<compile_context>
chip_gen: v6e
topology: v6e:2x2x1
jax: 0.10.0
libtpu: 0.0.40
codegen_flags: <defaults>
</compile_context>

<pallas_src>
import functools

import jax
import jax.numpy as jnp
from jax.experimental import pallas as pl
from jax.experimental.pallas import tpu as pltpu

# ---------------- model dimensions (PyTorch defaults) ----------------
NUM_LAYERS = 4
HIDDEN = 128
DIM_XYZ = 3 + 2 * 3 * 6          # 39
DIM_DIR = 3 + 2 * 3 * 4          # 27
DIM_IN = DIM_XYZ + DIM_DIR       # 66
DIM_EXPR = 76
DIM_LATENT = 32
N_XYZ_LAYERS = NUM_LAYERS - 1    # 3 hidden xyz layers, all Linear(128, 128)
DIM_DIRH = HIDDEN // 2           # 64


# ---------------------------- Pallas kernel ----------------------------
def _nerf_kernel(x_ref,
                 w1dv_ref, b1_ref,
                 wxyz_ref, bxyz_ref,
                 wfa_ref, bfeat_ref,
                 wdf_ref, bdir_ref,
                 wrgb4_ref, bout_ref,
                 out_ref):
    f32 = jnp.float32
    bf16 = jnp.bfloat16

    xb = x_ref[...]                      # (TM, 66) bf16

    # Fused layer1 + view-dir contribution: single (66, 192) MXU pass.
    #   cols   0:128 -> layer1 xyz part (view rows of the weight are zero)
    #   cols 128:192 -> layers_dir[0] view part (xyz rows of the weight zero)
    # expr / latent terms are row-invariant and already folded into b1.
    hv = jnp.dot(xb, w1dv_ref[...], preferred_element_type=f32)   # (TM, 192)
    h = hv[:, :HIDDEN] + b1_ref[...]                              # layer1 out
    v_add = hv[:, HIDDEN:] + bdir_ref[...]                        # dir bias folded

    # layers_xyz: 3 x (Linear(128,128) + relu). Skip-connection branch is dead
    # for the default config (see header note).
    for i in range(N_XYZ_LAYERS):
        h = jnp.maximum(
            jnp.dot(h.astype(bf16), wxyz_ref[i],
                    preferred_element_type=f32) + bxyz_ref[i],
            0.0)

    # Fused fc_feat + fc_alpha: one (128, 256) matmul.
    #   cols   0:128 -> fc_feat
    #   col  128+3   -> fc_alpha (other cols of the second half are zero)
    fa = jnp.dot(h.astype(bf16), wfa_ref[...], preferred_element_type=f32)
    feat = jnp.maximum(fa[:, :HIDDEN] + bfeat_ref[...], 0.0)
    alpha4 = fa[:, HIDDEN:HIDDEN + 4]    # (TM, 4): lanes 0..2 zero, lane 3 alpha

    # layers_dir[0]: Linear(128 + 27, 64) on cat(feat, view), + relu.
    # The view @ Wdv + bdir part is already in v_add.
    d = jnp.dot(feat.astype(bf16), wdf_ref[...], preferred_element_type=f32)
    d = jnp.maximum(d + v_add, 0.0)

    # Final cat(rgb, alpha):
    #   out[:, :3] = d @ Wrgb + brgb ; out[:, 3] = alpha + balpha
    out = jnp.dot(d.astype(bf16), wrgb4_ref[...], preferred_element_type=f32)
    out_ref[...] = out + alpha4 + bout_ref[...]


# ------------------------- one-time weight packing -------------------------
def pack_params(p):
    """Pack / pad / cast weights once per parameter set (hoisted out of the
    per-call path). Only b1 depends on expr / latent and is folded per call."""
    f32 = jnp.float32
    bf16 = jnp.bfloat16

    # Fused (66, 192) RHS: [ layer1_xyz | layers_dir[0]_view ], each half
    # zero-padded over the rows it does not use.
    w1dv = jnp.zeros((DIM_IN, HIDDEN + DIM_DIRH), f32)
    w1dv = w1dv.at[:DIM_XYZ, :HIDDEN].set(p["w1x"])
    w1dv = w1dv.at[DIM_XYZ:, HIDDEN:].set(p["wdv"])

    # Fused fc_feat (cols 0:128) + fc_alpha (col 131) -> (128, 256).
    wfa = jnp.zeros((HIDDEN, 2 * HIDDEN), f32)
    wfa = wfa.at[:, :HIDDEN].set(p["wfeat"])
    wfa = wfa.at[:, HIDDEN + 3:HIDDEN + 4].set(p["walpha"])

    # rgb head padded to 4 lanes (4th column zero so alpha can be added in).
    wrgb4 = jnp.concatenate([p["wrgb"], jnp.zeros((DIM_DIRH, 1), f32)], axis=1)
    bout = jnp.concatenate([p["brgb"], p["balpha"]], axis=1)       # (1, 4)

    return dict(
        w1dv=w1dv.astype(bf16),
        w1e=p["w1e"], w1l=p["w1l"], b1=p["b1"],        # kept f32 for the per-call fold
        wxyz=p["wxyz"].astype(bf16), bxyz=p["bxyz"],
        wfa=wfa.astype(bf16), bfeat=p["bfeat"],
        wdf=p["wdf"].astype(bf16), bdir=p["bdir"],
        wrgb4=wrgb4.astype(bf16), bout=bout,
    )


def _pick_tm(n_rows, tm_target):
    """Row-tile size: amortize per-grid-step overhead but keep >= 2 grid steps
    when there is enough work (v7x megacore), multiple of 16 (bf16 sublanes).
    tm_target=2048 keeps double-buffered tiles well under v5e's 16 MiB scoped
    VMEM default; raise vmem_limit_bytes before going higher."""
    tm = min(int(tm_target), int(n_rows))
    if n_rows >= 512:
        tm = min(tm, n_rows // 2)
    tm = max(16, (tm // 16) * 16)
    return tm


# ------------------------------ wrapper ------------------------------
@functools.partial(jax.jit, static_argnames=("tm_target",))
def forward_pallas(x, expr, latent, packed, *, tm_target=2048):
    f32 = jnp.float32
    bf16 = jnp.bfloat16
    N = x.shape[0]

    # Kernel consumes bf16 rays directly (ideally fed bf16 from upstream
    # positional encoding; cast once here otherwise).
    if x.dtype != bf16:
        x = x.astype(bf16)

    tm = _pick_tm(N, tm_target)
    grid = (pl.cdiv(N, tm),)             # partial last block handled by masking

    # Per-call fold: expr / latent contributions are row-invariant -> bias.
    b1_eff = (packed["b1"]
              + (expr.astype(f32) * (1.0 / 3.0)) @ packed["w1e"]
              + latent.astype(f32) @ packed["w1l"])

    weight_args = (packed["w1dv"], b1_eff,
                   packed["wxyz"], packed["bxyz"],
                   packed["wfa"], packed["bfeat"],
                   packed["wdf"], packed["bdir"],
                   packed["wrgb4"], packed["bout"])

    def full_spec(a):
        nd = a.ndim
        return pl.BlockSpec(a.shape, lambda i, nd=nd: (0,) * nd)

    in_specs = [pl.BlockSpec((tm, DIM_IN), lambda i: (i, 0))] + \
               [full_spec(a) for a in weight_args]

    # ~103K MACs per row; weights ~210 KB read once.
    weight_bytes = sum(int(a.size) * a.dtype.itemsize for a in weight_args)
    cost = pl.CostEstimate(
        flops=2 * 103_040 * int(N),
        transcendentals=0,
        bytes_accessed=int(N) * (DIM_IN * 2 + 4 * 4) + weight_bytes,
    )

    out = pl.pallas_call(
        _nerf_kernel,
        out_shape=jax.ShapeDtypeStruct((N, 4), jnp.float32),
        grid_spec=pltpu.PrefetchScalarGridSpec(
            num_scalar_prefetch=0,
            grid=grid,
            in_specs=in_specs,
            out_specs=pl.BlockSpec((tm, 4), lambda i: (i, 0)),
        ),
        compiler_params=pltpu.CompilerParams(
            dimension_semantics=("parallel",)),
        cost_estimate=cost,
    )(x, *weight_args)

    return out


# ------------------------- parameter creation -------------------------
def init_params(key):
    """Deterministic synthetic parameters (PyTorch-Linear-style uniform init)."""
    def linear(k, fan_in, fan_out):
        k1, k2 = jax.random.split(k)
        bound = 1.0 / float(fan_in) ** 0.5
        w = jax.random.uniform(k1, (fan_in, fan_out), jnp.float32, -bound, bound)
        b = jax.random.uniform(k2, (1, fan_out), jnp.float32, -bound, bound)
        return w, b

    keys = jax.random.split(key, 6)
    w1, b1 = linear(keys[0], DIM_XYZ + DIM_EXPR + DIM_LATENT, HIDDEN)
    w1x = w1[:DIM_XYZ]
    w1e = w1[DIM_XYZ:DIM_XYZ + DIM_EXPR]
    w1l = w1[DIM_XYZ + DIM_EXPR:]

    wxyz_l, bxyz_l = [], []
    for k in jax.random.split(keys[1], N_XYZ_LAYERS):
        w, b = linear(k, HIDDEN, HIDDEN)
        wxyz_l.append(w)
        bxyz_l.append(b)
    wxyz = jnp.stack(wxyz_l)          # (3, 128, 128)
    bxyz = jnp.stack(bxyz_l)          # (3, 1, 128)

    wfeat, bfeat = linear(keys[2], HIDDEN, HIDDEN)
    walpha, balpha = linear(keys[3], HIDDEN, 1)
    wdir, bdir = linear(keys[4], HIDDEN + DIM_DIR, DIM_DIRH)
    wdf, wdv = wdir[:HIDDEN], wdir[HIDDEN:]
    wrgb, brgb = linear(keys[5], DIM_DIRH, 3)

    return dict(w1x=w1x, w1e=w1e, w1l=w1l, b1=b1,
                wxyz=wxyz, bxyz=bxyz,
                wfeat=wfeat, bfeat=bfeat,
                walpha=walpha, balpha=balpha,
                wdf=wdf, wdv=wdv, bdir=bdir,
                wrgb=wrgb, brgb=brgb)


# --------------- plain-JAX reference (torch forward semantics) ---------------
def reference_forward(x, expr, latent, p):
    x = x.astype(jnp.float32)
    xyz, view = x[:, :DIM_XYZ], x[:, DIM_XYZ:]
    n = xyz.shape[0]
    lat = jnp.tile(latent, (n, 1))
    expr_enc = jnp.tile(expr * (1.0 / 3.0), (n, 1))
    w1 = jnp.concatenate([p["w1x"], p["w1e"], p["w1l"]], axis=0)
    h = jnp.concatenate([xyz, expr_enc, lat], axis=1) @ w1 + p["b1"]
    for i in range(N_XYZ_LAYERS):
        h = jax.nn.relu(h @ p["wxyz"][i] + p["bxyz"][i])
    feat = jax.nn.relu(h @ p["wfeat"] + p["bfeat"])
    alpha = h @ p["walpha"] + p["balpha"]
    wdir = jnp.concatenate([p["wdf"], p["wdv"]], axis=0)
    xd = jax.nn.relu(jnp.concatenate([feat, view], axis=-1) @ wdir + p["bdir"])
    rgb = xd @ p["wrgb"] + p["brgb"]
    return jnp.concatenate([rgb, alpha], axis=-1)


if __name__ == "__main__":
    key = jax.random.PRNGKey(0)
    kx, ke, kl, kp = jax.random.split(key, 4)

    N = 2048
    x = jax.random.normal(kx, (N, DIM_IN), jnp.float32)           # (2048, 66)
    expr = jax.random.normal(ke, (1, DIM_EXPR), jnp.float32)       # (1, 76)
    latent = jax.random.normal(kl, (1, DIM_LATENT), jnp.float32)   # (1, 32)
    params = init_params(kp)

    packed = pack_params(params)            # one-time packing (per param set)
    out = forward_pallas(x, expr, latent, packed)
    out = jax.block_until_ready(out)

    ref = reference_forward(x, expr, latent, params)
    assert out.shape == (N, 4), out.shape
    # bf16 MXU operands (incl. bf16 rays) with f32 accumulation -> looser tol.
    if not bool(jnp.allclose(out, ref, atol=5e-2, rtol=5e-2)):
        max_err = float(jnp.max(jnp.abs(out - ref)))
        raise RuntimeError(f"Pallas kernel output mismatch, max abs err={max_err}")
    print("KERNEL_OK")
</pallas_src>

<mosaic_0001>
module attributes {stable_mosaic.version = 11 : i64} {
  func.func @_nerf_kernel(%arg0: i32, %arg1: memref<1024x66xbf16, #tpu.memory_space<vmem>>, %arg2: memref<66x192xbf16, #tpu.memory_space<vmem>>, %arg3: memref<1x128xf32, #tpu.memory_space<vmem>>, %arg4: memref<3x128x128xbf16, #tpu.memory_space<vmem>>, %arg5: memref<3x1x128xf32, #tpu.memory_space<vmem>>, %arg6: memref<128x256xbf16, #tpu.memory_space<vmem>>, %arg7: memref<1x128xf32, #tpu.memory_space<vmem>>, %arg8: memref<128x64xbf16, #tpu.memory_space<vmem>>, %arg9: memref<1x64xf32, #tpu.memory_space<vmem>>, %arg10: memref<64x4xbf16, #tpu.memory_space<vmem>>, %arg11: memref<1x4xf32, #tpu.memory_space<vmem>>, %arg12: memref<1024x4xf32, #tpu.memory_space<vmem>>) attributes {dimension_semantics = [#tpu.dimension_semantics<parallel>], iteration_bounds = array<i64: 2>, scalar_prefetch = 0 : i64, scratch_operands = 0 : i64, tpu.core_type = #tpu.core_type<tc>, window_params = [{transform_indices = @transform_0, window_bounds = array<i64: 1024, 66>}, {pipeline_mode = #tpu.pipeline_mode<synchronous>, transform_indices = @transform_1, window_bounds = array<i64: 66, 192>}, {pipeline_mode = #tpu.pipeline_mode<synchronous>, transform_indices = @transform_2, window_bounds = array<i64: 1, 128>}, {pipeline_mode = #tpu.pipeline_mode<synchronous>, transform_indices = @transform_3, window_bounds = array<i64: 3, 128, 128>}, {pipeline_mode = #tpu.pipeline_mode<synchronous>, transform_indices = @transform_4, window_bounds = array<i64: 3, 1, 128>}, {pipeline_mode = #tpu.pipeline_mode<synchronous>, transform_indices = @transform_5, window_bounds = array<i64: 128, 256>}, {pipeline_mode = #tpu.pipeline_mode<synchronous>, transform_indices = @transform_6, window_bounds = array<i64: 1, 128>}, {pipeline_mode = #tpu.pipeline_mode<synchronous>, transform_indices = @transform_7, window_bounds = array<i64: 128, 64>}, {pipeline_mode = #tpu.pipeline_mode<synchronous>, transform_indices = @transform_8, window_bounds = array<i64: 1, 64>}, {pipeline_mode = #tpu.pipeline_mode<synchronous>, transform_indices = @transform_9, window_bounds = array<i64: 64, 4>}, {pipeline_mode = #tpu.pipeline_mode<synchronous>, transform_indices = @transform_10, window_bounds = array<i64: 1, 4>}, {transform_indices = @transform_11, window_bounds = array<i64: 1024, 4>}]} {
    %c0 = arith.constant 0 : index
    %c0_0 = arith.constant 0 : index
    %0 = vector.load %arg1[%c0, %c0_0] : memref<1024x66xbf16, #tpu.memory_space<vmem>>, vector<1024x66xbf16>
    %c0_1 = arith.constant 0 : index
    %c0_2 = arith.constant 0 : index
    %1 = vector.load %arg2[%c0_1, %c0_2] : memref<66x192xbf16, #tpu.memory_space<vmem>>, vector<66x192xbf16>
    %cst = arith.constant dense<0.000000e+00> : vector<1024x192xf32>
    %2 = tpu.matmul %0, %1, %cst {dimension_numbers = #tpu.dot_dimension_numbers<[1], [0], [0], [1], [0, 0, 1, 1], [], []>} : vector<1024x66xbf16>, vector<66x192xbf16>, vector<1024x192xf32> -> vector<1024x192xf32>
    %3 = vector.extract_strided_slice %2 {offsets = [0, 0], sizes = [1024, 128], strides = [1, 1]} : vector<1024x192xf32> to vector<1024x128xf32>
    %c0_3 = arith.constant 0 : index
    %c0_4 = arith.constant 0 : index
    %4 = vector.load %arg3[%c0_3, %c0_4] : memref<1x128xf32, #tpu.memory_space<vmem>>, vector<1x128xf32>
    %5 = vector.broadcast %4 : vector<1x128xf32> to vector<1024x128xf32>
    %6 = arith.addf %3, %5 : vector<1024x128xf32>
    %7 = vector.extract_strided_slice %2 {offsets = [0, 128], sizes = [1024, 64], strides = [1, 1]} : vector<1024x192xf32> to vector<1024x64xf32>
    %c0_5 = arith.constant 0 : index
    %c0_6 = arith.constant 0 : index
    %8 = vector.load %arg9[%c0_5, %c0_6] : memref<1x64xf32, #tpu.memory_space<vmem>>, vector<1x64xf32>
    %9 = vector.broadcast %8 : vector<1x64xf32> to vector<1024x64xf32>
    %10 = arith.addf %7, %9 : vector<1024x64xf32>
    %11 = arith.truncf %6 : vector<1024x128xf32> to vector<1024x128xbf16>
    %c0_7 = arith.constant 0 : index
    %c0_8 = arith.constant 0 : index
    %c0_9 = arith.constant 0 : index
    %12 = vector.load %arg4[%c0_7, %c0_8, %c0_9] : memref<3x128x128xbf16, #tpu.memory_space<vmem>>, vector<1x128x128xbf16>
    %13 = vector.shape_cast %12 : vector<1x128x128xbf16> to vector<128x128xbf16>
    %cst_10 = arith.constant dense<0.000000e+00> : vector<1024x128xf32>
    %14 = tpu.matmul %11, %13, %cst_10 {dimension_numbers = #tpu.dot_dimension_numbers<[1], [0], [0], [1], [0, 0, 1, 1], [], []>} : vector<1024x128xbf16>, vector<128x128xbf16>, vector<1024x128xf32> -> vector<1024x128xf32>
    %c0_11 = arith.constant 0 : index
    %c0_12 = arith.constant 0 : index
    %c0_13 = arith.constant 0 : index
    %15 = vector.load %arg5[%c0_11, %c0_12, %c0_13] : memref<3x1x128xf32, #tpu.memory_space<vmem>>, vector<1x1x128xf32>
    %16 = vector.shape_cast %15 : vector<1x1x128xf32> to vector<1x128xf32>
    %17 = vector.broadcast %16 : vector<1x128xf32> to vector<1024x128xf32>
    %18 = arith.addf %14, %17 : vector<1024x128xf32>
    %cst_14 = arith.constant 0.000000e+00 : f32
    %19 = vector.broadcast %cst_14 : f32 to vector<1024x128xf32>
    %20 = arith.maximumf %18, %19 : vector<1024x128xf32>
    %21 = arith.truncf %20 : vector<1024x128xf32> to vector<1024x128xbf16>
    %c1 = arith.constant 1 : index
    %c0_15 = arith.constant 0 : index
    %c0_16 = arith.constant 0 : index
    %22 = vector.load %arg4[%c1, %c0_15, %c0_16] : memref<3x128x128xbf16, #tpu.memory_space<vmem>>, vector<1x128x128xbf16>
    %23 = vector.shape_cast %22 : vector<1x128x128xbf16> to vector<128x128xbf16>
    %cst_17 = arith.constant dense<0.000000e+00> : vector<1024x128xf32>
    %24 = tpu.matmul %21, %23, %cst_17 {dimension_numbers = #tpu.dot_dimension_numbers<[1], [0], [0], [1], [0, 0, 1, 1], [], []>} : vector<1024x128xbf16>, vector<128x128xbf16>, vector<1024x128xf32> -> vector<1024x128xf32>
    %c1_18 = arith.constant 1 : index
    %c0_19 = arith.constant 0 : index
    %c0_20 = arith.constant 0 : index
    %25 = vector.load %arg5[%c1_18, %c0_19, %c0_20] : memref<3x1x128xf32, #tpu.memory_space<vmem>>, vector<1x1x128xf32>
    %26 = vector.shape_cast %25 : vector<1x1x128xf32> to vector<1x128xf32>
    %27 = vector.broadcast %26 : vector<1x128xf32> to vector<1024x128xf32>
    %28 = arith.addf %24, %27 : vector<1024x128xf32>
    %cst_21 = arith.constant 0.000000e+00 : f32
    %29 = vector.broadcast %cst_21 : f32 to vector<1024x128xf32>
    %30 = arith.maximumf %28, %29 : vector<1024x128xf32>
    %31 = arith.truncf %30 : vector<1024x128xf32> to vector<1024x128xbf16>
    %c2 = arith.constant 2 : index
    %c0_22 = arith.constant 0 : index
    %c0_23 = arith.constant 0 : index
    %32 = vector.load %arg4[%c2, %c0_22, %c0_23] : memref<3x128x128xbf16, #tpu.memory_space<vmem>>, vector<1x128x128xbf16>
    %33 = vector.shape_cast %32 : vector<1x128x128xbf16> to vector<128x128xbf16>
    %cst_24 = arith.constant dense<0.000000e+00> : vector<1024x128xf32>
    %34 = tpu.matmul %31, %33, %cst_24 {dimension_numbers = #tpu.dot_dimension_numbers<[1], [0], [0], [1], [0, 0, 1, 1], [], []>} : vector<1024x128xbf16>, vector<128x128xbf16>, vector<1024x128xf32> -> vector<1024x128xf32>
    %c2_25 = arith.constant 2 : index
    %c0_26 = arith.constant 0 : index
    %c0_27 = arith.constant 0 : index
    %35 = vector.load %arg5[%c2_25, %c0_26, %c0_27] : memref<3x1x128xf32, #tpu.memory_space<vmem>>, vector<1x1x128xf32>
    %36 = vector.shape_cast %35 : vector<1x1x128xf32> to vector<1x128xf32>
    %37 = vector.broadcast %36 : vector<1x128xf32> to vector<1024x128xf32>
    %38 = arith.addf %34, %37 : vector<1024x128xf32>
    %cst_28 = arith.constant 0.000000e+00 : f32
    %39 = vector.broadcast %cst_28 : f32 to vector<1024x128xf32>
    %40 = arith.maximumf %38, %39 : vector<1024x128xf32>
    %41 = arith.truncf %40 : vector<1024x128xf32> to vector<1024x128xbf16>
    %c0_29 = arith.constant 0 : index
    %c0_30 = arith.constant 0 : index
    %42 = vector.load %arg6[%c0_29, %c0_30] : memref<128x256xbf16, #tpu.memory_space<vmem>>, vector<128x256xbf16>
    %cst_31 = arith.constant dense<0.000000e+00> : vector<1024x256xf32>
    %43 = tpu.matmul %41, %42, %cst_31 {dimension_numbers = #tpu.dot_dimension_numbers<[1], [0], [0], [1], [0, 0, 1, 1], [], []>} : vector<1024x128xbf16>, vector<128x256xbf16>, vector<1024x256xf32> -> vector<1024x256xf32>
    %44 = vector.extract_strided_slice %43 {offsets = [0, 0], sizes = [1024, 128], strides = [1, 1]} : vector<1024x256xf32> to vector<1024x128xf32>
    %c0_32 = arith.constant 0 : index
    %c0_33 = arith.constant 0 : index
    %45 = vector.load %arg7[%c0_32, %c0_33] : memref<1x128xf32, #tpu.memory_space<vmem>>, vector<1x128xf32>
    %46 = vector.broadcast %45 : vector<1x128xf32> to vector<1024x128xf32>
    %47 = arith.addf %44, %46 : vector<1024x128xf32>
    %cst_34 = arith.constant 0.000000e+00 : f32
    %48 = vector.broadcast %cst_34 : f32 to vector<1024x128xf32>
    %49 = arith.maximumf %47, %48 : vector<1024x128xf32>
    %50 = vector.extract_strided_slice %43 {offsets = [0, 128], sizes = [1024, 4], strides = [1, 1]} : vector<1024x256xf32> to vector<1024x4xf32>
    %51 = arith.truncf %49 : vector<1024x128xf32> to vector<1024x128xbf16>
    %c0_35 = arith.constant 0 : index
    %c0_36 = arith.constant 0 : index
    %52 = vector.load %arg8[%c0_35, %c0_36] : memref<128x64xbf16, #tpu.memory_space<vmem>>, vector<128x64xbf16>
    %cst_37 = arith.constant dense<0.000000e+00> : vector<1024x64xf32>
    %53 = tpu.matmul %51, %52, %cst_37 {dimension_numbers = #tpu.dot_dimension_numbers<[1], [0], [0], [1], [0, 0, 1, 1], [], []>} : vector<1024x128xbf16>, vector<128x64xbf16>, vector<1024x64xf32> -> vector<1024x64xf32>
    %54 = arith.addf %53, %10 : vector<1024x64xf32>
    %cst_38 = arith.constant 0.000000e+00 : f32
    %55 = vector.broadcast %cst_38 : f32 to vector<1024x64xf32>
    %56 = arith.maximumf %54, %55 : vector<1024x64xf32>
    %57 = arith.truncf %56 : vector<1024x64xf32> to vector<1024x64xbf16>
    %c0_39 = arith.constant 0 : index
    %c0_40 = arith.constant 0 : index
    %58 = vector.load %arg10[%c0_39, %c0_40] : memref<64x4xbf16, #tpu.memory_space<vmem>>, vector<64x4xbf16>
    %cst_41 = arith.constant dense<0.000000e+00> : vector<1024x4xf32>
    %59 = tpu.matmul %57, %58, %cst_41 {dimension_numbers = #tpu.dot_dimension_numbers<[1], [0], [0], [1], [0, 0, 1, 1], [], []>} : vector<1024x64xbf16>, vector<64x4xbf16>, vector<1024x4xf32> -> vector<1024x4xf32>
    %60 = arith.addf %59, %50 : vector<1024x4xf32>
    %c0_42 = arith.constant 0 : index
    %c0_43 = arith.constant 0 : index
    %61 = vector.load %arg11[%c0_42, %c0_43] : memref<1x4xf32, #tpu.memory_space<vmem>>, vector<1x4xf32>
    %62 = vector.broadcast %61 : vector<1x4xf32> to vector<1024x4xf32>
    %63 = arith.addf %60, %62 : vector<1024x4xf32>
    %c0_44 = arith.constant 0 : index
    %c0_45 = arith.constant 0 : index
    %64 = vector.load %arg12[%c0_44, %c0_45] : memref<1024x4xf32, #tpu.memory_space<vmem>>, vector<1024x4xf32>
    tpu.vector_store %arg12[%c0_44, %c0_45], %63 {strides = array<i32>} : memref<1024x4xf32, #tpu.memory_space<vmem>>, vector<1024x4xf32>,
    return
  }
  func.func @transform_0(%arg0: i32) -> (i32, i32) {
    %c0_i32 = arith.constant 0 : i32
    %c0_i32_0 = arith.constant 0 : i32
    return %arg0, %c0_i32 : i32, i32
  }
  func.func @transform_1(%arg0: i32) -> (i32, i32) {
    %c0_i32 = arith.constant 0 : i32
    %c0_i32_0 = arith.constant 0 : i32
    %c0_i32_1 = arith.constant 0 : i32
    return %c0_i32, %c0_i32_0 : i32, i32
  }
  func.func @transform_2(%arg0: i32) -> (i32, i32) {
    %c0_i32 = arith.constant 0 : i32
    %c0_i32_0 = arith.constant 0 : i32
    %c0_i32_1 = arith.constant 0 : i32
    return %c0_i32, %c0_i32_0 : i32, i32
  }
  func.func @transform_3(%arg0: i32) -> (i32, i32, i32) {
    %c0_i32 = arith.constant 0 : i32
    %c0_i32_0 = arith.constant 0 : i32
    %c0_i32_1 = arith.constant 0 : i32
    %c0_i32_2 = arith.constant 0 : i32
    return %c0_i32, %c0_i32_0, %c0_i32_1 : i32, i32, i32
  }
  func.func @transform_4(%arg0: i32) -> (i32, i32, i32) {
    %c0_i32 = arith.constant 0 : i32
    %c0_i32_0 = arith.constant 0 : i32
    %c0_i32_1 = arith.constant 0 : i32
    %c0_i32_2 = arith.constant 0 : i32
    return %c0_i32, %c0_i32_0, %c0_i32_1 : i32, i32, i32
  }
  func.func @transform_5(%arg0: i32) -> (i32, i32) {
    %c0_i32 = arith.constant 0 : i32
    %c0_i32_0 = arith.constant 0 : i32
    %c0_i32_1 = arith.constant 0 : i32
    return %c0_i32, %c0_i32_0 : i32, i32
  }
  func.func @transform_6(%arg0: i32) -> (i32, i32) {
    %c0_i32 = arith.constant 0 : i32
    %c0_i32_0 = arith.constant 0 : i32
    %c0_i32_1 = arith.constant 0 : i32
    return %c0_i32, %c0_i32_0 : i32, i32
  }
  func.func @transform_7(%arg0: i32) -> (i32, i32) {
    %c0_i32 = arith.constant 0 : i32
    %c0_i32_0 = arith.constant 0 : i32
    %c0_i32_1 = arith.constant 0 : i32
    return %c0_i32, %c0_i32_0 : i32, i32
  }
  func.func @transform_8(%arg0: i32) -> (i32, i32) {
    %c0_i32 = arith.constant 0 : i32
    %c0_i32_0 = arith.constant 0 : i32
    %c0_i32_1 = arith.constant 0 : i32
    return %c0_i32, %c0_i32_0 : i32, i32
  }
  func.func @transform_9(%arg0: i32) -> (i32, i32) {
    %c0_i32 = arith.constant 0 : i32
    %c0_i32_0 = arith.constant 0 : i32
    %c0_i32_1 = arith.constant 0 : i32
    return %c0_i32, %c0_i32_0 : i32, i32
  }
  func.func @transform_10(%arg0: i32) -> (i32, i32) {
    %c0_i32 = arith.constant 0 : i32
    %c0_i32_0 = arith.constant 0 : i32
    %c0_i32_1 = arith.constant 0 : i32
    return %c0_i32, %c0_i32_0 : i32, i32
  }
  func.func @transform_11(%arg0: i32) -> (i32, i32) {
    %c0_i32 = arith.constant 0 : i32
    %c0_i32_0 = arith.constant 0 : i32
    return %arg0, %c0_i32 : i32, i32
  }
}

</mosaic_0001>

<bundles_post_ra>
// kernel: forward_pallas.1
= control target key start
LH: loop header
LB: loop body
LE: loop exit
PB: predicated region body
PF: predicated region fallthrough
CT: control target
= control target key end

     0   :  { %s9125_s17 = smov 0   ;;  %s12850_s0 = inlined_call_operand.vmem [shape: bf16[2048,66], index: 0, kind: input, shape index: {}]   ;;  %s12851_s1 = inlined_call_operand.vmem [shape: bf16[66,192], index: 1, kind: input, shape index: {}]   ;;  %s12852_s2 = inlined_call_operand.vmem [shape: f32[1,128], index: 2, kind: input, shape index: {}]   ;;  %s12853_s3 = inlined_call_operand.vmem [shape: bf16[3,128,128], index: 3, kind: input, shape index: {}]   ;;  %s12854_s4 = inlined_call_operand.vmem [shape: f32[3,1,128], index: 4, kind: input, shape index: {}]   ;;  %s12855_s5 = inlined_call_operand.vmem [shape: bf16[128,256], index: 5, kind: input, shape index: {}]   ;;  %s12856_s6 = inlined_call_operand.vmem [shape: f32[1,128], index: 6, kind: input, shape index: {}]   ;;  %s12857_s7 = inlined_call_operand.vmem [shape: bf16[128,64], index: 7, kind: input, shape index: {}]   ;;  %s12858_s8 = inlined_call_operand.vmem [shape: f32[1,64], index: 8, kind: input, shape index: {}]   ;;  %s12859_s9 = inlined_call_operand.vmem [shape: bf16[64,4], index: 9, kind: input, shape index: {}]   ;;  %s12860_s10 = inlined_call_operand.vmem [shape: f32[1,4], index: 10, kind: input, shape index: {}]   ;;  %s12861_s11 = inlined_call_operand.vmem [shape: f32[2048,4], index: 11, kind: output, shape index: {}]  }
   0x1 LB: > { %s7515_s18 = sadd.s32 4294967295, %s9062_s17   ;;  %p7519_p0 = scmp.ge.s32.totalorder %s9062_s17, 1  ;;  %s9062_s17 = sphi %s9125_s17, %s21_s17  }
   0x2   : > { %p338_p1 = scmp.lt.s32.totalorder %s9062_s17, 3 }
   0x4   : > { %p339_p2 = pnand %p7519_p0, %p338_p1 }
   0x6   : > { %342 = sbr.rel (%p339_p2) target bundleno = 2261 (0x8d5), region = 64 }
   0xb   : > { %v527_v0 = vld [vmem:[%s12851_s1 + $0x40] sm:$0x11]  ;;  %vm1086_vm0 = vcmask 1040384   ;;  %v8911_v3 = vld [vmem:[%s12851_s1 + $0x34] ss:$8 sps:$4 sm:$0xff]   ;;  %v12862_v4 = vmov 0  }
   0xc   : > { %v7597_v1 = vcombine.high %v527_v0, %v527_v0  ;;  %v7596_v2 = vcombine.low %v527_v0, %v527_v0  ;;  %1125 = vmatprep.mubr.bf16.mxu0 %v12862_v4  ;;  %s7520_s23 = sshll.u32 %s7515_s18, 7  ;;  %1605 = vmatprep.mubr.bf16.mxu1 %v12862_v4  ;;  %v8913_v6 = vld [vmem:[%s12851_s1 + $0x30] ss:$8 sps:$4 sm:$0xff]   ;;  %v8914_v7 = vld [vmem:[%s12851_s1 + $0x24] ss:$8 sps:$4 sm:$0xff]   ;;  %vm893_vm1 = vcmask 539648  }
   0xd   : > { %p379_p3 = scmp.lt.s32.totalorder %s7520_s23, 255  ;;  %v8916_v8 = vld [vmem:[%s12851_s1 + $0x20] ss:$8 sps:$4 sm:$0xff]   ;;  %v8917_v9 = vld [vmem:[%s12851_s1 + $0x14] ss:$8 sps:$4 sm:$0xff]   ;;  %vm6457_vm2 = vcmask 523264  }
   0xe   : > { %7598 = vmatprep.subr.msk.bf16.mxu0 %vm1086_vm0, %v7597_v1  ;;  %v1088_v5 = vsel %vm1086_vm0, %v7596_v2, 0  ;;  %8890 = vmatprep.subr.msk.bf16.mxu1 %vm1086_vm0, %v7597_v1  ;;  %v8919_v10 = vld [vmem:[%s12851_s1 + $0x10] ss:$8 sps:$4 sm:$0xff]   ;;  %v8920_v11 = vld [vmem:[%s12851_s1 + $0x4] ss:$8 sps:$4 sm:$0xff]   ;;  %vm7330_vm3 = vcmask 31744  }
   0xf   : > { %1100 = vmatpush1.bf16.msra.mxu0 %v1088_v5  ;;  %s13431_s23 = smov (!%p379_p3, %s7520_s23), 255  ;;  %8895 = vmatpush1.bf16.msra.mxu1 %v1088_v5  ;;  %v8922_v12 = vld [vmem:[%s12851_s1] ss:$8 sps:$4 sm:$0xff]   ;;  %v8959_v27 = vld [vmem:[%s12853_s3 + $0x38] sm:$0xff]   ;;  %v8960_v28 = vld [vmem:[%s12853_s3 + $0x30] sm:$0xff]  }
  0x10   : > { %1101 = vmatprep.subr.bf16.mxu0 %v8911_v3  ;;  %8891 = vmatprep.subr.bf16.mxu1 %v8911_v3  ;;  %s7521_s28 = sshll.u32 %s13431_s23, 2  ;;  %v8963_v31 = vld [vmem:[%s12853_s3 + $0x28] sm:$0xff]   ;;  %v8964_v32 = vld [vmem:[%s12853_s3 + $0x20] sm:$0xff]   ;;  %v8967_v35 = vld [vmem:[%s12853_s3 + $0x18] sm:$0xff]   ;;  %s7523_s21 = sshll.u32 %s13431_s23, 3 }
  0x11   : > { %s9153_s12 = scalar_lea.vmem %s12850_s0, %s7521_s28  ;;  %v8968_v38 = vld [vmem:[%s12853_s3 + $0x10] sm:$0xff]   ;;  %v8971_v39 = vld [vmem:[%s12853_s3 + $0x8] sm:$0xff]   ;;  %v8972_v40 = vld [vmem:[%s12853_s3] sm:$0xff]   ;;  %s12251_s23 = scalar_lea.vmem %s12861_s11, %s7523_s21 }
  0x12   : > { %v8923_v13 = vld [vmem:[%s9153_s12] sm:$0xff]   ;;  %v8924_v15 = vld [vmem:[%s9153_s12 + $0x8] sm:$0xff]   ;;  %v8925_v17 = vld [vmem:[%s9153_s12 + $0x10] sm:$0xff]  }
  0x13   : > { %1102 = vmatpush1.bf16.msra.mxu0 %v8913_v6  ;;  %8896 = vmatpush1.bf16.msra.mxu1 %v8913_v6  ;;  %v8934_v14 = vld [vmem:[%s9153_s12 + $0x180] sm:$0xff]   ;;  %v8936_v16 = vld [vmem:[%s9153_s12 + $0x188] sm:$0xff]   ;;  %v8938_v18 = vld [vmem:[%s9153_s12 + $0x190] sm:$0xff]  }
  0x14   : > { %1103 = vmatprep.subr.bf16.mxu0 %v8914_v7  ;;  %8892 = vmatprep.subr.bf16.mxu1 %v8914_v7  ;;  %v8926_v19 = vld [vmem:[%s9153_s12 + $0x18] sm:$0xff]   ;;  %v8927_v21 = vld [vmem:[%s9153_s12 + $0x20] sm:$0xff]   ;;  %v8928_v23 = vld [vmem:[%s9153_s12 + $0x28] sm:$0xff]  }
  0x15   : > { %v8940_v20 = vld [vmem:[%s9153_s12 + $0x198] sm:$0xff]   ;;  %v8942_v22 = vld [vmem:[%s9153_s12 + $0x1a0] sm:$0xff]   ;;  %v8944_v24 = vld [vmem:[%s9153_s12 + $0x1a8] sm:$0xff]  }
  0x16   : > { %v8929_v25 = vld [vmem:[%s9153_s12 + $0x30] sm:$0xff]   ;;  %v8930_v29 = vld [vmem:[%s9153_s12 + $0x38] sm:$0xff]   ;;  %v8931_v33 = vld [vmem:[%s9153_s12 + $0x40] sm:$0xff]  }
  0x17   : > { %1104 = vmatpush1.bf16.msra.mxu0 %v8916_v8  ;;  %8897 = vmatpush1.bf16.msra.mxu1 %v8916_v8  ;;  %v8946_v26 = vld [vmem:[%s9153_s12 + $0x1b0] sm:$0xff]   ;;  %v8948_v30 = vld [vmem:[%s9153_s12 + $0x1b8] sm:$0xff]   ;;  %v8950_v34 = vld [vmem:[%s9153_s12 + $0x1c0] sm:$0xff]  }
  0x18   : > { %1105 = vmatprep.subr.bf16.mxu0 %v8917_v9  ;;  %8893 = vmatprep.subr.bf16.mxu1 %v8917_v9  ;;  %v8932_v36 = vld [vmem:[%s9153_s12 + $0x48] sm:$0xff]   ;;  %v8933_v41 = vld [vmem:[%s9153_s12 + $0x50] sm:$0xff]   ;;  %v8935_v43 = vld [vmem:[%s9153_s12 + $0x58] sm:$0xff]  }
  0x19   : > { %v8952_v37 = vld [vmem:[%s9153_s12 + $0x1c8] sm:$0xff]   ;;  %v8954_v42 = vld [vmem:[%s9153_s12 + $0x1d0] sm:$0xff]   ;;  %v8956_v44 = vld [vmem:[%s9153_s12 + $0x1d8] sm:$0xff]  }
  0x1a   : > { %v8937_v45 = vld [vmem:[%s9153_s12 + $0x60] sm:$0xff]   ;;  %v8939_v47 = vld [vmem:[%s9153_s12 + $0x68] sm:$0xff]   ;;  %v8941_v49 = vld [vmem:[%s9153_s12 + $0x70] sm:$0xff]  }
  0x1b   : > { %1106 = vmatpush1.bf16.msra.mxu0 %v8919_v10  ;;  %8898 = vmatpush1.bf16.msra.mxu1 %v8919_v10  ;;  %v8958_v46 = vld [vmem:[%s9153_s12 + $0x1e0] sm:$0xff]   ;;  %v8962_v48 = vld [vmem:[%s9153_s12 + $0x1e8] sm:$0xff]   ;;  %v8966_v50 = vld [vmem:[%s9153_s12 + $0x1f0] sm:$0xff]  }
  0x1c   : > { %1107 = vmatprep.subr.bf16.mxu0 %v8920_v11  ;;  %8894 = vmatprep.subr.bf16.mxu1 %v8920_v11  ;;  %v8943_v51 = vld [vmem:[%s9153_s12 + $0x78] sm:$0xff]   ;;  %v8945_v53 = vld [vmem:[%s9153_s12 + $0x80] sm:$0xff]   ;;  %v8947_v54 = vld [vmem:[%s9153_s12 + $0x88] sm:$0xff]  }
  0x1d   : > { %v8970_v52 = vld [vmem:[%s9153_s12 + $0x1f8] sm:$0xff]   ;;  %v8949_v55 = vld [vmem:[%s9153_s12 + $0x90] sm:$0xff]   ;;  %v8953_v57 = vld [vmem:[%s9153_s12 + $0xa0] sm:$0xff]  }
  0x1e   : > { %v8951_v56 = vld [vmem:[%s9153_s12 + $0x98] sm:$0xff]   ;;  %v8955_v58 = vld [vmem:[%s9153_s12 + $0xa8] sm:$0xff]   ;;  %v8957_v59 = vld [vmem:[%s9153_s12 + $0xb0] sm:$0xff]  }
  0x1f   : > { %1108 = vmatpush1.bf16.msra.mxu0 %v8922_v12  ;;  %8899 = vmatpush1.bf16.msra.mxu1 %v8922_v12  ;;  %v8961_v60 = vld [vmem:[%s9153_s12 + $0xb8] sm:$0xff]   ;;  %v8965_v61 = vld [vmem:[%s9153_s12 + $0xc0] sm:$0xff]   ;;  %v8969_v6 = vld [vmem:[%s9153_s12 + $0xc8] sm:$0xff]  }
  0x20   : > { %8178 = vmatprep.subr.bf16.mxu1 %v8959_v27  ;;  %v9319_v0 = vld [vmem:[%s12852_s2] ss:$0 sm:$0xff] }
  0x22   : > { %7599 = vmatmul.mubr.msk.bf16.vlgmr.msra.gmra.mxu0 %vm893_vm1, %v8923_v13  ;;  %7647 = vmatmul.mubr.msk.bf16.vlgmr.msra.gmra.mxu1 %vm893_vm1, %v8934_v14 }
  0x23   : > { %1135 = vmatprep.mubr.bf16.mxu0 %v12862_v4  ;;  %1615 = vmatprep.mubr.bf16.mxu1 %v12862_v4 }
  0x24   : > { %8179 = vmatpush3.bf16.msra.mxu1 %v8959_v27 }
  0x25   : > { %8180 = vmatprep.subr.bf16.mxu1 %v8960_v28 }
  0x28   : > { %8181 = vmatpush3.bf16.msra.mxu1 %v8960_v28 }
  0x29   : > { %8182 = vmatprep.subr.bf16.mxu1 %v8963_v31 }
  0x2a   : > { %7600 = vmatmul.mubr.msk.bf16.gmra.mxu0 %vm893_vm1, %v8924_v15  ;;  %7648 = vmatmul.mubr.msk.bf16.gmra.mxu1 %vm893_vm1, %v8936_v16 }
  0x2b   : > { %1145 = vmatprep.mubr.bf16.mxu0 %v12862_v4  ;;  %1625 = vmatprep.mubr.bf16.mxu1 %v12862_v4 }
  0x2c   : > { %8183 = vmatpush3.bf16.msra.mxu1 %v8963_v31 }
  0x2d   : > { %8184 = vmatprep.subr.bf16.mxu1 %v8964_v32 }
  0x30   : > { %8185 = vmatpush3.bf16.msra.mxu1 %v8964_v32 }
  0x31   : > { %8186 = vmatprep.subr.bf16.mxu1 %v8967_v35 }
  0x32   : > { %7601 = vmatmul.mubr.msk.bf16.gmra.mxu0 %vm893_vm1, %v8925_v17  ;;  %7649 = vmatmul.mubr.msk.bf16.gmra.mxu1 %vm893_vm1, %v8938_v18 }
  0x33   : > { %1155 = vmatprep.mubr.bf16.mxu0 %v12862_v4  ;;  %1635 = vmatprep.mubr.bf16.mxu1 %v12862_v4 }
  0x34   : > { %8187 = vmatpush3.bf16.msra.mxu1 %v8967_v35 }
  0x35   : > { %8188 = vmatprep.subr.bf16.mxu1 %v8968_v38 }
  0x38   : > { %8189 = vmatpush3.bf16.msra.mxu1 %v8968_v38 }
  0x39   : > { %8190 = vmatprep.subr.bf16.mxu1 %v8971_v39 }
  0x3a   : > { %7602 = vmatmul.mubr.msk.bf16.gmra.mxu0 %vm893_vm1, %v8926_v19  ;;  %7650 = vmatmul.mubr.msk.bf16.gmra.mxu1 %vm893_vm1, %v8940_v20 }
  0x3b   : > { %1165 = vmatprep.mubr.bf16.mxu0 %v12862_v4  ;;  %1645 = vmatprep.mubr.bf16.mxu1 %v12862_v4 }
  0x3c   : > { %8191 = vmatpush3.bf16.msra.mxu1 %v8971_v39 }
  0x3d   : > { %8192 = vmatprep.subr.bf16.mxu1 %v8972_v40 }
  0x40   : > { %8193 = vmatpush3.bf16.msra.mxu1 %v8972_v40 }
  0x42   : > { %7603 = vmatmul.mubr.msk.bf16.gmra.mxu0 %vm893_vm1, %v8927_v21  ;;  %7651 = vmatmul.mubr.msk.bf16.gmra.mxu1 %vm893_vm1, %v8942_v22  ;;  %v8973_v21 = vld [vmem:[%s9153_s12 + $0xd0] sm:$0xff]  }
  0x43   : > { %1175 = vmatprep.mubr.bf16.mxu0 %v12862_v4  ;;  %1655 = vmatprep.mubr.bf16.mxu1 %v12862_v4 }
  0x4a   : > { %7604 = vmatmul.mubr.msk.bf16.gmra.mxu0 %vm893_vm1, %v8928_v23  ;;  %7652 = vmatmul.mubr.msk.bf16.gmra.mxu1 %vm893_vm1, %v8944_v24 }
  0x4b   : > { %1185 = vmatprep.mubr.bf16.mxu0 %v12862_v4  ;;  %1665 = vmatprep.mubr.bf16.mxu1 %v12862_v4 }
  0x52   : > { %7605 = vmatmul.mubr.msk.bf16.gmra.mxu0 %vm893_vm1, %v8929_v25  ;;  %7653 = vmatmul.mubr.msk.bf16.gmra.mxu1 %vm893_vm1, %v8946_v26 }
  0x53   : > { %1195 = vmatprep.mubr.bf16.mxu0 %v12862_v4  ;;  %1675 = vmatprep.mubr.bf16.mxu1 %v12862_v4 }
  0x5a   : > { %7606 = vmatmul.mubr.msk.bf16.gmra.mxu0 %vm893_vm1, %v8930_v29  ;;  %7654 = vmatmul.mubr.msk.bf16.gmra.mxu1 %vm893_vm1, %v8948_v30 }
  0x5b   : > { %1205 = vmatprep.mubr.bf16.mxu0 %v12862_v4  ;;  %1685 = vmatprep.mubr.bf16.mxu1 %v12862_v4 }
  0x62   : > { %7607 = vmatmul.mubr.msk.bf16.gmra.mxu0 %vm893_vm1, %v8931_v33  ;;  %7655 = vmatmul.mubr.msk.bf16.gmra.mxu1 %vm893_vm1, %v8950_v34 }
  0x63   : > { %1215 = vmatprep.mubr.bf16.mxu0 %v12862_v4  ;;  %1695 = vmatprep.mubr.bf16.mxu1 %v12862_v4 }
  0x6a   : > { %7608 = vmatmul.mubr.msk.bf16.gmra.mxu0 %vm893_vm1, %v8932_v36  ;;  %7656 = vmatmul.mubr.msk.bf16.gmra.mxu1 %vm893_vm1, %v8952_v37  ;;  %v8974_v36 = vld [vmem:[%s9153_s12 + $0xd8] sm:$0xff]  }
  0x6b   : > { %1225 = vmatprep.mubr.bf16.mxu0 %v12862_v4  ;;  %1705 = vmatprep.mubr.bf16.mxu1 %v12862_v4 }
  0x72   : > { %7609 = vmatmul.mubr.msk.bf16.gmra.mxu0 %vm893_vm1, %v8933_v41  ;;  %7657 = vmatmul.mubr.msk.bf16.gmra.mxu1 %vm893_vm1, %v8954_v42 }
  0x73   : > { %1235 = vmatprep.mubr.bf16.mxu0 %v12862_v4  ;;  %1715 = vmatprep.mubr.bf16.mxu1 %v12862_v4 }
  0x7a   : > { %7610 = vmatmul.mubr.msk.bf16.gmra.mxu0 %vm893_vm1, %v8935_v43  ;;  %7658 = vmatmul.mubr.msk.bf16.gmra.mxu1 %vm893_vm1, %v8956_v44  ;;  %v8980_v44 = vld [vmem:[%s9153_s12 + $0x108] sm:$0xff]  }
  0x7b   : > { %1245 = vmatprep.mubr.bf16.mxu0 %v12862_v4  ;;  %1725 = vmatprep.mubr.bf16.mxu1 %v12862_v4 }
  0x82   : > { %7611 = vmatmul.mubr.msk.bf16.gmra.mxu0 %vm893_vm1, %v8937_v45  ;;  %7659 = vmatmul.mubr.msk.bf16.gmra.mxu1 %vm893_vm1, %v8958_v46 }
  0x83   : > { %1255 = vmatprep.mubr.bf16.mxu0 %v12862_v4  ;;  %1735 = vmatprep.mubr.bf16.mxu1 %v12862_v4 }
  0x8a   : > { %7612 = vmatmul.mubr.msk.bf16.gmra.mxu0 %vm893_vm1, %v8939_v47  ;;  %7660 = vmatmul.mubr.msk.bf16.gmra.mxu1 %vm893_vm1, %v8962_v48 }
  0x8b   : > { %1265 = vmatprep.mubr.bf16.mxu0 %v12862_v4  ;;  %1745 = vmatprep.mubr.bf16.mxu1 %v12862_v4 }
  0x92   : > { %7613 = vmatmul.mubr.msk.bf16.gmra.mxu0 %vm893_vm1, %v8941_v49  ;;  %7661 = vmatmul.mubr.msk.bf16.gmra.mxu1 %vm893_vm1, %v8966_v50 }
  0x93   : > { %1275 = vmatprep.mubr.bf16.mxu0 %v12862_v4  ;;  %1755 = vmatprep.mubr.bf16.mxu1 %v12862_v4 }
  0x9a   : > { %7614 = vmatmul.mubr.msk.bf16.gmra.mxu0 %vm893_vm1, %v8943_v51  ;;  %7662 = vmatmul.mubr.msk.bf16.gmra.mxu1 %vm893_vm1, %v8970_v52  ;;  %v8975_v51 = vld [vmem:[%s9153_s12 + $0xe0] sm:$0xff]  }
  0x9b   : > { %1285 = vmatprep.mubr.bf16.mxu0 %v12862_v4 }
  0xa2   : > { %7615 = vmatmul.mubr.msk.bf16.gmra.mxu0 %vm893_vm1, %v8945_v53 }
  0xa3   : > { %1295 = vmatprep.mubr.bf16.mxu0 %v12862_v4 }
  0xaa   : > { %7616 = vmatmul.mubr.msk.bf16.gmra.mxu0 %vm893_vm1, %v8947_v54 }
  0xab   : > { %1305 = vmatprep.mubr.bf16.mxu0 %v12862_v4 }
  0xb2   : > { %7617 = vmatmul.mubr.msk.bf16.gmra.mxu0 %vm893_vm1, %v8949_v55 }
  0xb3   : > { %1315 = vmatprep.mubr.bf16.mxu0 %v12862_v4 }
  0xba   : > { %7618 = vmatmul.mubr.msk.bf16.gmra.mxu0 %vm893_vm1, %v8951_v56 }
  0xbb   : > { %1325 = vmatprep.mubr.bf16.mxu0 %v12862_v4 }
  0xc2   : > { %7619 = vmatmul.mubr.msk.bf16.gmra.mxu0 %vm893_vm1, %v8953_v57 }
  0xc3   : > { %1335 = vmatprep.mubr.bf16.mxu0 %v12862_v4 }
  0xca   : > { %7620 = vmatmul.mubr.msk.bf16.gmra.mxu0 %vm893_vm1, %v8955_v58 }
  0xcb   : > { %1345 = vmatprep.mubr.bf16.mxu0 %v12862_v4 }
  0xd2   : > { %7621 = vmatmul.mubr.msk.bf16.gmra.mxu0 %vm893_vm1, %v8957_v59 }
  0xd3   : > { %1355 = vmatprep.mubr.bf16.mxu0 %v12862_v4 }
  0xda   : > { %7622 = vmatmul.mubr.msk.bf16.gmra.mxu0 %vm893_vm1, %v8961_v60 }
  0xdb   : > { %1365 = vmatprep.mubr.bf16.mxu0 %v12862_v4 }
  0xe2   : > { %v1127_v62 = vpop.f32.mrf.mxu0  ;;  %7623 = vmatmul.mubr.msk.bf16.gmra.mxu0 %vm893_vm1, %v8965_v61  ;;  %v1607_v63 = vpop.f32.mrf.mxu1 }
  0xe3   : > { %1375 = vmatprep.mubr.bf16.mxu0 %v12862_v4  ;;  %v9326_v3 = vadd.f32 %v9319_v0, %v1607_v63  ;;  %v1773_v8 = vadd.f32 %v9319_v0, %v1127_v62 }
  0xe4   : > { %v9321_v1 = vpop.f32.mrf.mxu0  ;;  %v9323_v2 = vpop.f32.mrf.mxu1 }
  0xe5   : > { %12865 = vst [vmem:[#allocation2_spill] sm:$0xff] %v9321_v1  ;;  %12866 = vst [vmem:[#allocation3_spill] sm:$0xff] %v9323_v2 }
  0xe6   : > { %v1131_v5 = vpop.f32.mrf.mxu0  ;;  %v1611_v7 = vpop.f32.mrf.mxu1 }
  0xe7   : > { %v1774_v9 = vadd.f32 %v9319_v0, %v1131_v5  ;;  %v9332_v10 = vadd.f32 %v9319_v0, %v1611_v7  ;;  %v8976_v7 = vld [vmem:[%s9153_s12 + $0xe8] sm:$0xff]  }
  0xe8   : > { %v9334_v11 = vpop.f32.mrf.mxu0  ;;  %v9336_v12 = vpop.f32.mrf.mxu1 }
  0xe9   : > { %12867 = vst [vmem:[#allocation4_spill] sm:$0xff] %v9334_v11  ;;  %12868 = vst [vmem:[#allocation5_spill] sm:$0xff] %v9336_v12  ;;  %v2036_v13 = vpack.c.bf16 %v1774_v9, %v1773_v8 }
  0xea   : > { %v1137_v15 = vpop.f32.mrf.mxu0  ;;  %7624 = vmatmul.mubr.msk.bf16.gmra.mxu0 %vm893_vm1, %v8969_v6  ;;  %v1617_v16 = vpop.f32.mrf.mxu1 }
  0xeb   : > { %8194 = vmatprep.mubr.bf16.mxu1 %v2036_v13  ;;  %1385 = vmatprep.mubr.bf16.mxu0 %v12862_v4  ;;  %v9347_v19 = vadd.f32 %v9319_v0, %v1617_v16  ;;  %v1775_v23 = vadd.f32 %v9319_v0, %v1137_v15 }
  0xec   : > { %v9342_v17 = vpop.f32.mrf.mxu0  ;;  %v9344_v18 = vpop.f32.mrf.mxu1 }
  0xed   : > { %12869 = vst [vmem:[#allocation6_spill] sm:$0xff] %v9342_v17  ;;  %12870 = vst [vmem:[#allocation7_spill] sm:$0xff] %v9344_v18 }
  0xee   : > { %v1141_v20 = vpop.f32.mrf.mxu0  ;;  %v1621_v22 = vpop.f32.mrf.mxu1 }
  0xef   : > { %v1776_v24 = vadd.f32 %v9319_v0, %v1141_v20  ;;  %v9353_v25 = vadd.f32 %v9319_v0, %v1621_v22 }
  0xf0   : > { %v9355_v26 = vpop.f32.mrf.mxu0  ;;  %v9357_v27 = vpop.f32.mrf.mxu1 }
  0xf1   : > { %12871 = vst [vmem:[#allocation8_spill] sm:$0xff] %v9355_v26  ;;  %12872 = vst [vmem:[#allocation9_spill] sm:$0xff] %v9357_v27  ;;  %v2037_v28 = vpack.c.bf16 %v1776_v24, %v1775_v23 }
  0xf2   : > { %v1147_v30 = vpop.f32.mrf.mxu0  ;;  %7625 = vmatmul.mubr.msk.bf16.gmra.mxu0 %vm893_vm1, %v8973_v21  ;;  %v1627_v31 = vpop.f32.mrf.mxu1 }
  0xf3   : > { %8195 = vmatmul.mubr.bf16.vlgmr.msra.gmra.mxu1 %v2037_v28  ;;  %1395 = vmatprep.mubr.bf16.mxu0 %v12862_v4  ;;  %v9368_v34 = vadd.f32 %v9319_v0, %v1627_v31  ;;  %v1777_v38 = vadd.f32 %v9319_v0, %v1147_v30 }
  0xf4   : > { %v9363_v32 = vpop.f32.mrf.mxu0  ;;  %v9365_v33 = vpop.f32.mrf.mxu1 }
  0xf5   : > { %12873 = vst [vmem:[#allocation10_spill] sm:$0xff] %v9363_v32  ;;  %12874 = vst [vmem:[#allocation11_spill] sm:$0xff] %v9365_v33 }
  0xf6   : > { %v1151_v35 = vpop.f32.mrf.mxu0  ;;  %v1631_v37 = vpop.f32.mrf.mxu1 }
  0xf7   : > { %v1778_v39 = vadd.f32 %v9319_v0, %v1151_v35  ;;  %v9374_v40 = vadd.f32 %v9319_v0, %v1631_v37 }
  0xf8   : > { %v9376_v41 = vpop.f32.mrf.mxu0  ;;  %v9378_v42 = vpop.f32.mrf.mxu1 }
  0xf9   : > { %12875 = vst [vmem:[#allocation12_spill] sm:$0xff] %v9376_v41  ;;  %12876 = vst [vmem:[#allocation13_spill] sm:$0xff] %v9378_v42  ;;  %v2038_v43 = vpack.c.bf16 %v1778_v39, %v1777_v38 }
  0xfa   : > { %v1157_v45 = vpop.f32.mrf.mxu0  ;;  %7626 = vmatmul.mubr.msk.bf16.gmra.mxu0 %vm893_vm1, %v8974_v36  ;;  %v1637_v46 = vpop.f32.mrf.mxu1  ;;  %v8977_v36 = vld [vmem:[%s9153_s12 + $0xf0] sm:$0xff]  }
  0xfb   : > { %8198 = vmatprep.mubr.bf16.mxu1 %v2038_v43  ;;  %1405 = vmatprep.mubr.bf16.mxu0 %v12862_v4  ;;  %v9389_v49 = vadd.f32 %v9319_v0, %v1637_v46  ;;  %v1779_v53 = vadd.f32 %v9319_v0, %v1157_v45 }
  0xfc   : > { %v9384_v47 = vpop.f32.mrf.mxu0  ;;  %v9386_v48 = vpop.f32.mrf.mxu1 }
  0xfd   : > { %12877 = vst [vmem:[#allocation14_spill] sm:$0xff] %v9384_v47  ;;  %12878 = vst [vmem:[#allocation15_spill] sm:$0xff] %v9386_v48 }
  0xfe   : > { %v1161_v50 = vpop.f32.mrf.mxu0  ;;  %v1641_v52 = vpop.f32.mrf.mxu1 }
  0xff   : > { %v1780_v54 = vadd.f32 %v9319_v0, %v1161_v50  ;;  %v9395_v55 = vadd.f32 %v9319_v0, %v1641_v52 }
 0x100   : > { %v9397_v56 = vpop.f32.mrf.mxu0  ;;  %v9399_v57 = vpop.f32.mrf.mxu1 }
 0x101   : > { %12879 = vst [vmem:[#allocation16_spill] sm:$0xff] %v9397_v56  ;;  %12880 = vst [vmem:[#allocation17_spill] sm:$0xff] %v9399_v57  ;;  %v2039_v58 = vpack.c.bf16 %v1780_v54, %v1779_v53 }
 0x102   : > { %v1167_v60 = vpop.f32.mrf.mxu0  ;;  %7627 = vmatmul.mubr.msk.bf16.gmra.mxu0 %vm893_vm1, %v8975_v51  ;;  %v1647_v61 = vpop.f32.mrf.mxu1 }
 0x103   : > { %8199 = vmatmul.mubr.bf16.gmra.mxu1 %v2039_v58  ;;  %1415 = vmatprep.mubr.bf16.mxu0 %v12862_v4  ;;  %v9410_v5 = vadd.f32 %v9319_v0, %v1647_v61  ;;  %v1781_v9 = vadd.f32 %v9319_v0, %v1167_v60 }
 0x104   : > { %v9405_v62 = vpop.f32.mrf.mxu0  ;;  %v9407_v63 = vpop.f32.mrf.mxu1 }
 0x105   : > { %12881 = vst [vmem:[#allocation18_spill] sm:$0xff] %v9405_v62  ;;  %12882 = vst [vmem:[#allocation19_spill] sm:$0xff] %v9407_v63 }
 0x106   : > { %v1171_v6 = vpop.f32.mrf.mxu0  ;;  %v1651_v8 = vpop.f32.mrf.mxu1 }
 0x107   : > { %v1782_v13 = vadd.f32 %v9319_v0, %v1171_v6  ;;  %v9416_v15 = vadd.f32 %v9319_v0, %v1651_v8  ;;  %v8978_v6 = vld [vmem:[%s9153_s12 + $0xf8] sm:$0xff]  }
 0x108   : > { %v9418_v16 = vpop.f32.mrf.mxu0  ;;  %v9420_v20 = vpop.f32.mrf.mxu1 }
 0x109   : > { %12883 = vst [vmem:[#allocation20_spill] sm:$0xff] %v9418_v16  ;;  %12884 = vst [vmem:[#allocation21_spill] sm:$0xff] %v9420_v20  ;;  %v2040_v21 = vpack.c.bf16 %v1782_v13, %v1781_v9 }
 0x10a   : > { %v1177_v23 = vpop.f32.mrf.mxu0  ;;  %7628 = vmatmul.mubr.msk.bf16.gmra.mxu0 %vm893_vm1, %v8976_v7  ;;  %v1657_v24 = vpop.f32.mrf.mxu1 }
 0x10b   : > { %8202 = vmatprep.mubr.bf16.mxu1 %v2040_v21  ;;  %1425 = vmatprep.mubr.bf16.mxu0 %v12862_v4  ;;  %v9431_v31 = vadd.f32 %v9319_v0, %v1657_v24  ;;  %v1783_v38 = vadd.f32 %v9319_v0, %v1177_v23 }
 0x10c   : > { %v9426_v28 = vpop.f32.mrf.mxu0  ;;  %v9428_v30 = vpop.f32.mrf.mxu1 }
 0x10d   : > { %12885 = vst [vmem:[#allocation22_spill] sm:$0xff] %v9426_v28  ;;  %12886 = vst [vmem:[#allocation23_spill] sm:$0xff] %v9428_v30 }
 0x10e   : > { %v1181_v35 = vpop.f32.mrf.mxu0  ;;  %v1661_v37 = vpop.f32.mrf.mxu1 }
 0x10f   : > { %v1784_v39 = vadd.f32 %v9319_v0, %v1181_v35  ;;  %v9437_v43 = vadd.f32 %v9319_v0, %v1661_v37 }
 0x110   : > { %v9439_v45 = vpop.f32.mrf.mxu0  ;;  %v9441_v46 = vpop.f32.mrf.mxu1 }
 0x111   : > { %12887 = vst [vmem:[#allocation24_spill] sm:$0xff] %v9439_v45  ;;  %12888 = vst [vmem:[#allocation25_spill] sm:$0xff] %v9441_v46  ;;  %v2041_v50 = vpack.c.bf16 %v1784_v39, %v1783_v38 }
 0x112   : > { %v1187_v52 = vpop.f32.mrf.mxu0  ;;  %7629 = vmatmul.mubr.msk.bf16.gmra.mxu0 %vm893_vm1, %v8977_v36  ;;  %v1667_v53 = vpop.f32.mrf.mxu1 }
 0x113   : > { %8203 = vmatmul.mubr.bf16.gmra.mxu1 %v2041_v50  ;;  %1435 = vmatprep.mubr.bf16.mxu0 %v12862_v4  ;;  %v9452_v60 = vadd.f32 %v9319_v0, %v1667_v53  ;;  %v1785_v8 = vadd.f32 %v9319_v0, %v1187_v52  ;;  %v8979_v53 = vld [vmem:[%s9153_s12 + $0x100] sm:$0xff]  }
 0x114   : > { %v9447_v54 = vpop.f32.mrf.mxu0  ;;  %v9449_v58 = vpop.f32.mrf.mxu1 }
 0x115   : > { %12889 = vst [vmem:[#allocation26_spill] sm:$0xff] %v9447_v54  ;;  %12890 = vst [vmem:[#allocation27_spill] sm:$0xff] %v9449_v58 }
 0x116   : > { %v1191_v61 = vpop.f32.mrf.mxu0  ;;  %v1671_v7 = vpop.f32.mrf.mxu1 }
 0x117   : > { %v1786_v9 = vadd.f32 %v9319_v0, %v1191_v61  ;;  %v9458_v13 = vadd.f32 %v9319_v0, %v1671_v7 }
 0x118   : > { %v9460_v21 = vpop.f32.mrf.mxu0  ;;  %v9462_v23 = vpop.f32.mrf.mxu1 }
 0x119   : > { %12891 = vst [vmem:[#allocation28_spill] sm:$0xff] %v9460_v21  ;;  %12892 = vst [vmem:[#allocation29_spill] sm:$0xff] %v9462_v23  ;;  %v2042_v24 = vpack.c.bf16 %v1786_v9, %v1785_v8 }
 0x11a   : > { %v1197_v36 = vpop.f32.mrf.mxu0  ;;  %7630 = vmatmul.mubr.msk.bf16.gmra.mxu0 %vm893_vm1, %v8978_v6  ;;  %v1677_v37 = vpop.f32.mrf.mxu1 }
 0x11b   : > { %8206 = vmatprep.mubr.bf16.mxu1 %v2042_v24  ;;  %1445 = vmatprep.mubr.bf16.mxu0 %v12862_v4  ;;  %v9473_v50 = vadd.f32 %v9319_v0, %v1677_v37  ;;  %v1787_v7 = vadd.f32 %v9319_v0, %v1197_v36 }
 0x11c   : > { %v9468_v38 = vpop.f32.mrf.mxu0  ;;  %v9470_v39 = vpop.f32.mrf.mxu1 }
 0x11d   : > { %12893 = vst [vmem:[#allocation30_spill] sm:$0xff] %v9468_v38  ;;  %12894 = vst [vmem:[#allocation31_spill] sm:$0xff] %v9470_v39 }
 0x11e   : > { %v1201_v52 = vpop.f32.mrf.mxu0  ;;  %v1681_v61 = vpop.f32.mrf.mxu1 }
 0x11f   : > { %v1788_v8 = vadd.f32 %v9319_v0, %v1201_v52  ;;  %v9479_v6 = vadd.f32 %v9319_v0, %v1681_v61 }
 0x120   : > { %v9481_v9 = vpop.f32.mrf.mxu0  ;;  %v9483_v24 = vpop.f32.mrf.mxu1 }
 0x121   : > { %12895 = vst [vmem:[#allocation32_spill] sm:$0xff] %v9481_v9  ;;  %12896 = vst [vmem:[#allocation33_spill] sm:$0xff] %v9483_v24  ;;  %v2043_v35 = vpack.c.bf16 %v1788_v8, %v1787_v7 }
 0x122   : > { %v1207_v51 = vpop.f32.mrf.mxu0  ;;  %7631 = vmatmul.mubr.msk.bf16.gmra.mxu0 %vm893_vm1, %v8979_v53  ;;  %v1687_v22 = vpop.f32.mrf.mxu1 }
 0x123   : > { %8207 = vmatmul.mubr.bf16.gmra.mxu1 %v2043_v35  ;;  %1455 = vmatprep.mubr.bf16.mxu0 %v12862_v4  ;;  %v9494_v61 = vadd.f32 %v9319_v0, %v1687_v22  ;;  %v1789_v8 = vadd.f32 %v9319_v0, %v1207_v51  ;;  %v12901_v51 = vmov 0   ;;  %v8981_v22 = vld [vmem:[%s9153_s12 + $0x110] sm:$0xff]  }
 0x124   : > { %v9489_v36 = vpop.f32.mrf.mxu0  ;;  %v9491_v52 = vpop.f32.mrf.mxu1 }
 0x125   : > { %12897 = vst [vmem:[#allocation34_spill] sm:$0xff] %v9489_v36  ;;  %12898 = vst [vmem:[#allocation35_spill] sm:$0xff] %v9491_v52 }
 0x126   : > { %v1211_v59 = vpop.f32.mrf.mxu0  ;;  %v1691_v7 = vpop.f32.mrf.mxu1 }
 0x127   : > { %v1790_v37 = vadd.f32 %v9319_v0, %v1211_v59  ;;  %v9500_v53 = vadd.f32 %v9319_v0, %v1691_v7  ;;  %v8995_v59 = vld [vmem:[%s12853_s3 + $0x78] sm:$0xff]  }
 0x128   : > { %v9502_v35 = vpop.f32.mrf.mxu0  ;;  %v9504_v29 = vpop.f32.mrf.mxu1  ;;  %8322 = vmatprep.subr.bf16.mxu1 %v8995_v59 }
 0x129   : > { %12899 = vst [vmem:[#allocation36_spill] sm:$0xff] %v9502_v35  ;;  %12900 = vst [vmem:[#allocation37_spill] sm:$0xff] %v9504_v29  ;;  %v2044_v14 = vpack.c.bf16 %v1790_v37, %v1789_v8  ;;  %8323 = vmatpush3.bf16.msra.mxu1 %v8995_v59 }
 0x12a   : > { %v1217_v4 = vpop.f32.mrf.mxu0  ;;  %7632 = vmatmul.mubr.msk.bf16.gmra.mxu0 %vm893_vm1, %v8980_v44  ;;  %v1697_v52 = vpop.f32.mrf.mxu1 }
 0x12b   : > { %8210 = vmatprep.mubr.bf16.mxu1 %v2044_v14  ;;  %1465 = vmatprep.mubr.bf16.mxu0 %v12901_v51  ;;  %v9518_v37 = vadd.f32 %v9319_v0, %v1697_v52  ;;  %v1791_v14 = vadd.f32 %v9319_v0, %v1217_v4 }
 0x12c   : > { %v9513_v7 = vpop.f32.mrf.mxu0  ;;  %v9515_v39 = vpop.f32.mrf.mxu1 }
 0x12d   : > { %12902 = vst [vmem:[#allocation38_spill] sm:$0xff] %v9513_v7  ;;  %12903 = vst [vmem:[#allocation39_spill] sm:$0xff] %v9515_v39 }
 0x12e   : > { %v1221_v8 = vpop.f32.mrf.mxu0  ;;  %v1701_v29 = vpop.f32.mrf.mxu1 }
 0x12f   : > { %v1792_v44 = vadd.f32 %v9319_v0, %v1221_v8  ;;  %v9524_v24 = vadd.f32 %v9319_v0, %v1701_v29 }
 0x130   : > { %v9526_v58 = vpop.f32.mrf.mxu0  ;;  %v9528_v30 = vpop.f32.mrf.mxu1 }
 0x131   : > { %12904 = vst [vmem:[#allocation40_spill] sm:$0xff] %v9526_v58  ;;  %12905 = vst [vmem:[#allocation41_spill] sm:$0xff] %v9528_v30  ;;  %v2045_v39 = vpack.c.bf16 %v1792_v44, %v1791_v14  ;;  %v8982_v30 = vld [vmem:[%s9153_s12 + $0x118] sm:$0xff]  }
 0x132   : > { %v1227_v23 = vpop.f32.mrf.mxu0  ;;  %7633 = vmatmul.mubr.msk.bf16.gmra.mxu0 %vm893_vm1, %v8981_v22  ;;  %v1707_v59 = vpop.f32.mrf.mxu1 }
 0x133   : > { %8211 = vmatmul.mubr.bf16.gmra.mxu1 %v2045_v39  ;;  %1475 = vmatprep.mubr.bf16.mxu0 %v12901_v51  ;;  %v9539_v29 = vadd.f32 %v9319_v0, %v1707_v59  ;;  %v1793_v44 = vadd.f32 %v9319_v0, %v1227_v23 }
 0x134   : > { %v9534_v4 = vpop.f32.mrf.mxu0  ;;  %v9536_v8 = vpop.f32.mrf.mxu1 }
 0x135   : > { %12906 = vst [vmem:[#allocation42_spill] sm:$0xff] %v9534_v4  ;;  %12907 = vst [vmem:[#allocation43_spill] sm:$0xff] %v9536_v8 }
 0x136   : > { %v1231_v46 = vpop.f32.mrf.mxu0  ;;  %v1711_v14 = vpop.f32.mrf.mxu1 }
 0x137   : > { %v1794_v52 = vadd.f32 %v9319_v0, %v1231_v46  ;;  %v9545_v22 = vadd.f32 %v9319_v0, %v1711_v14 }
 0x138   : > { %v9547_v39 = vpop.f32.mrf.mxu0  ;;  %v9549_v63 = vpop.f32.mrf.mxu1 }
 0x139   : > { %12908 = vst [vmem:[#allocation44_spill] sm:$0xff] %v9547_v39  ;;  %12909 = vst [vmem:[#allocation45_spill] sm:$0xff] %v9549_v63  ;;  %v2046_v48 = vpack.c.bf16 %v1794_v52, %v1793_v44  ;;  %v8983_v63 = vld [vmem:[%s9153_s12 + $0x120] sm:$0xff]  }
 0x13a   : > { %v1237_v8 = vpop.f32.mrf.mxu0  ;;  %7634 = vmatmul.mubr.msk.bf16.gmra.mxu0 %vm893_vm1, %v8982_v30  ;;  %v1717_v20 = vpop.f32.mrf.mxu1 }
 0x13b   : > { %8214 = vmatprep.mubr.bf16.mxu1 %v2046_v48  ;;  %1485 = vmatprep.mubr.bf16.mxu0 %v12901_v51  ;;  %v9560_v14 = vadd.f32 %v9319_v0, %v1717_v20  ;;  %v1795_v44 = vadd.f32 %v9319_v0, %v1237_v8 }
 0x13c   : > { %v9555_v23 = vpop.f32.mrf.mxu0  ;;  %v9557_v46 = vpop.f32.mrf.mxu1 }
 0x13d   : > { %12910 = vst [vmem:[#allocation46_spill] sm:$0xff] %v9555_v23  ;;  %12911 = vst [vmem:[#allocation47_spill] sm:$0xff] %v9557_v46 }
 0x13e   : > { %v1241_v57 = vpop.f32.mrf.mxu0  ;;  %v1721_v52 = vpop.f32.mrf.mxu1 }
 0x13f   : > { %v1796_v59 = vadd.f32 %v9319_v0, %v1241_v57  ;;  %v9566_v30 = vadd.f32 %v9319_v0, %v1721_v52 }
 0x140   : > { %v9568_v48 = vpop.f32.mrf.mxu0  ;;  %v9570_v33 = vpop.f32.mrf.mxu1 }
 0x141   : > { %12912 = vst [vmem:[#allocation48_spill] sm:$0xff] %v9568_v48  ;;  %12913 = vst [vmem:[#allocation49_spill] sm:$0xff] %v9570_v33  ;;  %v2047_v18 = vpack.c.bf16 %v1796_v59, %v1795_v44  ;;  %v8984_v59 = vld [vmem:[%s9153_s12 + $0x128] sm:$0xff]  }
 0x142   : > { %v1247_v46 = vpop.f32.mrf.mxu0  ;;  %7635 = vmatmul.mubr.msk.bf16.gmra.mxu0 %vm893_vm1, %v8983_v63  ;;  %v1727_v42 = vpop.f32.mrf.mxu1 }
 0x143   : > { %8215 = vmatmul.mubr.bf16.gmra.mxu1 %v2047_v18  ;;  %1495 = vmatprep.mubr.bf16.mxu0 %v12901_v51  ;;  %v9581_v52 = vadd.f32 %v9319_v0, %v1727_v42  ;;  %v1797_v20 = vadd.f32 %v9319_v0, %v1247_v46 }
 0x144   : > { %v9576_v8 = vpop.f32.mrf.mxu0  ;;  %v9578_v57 = vpop.f32.mrf.mxu1 }
 0x145   : > { %12914 = vst [vmem:[#allocation50_spill] sm:$0xff] %v9576_v8  ;;  %12915 = vst [vmem:[#allocation51_spill] sm:$0xff] %v9578_v57 }
 0x146   : > { %v1251_v27 = vpop.f32.mrf.mxu0  ;;  %v1731_v44 = vpop.f32.mrf.mxu1 }
 0x147   : > { %v1798_v33 = vadd.f32 %v9319_v0, %v1251_v27  ;;  %v9587_v63 = vadd.f32 %v9319_v0, %v1731_v44  ;;  %v8996_v27 = vld [vmem:[%s12853_s3 + $0x70] sm:$0xff]  }
 0x148   : > { %v9589_v18 = vpop.f32.mrf.mxu0  ;;  %v8985_v44 = vld [vmem:[%s9153_s12 + $0x130] sm:$0xff]   ;;  %8324 = vmatprep.subr.bf16.mxu1 %v8996_v27 }
 0x149   : > { %12916 = vst [vmem:[#allocation52_spill] sm:$0xff] %v9589_v18  ;;  %v2048_v2 = vpack.c.bf16 %v1798_v33, %v1797_v20  ;;  %8325 = vmatpush3.bf16.msra.mxu1 %v8996_v27 }
 0x14a   : > { %v1257_v12 = vpop.f32.mrf.mxu0  ;;  %7636 = vmatmul.mubr.msk.bf16.gmra.mxu0 %vm893_vm1, %v8984_v59 }
 0x14b   : > { %8218 = vmatprep.mubr.bf16.mxu1 %v2048_v2  ;;  %1505 = vmatprep.mubr.bf16.mxu0 %v12901_v51  ;;  %v1799_v33 = vadd.f32 %v9319_v0, %v1257_v12 }
 0x14c   : > { %v9595_v42 = vpop.f32.mrf.mxu0 }
 0x14d   : > { %12917 = vst [vmem:[#allocation53_spill] sm:$0xff] %v9595_v42  ;;  %v8986_v42 = vld [vmem:[%s9153_s12 + $0x138] sm:$0xff]  }
 0x14e   : > { %v1261_v46 = vpop.f32.mrf.mxu0 }
 0x14f   : > { %v1800_v20 = vadd.f32 %v9319_v0, %v1261_v46 }
 0x150   : > { %v9603_v57 = vpop.f32.mrf.mxu0 }
 0x151   : > { %12918 = vst [vmem:[#allocation54_spill] sm:$0xff] %v9603_v57  ;;  %v2049_v2 = vpack.c.bf16 %v1800_v20, %v1799_v33  ;;  %v8987_v20 = vld [vmem:[%s9153_s12 + $0x140] sm:$0xff]  }
 0x152   : > { %v1267_v59 = vpop.f32.mrf.mxu0  ;;  %7637 = vmatmul.mubr.msk.bf16.gmra.mxu0 %vm893_vm1, %v8985_v44 }
 0x153   : > { %8219 = vmatmul.mubr.bf16.gmra.mxu1 %v2049_v2  ;;  %1515 = vmatprep.mubr.bf16.mxu0 %v12901_v51  ;;  %v1801_v39 = vadd.f32 %v9319_v0, %v1267_v59 }
 0x154   : > { %v9607_v18 = vpop.f32.mrf.mxu0 }
 0x155   : > { %12919 = vst [vmem:[#allocation55_spill] sm:$0xff] %v9607_v18 }
 0x156   : > { %v1271_v8 = vpop.f32.mrf.mxu0 }
 0x157   : > { %v1802_v12 = vadd.f32 %v9319_v0, %v1271_v8 }
 0x158   : > { %v9612_v46 = vpop.f32.mrf.mxu0 }
 0x159   : > { %12920 = vst [vmem:[#allocation56_spill] sm:$0xff] %v9612_v46  ;;  %v2050_v27 = vpack.c.bf16 %v1802_v12, %v1801_v39  ;;  %v8988_v12 = vld [vmem:[%s9153_s12 + $0x148] sm:$0xff]  }
 0x15a   : > { %v1277_v57 = vpop.f32.mrf.mxu0  ;;  %7638 = vmatmul.mubr.msk.bf16.gmra.mxu0 %vm893_vm1, %v8986_v42 }
 0x15b   : > { %8222 = vmatprep.mubr.bf16.mxu1 %v2050_v27  ;;  %1525 = vmatprep.mubr.bf16.mxu0 %v12901_v51  ;;  %v1803_v2 = vadd.f32 %v9319_v0, %v1277_v57 }
 0x15c   : > { %v9616_v44 = vpop.f32.mrf.mxu0 }
 0x15d   : > { %12921 = vst [vmem:[#allocation57_spill] sm:$0xff] %v9616_v44 }
 0x15e   : > { %v1281_v33 = vpop.f32.mrf.mxu0 }
 0x15f   : > { %v1804_v59 = vadd.f32 %v9319_v0, %v1281_v33 }
 0x160   : > { %v9621_v18 = vpop.f32.mrf.mxu0 }
 0x161   : > { %12922 = vst [vmem:[#allocation58_spill] sm:$0xff] %v9621_v18  ;;  %v2051_v8 = vpack.c.bf16 %v1804_v59, %v1803_v2  ;;  %v8997_v2 = vld [vmem:[%s12853_s3 + $0x68] sm:$0xff]  }
 0x162   : > { %v1287_v46 = vpop.f32.mrf.mxu0  ;;  %7639 = vmatmul.mubr.msk.bf16.gmra.mxu0 %vm893_vm1, %v8987_v20  ;;  %8326 = vmatprep.subr.bf16.mxu1 %v8997_v2 }
 0x163   : > { %8223 = vmatmul.mubr.bf16.gmra.mxu1 %v2051_v8  ;;  %1535 = vmatprep.mubr.bf16.mxu0 %v12901_v51  ;;  %v1805_v27 = vadd.f32 %v9319_v0, %v1287_v46  ;;  %v8989_v46 = vld [vmem:[%s9153_s12 + $0x150] sm:$0xff]  }
 0x164   : > { %v9625_v39 = vpop.f32.mrf.mxu0  ;;  %8327 = vmatpush3.bf16.msra.mxu1 %v8997_v2 }
 0x165   : > { %12923 = vst [vmem:[#allocation59_spill] sm:$0xff] %v9625_v39  ;;  %v8990_v39 = vld [vmem:[%s9153_s12 + $0x158] sm:$0xff]  }
 0x166   : > { %v1291_v42 = vpop.f32.mrf.mxu0 }
 0x167   : > { %v1806_v57 = vadd.f32 %v9319_v0, %v1291_v42 }
 0x168   : > { %v9630_v44 = vpop.f32.mrf.mxu0 }
 0x169   : > { %12924 = vst [vmem:[#allocation60_spill] sm:$0xff] %v9630_v44  ;;  %v2052_v33 = vpack.c.bf16 %v1806_v57, %v1805_v27 }
 0x16a   : > { %v1297_v18 = vpop.f32.mrf.mxu0  ;;  %7640 = vmatmul.mubr.msk.bf16.gmra.mxu0 %vm893_vm1, %v8988_v12 }
 0x16b   : > { %8226 = vmatprep.mubr.bf16.mxu1 %v2052_v33  ;;  %1545 = vmatprep.mubr.bf16.mxu0 %v12901_v51  ;;  %v1807_v8 = vadd.f32 %v9319_v0, %v1297_v18 }
 0x16c   : > { %v9634_v20 = vpop.f32.mrf.mxu0 }
 0x16d   : > { %12925 = vst [vmem:[#allocation61_spill] sm:$0xff] %v9634_v20 }
 0x16e   : > { %v1301_v59 = vpop.f32.mrf.mxu0 }
 0x16f   : > { %v1808_v42 = vadd.f32 %v9319_v0, %v1301_v59 }
 0x170   : > { %v9642_v27 = vpop.f32.mrf.mxu0 }
 0x171   : > { %12926 = vst [vmem:[#allocation62_spill] sm:$0xff] %v9642_v27  ;;  %v2053_v12 = vpack.c.bf16 %v1808_v42, %v1807_v8  ;;  %v8998_v8 = vld [vmem:[%s12853_s3 + $0xb8] sm:$0xff]  }
 0x172   : > { %v1307_v57 = vpop.f32.mrf.mxu0  ;;  %7641 = vmatmul.mubr.msk.bf16.gmra.mxu0 %vm893_vm1, %v8989_v46  ;;  %8466 = vmatprep.subr.bf16.mxu0 %v8998_v8 }
 0x173   : > { %8227 = vmatmul.mubr.bf16.gmra.mxu1 %v2053_v12  ;;  %1555 = vmatprep.mubr.bf16.mxu0 %v12901_v51  ;;  %v1809_v20 = vadd.f32 %v9319_v0, %v1307_v57  ;;  %v8991_v12 = vld [vmem:[%s9153_s12 + $0x160] sm:$0xff]  }
 0x174   : > { %v9646_v33 = vpop.f32.mrf.mxu0  ;;  %8467 = vmatpush3.bf16.msra.mxu0 %v8998_v8 }
 0x175   : > { %12927 = vst [vmem:[#allocation63_spill] sm:$0xff] %v9646_v33  ;;  %v8992_v33 = vld [vmem:[%s9153_s12 + $0x168] sm:$0xff]  }
 0x176   : > { %v1311_v44 = vpop.f32.mrf.mxu0 }
 0x177   : > { %v1810_v18 = vadd.f32 %v9319_v0, %v1311_v44 }
 0x178   : > { %v9651_v59 = vpop.f32.mrf.mxu0 }
 0x179   : > { %12928 = vst [vmem:[#allocation64_spill] sm:$0xff] %v9651_v59  ;;  %v2054_v2 = vpack.c.bf16 %v1810_v18, %v1809_v20 }
 0x17a   : > { %v1317_v27 = vpop.f32.mrf.mxu0  ;;  %7642 = vmatmul.mubr.msk.bf16.gmra.mxu0 %vm893_vm1, %v8990_v39 }
 0x17b   : > { %8230 = vmatprep.mubr.bf16.mxu1 %v2054_v2  ;;  %1565 = vmatprep.mubr.bf16.mxu0 %v12901_v51  ;;  %v1811_v44 = vadd.f32 %v9319_v0, %v1317_v27 }
 0x17c   : > { %v9655_v46 = vpop.f32.mrf.mxu0 }
 0x17d   : > { %12929 = vst [vmem:[#allocation65_spill] sm:$0xff] %v9655_v46 }
 0x17e   : > { %v1321_v42 = vpop.f32.mrf.mxu0 }
 0x17f   : > { %v1812_v20 = vadd.f32 %v9319_v0, %v1321_v42 }
 0x180   : > { %v9663_v57 = vpop.f32.mrf.mxu0 }
 0x181   : > { %12930 = vst [vmem:[#allocation66_spill] sm:$0xff] %v9663_v57  ;;  %v2055_v39 = vpack.c.bf16 %v1812_v20, %v1811_v44  ;;  %v8999_v44 = vld [vmem:[%s12853_s3 + $0x60] sm:$0xff]  }
 0x182   : > { %v1327_v18 = vpop.f32.mrf.mxu0  ;;  %7643 = vmatmul.mubr.msk.bf16.gmra.mxu0 %vm893_vm1, %v8991_v12  ;;  %8328 = vmatprep.subr.bf16.mxu1 %v8999_v44 }
 0x183   : > { %8231 = vmatmul.mubr.bf16.gmra.mxu1 %v2055_v39  ;;  %1575 = vmatprep.mubr.bf16.mxu0 %v12901_v51  ;;  %v1813_v46 = vadd.f32 %v9319_v0, %v1327_v18  ;;  %v8993_v39 = vld [vmem:[%s9153_s12 + $0x170] sm:$0xff]  }
 0x184   : > { %v9667_v2 = vpop.f32.mrf.mxu0  ;;  %8329 = vmatpush3.bf16.msra.mxu1 %v8999_v44 }
 0x185   : > { %12931 = vst [vmem:[#allocation67_spill] sm:$0xff] %v9667_v2  ;;  %v8994_v2 = vld [vmem:[%s9153_s12 + $0x178] sm:$0xff]  }
 0x186   : > { %v1331_v59 = vpop.f32.mrf.mxu0 }
 0x187   : > { %v1814_v27 = vadd.f32 %v9319_v0, %v1331_v59 }
 0x188   : > { %v9672_v42 = vpop.f32.mrf.mxu0 }
 0x189   : > { %12932 = vst [vmem:[#allocation68_spill] sm:$0xff] %v9672_v42  ;;  %v2056_v8 = vpack.c.bf16 %v1814_v27, %v1813_v46 }
 0x18a   : > { %v1337_v57 = vpop.f32.mrf.mxu0  ;;  %7644 = vmatmul.mubr.msk.bf16.gmra.mxu0 %vm893_vm1, %v8992_v33 }
 0x18b   : > { %8234 = vmatprep.mubr.bf16.mxu1 %v2056_v8  ;;  %1585 = vmatprep.mubr.bf16.mxu0 %v12901_v51  ;;  %v1815_v59 = vadd.f32 %v9319_v0, %v1337_v57 }
 0x18c   : > { %v9676_v12 = vpop.f32.mrf.mxu0 }
 0x18d   : > { %12933 = vst [vmem:[#allocation69_spill] sm:$0xff] %v9676_v12 }
 0x18e   : > { %v1341_v20 = vpop.f32.mrf.mxu0 }
 0x18f   : > { %v1816_v46 = vadd.f32 %v9319_v0, %v1341_v20 }
 0x190   : > { %v9684_v18 = vpop.f32.mrf.mxu0 }
 0x191   : > { %12934 = vst [vmem:[#allocation70_spill] sm:$0xff] %v9684_v18  ;;  %v2057_v33 = vpack.c.bf16 %v1816_v46, %v1815_v59 }
 0x192   : > { %v1347_v27 = vpop.f32.mrf.mxu0  ;;  %7645 = vmatmul.mubr.msk.bf16.gmra.mxu0 %vm893_vm1, %v8993_v39 }
 0x193   : > { %8235 = vmatmul.mubr.bf16.gmra.mxu1 %v2057_v33  ;;  %1595 = vmatprep.mubr.bf16.mxu0 %v12901_v51  ;;  %v1817_v42 = vadd.f32 %v9319_v0, %v1347_v27 }
 0x194   : > { %v9688_v8 = vpop.f32.mrf.mxu0 }
 0x195   : > { %12935 = vst [vmem:[#allocation71_spill] sm:$0xff] %v9688_v8 }
 0x196   : > { %v1351_v12 = vpop.f32.mrf.mxu0 }
 0x197   : > { %v1818_v57 = vadd.f32 %v9319_v0, %v1351_v12 }
 0x198   : > { %v9693_v48 = vpop.f32.mrf.mxu0 }
 0x199   : > { %12936 = vst [vmem:[#allocation72_spill] sm:$0xff] %v9693_v48  ;;  %v2058_v44 = vpack.c.bf16 %v1818_v57, %v1817_v42 }
 0x19a   : > { %v1357_v20 = vpop.f32.mrf.mxu0  ;;  %7646 = vmatmul.mubr.msk.bf16.gmra.mxu0 %vm893_vm1, %v8994_v2 }
 0x19b   : > { %8238 = vmatprep.mubr.bf16.mxu1 %v2058_v44  ;;  %v1819_v46 = vadd.f32 %v9319_v0, %v1357_v20 }
 0x19c   : > { %v9696_v59 = vpop.f32.mrf.mxu0 }
 0x19d   : > { %12937 = vst [vmem:[#allocation73_spill] sm:$0xff] %v9696_v59 }
 0x19e   : > { %v1361_v39 = vpop.f32.mrf.mxu0 }
 0x19f   : > { %v1820_v33 = vadd.f32 %v9319_v0, %v1361_v39  ;;  %v9000_v39 = vld [vmem:[%s12853_s3 + $0xb0] sm:$0xff]  }
 0x1a0   : > { %v9700_v8 = vpop.f32.mrf.mxu0  ;;  %8468 = vmatprep.subr.bf16.mxu0 %v9000_v39 }
 0x1a1   : > { %12938 = vst [vmem:[#allocation74_spill] sm:$0xff] %v9700_v8  ;;  %v2059_v18 = vpack.c.bf16 %v1820_v33, %v1819_v46  ;;  %v9716_v46 = vpop.f32.mrf.mxu1  ;;  %8469 = vmatpush3.bf16.msra.mxu0 %v9000_v39 }
 0x1a2   : > { %v1367_v27 = vpop.f32.mrf.mxu0  ;;  %12942 = vst [vmem:[#allocation78_spill] sm:$0xff] %v9716_v46 }
 0x1a3   : > { %8239 = vmatmul.mubr.bf16.gmra.mxu1 %v2059_v18  ;;  %v1821_v42 = vadd.f32 %v9319_v0, %v1367_v27  ;;  %v9001_v18 = vld [vmem:[%s12853_s3 + $0x58] sm:$0xff]  }
 0x1a4   : > { %v9702_v12 = vpop.f32.mrf.mxu0  ;;  %8330 = vmatprep.subr.bf16.mxu1 %v9001_v18 }
 0x1a5   : > { %12939 = vst [vmem:[#allocation75_spill] sm:$0xff] %v9702_v12  ;;  %8331 = vmatpush3.bf16.msra.mxu1 %v9001_v18 }
 0x1a6   : > { %v1371_v48 = vpop.f32.mrf.mxu0 }
 0x1a7   : > { %v1822_v2 = vadd.f32 %v9319_v0, %v1371_v48 }
 0x1a8   : > { %v9706_v57 = vpop.f32.mrf.mxu0 }
 0x1a9   : > { %12940 = vst [vmem:[#allocation76_spill] sm:$0xff] %v9706_v57  ;;  %v2060_v44 = vpack.c.bf16 %v1822_v2, %v1821_v42  ;;  %v9722_v2 = vpop.f32.mrf.mxu1 }
 0x1aa   : > { %v1377_v59 = vpop.f32.mrf.mxu0 }
 0x1ab   : > { %8242 = vmatprep.mubr.bf16.mxu1 %v2060_v44  ;;  %v1823_v48 = vadd.f32 %v9319_v0, %v1377_v59  ;;  %v9726_v57 = vpop.f32.mrf.mxu1 }
 0x1ac   : > { %v9708_v20 = vpop.f32.mrf.mxu0  ;;  %12945 = vst [vmem:[#allocation81_spill] sm:$0xff] %v9726_v57 }
 0x1ad   : > { %12941 = vst [vmem:[#allocation77_spill] sm:$0xff] %v9708_v20  ;;  %v9732_v39 = vpop.f32.mrf.mxu1 }
 0x1ae   : > { %v1381_v33 = vpop.f32.mrf.mxu0 }
 0x1af   : > { %v1824_v27 = vadd.f32 %v9319_v0, %v1381_v33 }
 0x1b0   : > { %v9720_v42 = vpop.f32.mrf.mxu0 }
 0x1b1   : > { %12943 = vst [vmem:[#allocation79_spill] sm:$0xff] %v9720_v42  ;;  %v2061_v44 = vpack.c.bf16 %v1824_v27, %v1823_v48  ;;  %v9736_v48 = vpop.f32.mrf.mxu1 }
 0x1b2   : > { %v1387_v20 = vpop.f32.mrf.mxu0  ;;  %12948 = vst [vmem:[#allocation84_spill] sm:$0xff] %v9736_v48 }
 0x1b3   : > { %8243 = vmatmul.mubr.bf16.gmra.mxu1 %v2061_v44  ;;  %v1825_v8 = vadd.f32 %v9319_v0, %v1387_v20  ;;  %v9742_v20 = vpop.f32.mrf.mxu1 }
 0x1b4   : > { %v9724_v12 = vpop.f32.mrf.mxu0 }
 0x1b5   : > { %12944 = vst [vmem:[#allocation80_spill] sm:$0xff] %v9724_v12 }
 0x1b6   : > { %v1391_v46 = vpop.f32.mrf.mxu0 }
 0x1b7   : > { %v1826_v59 = vadd.f32 %v9319_v0, %v1391_v46 }
 0x1b8   : > { %v9730_v4 = vpop.f32.mrf.mxu0 }
 0x1b9   : > { %12946 = vst [vmem:[#allocation82_spill] sm:$0xff] %v9730_v4  ;;  %v2062_v18 = vpack.c.bf16 %v1826_v59, %v1825_v8  ;;  %v9746_v8 = vpop.f32.mrf.mxu1 }
 0x1ba   : > { %v1397_v33 = vpop.f32.mrf.mxu0  ;;  %12951 = vst [vmem:[#allocation87_spill] sm:$0xff] %v9746_v8 }
 0x1bb   : > { %8246 = vmatprep.mubr.bf16.mxu1 %v2062_v18  ;;  %v1827_v44 = vadd.f32 %v9319_v0, %v1397_v33  ;;  %v9752_v33 = vpop.f32.mrf.mxu1 }
 0x1bc   : > { %v9734_v42 = vpop.f32.mrf.mxu0 }
 0x1bd   : > { %12947 = vst [vmem:[#allocation83_spill] sm:$0xff] %v9734_v42 }
 0x1be   : > { %v1401_v27 = vpop.f32.mrf.mxu0 }
 0x1bf   : > { %v1828_v57 = vadd.f32 %v9319_v0, %v1401_v27 }
 0x1c0   : > { %v9740_v12 = vpop.f32.mrf.mxu0 }
 0x1c1   : > { %12949 = vst [vmem:[#allocation85_spill] sm:$0xff] %v9740_v12  ;;  %v2063_v46 = vpack.c.bf16 %v1828_v57, %v1827_v44  ;;  %v9002_v57 = vld [vmem:[%s12853_s3 + $0x50] sm:$0xff]   ;;  %v9759_v44 = vpop.f32.mrf.mxu1 }
 0x1c2   : > { %v1407_v4 = vpop.f32.mrf.mxu0  ;;  %12954 = vst [vmem:[#allocation90_spill] sm:$0xff] %v9759_v44  ;;  %8332 = vmatprep.subr.bf16.mxu1 %v9002_v57 }
 0x1c3   : > { %8247 = vmatmul.mubr.bf16.gmra.mxu1 %v2063_v46  ;;  %v1829_v18 = vadd.f32 %v9319_v0, %v1407_v4 }
 0x1c4   : > { %v9744_v23 = vpop.f32.mrf.mxu0  ;;  %8333 = vmatpush3.bf16.msra.mxu1 %v9002_v57 }
 0x1c5   : > { %12950 = vst [vmem:[#allocation86_spill] sm:$0xff] %v9744_v23 }
 0x1c6   : > { %v1411_v59 = vpop.f32.mrf.mxu0 }
 0x1c7   : > { %v1830_v48 = vadd.f32 %v9319_v0, %v1411_v59 }
 0x1c8   : > { %v9750_v42 = vpop.f32.mrf.mxu0 }
 0x1c9   : > { %12952 = vst [vmem:[#allocation88_spill] sm:$0xff] %v9750_v42  ;;  %v2064_v27 = vpack.c.bf16 %v1830_v48, %v1829_v18  ;;  %v9765_v48 = vpop.f32.mrf.mxu1 }
 0x1ca   : > { %v1417_v12 = vpop.f32.mrf.mxu0 }
 0x1cb   : > { %8250 = vmatprep.mubr.bf16.mxu1 %v2064_v27  ;;  %v1831_v4 = vadd.f32 %v9319_v0, %v1417_v12  ;;  %v9769_v23 = vpop.f32.mrf.mxu1 }
 0x1cc   : > { %v9754_v35 = vpop.f32.mrf.mxu0  ;;  %12957 = vst [vmem:[#allocation93_spill] sm:$0xff] %v9769_v23 }
 0x1cd   : > { %12953 = vst [vmem:[#allocation89_spill] sm:$0xff] %v9754_v35 }
 0x1ce   : > { %v1421_v46 = vpop.f32.mrf.mxu0 }
 0x1cf   : > { %v1832_v59 = vadd.f32 %v9319_v0, %v1421_v46  ;;  %v9775_v46 = vpop.f32.mrf.mxu1 }
 0x1d0   : > { %v9763_v8 = vpop.f32.mrf.mxu0 }
 0x1d1   : > { %12955 = vst [vmem:[#allocation91_spill] sm:$0xff] %v9763_v8  ;;  %v2065_v18 = vpack.c.bf16 %v1832_v59, %v1831_v4  ;;  %v9003_v4 = vld [vmem:[%s12853_s3 + $0xa8] sm:$0xff]   ;;  %v9782_v59 = vpop.f32.mrf.mxu1 }
 0x1d2   : > { %v1427_v27 = vpop.f32.mrf.mxu0  ;;  %12960 = vst [vmem:[#allocation96_spill] sm:$0xff] %v9782_v59  ;;  %8470 = vmatprep.subr.bf16.mxu0 %v9003_v4 }
 0x1d3   : > { %8251 = vmatmul.mubr.bf16.gmra.mxu1 %v2065_v18  ;;  %v1833_v44 = vadd.f32 %v9319_v0, %v1427_v27  ;;  %8471 = vmatpush3.bf16.msra.mxu0 %v9003_v4 }
 0x1d4   : > { %v9767_v35 = vpop.f32.mrf.mxu0 }
 0x1d5   : > { %12956 = vst [vmem:[#allocation92_spill] sm:$0xff] %v9767_v35 }
 0x1d6   : > { %v1431_v42 = vpop.f32.mrf.mxu0 }
 0x1d7   : > { %v1834_v58 = vadd.f32 %v9319_v0, %v1431_v42 }
 0x1d8   : > { %v9773_v12 = vpop.f32.mrf.mxu0 }
 0x1d9   : > { %12958 = vst [vmem:[#allocation94_spill] sm:$0xff] %v9773_v12  ;;  %v2066_v57 = vpack.c.bf16 %v1834_v58, %v1833_v44  ;;  %v9788_v58 = vpop.f32.mrf.mxu1 }
 0x1da   : > { %v1437_v8 = vpop.f32.mrf.mxu0 }
 0x1db   : > { %8254 = vmatprep.mubr.bf16.mxu1 %v2066_v57  ;;  %v1835_v27 = vadd.f32 %v9319_v0, %v1437_v8  ;;  %v9792_v35 = vpop.f32.mrf.mxu1 }
 0x1dc   : > { %v9777_v36 = vpop.f32.mrf.mxu0 }
 0x1dd   : > { %12959 = vst [vmem:[#allocation95_spill] sm:$0xff] %v9777_v36 }
 0x1de   : > { %v1441_v18 = vpop.f32.mrf.mxu0 }
 0x1df   : > { %v1836_v42 = vadd.f32 %v9319_v0, %v1441_v18  ;;  %v9798_v18 = vpop.f32.mrf.mxu1 }
 0x1e0   : > { %v9786_v23 = vpop.f32.mrf.mxu0 }
 0x1e1   : > { %12961 = vst [vmem:[#allocation97_spill] sm:$0xff] %v9786_v23  ;;  %v2067_v44 = vpack.c.bf16 %v1836_v42, %v1835_v27  ;;  %v9004_v27 = vld [vmem:[%s12853_s3 + $0x48] sm:$0xff]   ;;  %v9805_v42 = vpop.f32.mrf.mxu1 }
 0x1e2   : > { %v1447_v57 = vpop.f32.mrf.mxu0  ;;  %8334 = vmatprep.subr.bf16.mxu1 %v9004_v27 }
 0x1e3   : > { %8255 = vmatmul.mubr.bf16.gmra.mxu1 %v2067_v44  ;;  %v1837_v59 = vadd.f32 %v9319_v0, %v1447_v57  ;;  %v9807_v57 = vpop.f32.mrf.mxu1 }
 0x1e4   : > { %v9790_v36 = vpop.f32.mrf.mxu0  ;;  %8335 = vmatpush3.bf16.msra.mxu1 %v9004_v27 }
 0x1e5   : > { %12962 = vst [vmem:[#allocation98_spill] sm:$0xff] %v9790_v36 }
 0x1e6   : > { %v1451_v12 = vpop.f32.mrf.mxu0 }
 0x1e7   : > { %v1838_v7 = vadd.f32 %v9319_v0, %v1451_v12 }
 0x1e8   : > { %v9796_v8 = vpop.f32.mrf.mxu0 }
 0x1e9   : > { %12963 = vst [vmem:[#allocation99_spill] sm:$0xff] %v9796_v8  ;;  %v2068_v4 = vpack.c.bf16 %v1838_v7, %v1837_v59 }
 0x1ea   : > { %v1457_v23 = vpop.f32.mrf.mxu0 }
 0x1eb   : > { %8258 = vmatprep.mubr.bf16.mxu1 %v2068_v4  ;;  %v1839_v12 = vadd.f32 %v9319_v0, %v1457_v23 }
 0x1ec   : > { %v9800_v21 = vpop.f32.mrf.mxu0 }
 0x1ed   : > { %12964 = vst [vmem:[#allocation100_spill] sm:$0xff] %v9800_v21  ;;  %v9813_v21 = vpop.f32.mrf.mxu1 }
 0x1ee   : > { %v1461_v44 = vpop.f32.mrf.mxu0 }
 0x1ef   : > { %v1840_v36 = vadd.f32 %v9319_v0, %v1461_v44  ;;  %v9817_v54 = vpop.f32.mrf.mxu1 }
 0x1f0   : > { %v9811_v7 = vpop.f32.mrf.mxu0 }
 0x1f1   : > { %12965 = vst [vmem:[#allocation101_spill] sm:$0xff] %v9811_v7  ;;  %v2069_v59 = vpack.c.bf16 %v1840_v36, %v1839_v12  ;;  %v9823_v45 = vpop.f32.mrf.mxu1 }
 0x1f2   : > { %v1467_v4 = vpop.f32.mrf.mxu0 }
 0x1f3   : > { %8259 = vmatmul.mubr.bf16.gmra.mxu1 %v2069_v59  ;;  %v1841_v38 = vadd.f32 %v9319_v0, %v1467_v4  ;;  %v9827_v12 = vpop.f32.mrf.mxu1 }
 0x1f4   : > { %v9815_v8 = vpop.f32.mrf.mxu0 }
 0x1f5   : > { %12966 = vst [vmem:[#allocation102_spill] sm:$0xff] %v9815_v8  ;;  %v9833_v4 = vpop.f32.mrf.mxu1 }
 0x1f6   : > { %v1471_v9 = vpop.f32.mrf.mxu0 }
 0x1f7   : > { %v1842_v16 = vadd.f32 %v9319_v0, %v1471_v9 }
 0x1f8   : > { %v9821_v23 = vpop.f32.mrf.mxu0 }
 0x1f9   : > { %12967 = vst [vmem:[#allocation103_spill] sm:$0xff] %v9821_v23  ;;  %v2070_v44 = vpack.c.bf16 %v1842_v16, %v1841_v38  ;;  %v9837_v38 = vpop.f32.mrf.mxu1 }
 0x1fa   : > { %v1477_v27 = vpop.f32.mrf.mxu0 }
 0x1fb   : > { %8262 = vmatprep.mubr.bf16.mxu1 %v2070_v44  ;;  %v1843_v8 = vadd.f32 %v9319_v0, %v1477_v27  ;;  %v9843_v27 = vpop.f32.mrf.mxu1 }
 0x1fc   : > { %v9825_v36 = vpop.f32.mrf.mxu0 }
 0x1fd   : > { %12968 = vst [vmem:[#allocation104_spill] sm:$0xff] %v9825_v36  ;;  %v9845_v56 = vpop.f32.mrf.mxu1 }
 0x1fe   : > { %v1481_v59 = vpop.f32.mrf.mxu0  ;;  %12972 = vst [vmem:[#allocation108_spill] sm:$0xff] %v9845_v56 }
 0x1ff   : > { %v1844_v7 = vadd.f32 %v9319_v0, %v1481_v59 }
 0x200   : > { %v9831_v62 = vpop.f32.mrf.mxu0 }
 0x201   : > { %12969 = vst [vmem:[#allocation105_spill] sm:$0xff] %v9831_v62  ;;  %v2071_v9 = vpack.c.bf16 %v1844_v7, %v1843_v8  ;;  %v9005_v7 = vld [vmem:[%s12853_s3 + $0xa0] sm:$0xff]  }
 0x202   : > { %v1487_v23 = vpop.f32.mrf.mxu0  ;;  %8472 = vmatprep.subr.bf16.mxu0 %v9005_v7 }
 0x203   : > { %8263 = vmatmul.mubr.bf16.gmra.mxu1 %v2071_v9  ;;  %v1845_v36 = vadd.f32 %v9319_v0, %v1487_v23  ;;  %v9006_v23 = vld [vmem:[%s12853_s3 + $0x40] sm:$0xff]   ;;  %v9855_v9 = vpop.f32.mrf.mxu1  ;;  %8473 = vmatpush3.bf16.msra.mxu0 %v9005_v7 }
 0x204   : > { %v9835_v16 = vpop.f32.mrf.mxu0  ;;  %8336 = vmatprep.subr.bf16.mxu1 %v9006_v23 }
 0x205   : > { %12970 = vst [vmem:[#allocation106_spill] sm:$0xff] %v9835_v16  ;;  %8337 = vmatpush3.bf16.msra.mxu1 %v9006_v23 }
 0x206   : > { %v1491_v44 = vpop.f32.mrf.mxu0 }
 0x207   : > { %v1846_v28 = vadd.f32 %v9319_v0, %v1491_v44 }
 0x208   : > { %v9841_v41 = vpop.f32.mrf.mxu0 }
 0x209   : > { %12971 = vst [vmem:[#allocation107_spill] sm:$0xff] %v9841_v41  ;;  %v2072_v59 = vpack.c.bf16 %v1846_v28, %v1845_v36  ;;  %v9860_v28 = vld [vmem:[%s12852_s2] ss:$0 sm:$0xff]  ;;  %v9866_v41 = vpop.f32.mrf.mxu1 }
 0x20a   : > { %v1497_v62 = vpop.f32.mrf.mxu0 }
 0x20b   : > { %8266 = vmatprep.mubr.bf16.mxu1 %v2072_v59  ;;  %v1847_v36 = vadd.f32 %v9860_v28, %v1497_v62  ;;  %v9870_v11 = vpop.f32.mrf.mxu1 }
 0x20c   : > { %v9847_v8 = vpop.f32.mrf.mxu0 }
 0x20d   : > { %12973 = vst [vmem:[#allocation109_spill] sm:$0xff] %v9847_v8  ;;  %v9876_v7 = vpop.f32.mrf.mxu1 }
 0x20e   : > { %v1501_v0 = vpop.f32.mrf.mxu0  ;;  %12977 = vst [vmem:[#allocation113_spill] sm:$0xff] %v9876_v7 }
 0x20f   : > { %v1848_v44 = vadd.f32 %v9860_v28, %v1501_v0 }
 0x210   : > { %v9864_v59 = vpop.f32.mrf.mxu0 }
 0x211   : > { %12974 = vst [vmem:[#allocation110_spill] sm:$0xff] %v9864_v59  ;;  %v2073_v8 = vpack.c.bf16 %v1848_v44, %v1847_v36  ;;  %v9880_v44 = vpop.f32.mrf.mxu1 }
 0x212   : > { %v1507_v16 = vpop.f32.mrf.mxu0  ;;  %12979 = vst [vmem:[#allocation115_spill] sm:$0xff] %v9880_v44 }
 0x213   : > { %8267 = vmatmul.mubr.bf16.gmra.mxu1 %v2073_v8  ;;  %v1849_v26 = vadd.f32 %v9860_v28, %v1507_v16  ;;  %v9886_v16 = vpop.f32.mrf.mxu1 }
 0x214   : > { %v9868_v32 = vpop.f32.mrf.mxu0  ;;  %12981 = vst [vmem:[#allocation117_spill] sm:$0xff] %v9886_v16 }
 0x215   : > { %12975 = vst [vmem:[#allocation111_spill] sm:$0xff] %v9868_v32 }
 0x216   : > { %v1511_v47 = vpop.f32.mrf.mxu0 }
 0x217   : > { %v1850_v62 = vadd.f32 %v9860_v28, %v1511_v47 }
 0x218   : > { %v9874_v1 = vpop.f32.mrf.mxu0 }
 0x219   : > { %12976 = vst [vmem:[#allocation112_spill] sm:$0xff] %v9874_v1  ;;  %v2074_v23 = vpack.c.bf16 %v1850_v62, %v1849_v26  ;;  %v9890_v26 = vpop.f32.mrf.mxu1 }
 0x21a   : > { %v1517_v0 = vpop.f32.mrf.mxu0 }
 0x21b   : > { %8270 = vmatprep.mubr.bf16.mxu1 %v2074_v23  ;;  %v1851_v32 = vadd.f32 %v9860_v28, %v1517_v0  ;;  %v9892_v23 = vpop.f32.mrf.mxu1 }
 0x21c   : > { %v9878_v36 = vpop.f32.mrf.mxu0  ;;  %12983 = vst [vmem:[#allocation119_spill] sm:$0xff] %v9892_v23 }
 0x21d   : > { %12978 = vst [vmem:[#allocation114_spill] sm:$0xff] %v9878_v36  ;;  %v9898_v44 = vpop.f32.mrf.mxu1 }
 0x21e   : > { %v1521_v8 = vpop.f32.mrf.mxu0  ;;  %12985 = vst [vmem:[#allocation121_spill] sm:$0xff] %v9898_v44 }
 0x21f   : > { %v1852_v59 = vadd.f32 %v9860_v28, %v1521_v8 }
 0x220   : > { %v9884_v17 = vpop.f32.mrf.mxu0 }
 0x221   : > { %12980 = vst [vmem:[#allocation116_spill] sm:$0xff] %v9884_v17  ;;  %v2075_v47 = vpack.c.bf16 %v1852_v59, %v1851_v32 }
 0x222   : > { %v1527_v1 = vpop.f32.mrf.mxu0 }
 0x223   : > { %8271 = vmatmul.mubr.bf16.gmra.mxu1 %v2075_v47  ;;  %v1853_v36 = vadd.f32 %v9860_v28, %v1527_v1  ;;  %v9902_v47 = vpop.f32.mrf.mxu1 }
 0x224   : > { %v9888_v51 = vpop.f32.mrf.mxu0  ;;  %12987 = vst [vmem:[#allocation123_spill] sm:$0xff] %v9902_v47 }
 0x225   : > { %12982 = vst [vmem:[#allocation118_spill] sm:$0xff] %v9888_v51  ;;  %v9908_v56 = vpop.f32.mrf.mxu1 }
 0x226   : > { %v1531_v62 = vpop.f32.mrf.mxu0  ;;  %12989 = vst [vmem:[#allocation125_spill] sm:$0xff] %v9908_v56 }
 0x227   : > { %v1854_v0 = vadd.f32 %v9860_v28, %v1531_v62 }
 0x228   : > { %v9896_v7 = vpop.f32.mrf.mxu0 }
 0x229   : > { %12984 = vst [vmem:[#allocation120_spill] sm:$0xff] %v9896_v7  ;;  %v2076_v8 = vpack.c.bf16 %v1854_v0, %v1853_v36  ;;  %v9912_v0 = vpop.f32.mrf.mxu1 }
 0x22a   : > { %v1537_v17 = vpop.f32.mrf.mxu0  ;;  %12991 = vst [vmem:[#allocation127_spill] sm:$0xff] %v9912_v0 }
 0x22b   : > { %8274 = vmatprep.mubr.bf16.mxu1 %v2076_v8  ;;  %v1855_v51 = vadd.f32 %v9860_v28, %v1537_v17  ;;  %v9918_v17 = vpop.f32.mrf.mxu1 }
 0x22c   : > { %v9900_v32 = vpop.f32.mrf.mxu0  ;;  %12993 = vst [vmem:[#allocation129_spill] sm:$0xff] %v9918_v17 }
 0x22d   : > { %12986 = vst [vmem:[#allocation122_spill] sm:$0xff] %v9900_v32 }
 0x22e   : > { %v1541_v59 = vpop.f32.mrf.mxu0 }
 0x22f   : > { %v1856_v23 = vadd.f32 %v9860_v28, %v1541_v59 }
 0x230   : > { %v9906_v16 = vpop.f32.mrf.mxu0 }
 0x231   : > { %12988 = vst [vmem:[#allocation124_spill] sm:$0xff] %v9906_v16  ;;  %v2077_v1 = vpack.c.bf16 %v1856_v23, %v1855_v51  ;;  %v9007_v23 = vld [vmem:[%s12853_s3 + $0x98] sm:$0xff]  }
 0x232   : > { %v1547_v62 = vpop.f32.mrf.mxu0  ;;  %8474 = vmatprep.subr.bf16.mxu0 %v9007_v23 }
 0x233   : > { %8275 = vmatmul.mubr.bf16.gmra.mxu1 %v2077_v1  ;;  %v1857_v32 = vadd.f32 %v9860_v28, %v1547_v62  ;;  %v9925_v1 = vpop.f32.mrf.mxu1  ;;  %8475 = vmatpush3.bf16.msra.mxu0 %v9007_v23 }
 0x234   : > { %v9910_v36 = vpop.f32.mrf.mxu0  ;;  %12995 = vst [vmem:[#allocation131_spill] sm:$0xff] %v9925_v1 }
 0x235   : > { %12990 = vst [vmem:[#allocation126_spill] sm:$0xff] %v9910_v36 }
 0x236   : > { %v1551_v8 = vpop.f32.mrf.mxu0 }
 0x237   : > { %v1858_v7 = vadd.f32 %v9860_v28, %v1551_v8 }
 0x238   : > { %v9916_v47 = vpop.f32.mrf.mxu0 }
 0x239   : > { %12992 = vst [vmem:[#allocation128_spill] sm:$0xff] %v9916_v47  ;;  %v2078_v59 = vpack.c.bf16 %v1858_v7, %v1857_v32  ;;  %v9931_v7 = vpop.f32.mrf.mxu1 }
 0x23a   : > { %v1557_v16 = vpop.f32.mrf.mxu0 }
 0x23b   : > { %8278 = vmatprep.mubr.bf16.mxu1 %v2078_v59  ;;  %v1859_v62 = vadd.f32 %v9860_v28, %v1557_v16 }
 0x23c   : > { %v9920_v51 = vpop.f32.mrf.mxu0 }
 0x23d   : > { %12994 = vst [vmem:[#allocation130_spill] sm:$0xff] %v9920_v51  ;;  %v9933_v51 = vpop.f32.mrf.mxu1 }
 0x23e   : > { %v1561_v36 = vpop.f32.mrf.mxu0  ;;  %12997 = vst [vmem:[#allocation133_spill] sm:$0xff] %v9933_v51 }
 0x23f   : > { %v1860_v8 = vadd.f32 %v9860_v28, %v1561_v36  ;;  %v9937_v1 = vpop.f32.mrf.mxu1 }
 0x240   : > { %v9929_v47 = vpop.f32.mrf.mxu0  ;;  %12999 = vst [vmem:[#allocation135_spill] sm:$0xff] %v9937_v1 }
 0x241   : > { %12996 = vst [vmem:[#allocation132_spill] sm:$0xff] %v9929_v47  ;;  %v2079_v32 = vpack.c.bf16 %v1860_v8, %v1859_v62  ;;  %v9943_v56 = vpop.f32.mrf.mxu1 }
 0x242   : > { %v1567_v59 = vpop.f32.mrf.mxu0  ;;  %13001 = vst [vmem:[#allocation137_spill] sm:$0xff] %v9943_v56 }
 0x243   : > { %8279 = vmatmul.mubr.bf16.gmra.mxu1 %v2079_v32  ;;  %v1861_v44 = vadd.f32 %v9860_v28, %v1567_v59  ;;  %v9947_v32 = vpop.f32.mrf.mxu1 }
 0x244   : > { %v9935_v0 = vpop.f32.mrf.mxu0  ;;  %13003 = vst [vmem:[#allocation139_spill] sm:$0xff] %v9947_v32 }
 0x245   : > { %12998 = vst [vmem:[#allocation134_spill] sm:$0xff] %v9935_v0  ;;  %v9953_v59 = vpop.f32.mrf.mxu1 }
 0x246   : > { %v1571_v17 = vpop.f32.mrf.mxu0  ;;  %13005 = vst [vmem:[#allocation141_spill] sm:$0xff] %v9953_v59 }
 0x247   : > { %v1862_v16 = vadd.f32 %v9860_v28, %v1571_v17 }
 0x248   : > { %v9941_v36 = vpop.f32.mrf.mxu0 }
 0x249   : > { %13000 = vst [vmem:[#allocation136_spill] sm:$0xff] %v9941_v36  ;;  %v2080_v23 = vpack.c.bf16 %v1862_v16, %v1861_v44  ;;  %v9957_v16 = vpop.f32.mrf.mxu1 }
 0x24a   : > { %v1577_v47 = vpop.f32.mrf.mxu0  ;;  %13007 = vst [vmem:[#allocation143_spill] sm:$0xff] %v9957_v16 }
 0x24b   : > { %8282 = vmatprep.mubr.bf16.mxu1 %v2080_v23  ;;  %v1863_v0 = vadd.f32 %v9860_v28, %v1577_v47  ;;  %v9963_v47 = vpop.f32.mrf.mxu1 }
 0x24c   : > { %v9945_v62 = vpop.f32.mrf.mxu0 }
 0x24d   : > { %13002 = vst [vmem:[#allocation138_spill] sm:$0xff] %v9945_v62 }
 0x24e   : > { %v1581_v8 = vpop.f32.mrf.mxu0 }
 0x24f   : > { %v1864_v51 = vadd.f32 %v9860_v28, %v1581_v8 }
 0x250   : > { %v9951_v1 = vpop.f32.mrf.mxu0 }
 0x251   : > { %13004 = vst [vmem:[#allocation140_spill] sm:$0xff] %v9951_v1  ;;  %v2081_v17 = vpack.c.bf16 %v1864_v51, %v1863_v0  ;;  %v9967_v0 = vpop.f32.mrf.mxu1 }
 0x252   : > { %v1587_v36 = vpop.f32.mrf.mxu0 }
 0x253   : > { %8283 = vmatmul.mubr.bf16.gmra.mxu1 %v2081_v17  ;;  %v1865_v62 = vadd.f32 %v9860_v28, %v1587_v36  ;;  %v9969_v17 = vpop.f32.mrf.mxu1 }
 0x254   : > { %v9955_v44 = vpop.f32.mrf.mxu0 }
 0x255   : > { %13006 = vst [vmem:[#allocation142_spill] sm:$0xff] %v9955_v44 }
 0x256   : > { %v1591_v23 = vpop.f32.mrf.mxu0 }
 0x257   : > { %v1866_v56 = vadd.f32 %v9860_v28, %v1591_v23  ;;  %v9973_v23 = vpop.f32.mrf.mxu1 }
 0x258   : > { %v9961_v32 = vpop.f32.mrf.mxu0 }
 0x259   : > { %13008 = vst [vmem:[#allocation144_spill] sm:$0xff] %v9961_v32  ;;  %v2082_v8 = vpack.c.bf16 %v1866_v56, %v1865_v62  ;;  %v13010_v56 = vpack.c.bf16 %v9332_v10, %v9326_v3  ;;  %v9978_v62 = vpop.f32.mrf.mxu1  ;;  %v13013_v10 = vpack.c.bf16 %v9395_v55, %v9389_v49 }
 0x25a   : > { %v1597_v1 = vpop.f32.mrf.mxu0 }
 0x25b   : > { %8286 = vmatprep.mubr.bf16.mxu1 %v2082_v8  ;;  %v1867_v44 = vadd.f32 %v9860_v28, %v1597_v1  ;;  %v9980_v8 = vpop.f32.mrf.mxu1  ;;  %v13012_v1 = vpack.c.bf16 %v9374_v40, %v9368_v34 }
 0x25c   : > { %v9965_v59 = vpop.f32.mrf.mxu0 }
 0x25d   : > { %13009 = vst [vmem:[#allocation145_spill] sm:$0xff] %v9965_v59  ;;  %v13011_v59 = vpack.c.bf16 %v9353_v25, %v9347_v19  ;;  %v13014_v19 = vpack.c.bf16 %v9416_v15, %v9410_v5  ;;  %v13017_v5 = vpack.c.bf16 %v9479_v6, %v9473_v50  ;;  %v13018_v15 = vpack.c.bf16 %v9500_v53, %v9494_v61 }
 0x25e   : > { %v1601_v51 = vpop.f32.mrf.mxu0  ;;  %v13021_v6 = vpack.c.bf16 %v9566_v30, %v9560_v14  ;;  %v13022_v61 = vpack.c.bf16 %v9587_v63, %v9581_v52  ;;  %v1896_v53 = vadd.f32 %v9860_v28, %v9732_v39  ;;  %v10058_v52 = vld [vmem:[%s12854_s4] ss:$0 sm:$0xff] }
 0x25f   : > { %v1868_v36 = vadd.f32 %v9860_v28, %v1601_v51  ;;  %v13016_v51 = vpack.c.bf16 %v9458_v13, %v9452_v60  ;;  %v13020_v60 = vpack.c.bf16 %v9545_v22, %v9539_v29  ;;  %v1897_v29 = vadd.f32 %v9860_v28, %v9742_v20 }
 0x260   : > { %v1898_v22 = vadd.f32 %v9860_v28, %v9752_v33  ;;  %v2206_v20 = vadd.f32 %v10058_v52, %v9792_v35  ;;  %v9009_v33 = vld [vmem:[%s12853_s3 + $0x88] sm:$0xff]   ;;  %v2217_v35 = vadd.f32 %v9798_v18, %v10058_v52 }
 0x261   : > { %v2083_v16 = vpack.c.bf16 %v1868_v36, %v1867_v44  ;;  %v9008_v44 = vld [vmem:[%s12853_s3 + $0x90] sm:$0xff]  }
 0x262   : > { %8476 = vmatprep.subr.bf16.mxu0 %v9008_v44  ;;  %v2098_v63 = vpack.c.bf16 %v1898_v22, %v1897_v29 }
 0x263   : > { %8287 = vmatmul.mubr.bf16.gmra.mxu1 %v2083_v16  ;;  %v9991_v16 = vpop.f32.mrf.mxu1  ;;  %8477 = vmatpush3.bf16.msra.mxu0 %v9008_v44 }
 0x264   : > { %8290 = vmatprep.mubr.bf16.mxu1 %v13010_v56  ;;  %v1899_v56 = vadd.f32 %v9860_v28, %v9765_v48  ;;  %8478 = vmatprep.subr.bf16.mxu0 %v9009_v33  ;;  %v2214_v48 = vadd.f32 %v9788_v58, %v10058_v52  ;;  %v2241_v58 = vadd.f32 %v10058_v52, %v9843_v27 }
 0x265   : > { %v9993_v3 = vpop.f32.mrf.mxu1 }
 0x267   : > { %v10001_v25 = vpop.f32.mrf.mxu1  ;;  %8479 = vmatpush3.bf16.msra.mxu0 %v9009_v33 }
 0x269   : > { %v10003_v34 = vpop.f32.mrf.mxu1 }
 0x26b   : > { %8291 = vmatmul.mubr.bf16.gmra.mxu1 %v13011_v59  ;;  %v10005_v40 = vpop.f32.mrf.mxu1  ;;  %v13015_v59 = vpack.c.bf16 %v9437_v43, %v9431_v31  ;;  %v13019_v43 = vpack.c.bf16 %v9524_v24, %v9518_v37  ;;  %v1895_v24 = vadd.f32 %v9860_v28, %v9722_v2  ;;  %v2209_v2 = vadd.f32 %v10058_v52, %v9805_v42 }
 0x26c   : > { %8294 = vmatprep.mubr.bf16.mxu1 %v13012_v1  ;;  %v1900_v1 = vadd.f32 %v9860_v28, %v9775_v46  ;;  %v2222_v46 = vadd.f32 %v10058_v52, %v9813_v21  ;;  %v2719_v28 = vmax.f32 %v2217_v35, 0.0  ;;  %v2230_v21 = vadd.f32 %v9807_v57, %v10058_v52 }
 0x26d   : > { %v10013_v49 = vpop.f32.mrf.mxu1  ;;  %v2097_v30 = vpack.c.bf16 %v1896_v53, %v1895_v24  ;;  %v2717_v44 = vmax.f32 %v2209_v2, 0.0  ;;  %v2238_v53 = vadd.f32 %v10058_v52, %v9833_v4  ;;  %v2257_v57 = vadd.f32 %v10058_v52, %v9870_v11 }
 0x26e   : > { %v2720_v18 = vmax.f32 %v2222_v46, 0.0  ;;  %v2246_v4 = vadd.f32 %v9827_v12, %v10058_v52  ;;  %v2265_v11 = vadd.f32 %v9866_v41, %v10058_v52  ;;  %v2273_v12 = vadd.f32 %v10058_v52, %v9890_v26  ;;  %v13025_v26 = vld [vmem:[#allocation117_spill] sm:$0xff] }
 0x26f   : > { %v10015_v55 = vpop.f32.mrf.mxu1 }
 0x271   : > { %v10023_v36 = vpop.f32.mrf.mxu1 }
 0x273   : > { %8295 = vmatmul.mubr.bf16.gmra.mxu1 %v13013_v10  ;;  %v10025_v31 = vpop.f32.mrf.mxu1  ;;  %v2716_v10 = vmax.f32 %v2206_v20, 0.0  ;;  %v2249_v20 = vadd.f32 %v9837_v38, %v10058_v52 }
 0x274   : > { %8298 = vmatprep.mubr.bf16.mxu1 %v13014_v19  ;;  %v2099_v19 = vpack.c.bf16 %v1900_v1, %v1899_v56  ;;  %v2254_v1 = vadd.f32 %v10058_v52, %v9855_v9  ;;  %v13024_v9 = vld [vmem:[#allocation115_spill] sm:$0xff] }
 0x275   : > { %v10033_v13 = vpop.f32.mrf.mxu1 }
 0x276   : > { %v2728_v35 = vmax.f32 %v2254_v1, 0.0 }
 0x277   : > { %v10035_v50 = vpop.f32.mrf.mxu1 }
 0x279   : > { %v10047_v37 = vpop.f32.mrf.mxu1 }
 0x27b   : > { %8299 = vmatmul.mubr.bf16.gmra.mxu1 %v13015_v59  ;;  %v2225_v59 = vadd.f32 %v10058_v52, %v9823_v45  ;;  %v2233_v45 = vadd.f32 %v9817_v54, %v10058_v52  ;;  %v2724_v54 = vmax.f32 %v2238_v53, 0.0  ;;  %v13026_v53 = vld [vmem:[#allocation125_spill] sm:$0xff] }
 0x27c   : > { %8302 = vmatprep.mubr.bf16.mxu1 %v13016_v51  ;;  %v2844_v51 = vpack.c.bf16 %v2717_v44, %v2716_v10  ;;  %v2727_v44 = vmax.f32 %v2249_v20, 0.0  ;;  %v2729_v10 = vmax.f32 %v2257_v57, 0.0 }
 0x27d   : > { %v2723_v29 = vmax.f32 %v2233_v45, 0.0 }
 0x283   : > { %8303 = vmatmul.mubr.bf16.gmra.mxu1 %v13017_v5  ;;  %v10053_v14 = vpop.f32.mrf.mxu1 }
 0x284   : > { %8306 = vmatprep.mubr.bf16.mxu1 %v13018_v15 }
 0x285   : > { %v10062_v39 = vpop.f32.mrf.mxu1 }
 0x287   : > { %v10073_v42 = vpop.f32.mrf.mxu1 }
 0x289   : > { %v10081_v5 = vpop.f32.mrf.mxu1 }
 0x28b   : > { %8307 = vmatmul.mubr.bf16.gmra.mxu1 %v13019_v43  ;;  %v2721_v43 = vmax.f32 %v2225_v59, 0.0 }
 0x28c   : > { %8310 = vmatprep.mubr.bf16.mxu1 %v13020_v60  ;;  %v2718_v60 = vmax.f32 %v2214_v48, 0.0  ;;  %v13023_v48 = vld [vmem:[#allocation108_spill] sm:$0xff] }
 0x28d   : > { %v2846_v24 = vpack.c.bf16 %v2721_v43, %v2720_v18  ;;  %v2262_v46 = vadd.f32 %v13023_v48, %v10058_v52  ;;  %v2270_v43 = vadd.f32 %v10058_v52, %v13024_v9  ;;  %v2733_v18 = vmax.f32 %v2273_v12, 0.0 }
 0x28f   : > { %v2732_v41 = vmax.f32 %v2270_v43, 0.0  ;;  %v13031_v43 = vld [vmem:[#allocation129_spill] sm:$0xff] }
 0x293   : > { %8311 = vmatmul.mubr.bf16.gmra.mxu1 %v13021_v6  ;;  %v10085_v15 = vpop.f32.mrf.mxu1  ;;  %v2845_v6 = vpack.c.bf16 %v2719_v28, %v2718_v60  ;;  %v2731_v60 = vmax.f32 %v2265_v11, 0.0 }
 0x294   : > { %8314 = vmatprep.mubr.bf16.mxu1 %v13022_v61 }
 0x295   : > { %v10089_v61 = vpop.f32.mrf.mxu1 }
 0x297   : > { %v10097_v22 = vpop.f32.mrf.mxu1 }
 0x299   : > { %v10101_v27 = vpop.f32.mrf.mxu1 }
 0x29b   : > { %8315 = vmatmul.mubr.bf16.gmra.mxu1 %v2097_v30  ;;  %v2725_v30 = vmax.f32 %v2241_v58, 0.0 }
 0x29c   : > { %8318 = vmatprep.mubr.bf16.mxu1 %v2098_v63  ;;  %v2722_v63 = vmax.f32 %v2230_v21, 0.0 }
 0x29d   : > { %v2848_v33 = vpack.c.bf16 %v2725_v30, %v2724_v54  ;;  %v2852_v30 = vpack.c.bf16 %v2733_v18, %v2732_v41  ;;  %v9013_v18 = vld [vmem:[%s12853_s3 + $0x80] sm:$0xff]  }
 0x29e   : > { %v2847_v2 = vpack.c.bf16 %v2723_v29, %v2722_v63  ;;  %v2289_v29 = vadd.f32 %v10058_v52, %v13026_v53  ;;  %v13027_v63 = vld [vmem:[#allocation113_spill] sm:$0xff]  ;;  %8480 = vmatprep.subr.bf16.mxu0 %v9013_v18 }
 0x29f   : > { %v2278_v54 = vadd.f32 %v13027_v63, %v10058_v52  ;;  %8481 = vmatpush3.bf16.msra.mxu0 %v9013_v18  ;;  %v13033_v63 = vld [vmem:[#allocation139_spill] sm:$0xff] }
 0x2a1   : > { %v2734_v1 = vmax.f32 %v2278_v54, 0.0  ;;  %v2321_v54 = vadd.f32 %v10058_v52, %v13033_v63 }
 0x2a3   : > { %8319 = vmatmul.mubr.bf16.gmra.mxu1 %v2099_v19  ;;  %v10107_v56 = vpop.f32.mrf.mxu1  ;;  %v2726_v19 = vmax.f32 %v2246_v4, 0.0  ;;  %v2737_v4 = vmax.f32 %v2289_v29, 0.0  ;;  %v13032_v29 = vld [vmem:[#allocation131_spill] sm:$0xff] }
 0x2a4   : > { %8338 = vmatprep.mubr.bf16.mxu1 %v2844_v51  ;;  %v2850_v51 = vpack.c.bf16 %v2729_v10, %v2728_v35  ;;  %v9010_v10 = vld [vmem:[%s12855_s5 + $0x70] ss:$8 sps:$4 sm:$0xff]  }
 0x2a5   : > { %v10111_v38 = vpop.f32.mrf.mxu1  ;;  %v2849_v59 = vpack.c.bf16 %v2727_v44, %v2726_v19  ;;  %v9012_v19 = vld [vmem:[%s12855_s5 + $0x74] ss:$8 sps:$4 sm:$0xff]  }
 0x2a6   : > { %4624 = vmatprep.subr.bf16.mxu1 %v9012_v19  ;;  %v2745_v19 = vmax.f32 %v2321_v54, 0.0 }
 0x2a7   : > { %v10119_v28 = vpop.f32.mrf.mxu1 }
 0x2a9   : > { %v10123_v45 = vpop.f32.mrf.mxu1 }
 0x2ab   : > { %8339 = vmatmul.mubr.bf16.vlgmr.msra.gmra.mxu1 %v2845_v6  ;;  %v2730_v6 = vmax.f32 %v2262_v46, 0.0  ;;  %v13030_v46 = vld [vmem:[#allocation119_spill] sm:$0xff] }
 0x2ac   : > { %8342 = vmatprep.mubr.bf16.mxu1 %v2846_v24  ;;  %v2281_v24 = vadd.f32 %v13025_v26, %v10058_v52  ;;  %v2294_v9 = vadd.f32 %v13030_v46, %v10058_v52  ;;  %4625 = vmatpush1.bf16.msra.mxu1 %v9010_v10 }
 0x2ad   : > { %v2851_v58 = vpack.c.bf16 %v2731_v60, %v2730_v6  ;;  %v2302_v60 = vadd.f32 %v10058_v52, %v13031_v43 }
 0x2ae   : > { %v2735_v57 = vmax.f32 %v2281_v24, 0.0 }
 0x2af   : > { %v2740_v24 = vmax.f32 %v2302_v60, 0.0  ;;  %v13037_v60 = vld [vmem:[#allocation133_spill] sm:$0xff] }
 0x2b0   : > { %v2853_v35 = vpack.c.bf16 %v2735_v57, %v2734_v1  ;;  %v13035_v1 = vld [vmem:[#allocation135_spill] sm:$0xff]  ;;  %v2326_v18 = vadd.f32 %v13037_v60, %v10058_v52 }
 0x2b3   : > { %8343 = vmatmul.mubr.bf16.gmra.mxu1 %v2847_v2  ;;  %v10127_v21 = vpop.f32.mrf.mxu1  ;;  %v13028_v2 = vld [vmem:[#allocation121_spill] sm:$0xff] }
 0x2b4   : > { %8346 = vmatprep.mubr.bf16.mxu1 %v2848_v33  ;;  %v2286_v20 = vadd.f32 %v10058_v52, %v13028_v2 }
 0x2b5   : > { %v10135_v33 = vpop.f32.mrf.mxu1 }
 0x2b6   : > { %v2736_v44 = vmax.f32 %v2286_v20, 0.0  ;;  %v13034_v20 = vld [vmem:[#allocation127_spill] sm:$0xff] }
 0x2b7   : > { %v10145_v12 = vpop.f32.mrf.mxu1  ;;  %v2310_v57 = vadd.f32 %v13034_v20, %v10058_v52  ;;  %v2353_v20 = vadd.f32 %v10058_v52, %v9980_v8  ;;  %v9016_v8 = vld [vmem:[%s12855_s5 + $0x64] ss:$8 sps:$4 sm:$0xff]  }
 0x2b8   : > { %v2854_v48 = vpack.c.bf16 %v2737_v4, %v2736_v44  ;;  %v2318_v44 = vadd.f32 %v10058_v52, %v13035_v1  ;;  %v13039_v1 = vld [vmem:[#allocation141_spill] sm:$0xff]  ;;  %4626 = vmatprep.subr.bf16.mxu1 %v9016_v8 }
 0x2b9   : > { %v10156_v41 = vpop.f32.mrf.mxu1 }
 0x2bb   : > { %8347 = vmatmul.mubr.bf16.gmra.mxu1 %v2849_v59  ;;  %v13029_v59 = vld [vmem:[#allocation123_spill] sm:$0xff] }
 0x2bc   : > { %8350 = vmatprep.mubr.bf16.mxu1 %v2850_v51  ;;  %v2297_v11 = vadd.f32 %v13029_v59, %v10058_v52  ;;  %v2305_v51 = vadd.f32 %v10058_v52, %v9931_v7  ;;  %v2738_v7 = vmax.f32 %v2294_v9, 0.0  ;;  %v2337_v9 = vadd.f32 %v10058_v52, %v9967_v0 }
 0x2bd   : > { %v2345_v0 = vadd.f32 %v9963_v47, %v10058_v52 }
 0x2be   : > { %v2739_v6 = vmax.f32 %v2297_v11, 0.0  ;;  %v2744_v11 = vmax.f32 %v2318_v44, 0.0  ;;  %v2342_v44 = vadd.f32 %v13039_v1, %v10058_v52 }
 0x2c0   : > { %v2855_v53 = vpack.c.bf16 %v2739_v6, %v2738_v7  ;;  %v2858_v43 = vpack.c.bf16 %v2745_v19, %v2744_v11  ;;  %v2751_v19 = vmax.f32 %v2345_v0, 0.0  ;;  %v2753_v11 = vmax.f32 %v2353_v20, 0.0 }
 0x2c1   : > { %v2374_v20 = vadd.f32 %v9991_v16, %v10058_v52  ;;  %v2401_v16 = vadd.f32 %v10058_v52, %v10047_v37 }
 0x2c3   : > { %8351 = vmatmul.mubr.bf16.gmra.mxu1 %v2851_v58  ;;  %v2741_v58 = vmax.f32 %v2305_v51, 0.0  ;;  %v10158_v26 = vpop.f32.mrf.mxu1 }
 0x2c4   : > { %8354 = vmatprep.mubr.bf16.mxu1 %v2852_v30  ;;  %v2313_v30 = vadd.f32 %v13032_v29, %v10058_v52  ;;  %v2749_v29 = vmax.f32 %v2337_v9, 0.0  ;;  %v2361_v9 = vadd.f32 %v9978_v62, %v10058_v52 }
 0x2c5   : > { %v2856_v2 = vpack.c.bf16 %v2741_v58, %v2740_v24  ;;  %v10166_v4 = vpop.f32.mrf.mxu1  ;;  %v13038_v58 = vld [vmem:[#allocation143_spill] sm:$0xff] }
 0x2c6   : > { %v2743_v10 = vmax.f32 %v2313_v30, 0.0  ;;  %v2334_v7 = vadd.f32 %v10058_v52, %v13038_v58  ;;  %v2746_v30 = vmax.f32 %v2326_v18, 0.0  ;;  %v2358_v18 = vadd.f32 %v9969_v17, %v10058_v52 }
 0x2c7   : > { %v10170_v59 = vpop.f32.mrf.mxu1  ;;  %v2385_v17 = vadd.f32 %v10058_v52, %v10023_v36  ;;  %v2393_v36 = vadd.f32 %v10015_v55, %v10058_v52 }
 0x2c8   : > { %v2748_v63 = vmax.f32 %v2334_v7, 0.0  ;;  %v2366_v7 = vadd.f32 %v10058_v52, %v9993_v3 }
 0x2c9   : > { %v10178_v6 = vpop.f32.mrf.mxu1  ;;  %v2763_v8 = vmax.f32 %v2393_v36, 0.0 }
 0x2cb   : > { %8355 = vmatmul.mubr.bf16.gmra.mxu1 %v2853_v35  ;;  %v2742_v35 = vmax.f32 %v2310_v57, 0.0  ;;  %v2860_v57 = vpack.c.bf16 %v2749_v29, %v2748_v63  ;;  %v2754_v29 = vmax.f32 %v2358_v18, 0.0  ;;  %v2756_v63 = vmax.f32 %v2366_v7, 0.0 }
 0x2cc   : > { %8358 = vmatprep.mubr.bf16.mxu1 %v2854_v48  ;;  %v13036_v48 = vld [vmem:[#allocation137_spill] sm:$0xff]  ;;  %v2409_v18 = vadd.f32 %v10035_v50, %v10058_v52 }
 0x2cd   : > { %v2857_v51 = vpack.c.bf16 %v2743_v10, %v2742_v35  ;;  %v2329_v46 = vadd.f32 %v13036_v48, %v10058_v52  ;;  %v2350_v10 = vadd.f32 %v10058_v52, %v9973_v23  ;;  %v9014_v48 = vld [vmem:[%s12855_s5 + $0x60] ss:$8 sps:$4 sm:$0xff]  }
 0x2ce   : > { %4627 = vmatpush1.bf16.msra.mxu1 %v9014_v48  ;;  %v2398_v48 = vadd.f32 %v10058_v52, %v10033_v13  ;;  %v2406_v13 = vadd.f32 %v10025_v31, %v10058_v52  ;;  %v9019_v31 = vld [vmem:[%s12855_s5 + $0x54] ss:$8 sps:$4 sm:$0xff]  }
 0x2cf   : > { %v2747_v24 = vmax.f32 %v2329_v46, 0.0  ;;  %v2752_v47 = vmax.f32 %v2350_v10, 0.0  ;;  %v2758_v10 = vmax.f32 %v2374_v20, 0.0  ;;  %4628 = vmatprep.subr.bf16.mxu1 %v9019_v31 }
 0x2d0   : > { %v2764_v55 = vmax.f32 %v2398_v48, 0.0  ;;  %v2446_v48 = vadd.f32 %v10058_v52, %v10111_v38  ;;  %v2454_v38 = vadd.f32 %v10107_v56, %v10058_v52  ;;  %v2481_v56 = vadd.f32 %v10058_v52, %v10178_v6  ;;  %v9020_v6 = vld [vmem:[%s12855_s5 + $0x40] ss:$8 sps:$4 sm:$0xff]  }
 0x2d1   : > { %v2859_v54 = vpack.c.bf16 %v2747_v24, %v2746_v30  ;;  %v2862_v60 = vpack.c.bf16 %v2753_v11, %v2752_v47  ;;  %v2755_v24 = vmax.f32 %v2361_v9, 0.0  ;;  %v2765_v9 = vmax.f32 %v2401_v16, 0.0 }
 0x2d2   : > { %v2441_v16 = vadd.f32 %v10097_v22, %v10058_v52  ;;  %v2776_v22 = vmax.f32 %v2446_v48, 0.0 }
 0x2d3   : > { %8359 = vmatmul.mubr.bf16.gmra.mxu1 %v2855_v53  ;;  %v10182_v53 = vpop.f32.mrf.mxu1  ;;  %v2868_v7 = vpack.c.bf16 %v2765_v9, %v2764_v55 }
 0x2d4   : > { %8362 = vmatprep.mubr.bf16.mxu1 %v2856_v2 }
 0x2d5   : > { %v10186_v2 = vpop.f32.mrf.mxu1 }
 0x2d7   : > { %v10194_v35 = vpop.f32.mrf.mxu1 }
 0x2d9   : > { %v10204_v23 = vpop.f32.mrf.mxu1 }
 0x2db   : > { %8363 = vmatmul.mubr.bf16.gmra.mxu1 %v2857_v51  ;;  %v2750_v51 = vmax.f32 %v2342_v44, 0.0  ;;  %v2761_v44 = vmax.f32 %v2385_v17, 0.0 }
 0x2dc   : > { %8366 = vmatprep.mubr.bf16.mxu1 %v2858_v43  ;;  %v2369_v43 = vadd.f32 %v10058_v52, %v10003_v34  ;;  %v2863_v34 = vpack.c.bf16 %v2755_v24, %v2754_v29  ;;  %v2414_v24 = vadd.f32 %v10058_v52, %v10062_v39  ;;  %v2425_v39 = vadd.f32 %v10073_v42, %v10058_v52 }
 0x2dd   : > { %v2861_v46 = vpack.c.bf16 %v2751_v19, %v2750_v51 }
 0x2de   : > { %v2757_v62 = vmax.f32 %v2369_v43, 0.0 }
 0x2e0   : > { %v2864_v0 = vpack.c.bf16 %v2757_v62, %v2756_v63  ;;  %v2767_v62 = vmax.f32 %v2409_v18, 0.0 }
 0x2e3   : > { %8367 = vmatmul.mubr.bf16.gmra.mxu1 %v2859_v54  ;;  %v10210_v58 = vpop.f32.mrf.mxu1  ;;  %v2377_v54 = vadd.f32 %v10001_v25, %v10058_v52 }
 0x2e4   : > { %8370 = vmatprep.mubr.bf16.mxu1 %v2860_v57  ;;  %v2382_v57 = vadd.f32 %v10058_v52, %v10013_v49  ;;  %v2390_v49 = vadd.f32 %v10005_v40, %v10058_v52  ;;  %v2417_v40 = vadd.f32 %v10058_v52, %v10081_v5  ;;  %v9017_v5 = vld [vmem:[%s12855_s5 + $0x50] ss:$8 sps:$4 sm:$0xff]  }
 0x2e5   : > { %v10214_v30 = vpop.f32.mrf.mxu1  ;;  %v2759_v1 = vmax.f32 %v2377_v54, 0.0  ;;  %v2768_v54 = vmax.f32 %v2414_v24, 0.0  ;;  %4629 = vmatpush1.bf16.msra.mxu1 %v9017_v5 }
 0x2e6   : > { %v2760_v25 = vmax.f32 %v2382_v57, 0.0  ;;  %v2762_v43 = vmax.f32 %v2390_v49, 0.0  ;;  %v2769_v63 = vmax.f32 %v2417_v40, 0.0  ;;  %v2422_v57 = vadd.f32 %v10053_v14, %v10058_v52 }
 0x2e7   : > { %v10222_v3 = vpop.f32.mrf.mxu1  ;;  %v2865_v11 = vpack.c.bf16 %v2759_v1, %v2758_v10  ;;  %v2771_v10 = vmax.f32 %v2425_v39, 0.0  ;;  %v2449_v14 = vadd.f32 %v10058_v52, %v10123_v45  ;;  %v2438_v49 = vadd.f32 %v10085_v15, %v10058_v52 }
 0x2e8   : > { %v2866_v47 = vpack.c.bf16 %v2761_v44, %v2760_v25  ;;  %v2870_v20 = vpack.c.bf16 %v2769_v63, %v2768_v54  ;;  %v2430_v44 = vadd.f32 %v10058_v52, %v10089_v61  ;;  %v2457_v45 = vadd.f32 %v10119_v28, %v10058_v52 }
 0x2e9   : > { %v10226_v19 = vpop.f32.mrf.mxu1  ;;  %v2774_v55 = vmax.f32 %v2438_v49, 0.0  ;;  %v2465_v15 = vadd.f32 %v10058_v52, %v10156_v41  ;;  %v2778_v63 = vmax.f32 %v2454_v38, 0.0  ;;  %v2473_v54 = vadd.f32 %v10145_v12, %v10058_v52 }
 0x2ea   : > { %v2772_v36 = vmax.f32 %v2430_v44, 0.0  ;;  %v2785_v12 = vmax.f32 %v2481_v56, 0.0 }
 0x2eb   : > { %8371 = vmatmul.mubr.bf16.gmra.mxu1 %v2861_v46  ;;  %v2783_v39 = vmax.f32 %v2473_v54, 0.0 }
 0x2ec   : > { %8374 = vmatprep.mubr.bf16.mxu1 %v2862_v60  ;;  %v2867_v60 = vpack.c.bf16 %v2763_v8, %v2762_v43  ;;  %v2775_v8 = vmax.f32 %v2441_v16, 0.0  ;;  %v2777_v43 = vmax.f32 %v2449_v14, 0.0  ;;  %v2494_v14 = vadd.f32 %v10058_v52, %v10186_v2 }
 0x2ee   : > { %v2874_v40 = vpack.c.bf16 %v2777_v43, %v2776_v22  ;;  %v2513_v22 = vadd.f32 %v10058_v52, %v10226_v19 }
 0x2f3   : > { %8375 = vmatmul.mubr.bf16.gmra.mxu1 %v2863_v34  ;;  %v10230_v51 = vpop.f32.mrf.mxu1  ;;  %v2766_v34 = vmax.f32 %v2406_v13, 0.0  ;;  %v2779_v13 = vmax.f32 %v2457_v45, 0.0 }
 0x2f4   : > { %8378 = vmatprep.mubr.bf16.mxu1 %v2864_v0  ;;  %v2433_v0 = vadd.f32 %v10058_v52, %v10101_v27 }
 0x2f5   : > { %v10238_v46 = vpop.f32.mrf.mxu1  ;;  %v2869_v17 = vpack.c.bf16 %v2767_v62, %v2766_v34  ;;  %v2781_v62 = vmax.f32 %v2465_v15, 0.0  ;;  %v2875_v34 = vpack.c.bf16 %v2779_v13, %v2778_v63  ;;  %v2510_v15 = vadd.f32 %v10058_v52, %v10214_v30 }
 0x2f6   : > { %v2773_v25 = vmax.f32 %v2433_v0, 0.0  ;;  %v2521_v63 = vadd.f32 %v10222_v3, %v10058_v52  ;;  %v2518_v30 = vadd.f32 %v10210_v58, %v10058_v52  ;;  %v2526_v56 = vadd.f32 %v10058_v52, %v10238_v46 }
 0x2f7   : > { %v10242_v37 = vpop.f32.mrf.mxu1  ;;  %v2534_v46 = vadd.f32 %v10230_v51, %v10058_v52  ;;  %v9025_v51 = vld [vmem:[%s12855_s5 + $0x34] ss:$8 sps:$4 sm:$0xff]  }
 0x2f9   : > { %v10250_v29 = vpop.f32.mrf.mxu1 }
 0x2fb   : > { %8379 = vmatmul.mubr.bf16.gmra.mxu1 %v2865_v11  ;;  %v2770_v11 = vmax.f32 %v2422_v57, 0.0 }
 0x2fc   : > { %8382 = vmatprep.mubr.bf16.mxu1 %v2866_v47  ;;  %v2872_v47 = vpack.c.bf16 %v2773_v25, %v2772_v36 }
 0x2fd   : > { %v2871_v27 = vpack.c.bf16 %v2771_v10, %v2770_v11  ;;  %v2497_v11 = vadd.f32 %v10058_v52, %v10204_v23  ;;  %v2788_v23 = vmax.f32 %v2494_v14, 0.0 }
 0x2ff   : > { %v2789_v49 = vmax.f32 %v2497_v11, 0.0 }
 0x301   : > { %v2880_v2 = vpack.c.bf16 %v2789_v49, %v2788_v23 }
 0x303   : > { %8383 = vmatmul.mubr.bf16.gmra.mxu1 %v2867_v60  ;;  %v10252_v50 = vpop.f32.mrf.mxu1  ;;  %v2873_v60 = vpack.c.bf16 %v2775_v8, %v2774_v55 }
 0x304   : > { %8386 = vmatprep.mubr.bf16.mxu1 %v2868_v7  ;;  %v2462_v7 = vadd.f32 %v10058_v52, %v10135_v33  ;;  %v2470_v33 = vadd.f32 %v10127_v21, %v10058_v52  ;;  %v9022_v21 = vld [vmem:[%s12855_s5 + $0x44] ss:$8 sps:$4 sm:$0xff]  }
 0x305   : > { %v10266_v1 = vpop.f32.mrf.mxu1  ;;  %4630 = vmatprep.subr.bf16.mxu1 %v9022_v21 }
 0x306   : > { %v2780_v28 = vmax.f32 %v2462_v7, 0.0  ;;  %4631 = vmatpush1.bf16.msra.mxu1 %v9020_v6 }
 0x307   : > { %v10270_v42 = vpop.f32.mrf.mxu1  ;;  %4632 = vmatprep.subr.bf16.mxu1 %v9025_v51 }
 0x308   : > { %v2876_v5 = vpack.c.bf16 %v2781_v62, %v2780_v28  ;;  %v2792_v62 = vmax.f32 %v2510_v15, 0.0  ;;  %v2529_v28 = vadd.f32 %v10058_v52, %v10250_v29 }
 0x309   : > { %v10278_v61 = vpop.f32.mrf.mxu1 }
 0x30a   : > { %v2797_v3 = vmax.f32 %v2529_v28, 0.0 }
 0x30b   : > { %8387 = vmatmul.mubr.bf16.gmra.mxu1 %v2869_v17  ;;  %v2478_v17 = vadd.f32 %v10058_v52, %v10166_v4  ;;  %v2489_v4 = vadd.f32 %v10170_v59, %v10058_v52 }
 0x30c   : > { %8390 = vmatprep.mubr.bf16.mxu1 %v2870_v20  ;;  %v2782_v20 = vmax.f32 %v2470_v33, 0.0 }
 0x30d   : > { %v2784_v44 = vmax.f32 %v2478_v17, 0.0  ;;  %v2794_v17 = vmax.f32 %v2518_v30, 0.0 }
 0x30e   : > { %v2877_v10 = vpack.c.bf16 %v2783_v39, %v2782_v20  ;;  %v2537_v20 = vadd.f32 %v10242_v37, %v10058_v52 }
 0x30f   : > { %v2878_v36 = vpack.c.bf16 %v2785_v12, %v2784_v44  ;;  %v2796_v12 = vmax.f32 %v2526_v56, 0.0  ;;  %v2545_v44 = vadd.f32 %v10058_v52, %v10278_v61  ;;  %v9023_v61 = vld [vmem:[%s12855_s5 + $0x30] ss:$8 sps:$4 sm:$0xff]  }
 0x310   : > { %4633 = vmatpush1.bf16.msra.mxu1 %v9023_v61 }
 0x311   : > { %v2884_v6 = vpack.c.bf16 %v2797_v3, %v2796_v12  ;;  %v2801_v37 = vmax.f32 %v2545_v44, 0.0 }
 0x313   : > { %8391 = vmatmul.mubr.bf16.gmra.mxu1 %v2871_v27  ;;  %v10282_v9 = vpop.f32.mrf.mxu1  ;;  %v2486_v27 = vadd.f32 %v10158_v26, %v10058_v52  ;;  %v2505_v26 = vadd.f32 %v10194_v35, %v10058_v52  ;;  %v2793_v35 = vmax.f32 %v2513_v22, 0.0 }
 0x314   : > { %8394 = vmatprep.mubr.bf16.mxu1 %v2872_v47  ;;  %v2787_v47 = vmax.f32 %v2489_v4, 0.0  ;;  %v2799_v4 = vmax.f32 %v2537_v20, 0.0 }
 0x315   : > { %v10286_v18 = vpop.f32.mrf.mxu1  ;;  %v2786_v48 = vmax.f32 %v2486_v27, 0.0 }
 0x316   : > { %v2558_v22 = vadd.f32 %v10058_v52, %v10286_v18 }
 0x317   : > { %v10294_v24 = vpop.f32.mrf.mxu1  ;;  %v2879_v43 = vpack.c.bf16 %v2787_v47, %v2786_v48 }
 0x319   : > { %v10298_v41 = vpop.f32.mrf.mxu1 }
 0x31a   : > { %v2561_v48 = vadd.f32 %v10058_v52, %v10298_v41  ;;  %v2804_v41 = vmax.f32 %v2558_v22, 0.0 }
 0x31b   : > { %8395 = vmatmul.mubr.bf16.gmra.mxu1 %v2873_v60  ;;  %v2502_v60 = vadd.f32 %v10182_v53, %v10058_v52 }
 0x31c   : > { %8398 = vmatprep.mubr.bf16.mxu1 %v2874_v40  ;;  %v2791_v40 = vmax.f32 %v2505_v26, 0.0 }
 0x31d   : > { %v2790_v7 = vmax.f32 %v2502_v60, 0.0  ;;  %v2805_v60 = vmax.f32 %v2561_v48, 0.0 }
 0x31f   : > { %v2881_v19 = vpack.c.bf16 %v2791_v40, %v2790_v7  ;;  %v2888_v18 = vpack.c.bf16 %v2805_v60, %v2804_v41 }
 0x323   : > { %v10304_v31 = vpop.f32.mrf.mxu1  ;;  %8399 = vmatmul.mubr.bf16.gmra.mxu1 %v2875_v34  ;;  %v2882_v34 = vpack.c.bf16 %v2793_v35, %v2792_v62 }
 0x324   : > { %8402 = vmatprep.mubr.bf16.mxu1 %v2876_v5  ;;  %v2795_v5 = vmax.f32 %v2521_v63, 0.0 }
 0x325   : > { %v10308_v0 = vpop.f32.mrf.mxu1 }
 0x326   : > { %v2883_v29 = vpack.c.bf16 %v2795_v5, %v2794_v17  ;;  %v2574_v28 = vadd.f32 %v10058_v52, %v10308_v0  ;;  %v2582_v0 = vadd.f32 %v10304_v31, %v10058_v52 }
 0x327   : > { %v10310_v57 = vpop.f32.mrf.mxu1 }
 0x328   : > { %v2808_v3 = vmax.f32 %v2574_v28, 0.0  ;;  %v2585_v17 = vadd.f32 %v10310_v57, %v10058_v52  ;;  %v10471_v28 = vld [vmem:[%s12854_s4 + $0x1] ss:$0 sm:$0xff] }
 0x329   : > { %v10320_v25 = vpop.f32.mrf.mxu1 }
 0x32a   : > { %v2577_v62 = vadd.f32 %v10058_v52, %v10320_v25 }
 0x32b   : > { %v10326_v16 = vpop.f32.mrf.mxu1  ;;  %8403 = vmatmul.mubr.bf16.gmra.mxu1 %v2877_v10  ;;  %v2542_v10 = vadd.f32 %v10058_v52, %v10266_v1  ;;  %v2553_v1 = vadd.f32 %v10270_v42, %v10058_v52 }
 0x32c   : > { %8406 = vmatprep.mubr.bf16.mxu1 %v2878_v36  ;;  %v2798_v36 = vmax.f32 %v2534_v46, 0.0 }
 0x32d   : > { %v10330_v59 = vpop.f32.mrf.mxu1  ;;  %v2800_v14 = vmax.f32 %v2542_v10, 0.0  ;;  %v2810_v10 = vmax.f32 %v2582_v0, 0.0 }
 0x32e   : > { %v2885_v47 = vpack.c.bf16 %v2799_v4, %v2798_v36  ;;  %v2590_v44 = vadd.f32 %v10058_v52, %v10330_v59  ;;  %v2598_v59 = vadd.f32 %v10326_v16, %v10058_v52  ;;  %v9028_v16 = vld [vmem:[%s12855_s5 + $0x24] ss:$8 sps:$4 sm:$0xff]  }
 0x32f   : > { %v10332_v8 = vpop.f32.mrf.mxu1  ;;  %v2886_v23 = vpack.c.bf16 %v2801_v37, %v2800_v14  ;;  %4634 = vmatprep.subr.bf16.mxu1 %v9028_v16 }
 0x330   : > { %v2812_v37 = vmax.f32 %v2590_v44, 0.0  ;;  %v2601_v36 = vadd.f32 %v10332_v8, %v10058_v52 }
 0x331   : > { %v10336_v55 = vpop.f32.mrf.mxu1 }
 0x332   : > { %v2593_v12 = vadd.f32 %v10058_v52, %v10336_v55 }
 0x333   : > { %v10342_v45 = vpop.f32.mrf.mxu1  ;;  %8407 = vmatmul.mubr.bf16.gmra.mxu1 %v2879_v43  ;;  %v2550_v43 = vadd.f32 %v10252_v50, %v10058_v52  ;;  %v2569_v50 = vadd.f32 %v10294_v24, %v10058_v52  ;;  %v2809_v24 = vmax.f32 %v2577_v62, 0.0 }
 0x334   : > { %8410 = vmatprep.mubr.bf16.mxu1 %v2880_v2  ;;  %v2803_v2 = vmax.f32 %v2553_v1, 0.0  ;;  %v2813_v57 = vmax.f32 %v2593_v12, 0.0  ;;  %v2815_v1 = vmax.f32 %v2601_v36, 0.0 }
 0x335   : > { %v10346_v38 = vpop.f32.mrf.mxu1  ;;  %v2802_v15 = vmax.f32 %v2550_v43, 0.0 }
 0x336   : > { %v2892_v61 = vpack.c.bf16 %v2813_v57, %v2812_v37 }
 0x337   : > { %v10348_v13 = vpop.f32.mrf.mxu1  ;;  %v2887_v35 = vpack.c.bf16 %v2803_v2, %v2802_v15 }
 0x339   : > { %v10352_v53 = vpop.f32.mrf.mxu1 }
 0x33a   : > { %v2609_v14 = vadd.f32 %v10058_v52, %v10352_v53  ;;  %v9026_v53 = vld [vmem:[%s12855_s5 + $0x20] ss:$8 sps:$4 sm:$0xff]  }
 0x33b   : > { %v10358_v54 = vpop.f32.mrf.mxu1  ;;  %8411 = vmatmul.mubr.bf16.gmra.mxu1 %v2881_v19  ;;  %v2566_v19 = vadd.f32 %v10282_v9, %v10058_v52 }
 0x33c   : > { %8414 = vmatprep.mubr.bf16.mxu1 %v2882_v34  ;;  %v2807_v34 = vmax.f32 %v2569_v50, 0.0  ;;  %v2817_v8 = vmax.f32 %v2609_v14, 0.0  ;;  %4635 = vmatpush1.bf16.msra.mxu1 %v9026_v53  ;;  %v2630_v44 = vadd.f32 %v10358_v54, %v10058_v52 }
 0x33d   : > { %v10362_v33 = vpop.f32.mrf.mxu1  ;;  %v2806_v56 = vmax.f32 %v2566_v19, 0.0 }
 0x33e   : > { %v2622_v62 = vadd.f32 %v10058_v52, %v10362_v33 }
 0x33f   : > { %v10364_v39 = vpop.f32.mrf.mxu1  ;;  %v2889_v25 = vpack.c.bf16 %v2807_v34, %v2806_v56 }
 0x340   : > { %v2633_v33 = vadd.f32 %v10364_v39, %v10058_v52 }
 0x341   : > { %v10368_v58 = vpop.f32.mrf.mxu1 }
 0x342   : > { %v2625_v15 = vadd.f32 %v10058_v52, %v10368_v58 }
 0x343   : > { %v10374_v21 = vpop.f32.mrf.mxu1  ;;  %8415 = vmatmul.mubr.bf16.gmra.mxu1 %v2883_v29  ;;  %v2890_v29 = vpack.c.bf16 %v2809_v24, %v2808_v3  ;;  %v2820_v24 = vmax.f32 %v2622_v62, 0.0 }
 0x344   : > { %8418 = vmatprep.mubr.bf16.mxu1 %v2884_v6  ;;  %v2811_v6 = vmax.f32 %v2585_v17, 0.0 }
 0x345   : > { %v10378_v11 = vpop.f32.mrf.mxu1 }
 0x346   : > { %v2891_v55 = vpack.c.bf16 %v2811_v6, %v2810_v10  ;;  %v2638_v10 = vadd.f32 %v10058_v52, %v10378_v11 }
 0x347   : > { %v10380_v27 = vpop.f32.mrf.mxu1 }
 0x348   : > { %v2649_v11 = vadd.f32 %v10380_v27, %v10058_v52 }
 0x349   : > { %v10390_v49 = vpop.f32.mrf.mxu1 }
 0x34a   : > { %v2641_v12 = vadd.f32 %v10058_v52, %v10390_v49 }
 0x34b   : > { %v10396_v26 = vpop.f32.mrf.mxu1  ;;  %8419 = vmatmul.mubr.bf16.gmra.mxu1 %v2885_v47  ;;  %v2606_v47 = vadd.f32 %v10058_v52, %v10346_v38  ;;  %v2617_v38 = vadd.f32 %v10348_v13, %v10058_v52  ;;  %v2821_v13 = vmax.f32 %v2625_v15, 0.0 }
 0x34c   : > { %8422 = vmatprep.mubr.bf16.mxu1 %v2886_v23  ;;  %v2814_v23 = vmax.f32 %v2598_v59, 0.0  ;;  %v2822_v59 = vmax.f32 %v2630_v44, 0.0 }
 0x34d   : > { %v10400_v42 = vpop.f32.mrf.mxu1  ;;  %v2816_v22 = vmax.f32 %v2606_v47, 0.0  ;;  %v2896_v0 = vpack.c.bf16 %v2821_v13, %v2820_v24 }
 0x34e   : > { %v2893_v2 = vpack.c.bf16 %v2815_v1, %v2814_v23  ;;  %v2654_v62 = vadd.f32 %v10058_v52, %v10400_v42 }
 0x34f   : > { %v10402_v40 = vpop.f32.mrf.mxu1  ;;  %v2894_v41 = vpack.c.bf16 %v2817_v8, %v2816_v22  ;;  %v2824_v8 = vmax.f32 %v2638_v10, 0.0 }
 0x350   : > { %v2665_v42 = vadd.f32 %v10402_v40, %v10058_v52 }
 0x351   : > { %v10406_v7 = vpop.f32.mrf.mxu1 }
 0x353   : > { %v10412_v63 = vpop.f32.mrf.mxu1  ;;  %8423 = vmatmul.mubr.bf16.gmra.mxu1 %v2887_v35  ;;  %v2614_v35 = vadd.f32 %v10342_v45, %v10058_v52 }
 0x354   : > { %8426 = vmatprep.mubr.bf16.mxu1 %v2888_v18  ;;  %v2819_v18 = vmax.f32 %v2617_v38, 0.0 }
 0x355   : > { %v10416_v30 = vpop.f32.mrf.mxu1  ;;  %v2818_v58 = vmax.f32 %v2614_v35, 0.0 }
 0x357   : > { %v10418_v5 = vpop.f32.mrf.mxu1  ;;  %v2895_v3 = vpack.c.bf16 %v2819_v18, %v2818_v58 }
 0x359   : > { %v10422_v9 = vpop.f32.mrf.mxu1 }
 0x35b   : > { %v10428_v20 = vpop.f32.mrf.mxu1  ;;  %8427 = vmatmul.mubr.bf16.gmra.mxu1 %v2889_v25 }
 0x35c   : > { %8430 = vmatprep.mubr.bf16.mxu1 %v2890_v29 }
 0x35d   : > { %v10432_v46 = vpop.f32.mrf.mxu1 }
 0x35f   : > { %v10434_v4 = vpop.f32.mrf.mxu1 }
 0x361   : > { %v10438_v31 = vpop.f32.mrf.mxu1 }
 0x363   : > { %v10444_v51 = vpop.f32.mrf.mxu1  ;;  %8431 = vmatmul.mubr.bf16.gmra.mxu1 %v2891_v55  ;;  %v2823_v55 = vmax.f32 %v2633_v33, 0.0 }
 0x364   : > { %8434 = vmatprep.mubr.bf16.mxu1 %v2892_v61  ;;  %v2825_v61 = vmax.f32 %v2641_v12, 0.0 }
 0x365   : > { %v10448_v48 = vpop.f32.mrf.mxu1  ;;  %v2897_v22 = vpack.c.bf16 %v2823_v55, %v2822_v59  ;;  %v2831_v55 = vmax.f32 %v2665_v42, 0.0 }
 0x366   : > { %v2898_v15 = vpack.c.bf16 %v2825_v61, %v2824_v8 }
 0x367   : > { %v10450_v43 = vpop.f32.mrf.mxu1 }
 0x369   : > { %v10460_v60 = vpop.f32.mrf.mxu1 }
 0x36b   : > { %v8340_v50 = vpop.f32.mrf.mxu1  ;;  %8435 = vmatmul.mubr.bf16.gmra.mxu1 %v2893_v2  ;;  %v2657_v2 = vadd.f32 %v10058_v52, %v10406_v7 }
 0x36c   : > { %8438 = vmatprep.mubr.bf16.mxu1 %v2894_v41  ;;  %v3024_v25 = vadd.f32 %v8340_v50, %v10471_v28  ;;  %v2646_v41 = vadd.f32 %v10374_v21, %v10058_v52 }
 0x36d   : > { %v3015_v19 = vpop.f32.mrf.mxu1 }
 0x36e   : > { %v3016_v45 = vadd.f32 %v10471_v28, %v3015_v19  ;;  %v3528_v36 = vmax.f32 %v3024_v25, 0.0  ;;  %v2827_v19 = vmax.f32 %v2649_v11, 0.0  ;;  %v2826_v24 = vmax.f32 %v2646_v41, 0.0 }
 0x36f   : > { %v8341_v34 = vpop.f32.mrf.mxu1 }
 0x370   : > { %v3027_v56 = vadd.f32 %v8341_v34, %v10471_v28  ;;  %v3526_v37 = vmax.f32 %v3016_v45, 0.0  ;;  %v2829_v34 = vmax.f32 %v2657_v2, 0.0  ;;  %v2899_v25 = vpack.c.bf16 %v2827_v19, %v2826_v24 }
 0x371   : > { %v3018_v17 = vpop.f32.mrf.mxu1 }
 0x372   : > { %v3019_v29 = vadd.f32 %v10471_v28, %v3018_v17  ;;  %v3529_v6 = vmax.f32 %v3027_v56, 0.0 }
 0x373   : > { %v8344_v57 = vpop.f32.mrf.mxu1  ;;  %8439 = vmatmul.mubr.bf16.gmra.mxu1 %v2895_v3  ;;  %v2828_v3 = vmax.f32 %v2654_v62, 0.0 }
 0x374   : > { %v3527_v39 = vmax.f32 %v3019_v29, 0.0  ;;  %8442 = vmatprep.mubr.bf16.mxu1 %v2896_v0  ;;  %v3655_v47 = vpack.c.bf16 %v3529_v6, %v3528_v36  ;;  %v3040_v53 = vadd.f32 %v8344_v57, %v10471_v28  ;;  %v2673_v29 = vadd.f32 %v10058_v52, %v10422_v9 }
 0x375   : > { %v3031_v14 = vpop.f32.mrf.mxu1  ;;  %v2900_v44 = vpack.c.bf16 %v2829_v34, %v2828_v3  ;;  %v2662_v6 = vadd.f32 %v10396_v26, %v10058_v52 }
 0x376   : > { %v3654_v49 = vpack.c.bf16 %v3527_v39, %v3526_v37  ;;  %v3032_v54 = vadd.f32 %v10471_v28, %v3031_v14  ;;  %v3532_v13 = vmax.f32 %v3040_v53, 0.0  ;;  %v2670_v37 = vadd.f32 %v10058_v52, %v10416_v30  ;;  %v9029_v52 = vld [vmem:[%s12855_s5 + $0x10] ss:$8 sps:$4 sm:$0xff]   ;;  %v9031_v30 = vld [vmem:[%s12855_s5 + $0x14] ss:$8 sps:$4 sm:$0xff]  }
 0x377   : > { %v8345_v1 = vpop.f32.mrf.mxu1  ;;  %v2833_v61 = vmax.f32 %v2673_v29, 0.0  ;;  %4636 = vmatprep.subr.bf16.mxu1 %v9031_v30 }
 0x378   : > { %v3043_v23 = vadd.f32 %v8345_v1, %v10471_v28  ;;  %8482 = vmatprep.mubr.bf16.mxu0 %v3654_v49  ;;  %v3530_v27 = vmax.f32 %v3032_v54, 0.0  ;;  %v2830_v49 = vmax.f32 %v2662_v6, 0.0  ;;  %v2832_v1 = vmax.f32 %v2670_v37, 0.0  ;;  %4637 = vmatpush1.bf16.msra.mxu1 %v9029_v52 }
 0x379   : > { %v3034_v16 = vpop.f32.mrf.mxu1  ;;  %8483 = vmatmul.mubr.bf16.vlgmr.msra.gmra.mxu0 %v3655_v47 }
 0x37a   : > { %v3035_v38 = vadd.f32 %v10471_v28, %v3034_v16  ;;  %v3533_v35 = vmax.f32 %v3043_v23, 0.0  ;;  %v2901_v54 = vpack.c.bf16 %v2831_v55, %v2830_v49  ;;  %v10520_v23 = vld [vmem:[%s12854_s4] ss:$0 sm:$0xff] }
 0x37b   : > { %v8348_v50 = vpop.f32.mrf.mxu1  ;;  %8443 = vmatmul.mubr.bf16.gmra.mxu1 %v2897_v22  ;;  %v2681_v22 = vadd.f32 %v10520_v23, %v10418_v5  ;;  %v2689_v16 = vadd.f32 %v10520_v23, %v10438_v31  ;;  %v2686_v5 = vadd.f32 %v10520_v23, %v10432_v46  ;;  %v2697_v46 = vadd.f32 %v10520_v23, %v10434_v4 }
 0x37c   : > { %v3531_v18 = vmax.f32 %v3035_v38, 0.0  ;;  %8446 = vmatprep.mubr.bf16.mxu1 %v2898_v15  ;;  %v3657_v45 = vpack.c.bf16 %v3533_v35, %v3532_v13  ;;  %v3056_v17 = vadd.f32 %v8348_v50, %v10471_v28  ;;  %v2902_v38 = vpack.c.bf16 %v2833_v61, %v2832_v1 }
 0x37d   : > { %v3047_v58 = vpop.f32.mrf.mxu1  ;;  %v2678_v15 = vadd.f32 %v10520_v23, %v10412_v63  ;;  %v2837_v19 = vmax.f32 %v2689_v16, 0.0  ;;  %v2836_v24 = vmax.f32 %v2686_v5, 0.0  ;;  %v2839_v6 = vmax.f32 %v2697_v46, 0.0 }
 0x37e   : > { %v3656_v7 = vpack.c.bf16 %v3531_v18, %v3530_v27  ;;  %v3048_v21 = vadd.f32 %v10471_v28, %v3047_v58  ;;  %v3536_v36 = vmax.f32 %v3056_v17, 0.0  ;;  %v2835_v27 = vmax.f32 %v2681_v22, 0.0 }
 0x37f   : > { %v8349_v56 = vpop.f32.mrf.mxu1  ;;  %v2834_v58 = vmax.f32 %v2678_v15, 0.0  ;;  %v2904_v42 = vpack.c.bf16 %v2837_v19, %v2836_v24  ;;  %v2694_v17 = vadd.f32 %v10520_v23, %v10428_v20  ;;  %v2710_v1 = vadd.f32 %v10520_v23, %v10444_v51 }
 0x380   : > { %v3059_v33 = vadd.f32 %v8349_v56, %v10471_v28  ;;  %8486 = vmatprep.mubr.bf16.mxu0 %v3656_v7  ;;  %v3534_v40 = vmax.f32 %v3048_v21, 0.0 }
 0x381   : > { %v3050_v12 = vpop.f32.mrf.mxu1  ;;  %8487 = vmatmul.mubr.bf16.gmra.mxu0 %v3657_v45  ;;  %v2903_v56 = vpack.c.bf16 %v2835_v27, %v2834_v58 }
 0x382   : > { %v3051_v0 = vadd.f32 %v10471_v28, %v3050_v12  ;;  %v3537_v57 = vmax.f32 %v3059_v33, 0.0  ;;  %v2705_v33 = vadd.f32 %v10520_v23, %v10460_v60 }
 0x383   : > { %v8352_v10 = vpop.f32.mrf.mxu1  ;;  %8447 = vmatmul.mubr.bf16.gmra.mxu1 %v2899_v25 }
 0x384   : > { %v3535_v39 = vmax.f32 %v3051_v0, 0.0  ;;  %8450 = vmatprep.mubr.bf16.mxu1 %v2900_v44  ;;  %v3659_v59 = vpack.c.bf16 %v3537_v57, %v3536_v36  ;;  %v3072_v11 = vadd.f32 %v8352_v10, %v10471_v28  ;;  %v2702_v0 = vadd.f32 %v10520_v23, %v10448_v48 }
 0x385   : > { %v3063_v14 = vpop.f32.mrf.mxu1  ;;  %v2841_v37 = vmax.f32 %v2705_v33, 0.0  ;;  %v2713_v48 = vadd.f32 %v10520_v23, %v10450_v43 }
 0x386   : > { %v3658_v9 = vpack.c.bf16 %v3535_v39, %v3534_v40  ;;  %v3064_v26 = vadd.f32 %v10471_v28, %v3063_v14  ;;  %v3540_v18 = vmax.f32 %v3072_v11, 0.0  ;;  %v2838_v40 = vmax.f32 %v2694_v17, 0.0 }
 0x387   : > { %v8353_v47 = vpop.f32.mrf.mxu1  ;;  %v2840_v36 = vmax.f32 %v2702_v0, 0.0 }
 0x388   : > { %v3075_v8 = vadd.f32 %v8353_v47, %v10471_v28  ;;  %8490 = vmatprep.mubr.bf16.mxu0 %v3658_v9  ;;  %v3538_v50 = vmax.f32 %v3064_v26, 0.0  ;;  %v2905_v61 = vpack.c.bf16 %v2839_v6, %v2838_v40 }
 0x389   : > { %v3066_v53 = vpop.f32.mrf.mxu1  ;;  %8491 = vmatmul.mubr.bf16.gmra.mxu0 %v3659_v59  ;;  %v2906_v47 = vpack.c.bf16 %v2841_v37, %v2840_v36 }
 0x38a   : > { %v3067_v2 = vadd.f32 %v10471_v28, %v3066_v53  ;;  %v3541_v41 = vmax.f32 %v3075_v8, 0.0  ;;  %v2842_v53 = vmax.f32 %v2710_v1, 0.0 }
 0x38b   : > { %v8356_v35 = vpop.f32.mrf.mxu1  ;;  %8451 = vmatmul.mubr.bf16.gmra.mxu1 %v2901_v54  ;;  %v2843_v54 = vmax.f32 %v2713_v48, 0.0 }
 0x38c   : > { %v3539_v62 = vmax.f32 %v3067_v2, 0.0  ;;  %8454 = vmatprep.mubr.bf16.mxu1 %v2902_v38  ;;  %v3661_v34 = vpack.c.bf16 %v3541_v41, %v3540_v18  ;;  %v3088_v3 = vadd.f32 %v8356_v35, %v10471_v28  ;;  %v13040_v18 = vmov 0  }
 0x38d   : > { %v3079_v31 = vpop.f32.mrf.mxu1  ;;  %v2907_v41 = vpack.c.bf16 %v2843_v54, %v2842_v53 }
 0x38e   : > { %v3660_v13 = vpack.c.bf16 %v3539_v62, %v3538_v50  ;;  %v3080_v63 = vadd.f32 %v10471_v28, %v3079_v31  ;;  %v3544_v57 = vmax.f32 %v3088_v3, 0.0 }
 0x38f   : > { %v8357_v7 = vpop.f32.mrf.mxu1 }
 0x390   : > { %v3091_v45 = vadd.f32 %v8357_v7, %v10471_v28  ;;  %8494 = vmatprep.mubr.bf16.mxu0 %v3660_v13  ;;  %v3542_v4 = vmax.f32 %v3080_v63, 0.0  ;;  %v9032_v63 = vld [vmem:[%s12855_s5] ss:$8 sps:$4 sm:$0xff]  }
 0x391   : > { %v3082_v21 = vpop.f32.mrf.mxu1  ;;  %8495 = vmatmul.mubr.bf16.gmra.mxu0 %v3661_v34 }
 0x392   : > { %v3083_v25 = vadd.f32 %v10471_v28, %v3082_v21  ;;  %v3545_v12 = vmax.f32 %v3091_v45, 0.0  ;;  %v9034_v45 = vld [vmem:[%s12855_s5 + $0x4] ss:$8 sps:$4 sm:$0xff]  }
 0x393   : > { %v8360_v29 = vpop.f32.mrf.mxu1  ;;  %8455 = vmatmul.mubr.bf16.gmra.mxu1 %v2903_v56  ;;  %4638 = vmatprep.subr.bf16.mxu1 %v9034_v45 }
 0x394   : > { %v3543_v44 = vmax.f32 %v3083_v25, 0.0  ;;  %8458 = vmatprep.mubr.bf16.mxu1 %v2904_v42  ;;  %v3663_v39 = vpack.c.bf16 %v3545_v12, %v3544_v57  ;;  %v3104_v9 = vadd.f32 %v8360_v29, %v10471_v28  ;;  %4639 = vmatpush1.bf16.msra.mxu1 %v9032_v63 }
 0x395   : > { %v3095_v10 = vpop.f32.mrf.mxu1 }
 0x396   : > { %v3662_v60 = vpack.c.bf16 %v3543_v44, %v3542_v4  ;;  %v3096_v20 = vadd.f32 %v10471_v28, %v3095_v10  ;;  %v3548_v22 = vmax.f32 %v3104_v9, 0.0 }
 0x397   : > { %v8361_v55 = vpop.f32.mrf.mxu1 }
 0x398   : > { %v3107_v14 = vadd.f32 %v8361_v55, %v10471_v28  ;;  %8498 = vmatprep.mubr.bf16.mxu0 %v3662_v60  ;;  %v3546_v52 = vmax.f32 %v3096_v20, 0.0 }
 0x399   : > { %v3098_v49 = vpop.f32.mrf.mxu1  ;;  %8499 = vmatmul.mubr.bf16.gmra.mxu0 %v3663_v39 }
 0x39a   : > { %v3099_v59 = vadd.f32 %v10471_v28, %v3098_v49  ;;  %v3549_v26 = vmax.f32 %v3107_v14, 0.0 }
 0x39b   : > { %v8364_v8 = vpop.f32.mrf.mxu1  ;;  %8459 = vmatmul.mubr.bf16.gmra.mxu1 %v2905_v61 }
 0x39c   : > { %v3547_v30 = vmax.f32 %v3099_v59, 0.0  ;;  %8462 = vmatprep.mubr.bf16.mxu1 %v2906_v47  ;;  %v3665_v16 = vpack.c.bf16 %v3549_v26, %v3548_v22  ;;  %v3120_v51 = vadd.f32 %v8364_v8, %v10471_v28 }
 0x39d   : > { %v3111_v11 = vpop.f32.mrf.mxu1 }
 0x39e   : > { %v3664_v43 = vpack.c.bf16 %v3547_v30, %v3546_v52  ;;  %v3112_v38 = vadd.f32 %v10471_v28, %v3111_v11  ;;  %v3552_v31 = vmax.f32 %v3120_v51, 0.0 }
 0x39f   : > { %v8365_v2 = vpop.f32.mrf.mxu1 }
 0x3a0   : > { %v3123_v15 = vadd.f32 %v8365_v2, %v10471_v28  ;;  %8502 = vmatprep.mubr.bf16.mxu0 %v3664_v43  ;;  %v3550_v62 = vmax.f32 %v3112_v38, 0.0 }
 0x3a1   : > { %v3114_v23 = vpop.f32.mrf.mxu1  ;;  %8503 = vmatmul.mubr.bf16.gmra.mxu0 %v3665_v16 }
 0x3a2   : > { %v3115_v35 = vadd.f32 %v10471_v28, %v3114_v23  ;;  %v3553_v5 = vmax.f32 %v3123_v15, 0.0 }
 0x3a3   : > { %v8368_v50 = vpop.f32.mrf.mxu1  ;;  %8463 = vmatmul.mubr.bf16.gmra.mxu1 %v2907_v41 }
 0x3a4   : > { %v3551_v27 = vmax.f32 %v3115_v35, 0.0  ;;  %4656 = vmatprep.mubr.bf16.mxu1 %v13040_v18  ;;  %v3667_v58 = vpack.c.bf16 %v3553_v5, %v3552_v31  ;;  %v3136_v56 = vadd.f32 %v8368_v50, %v10471_v28 }
 0x3a5   : > { %v3127_v19 = vpop.f32.mrf.mxu1 }
 0x3a6   : > { %v3666_v13 = vpack.c.bf16 %v3551_v27, %v3550_v62  ;;  %v3128_v7 = vadd.f32 %v10471_v28, %v3127_v19  ;;  %v3556_v17 = vmax.f32 %v3136_v56, 0.0 }
 0x3a7   : > { %v8369_v34 = vpop.f32.mrf.mxu1 }
 0x3a8   : > { %v3139_v24 = vadd.f32 %v8369_v34, %v10471_v28  ;;  %8506 = vmatprep.mubr.bf16.mxu0 %v3666_v13  ;;  %v3554_v25 = vmax.f32 %v3128_v7, 0.0 }
 0x3a9   : > { %v3130_v46 = vpop.f32.mrf.mxu1  ;;  %8507 = vmatmul.mubr.bf16.gmra.mxu0 %v3667_v58 }
 0x3aa   : > { %v3131_v3 = vadd.f32 %v10471_v28, %v3130_v46  ;;  %v3557_v21 = vmax.f32 %v3139_v24, 0.0 }
 0x3ab   : > { %v8372_v33 = vpop.f32.mrf.mxu1 }
 0x3ac   : > { %v3555_v42 = vmax.f32 %v3131_v3, 0.0  ;;  %v3669_v0 = vpack.c.bf16 %v3557_v21, %v3556_v17  ;;  %v3152_v57 = vadd.f32 %v8372_v33, %v10471_v28 }
 0x3ad   : > { %v3143_v12 = vpop.f32.mrf.mxu1 }
 0x3ae   : > { %v3668_v29 = vpack.c.bf16 %v3555_v42, %v3554_v25  ;;  %v3144_v44 = vadd.f32 %v10471_v28, %v3143_v12  ;;  %v3560_v36 = vmax.f32 %v3152_v57, 0.0 }
 0x3af   : > { %v8373_v4 = vpop.f32.mrf.mxu1 }
 0x3b0   : > { %v3155_v6 = vadd.f32 %v8373_v4, %v10471_v28  ;;  %8510 = vmatprep.mubr.bf16.mxu0 %v3668_v29  ;;  %v3558_v39 = vmax.f32 %v3144_v44, 0.0 }
 0x3b1   : > { %v3146_v10 = vpop.f32.mrf.mxu1  ;;  %8511 = vmatmul.mubr.bf16.gmra.mxu0 %v3669_v0 }
 0x3b2   : > { %v3147_v37 = vadd.f32 %v10471_v28, %v3146_v10  ;;  %v3561_v60 = vmax.f32 %v3155_v6, 0.0 }
 0x3b3   : > { %v8376_v40 = vpop.f32.mrf.mxu1 }
 0x3b4   : > { %v3559_v55 = vmax.f32 %v3147_v37, 0.0  ;;  %v3671_v61 = vpack.c.bf16 %v3561_v60, %v3560_v36  ;;  %v3168_v59 = vadd.f32 %v8376_v40, %v10471_v28 }
 0x3b5   : > { %v3159_v20 = vpop.f32.mrf.mxu1 }
 0x3b6   : > { %v3670_v14 = vpack.c.bf16 %v3559_v55, %v3558_v39  ;;  %v3160_v9 = vadd.f32 %v10471_v28, %v3159_v20  ;;  %v3564_v54 = vmax.f32 %v3168_v59, 0.0 }
 0x3b7   : > { %v8377_v48 = vpop.f32.mrf.mxu1 }
 0x3b8   : > { %v3171_v49 = vadd.f32 %v8377_v48, %v10471_v28  ;;  %8514 = vmatprep.mubr.bf16.mxu0 %v3670_v14  ;;  %v3562_v52 = vmax.f32 %v3160_v9, 0.0 }
 0x3b9   : > { %v3162_v47 = vpop.f32.mrf.mxu1  ;;  %8515 = vmatmul.mubr.bf16.gmra.mxu0 %v3671_v61 }
 0x3ba   : > { %v3163_v1 = vadd.f32 %v10471_v28, %v3162_v47  ;;  %v3565_v26 = vmax.f32 %v3171_v49, 0.0 }
 0x3bb   : > { %v8380_v8 = vpop.f32.mrf.mxu1 }
 0x3bc   : > { %v3563_v30 = vmax.f32 %v3163_v1, 0.0  ;;  %v3673_v43 = vpack.c.bf16 %v3565_v26, %v3564_v54  ;;  %v3184_v38 = vadd.f32 %v8380_v8, %v10471_v28 }
 0x3bd   : > { %v3175_v22 = vpop.f32.mrf.mxu1 }
 0x3be   : > { %v3672_v11 = vpack.c.bf16 %v3563_v30, %v3562_v52  ;;  %v3176_v16 = vadd.f32 %v10471_v28, %v3175_v22  ;;  %v3568_v50 = vmax.f32 %v3184_v38, 0.0 }
 0x3bf   : > { %v8381_v53 = vpop.f32.mrf.mxu1 }
 0x3c0   : > { %v3187_v2 = vadd.f32 %v8381_v53, %v10471_v28  ;;  %8518 = vmatprep.mubr.bf16.mxu0 %v3672_v11  ;;  %v3566_v35 = vmax.f32 %v3176_v16, 0.0 }
 0x3c1   : > { %v3178_v15 = vpop.f32.mrf.mxu1  ;;  %8519 = vmatmul.mubr.bf16.gmra.mxu0 %v3673_v43 }
 0x3c2   : > { %v3179_v41 = vadd.f32 %v10471_v28, %v3178_v15  ;;  %v3569_v51 = vmax.f32 %v3187_v2, 0.0 }
 0x3c3   : > { %v8384_v23 = vpop.f32.mrf.mxu1 }
 0x3c4   : > { %v3567_v5 = vmax.f32 %v3179_v41, 0.0  ;;  %v3675_v31 = vpack.c.bf16 %v3569_v51, %v3568_v50  ;;  %v3200_v34 = vadd.f32 %v8384_v23, %v10471_v28 }
 0x3c5   : > { %v3191_v62 = vpop.f32.mrf.mxu1 }
 0x3c6   : > { %v3674_v27 = vpack.c.bf16 %v3567_v5, %v3566_v35  ;;  %v3192_v13 = vadd.f32 %v10471_v28, %v3191_v62  ;;  %v3572_v3 = vmax.f32 %v3200_v34, 0.0 }
 0x3c7   : > { %v8385_v19 = vpop.f32.mrf.mxu1 }
 0x3c8   : > { %v3203_v58 = vadd.f32 %v8385_v19, %v10471_v28  ;;  %8522 = vmatprep.mubr.bf16.mxu0 %v3674_v27  ;;  %v3570_v56 = vmax.f32 %v3192_v13, 0.0 }
 0x3c9   : > { %v3194_v7 = vpop.f32.mrf.mxu1  ;;  %8523 = vmatmul.mubr.bf16.gmra.mxu0 %v3675_v31 }
 0x3ca   : > { %v3195_v24 = vadd.f32 %v10471_v28, %v3194_v7  ;;  %v3573_v63 = vmax.f32 %v3203_v58, 0.0 }
 0x3cb   : > { %v8388_v45 = vpop.f32.mrf.mxu1 }
 0x3cc   : > { %v3571_v46 = vmax.f32 %v3195_v24, 0.0  ;;  %v3677_v25 = vpack.c.bf16 %v3573_v63, %v3572_v3  ;;  %v3216_v29 = vadd.f32 %v8388_v45, %v10471_v28 }
 0x3cd   : > { %v3207_v21 = vpop.f32.mrf.mxu1 }
 0x3ce   : > { %v3676_v33 = vpack.c.bf16 %v3571_v46, %v3570_v56  ;;  %v3208_v17 = vadd.f32 %v10471_v28, %v3207_v21  ;;  %v3576_v37 = vmax.f32 %v3216_v29, 0.0 }
 0x3cf   : > { %v8389_v42 = vpop.f32.mrf.mxu1 }
 0x3d0   : > { %v3219_v12 = vadd.f32 %v8389_v42, %v10471_v28  ;;  %8526 = vmatprep.mubr.bf16.mxu0 %v3676_v33  ;;  %v3574_v57 = vmax.f32 %v3208_v17, 0.0 }
 0x3d1   : > { %v3210_v0 = vpop.f32.mrf.mxu1  ;;  %8527 = vmatmul.mubr.bf16.gmra.mxu0 %v3677_v25 }
 0x3d2   : > { %v3211_v4 = vadd.f32 %v10471_v28, %v3210_v0  ;;  %v3577_v44 = vmax.f32 %v3219_v12, 0.0 }
 0x3d3   : > { %v8392_v6 = vpop.f32.mrf.mxu1 }
 0x3d4   : > { %v3575_v10 = vmax.f32 %v3211_v4, 0.0  ;;  %v3679_v39 = vpack.c.bf16 %v3577_v44, %v3576_v37  ;;  %v3232_v14 = vadd.f32 %v8392_v6, %v10471_v28 }
 0x3d5   : > { %v3223_v60 = vpop.f32.mrf.mxu1 }
 0x3d6   : > { %v3678_v40 = vpack.c.bf16 %v3575_v10, %v3574_v57  ;;  %v3224_v36 = vadd.f32 %v10471_v28, %v3223_v60  ;;  %v3580_v1 = vmax.f32 %v3232_v14, 0.0 }
 0x3d7   : > { %v8393_v55 = vpop.f32.mrf.mxu1 }
 0x3d8   : > { %v3235_v20 = vadd.f32 %v8393_v55, %v10471_v28  ;;  %8530 = vmatprep.mubr.bf16.mxu0 %v3678_v40  ;;  %v3578_v59 = vmax.f32 %v3224_v36, 0.0 }
 0x3d9   : > { %v3226_v61 = vpop.f32.mrf.mxu1  ;;  %8531 = vmatmul.mubr.bf16.gmra.mxu0 %v3679_v39 }
 0x3da   : > { %v3227_v48 = vadd.f32 %v10471_v28, %v3226_v61  ;;  %v3581_v9 = vmax.f32 %v3235_v20, 0.0 }
 0x3db   : > { %v8396_v49 = vpop.f32.mrf.mxu1 }
 0x3dc   : > { %v3579_v47 = vmax.f32 %v3227_v48, 0.0  ;;  %v3681_v52 = vpack.c.bf16 %v3581_v9, %v3580_v1  ;;  %v3248_v11 = vadd.f32 %v8396_v49, %v10471_v28 }
 0x3dd   : > { %v3239_v26 = vpop.f32.mrf.mxu1 }
 0x3de   : > { %v3680_v8 = vpack.c.bf16 %v3579_v47, %v3578_v59  ;;  %v3240_v54 = vadd.f32 %v10471_v28, %v3239_v26  ;;  %v3584_v41 = vmax.f32 %v3248_v11, 0.0 }
 0x3df   : > { %v8397_v30 = vpop.f32.mrf.mxu1 }
 0x3e0   : > { %v3251_v22 = vadd.f32 %v8397_v30, %v10471_v28  ;;  %8534 = vmatprep.mubr.bf16.mxu0 %v3680_v8  ;;  %v3582_v38 = vmax.f32 %v3240_v54, 0.0 }
 0x3e1   : > { %v3242_v43 = vpop.f32.mrf.mxu1  ;;  %8535 = vmatmul.mubr.bf16.gmra.mxu0 %v3681_v52 }
 0x3e2   : > { %v3243_v53 = vadd.f32 %v10471_v28, %v3242_v43  ;;  %v3585_v16 = vmax.f32 %v3251_v22, 0.0 }
 0x3e3   : > { %v8400_v2 = vpop.f32.mrf.mxu1 }
 0x3e4   : > { %v3583_v15 = vmax.f32 %v3243_v53, 0.0  ;;  %v3683_v35 = vpack.c.bf16 %v3585_v16, %v3584_v41  ;;  %v3264_v27 = vadd.f32 %v8400_v2, %v10471_v28 }
 0x3e5   : > { %v3255_v51 = vpop.f32.mrf.mxu1 }
 0x3e6   : > { %v3682_v23 = vpack.c.bf16 %v3583_v15, %v3582_v38  ;;  %v3256_v50 = vadd.f32 %v10471_v28, %v3255_v51  ;;  %v3588_v24 = vmax.f32 %v3264_v27, 0.0 }
 0x3e7   : > { %v8401_v5 = vpop.f32.mrf.mxu1 }
 0x3e8   : > { %v3267_v62 = vadd.f32 %v8401_v5, %v10471_v28  ;;  %8538 = vmatprep.mubr.bf16.mxu0 %v3682_v23  ;;  %v3586_v34 = vmax.f32 %v3256_v50, 0.0 }
 0x3e9   : > { %v3258_v31 = vpop.f32.mrf.mxu1  ;;  %8539 = vmatmul.mubr.bf16.gmra.mxu0 %v3683_v35 }
 0x3ea   : > { %v3259_v19 = vadd.f32 %v10471_v28, %v3258_v31  ;;  %v3589_v13 = vmax.f32 %v3267_v62, 0.0 }
 0x3eb   : > { %v8404_v58 = vpop.f32.mrf.mxu1 }
 0x3ec   : > { %v3587_v7 = vmax.f32 %v3259_v19, 0.0  ;;  %v3685_v56 = vpack.c.bf16 %v3589_v13, %v3588_v24  ;;  %v3280_v33 = vadd.f32 %v8404_v58, %v10471_v28 }
 0x3ed   : > { %v3271_v63 = vpop.f32.mrf.mxu1 }
 0x3ee   : > { %v3684_v45 = vpack.c.bf16 %v3587_v7, %v3586_v34  ;;  %v3272_v3 = vadd.f32 %v10471_v28, %v3271_v63  ;;  %v3592_v4 = vmax.f32 %v3280_v33, 0.0 }
 0x3ef   : > { %v8405_v46 = vpop.f32.mrf.mxu1 }
 0x3f0   : > { %v3283_v21 = vadd.f32 %v8405_v46, %v10471_v28  ;;  %8542 = vmatprep.mubr.bf16.mxu0 %v3684_v45  ;;  %v3590_v29 = vmax.f32 %v3272_v3, 0.0 }
 0x3f1   : > { %v3274_v25 = vpop.f32.mrf.mxu1  ;;  %8543 = vmatmul.mubr.bf16.gmra.mxu0 %v3685_v56 }
 0x3f2   : > { %v3275_v42 = vadd.f32 %v10471_v28, %v3274_v25  ;;  %v3593_v17 = vmax.f32 %v3283_v21, 0.0 }
 0x3f3   : > { %v8408_v12 = vpop.f32.mrf.mxu1 }
 0x3f4   : > { %v3591_v0 = vmax.f32 %v3275_v42, 0.0  ;;  %v3687_v57 = vpack.c.bf16 %v3593_v17, %v3592_v4  ;;  %v3296_v40 = vadd.f32 %v8408_v12, %v10471_v28 }
 0x3f5   : > { %v3287_v44 = vpop.f32.mrf.mxu1 }
 0x3f6   : > { %v3686_v6 = vpack.c.bf16 %v3591_v0, %v3590_v29  ;;  %v3288_v37 = vadd.f32 %v10471_v28, %v3287_v44  ;;  %v3596_v48 = vmax.f32 %v3296_v40, 0.0 }
 0x3f7   : > { %v8409_v10 = vpop.f32.mrf.mxu1 }
 0x3f8   : > { %v3299_v60 = vadd.f32 %v8409_v10, %v10471_v28  ;;  %8546 = vmatprep.mubr.bf16.mxu0 %v3686_v6  ;;  %v3594_v14 = vmax.f32 %v3288_v37, 0.0 }
 0x3f9   : > { %v3290_v39 = vpop.f32.mrf.mxu1  ;;  %8547 = vmatmul.mubr.bf16.gmra.mxu0 %v3687_v57 }
 0x3fa   : > { %v3291_v55 = vadd.f32 %v10471_v28, %v3290_v39  ;;  %v3597_v36 = vmax.f32 %v3299_v60, 0.0 }
 0x3fb   : > { %v8412_v20 = vpop.f32.mrf.mxu1 }
 0x3fc   : > { %v3595_v61 = vmax.f32 %v3291_v55, 0.0  ;;  %v3689_v59 = vpack.c.bf16 %v3597_v36, %v3596_v48  ;;  %v3312_v8 = vadd.f32 %v8412_v20, %v10471_v28 }
 0x3fd   : > { %v3303_v9 = vpop.f32.mrf.mxu1 }
 0x3fe   : > { %v3688_v49 = vpack.c.bf16 %v3595_v61, %v3594_v14  ;;  %v3304_v1 = vadd.f32 %v10471_v28, %v3303_v9  ;;  %v3600_v53 = vmax.f32 %v3312_v8, 0.0 }
 0x3ff   : > { %v8413_v47 = vpop.f32.mrf.mxu1 }
 0x400   : > { %v3315_v26 = vadd.f32 %v8413_v47, %v10471_v28  ;;  %8550 = vmatprep.mubr.bf16.mxu0 %v3688_v49  ;;  %v3598_v11 = vmax.f32 %v3304_v1, 0.0 }
 0x401   : > { %v3306_v52 = vpop.f32.mrf.mxu1  ;;  %8551 = vmatmul.mubr.bf16.gmra.mxu0 %v3689_v59 }
 0x402   : > { %v3307_v30 = vadd.f32 %v10471_v28, %v3306_v52  ;;  %v3601_v54 = vmax.f32 %v3315_v26, 0.0 }
 0x403   : > { %v8416_v22 = vpop.f32.mrf.mxu1 }
 0x404   : > { %v3599_v43 = vmax.f32 %v3307_v30, 0.0  ;;  %v3691_v38 = vpack.c.bf16 %v3601_v54, %v3600_v53  ;;  %v3328_v23 = vadd.f32 %v8416_v22, %v10471_v28 }
 0x405   : > { %v3319_v16 = vpop.f32.mrf.mxu1 }
 0x406   : > { %v3690_v2 = vpack.c.bf16 %v3599_v43, %v3598_v11  ;;  %v3320_v41 = vadd.f32 %v10471_v28, %v3319_v16  ;;  %v3604_v19 = vmax.f32 %v3328_v23, 0.0 }
 0x407   : > { %v8417_v15 = vpop.f32.mrf.mxu1 }
 0x408   : > { %v3331_v51 = vadd.f32 %v8417_v15, %v10471_v28  ;;  %8554 = vmatprep.mubr.bf16.mxu0 %v3690_v2  ;;  %v3602_v27 = vmax.f32 %v3320_v41, 0.0 }
 0x409   : > { %v3322_v35 = vpop.f32.mrf.mxu1  ;;  %8555 = vmatmul.mubr.bf16.gmra.mxu0 %v3691_v38 }
 0x40a   : > { %v3323_v5 = vadd.f32 %v10471_v28, %v3322_v35  ;;  %v3605_v50 = vmax.f32 %v3331_v51, 0.0 }
 0x40b   : > { %v8420_v62 = vpop.f32.mrf.mxu1 }
 0x40c   : > { %v3603_v31 = vmax.f32 %v3323_v5, 0.0  ;;  %v3693_v34 = vpack.c.bf16 %v3605_v50, %v3604_v19  ;;  %v3344_v45 = vadd.f32 %v8420_v62, %v10471_v28 }
 0x40d   : > { %v3335_v13 = vpop.f32.mrf.mxu1 }
 0x40e   : > { %v3692_v58 = vpack.c.bf16 %v3603_v31, %v3602_v27  ;;  %v3336_v24 = vadd.f32 %v10471_v28, %v3335_v13  ;;  %v3608_v42 = vmax.f32 %v3344_v45, 0.0 }
 0x40f   : > { %v8421_v7 = vpop.f32.mrf.mxu1 }
 0x410   : > { %v3347_v63 = vadd.f32 %v8421_v7, %v10471_v28  ;;  %8558 = vmatprep.mubr.bf16.mxu0 %v3692_v58  ;;  %v3606_v33 = vmax.f32 %v3336_v24, 0.0 }
 0x411   : > { %v3338_v56 = vpop.f32.mrf.mxu1  ;;  %8559 = vmatmul.mubr.bf16.gmra.mxu0 %v3693_v34 }
 0x412   : > { %v3339_v46 = vadd.f32 %v10471_v28, %v3338_v56  ;;  %v3609_v3 = vmax.f32 %v3347_v63, 0.0 }
 0x413   : > { %v8424_v21 = vpop.f32.mrf.mxu1 }
 0x414   : > { %v3607_v25 = vmax.f32 %v3339_v46, 0.0  ;;  %v3695_v29 = vpack.c.bf16 %v3609_v3, %v3608_v42  ;;  %v3360_v6 = vadd.f32 %v8424_v21, %v10471_v28 }
 0x415   : > { %v3351_v17 = vpop.f32.mrf.mxu1 }
 0x416   : > { %v3694_v12 = vpack.c.bf16 %v3607_v25, %v3606_v33  ;;  %v3352_v4 = vadd.f32 %v10471_v28, %v3351_v17  ;;  %v3612_v55 = vmax.f32 %v3360_v6, 0.0  ;;  %v10635_v33 = vpop.f32.mrf.mxu0 }
 0x417   : > { %v8425_v0 = vpop.f32.mrf.mxu1  ;;  %13041 = vst [vmem:[#allocation108_spill] sm:$0xff] %v10635_v33  ;;  %v13214_v33 = vld [vmem:[#allocation70_spill] sm:$0xff] }
 0x418   : > { %v3363_v44 = vadd.f32 %v8425_v0, %v10471_v28  ;;  %8562 = vmatprep.mubr.bf16.mxu0 %v3694_v12  ;;  %v3610_v40 = vmax.f32 %v3352_v4, 0.0 }
 0x419   : > { %v3354_v57 = vpop.f32.mrf.mxu1  ;;  %8563 = vmatmul.mubr.bf16.gmra.mxu0 %v3695_v29 }
 0x41a   : > { %v3355_v10 = vadd.f32 %v10471_v28, %v3354_v57  ;;  %v3613_v37 = vmax.f32 %v3363_v44, 0.0 }
 0x41b   : > { %v8428_v60 = vpop.f32.mrf.mxu1 }
 0x41c   : > { %v3611_v39 = vmax.f32 %v3355_v10, 0.0  ;;  %v3697_v14 = vpack.c.bf16 %v3613_v37, %v3612_v55  ;;  %v3376_v49 = vadd.f32 %v8428_v60, %v10471_v28 }
 0x41d   : > { %v3367_v36 = vpop.f32.mrf.mxu1 }
 0x41e   : > { %v3696_v20 = vpack.c.bf16 %v3611_v39, %v3610_v40  ;;  %v3368_v48 = vadd.f32 %v10471_v28, %v3367_v36  ;;  %v3616_v30 = vmax.f32 %v3376_v49, 0.0  ;;  %v10644_v39 = vld [vmem:[%s12854_s4 + $0x2] ss:$0 sm:$0xff] }
 0x41f   : > { %v8429_v61 = vpop.f32.mrf.mxu1 }
 0x420   : > { %v3379_v9 = vadd.f32 %v8429_v61, %v10471_v28  ;;  %8566 = vmatprep.mubr.bf16.mxu0 %v3696_v20  ;;  %v3614_v8 = vmax.f32 %v3368_v48, 0.0 }
 0x421   : > { %v3370_v59 = vpop.f32.mrf.mxu1  ;;  %8567 = vmatmul.mubr.bf16.gmra.mxu0 %v3697_v14 }
 0x422   : > { %v3371_v47 = vadd.f32 %v10471_v28, %v3370_v59  ;;  %v3617_v1 = vmax.f32 %v3379_v9, 0.0 }
 0x423   : > { %v8432_v26 = vpop.f32.mrf.mxu1 }
 0x424   : > { %v3615_v52 = vmax.f32 %v3371_v47, 0.0  ;;  %v3699_v11 = vpack.c.bf16 %v3617_v1, %v3616_v30  ;;  %v3392_v2 = vadd.f32 %v8432_v26, %v10471_v28 }
 0x425   : > { %v3383_v54 = vpop.f32.mrf.mxu1 }
 0x426   : > { %v3698_v22 = vpack.c.bf16 %v3615_v52, %v3614_v8  ;;  %v3384_v53 = vadd.f32 %v10471_v28, %v3383_v54  ;;  %v3620_v5 = vmax.f32 %v3392_v2, 0.0  ;;  %v10656_v54 = vld [vmem:[%s12854_s4 + $0x1] ss:$0 sm:$0xff] }
 0x427   : > { %v8433_v43 = vpop.f32.mrf.mxu1 }
 0x428   : > { %v3395_v16 = vadd.f32 %v8433_v43, %v10471_v28  ;;  %8570 = vmatprep.mubr.bf16.mxu0 %v3698_v22  ;;  %v3618_v23 = vmax.f32 %v3384_v53, 0.0 }
 0x429   : > { %v3386_v38 = vpop.f32.mrf.mxu1  ;;  %8571 = vmatmul.mubr.bf16.gmra.mxu0 %v3699_v11 }
 0x42a   : > { %v3387_v15 = vadd.f32 %v10471_v28, %v3386_v38  ;;  %v3621_v41 = vmax.f32 %v3395_v16, 0.0 }
 0x42b   : > { %v8436_v51 = vpop.f32.mrf.mxu1 }
 0x42c   : > { %v3619_v35 = vmax.f32 %v3387_v15, 0.0  ;;  %v3701_v27 = vpack.c.bf16 %v3621_v41, %v3620_v5  ;;  %v3408_v58 = vadd.f32 %v8436_v51, %v10471_v28 }
 0x42d   : > { %v3399_v50 = vpop.f32.mrf.mxu1 }
 0x42e   : > { %v3700_v62 = vpack.c.bf16 %v3619_v35, %v3618_v23  ;;  %v3400_v19 = vadd.f32 %v10471_v28, %v3399_v50  ;;  %v3624_v46 = vmax.f32 %v3408_v58, 0.0 }
 0x42f   : > { %v8437_v31 = vpop.f32.mrf.mxu1 }
 0x430   : > { %v3411_v13 = vadd.f32 %v8437_v31, %v10471_v28  ;;  %8574 = vmatprep.mubr.bf16.mxu0 %v3700_v62  ;;  %v3622_v45 = vmax.f32 %v3400_v19, 0.0 }
 0x431   : > { %v3402_v34 = vpop.f32.mrf.mxu1  ;;  %8575 = vmatmul.mubr.bf16.gmra.mxu0 %v3701_v27 }
 0x432   : > { %v3403_v7 = vadd.f32 %v10471_v28, %v3402_v34  ;;  %v3625_v24 = vmax.f32 %v3411_v13, 0.0 }
 0x433   : > { %v8440_v63 = vpop.f32.mrf.mxu1 }
 0x434   : > { %v3623_v56 = vmax.f32 %v3403_v7, 0.0  ;;  %v3703_v25 = vpack.c.bf16 %v3625_v24, %v3624_v46  ;;  %v3424_v29 = vadd.f32 %v8440_v63, %v10471_v28 }
 0x435   : > { %v3415_v3 = vpop.f32.mrf.mxu1 }
 0x436   : > { %v3702_v21 = vpack.c.bf16 %v3623_v56, %v3622_v45  ;;  %v3416_v17 = vadd.f32 %v10471_v28, %v3415_v3  ;;  %v3628_v40 = vmax.f32 %v3424_v29, 0.0 }
 0x437   : > { %v8441_v42 = vpop.f32.mrf.mxu1 }
 0x438   : > { %v3427_v12 = vadd.f32 %v8441_v42, %v10471_v28  ;;  %8578 = vmatprep.mubr.bf16.mxu0 %v3702_v21  ;;  %v3626_v37 = vmax.f32 %v3416_v17, 0.0 }
 0x439   : > { %v3418_v0 = vpop.f32.mrf.mxu1  ;;  %v8484_v4 = vpop.f32.mrf.mxu0  ;;  %8579 = vmatmul.mubr.bf16.gmra.mxu0 %v3703_v25 }
 0x43a   : > { %v3419_v44 = vadd.f32 %v10471_v28, %v3418_v0  ;;  %v3629_v6 = vmax.f32 %v3427_v12, 0.0  ;;  %v3834_v23 = vadd.f32 %v8484_v4, %v10644_v39 }
 0x43b   : > { %v8444_v57 = vpop.f32.mrf.mxu1  ;;  %v3825_v10 = vpop.f32.mrf.mxu0 }
 0x43c   : > { %v3627_v60 = vmax.f32 %v3419_v44, 0.0  ;;  %v3826_v20 = vadd.f32 %v10644_v39, %v3825_v10  ;;  %v3705_v61 = vpack.c.bf16 %v3629_v6, %v3628_v40  ;;  %v3440_v1 = vadd.f32 %v8444_v57, %v10471_v28 }
 0x43d   : > { %v3431_v55 = vpop.f32.mrf.mxu1  ;;  %v8485_v36 = vpop.f32.mrf.mxu0  ;;  %v4338_v7 = vmax.f32 %v3834_v23, 0.0 }
 0x43e   : > { %v3704_v14 = vpack.c.bf16 %v3627_v60, %v3626_v37  ;;  %v3432_v49 = vadd.f32 %v10471_v28, %v3431_v55  ;;  %v4336_v52 = vmax.f32 %v3826_v20, 0.0  ;;  %v3837_v2 = vadd.f32 %v8485_v36, %v10644_v39 }
 0x43f   : > { %v8445_v48 = vpop.f32.mrf.mxu1  ;;  %v3828_v9 = vpop.f32.mrf.mxu0  ;;  %v3632_v15 = vmax.f32 %v3440_v1, 0.0 }
 0x440   : > { %v3443_v59 = vadd.f32 %v8445_v48, %v10471_v28  ;;  %v3829_v47 = vadd.f32 %v10644_v39, %v3828_v9  ;;  %8582 = vmatprep.mubr.bf16.mxu0 %v3704_v14  ;;  %v3630_v16 = vmax.f32 %v3432_v49, 0.0  ;;  %v4339_v27 = vmax.f32 %v3837_v2, 0.0 }
 0x441   : > { %v3434_v26 = vpop.f32.mrf.mxu1  ;;  %v10651_v8 = vpop.f32.mrf.mxu0  ;;  %8583 = vmatmul.mubr.bf16.gmra.mxu0 %v3705_v61 }
 0x442   : > { %v4337_v30 = vmax.f32 %v3829_v47, 0.0  ;;  %v3435_v22 = vadd.f32 %v10656_v54, %v3434_v26  ;;  %v3633_v11 = vmax.f32 %v3443_v59, 0.0  ;;  %v4465_v46 = vpack.c.bf16 %v4339_v27, %v4338_v7 }
 0x443   : > { %v8448_v43 = vpop.f32.mrf.mxu1  ;;  %v3841_v53 = vpop.f32.mrf.mxu0 }
 0x444   : > { %v4464_v28 = vpack.c.bf16 %v4337_v30, %v4336_v52  ;;  %v3631_v38 = vmax.f32 %v3435_v22, 0.0  ;;  %v3707_v5 = vpack.c.bf16 %v3633_v11, %v3632_v15  ;;  %v3456_v13 = vadd.f32 %v10656_v54, %v8448_v43 }
 0x445   : > { %v3447_v41 = vpop.f32.mrf.mxu1  ;;  %v8489_v51 = vpop.f32.mrf.mxu0  ;;  %v3842_v29 = vadd.f32 %v10644_v39, %v3841_v53  ;;  %v3850_v30 = vadd.f32 %v10651_v8, %v10644_v39 }
 0x446   : > { %4657 = vmatmul.mubr.bf16.vlgmr.msra.gmra.mxu1 %v4464_v28  ;;  %v3706_v35 = vpack.c.bf16 %v3631_v38, %v3630_v16  ;;  %v3448_v31 = vadd.f32 %v10656_v54, %v3447_v41  ;;  %v3636_v42 = vmax.f32 %v3456_v13, 0.0  ;;  %v3853_v9 = vadd.f32 %v8489_v51, %v10644_v39 }
 0x447   : > { %v8449_v50 = vpop.f32.mrf.mxu1  ;;  %v3844_v62 = vpop.f32.mrf.mxu0  ;;  %4666 = vmatprep.mubr.bf16.mxu1 %v13040_v18  ;;  %v4340_v36 = vmax.f32 %v3842_v29, 0.0  ;;  %v4342_v8 = vmax.f32 %v3850_v30, 0.0 }
 0x448   : > { %v3459_v19 = vadd.f32 %v10656_v54, %v8449_v50  ;;  %8586 = vmatprep.mubr.bf16.mxu0 %v3706_v35  ;;  %v3634_v3 = vmax.f32 %v3448_v31, 0.0  ;;  %v3845_v21 = vadd.f32 %v10644_v39, %v3844_v62  ;;  %v4343_v16 = vmax.f32 %v3853_v9, 0.0 }
 0x449   : > { %v3450_v58 = vpop.f32.mrf.mxu1  ;;  %v10665_v34 = vpop.f32.mrf.mxu0  ;;  %8587 = vmatmul.mubr.bf16.gmra.mxu0 %v3707_v5 }
 0x44a   : > { %v3451_v24 = vadd.f32 %v10656_v54, %v3450_v58  ;;  %v3637_v63 = vmax.f32 %v3459_v19, 0.0  ;;  %v4341_v57 = vmax.f32 %v3845_v21, 0.0  ;;  %v4467_v50 = vpack.c.bf16 %v4343_v16, %v4342_v8 }
 0x44b   : > { %v8452_v45 = vpop.f32.mrf.mxu1  ;;  %v3857_v56 = vpop.f32.mrf.mxu0 }
 0x44c   : > { %v3635_v25 = vmax.f32 %v3451_v24, 0.0  ;;  %v3709_v4 = vpack.c.bf16 %v3637_v63, %v3636_v42  ;;  %v3472_v60 = vadd.f32 %v10656_v54, %v8452_v45  ;;  %v4466_v49 = vpack.c.bf16 %v4341_v57, %v4340_v36 }
 0x44d   : > { %v3463_v17 = vpop.f32.mrf.mxu1  ;;  %v10669_v12 = vpop.f32.mrf.mxu0  ;;  %v3858_v7 = vadd.f32 %v10644_v39, %v3857_v56 }
 0x44e   : > { %4667 = vmatmul.mubr.bf16.gmra.mxu1 %v4465_v46  ;;  %v3708_v0 = vpack.c.bf16 %v3635_v25, %v3634_v3  ;;  %v3464_v10 = vadd.f32 %v10656_v54, %v3463_v17  ;;  %v3640_v1 = vmax.f32 %v3472_v60, 0.0  ;;  %v3869_v57 = vadd.f32 %v10669_v12, %v10644_v39 }
 0x44f   : > { %v8453_v44 = vpop.f32.mrf.mxu1  ;;  %v3860_v6 = vpop.f32.mrf.mxu0  ;;  %4676 = vmatprep.mubr.bf16.mxu1 %v13040_v18  ;;  %v4344_v56 = vmax.f32 %v3858_v7, 0.0 }
 0x450   : > { %v3475_v37 = vadd.f32 %v10656_v54, %v8453_v44  ;;  %8590 = vmatprep.mubr.bf16.mxu0 %v3708_v0  ;;  %v3638_v59 = vmax.f32 %v3464_v10, 0.0  ;;  %v3861_v62 = vadd.f32 %v10644_v39, %v3860_v6 }
 0x451   : > { %v3466_v40 = vpop.f32.mrf.mxu1  ;;  %v10676_v55 = vpop.f32.mrf.mxu0  ;;  %8591 = vmatmul.mubr.bf16.gmra.mxu0 %v3709_v4 }
 0x452   : > { %v3467_v20 = vadd.f32 %v10656_v54, %v3466_v40  ;;  %v3641_v14 = vmax.f32 %v3475_v37, 0.0  ;;  %v4345_v3 = vmax.f32 %v3861_v62, 0.0  ;;  %v3882_v7 = vadd.f32 %v10676_v55, %v10644_v39 }
 0x453   : > { %v8456_v61 = vpop.f32.mrf.mxu1  ;;  %v10679_v48 = vpop.f32.mrf.mxu0 }
 0x454   : > { %v3639_v47 = vmax.f32 %v3467_v20, 0.0  ;;  %v3711_v11 = vpack.c.bf16 %v3641_v14, %v3640_v1  ;;  %v3488_v38 = vadd.f32 %v10656_v54, %v8456_v61  ;;  %v4468_v10 = vpack.c.bf16 %v4345_v3, %v4344_v56 }
 0x455   : > { %v3479_v26 = vpop.f32.mrf.mxu1  ;;  %v10682_v52 = vpop.f32.mrf.mxu0  ;;  %v3866_v14 = vadd.f32 %v10665_v34, %v10644_v39 }
 0x456   : > { %4677 = vmatmul.mubr.bf16.gmra.mxu1 %v4466_v49  ;;  %v3710_v22 = vpack.c.bf16 %v3639_v47, %v3638_v59  ;;  %v3480_v2 = vadd.f32 %v10656_v54, %v3479_v26  ;;  %v3644_v19 = vmax.f32 %v3488_v38, 0.0  ;;  %v4347_v47 = vmax.f32 %v3869_v57, 0.0 }
 0x457   : > { %v8457_v43 = vpop.f32.mrf.mxu1  ;;  %v10686_v53 = vpop.f32.mrf.mxu0  ;;  %4686 = vmatprep.mubr.bf16.mxu1 %v13040_v18  ;;  %v4346_v34 = vmax.f32 %v3866_v14, 0.0 }
 0x458   : > { %v3491_v28 = vadd.f32 %v10656_v54, %v8457_v43  ;;  %8594 = vmatprep.mubr.bf16.mxu0 %v3710_v22  ;;  %v3642_v27 = vmax.f32 %v3480_v2, 0.0 }
 0x459   : > { %v3482_v15 = vpop.f32.mrf.mxu1  ;;  %v10692_v41 = vpop.f32.mrf.mxu0  ;;  %8595 = vmatmul.mubr.bf16.gmra.mxu0 %v3711_v11  ;;  %v4469_v2 = vpack.c.bf16 %v4347_v47, %v4346_v34 }
 0x45a   : > { %v3483_v51 = vadd.f32 %v10656_v54, %v3482_v15  ;;  %v3645_v23 = vmax.f32 %v3491_v28, 0.0  ;;  %v3877_v28 = vadd.f32 %v10644_v39, %v10686_v53 }
 0x45b   : > { %v8460_v35 = vpop.f32.mrf.mxu1  ;;  %v10695_v5 = vpop.f32.mrf.mxu0 }
 0x45c   : > { %v3643_v31 = vmax.f32 %v3483_v51, 0.0  ;;  %v3713_v63 = vpack.c.bf16 %v3645_v23, %v3644_v19  ;;  %v3504_v42 = vadd.f32 %v10656_v54, %v8460_v35  ;;  %v3874_v23 = vadd.f32 %v10644_v39, %v10679_v48 }
 0x45d   : > { %v3495_v13 = vpop.f32.mrf.mxu1  ;;  %v10698_v58 = vpop.f32.mrf.mxu0  ;;  %v3885_v19 = vadd.f32 %v10682_v52, %v10644_v39  ;;  %v3890_v56 = vadd.f32 %v10644_v39, %v10695_v5 }
 0x45e   : > { %4687 = vmatmul.mubr.bf16.gmra.mxu1 %v4467_v50  ;;  %v3712_v24 = vpack.c.bf16 %v3643_v31, %v3642_v27  ;;  %v3496_v21 = vadd.f32 %v10656_v54, %v3495_v13  ;;  %v3648_v40 = vmax.f32 %v3504_v42, 0.0  ;;  %v4348_v53 = vmax.f32 %v3874_v23, 0.0  ;;  %v9036_v42 = vld [vmem:[%s12857_s7 + $0x30] sm:$0xff]  }
 0x45f   : > { %v8461_v45 = vpop.f32.mrf.mxu1  ;;  %v10701_v46 = vpop.f32.mrf.mxu0  ;;  %4696 = vmatprep.mubr.bf16.mxu1 %v13040_v18  ;;  %v4352_v57 = vmax.f32 %v3890_v56, 0.0  ;;  %v3901_v5 = vadd.f32 %v10698_v58, %v10644_v39  ;;  %v9039_v58 = vld [vmem:[%s12857_s7 + $0x18] sm:$0xff]  }
 0x460   : > { %v3507_v25 = vadd.f32 %v10656_v54, %v8461_v45  ;;  %8598 = vmatprep.mubr.bf16.mxu0 %v3712_v24  ;;  %v3646_v37 = vmax.f32 %v3496_v21, 0.0  ;;  %v9035_v45 = vld [vmem:[%s12857_s7 + $0x38] sm:$0xff]   ;;  %v4350_v21 = vmax.f32 %v3882_v7, 0.0  ;;  %v3893_v55 = vadd.f32 %v10644_v39, %v10701_v46  ;;  %v9037_v46 = vld [vmem:[%s12857_s7 + $0x28] sm:$0xff]  }
 0x461   : > { %v3498_v17 = vpop.f32.mrf.mxu1  ;;  %v10707_v29 = vpop.f32.mrf.mxu0  ;;  %8599 = vmatmul.mubr.bf16.gmra.mxu0 %v3713_v63  ;;  %v4351_v63 = vmax.f32 %v3885_v19, 0.0  ;;  %8610 = vmatprep.subr.bf16.mxu0 %v9035_v45 }
 0x462   : > { %v3499_v0 = vadd.f32 %v10656_v54, %v3498_v17  ;;  %v3649_v4 = vmax.f32 %v3507_v25, 0.0  ;;  %8611 = vmatpush3.bf16.msra.mxu0 %v9035_v45  ;;  %v3914_v23 = vadd.f32 %v10707_v29, %v10644_v39 }
 0x463   : > { %v8464_v44 = vpop.f32.mrf.mxu1  ;;  %v10710_v6 = vpop.f32.mrf.mxu0  ;;  %v4471_v25 = vpack.c.bf16 %v4351_v63, %v4350_v21  ;;  %8612 = vmatprep.subr.bf16.mxu0 %v9036_v42 }
 0x464   : > { %v3647_v60 = vmax.f32 %v3499_v0, 0.0  ;;  %v3715_v9 = vpack.c.bf16 %v3649_v4, %v3648_v40  ;;  %v3520_v26 = vadd.f32 %v10656_v54, %v8464_v44  ;;  %v4353_v4 = vmax.f32 %v3893_v55, 0.0 }
 0x465   : > { %v3511_v36 = vpop.f32.mrf.mxu1  ;;  %v10714_v20 = vpop.f32.mrf.mxu0 }
 0x466   : > { %4697 = vmatmul.mubr.bf16.gmra.mxu1 %v4468_v10  ;;  %v3714_v61 = vpack.c.bf16 %v3647_v60, %v3646_v37  ;;  %v3512_v12 = vadd.f32 %v10656_v54, %v3511_v36  ;;  %v3652_v8 = vmax.f32 %v3520_v26, 0.0  ;;  %8613 = vmatpush3.bf16.msra.mxu0 %v9036_v42  ;;  %v4472_v37 = vpack.c.bf16 %v4353_v4, %v4352_v57  ;;  %v9038_v60 = vld [vmem:[%s12857_s7 + $0x20] sm:$0xff]  }
 0x467   : > { %v8465_v49 = vpop.f32.mrf.mxu1  ;;  %v10718_v59 = vpop.f32.mrf.mxu0  ;;  %4706 = vmatprep.mubr.bf16.mxu1 %v13040_v18  ;;  %8614 = vmatprep.subr.bf16.mxu0 %v9037_v46  ;;  %v3898_v36 = vadd.f32 %v10692_v41, %v10644_v39 }
 0x468   : > { %v3523_v1 = vadd.f32 %v10656_v54, %v8465_v49  ;;  %8602 = vmatprep.mubr.bf16.mxu0 %v3714_v61  ;;  %v3650_v38 = vmax.f32 %v3512_v12, 0.0  ;;  %v4355_v61 = vmax.f32 %v3901_v5, 0.0  ;;  %v3909_v12 = vadd.f32 %v10644_v39, %v10718_v59  ;;  %v9041_v59 = vld [vmem:[%s12857_s7 + $0x8] sm:$0xff]  }
 0x469   : > { %v3514_v30 = vpop.f32.mrf.mxu1  ;;  %v10724_v22 = vpop.f32.mrf.mxu0  ;;  %8603 = vmatmul.mubr.bf16.gmra.mxu0 %v3715_v9  ;;  %v4354_v49 = vmax.f32 %v3898_v36, 0.0 }
 0x46a   : > { %v3515_v11 = vadd.f32 %v10656_v54, %v3514_v30  ;;  %v3653_v43 = vmax.f32 %v3523_v1, 0.0  ;;  %v4349_v54 = vmax.f32 %v3877_v28, 0.0  ;;  %8615 = vmatpush3.bf16.msra.mxu0 %v9037_v46  ;;  %v9040_v1 = vld [vmem:[%s12857_s7 + $0x10] sm:$0xff]   ;;  %v3906_v30 = vadd.f32 %v10644_v39, %v10710_v6 }
 0x46b   : > { %v10727_v16 = vpop.f32.mrf.mxu0  ;;  %8616 = vmatprep.subr.bf16.mxu0 %v9038_v60  ;;  %v4473_v41 = vpack.c.bf16 %v4355_v61, %v4354_v49  ;;  %v3917_v6 = vadd.f32 %v10714_v20, %v10644_v39  ;;  %v3930_v55 = vadd.f32 %v10724_v22, %v10644_v39 }
 0x46c   : > { %v3651_v15 = vmax.f32 %v3515_v11, 0.0  ;;  %v3717_v50 = vpack.c.bf16 %v3653_v43, %v3652_v8  ;;  %v4470_v13 = vpack.c.bf16 %v4349_v54, %v4348_v53  ;;  %v4357_v11 = vmax.f32 %v3909_v12, 0.0 }
 0x46d   : > { %v10731_v51 = vpop.f32.mrf.mxu0  ;;  %v4358_v54 = vmax.f32 %v3914_v23, 0.0  ;;  %v4362_v42 = vmax.f32 %v3930_v55, 0.0 }
 0x46e   : > { %4707 = vmatmul.mubr.bf16.gmra.mxu1 %v4469_v2  ;;  %v3716_v35 = vpack.c.bf16 %v3651_v15, %v3650_v38  ;;  %8617 = vmatpush3.bf16.msra.mxu0 %v9038_v60  ;;  %v4356_v2 = vmax.f32 %v3906_v30, 0.0  ;;  %v9042_v15 = vld [vmem:[%s12857_s7] sm:$0xff]   ;;  %v3933_v21 = vadd.f32 %v10731_v51, %v10644_v39 }
 0x46f   : > { %v10735_v62 = vpop.f32.mrf.mxu0  ;;  %4716 = vmatprep.mubr.bf16.mxu1 %v13040_v18  ;;  %8618 = vmatprep.subr.bf16.mxu0 %v9039_v58 }
 0x470   : > { %8606 = vmatprep.mubr.bf16.mxu0 %v3716_v35  ;;  %v4474_v38 = vpack.c.bf16 %v4357_v11, %v4356_v2  ;;  %v3925_v19 = vadd.f32 %v10644_v39, %v10735_v62 }
 0x471   : > { %v10738_v27 = vpop.f32.mrf.mxu0  ;;  %8607 = vmatmul.mubr.bf16.gmra.mxu0 %v3717_v50  ;;  %v4359_v50 = vmax.f32 %v3917_v6, 0.0 }
 0x472   : > { %8619 = vmatpush3.bf16.msra.mxu0 %v9039_v58  ;;  %v4361_v7 = vmax.f32 %v3925_v19, 0.0  ;;  %v3946_v61 = vadd.f32 %v10738_v27, %v10644_v39 }
 0x473   : > { %v10740_v31 = vpop.f32.mrf.mxu0  ;;  %8620 = vmatprep.subr.bf16.mxu0 %v9040_v1  ;;  %v4475_v53 = vpack.c.bf16 %v4359_v50, %v4358_v54 }
 0x474   : > { %v3938_v51 = vadd.f32 %v10644_v39, %v10740_v31  ;;  %v4366_v58 = vmax.f32 %v3946_v61, 0.0 }
 0x475   : > { %v10744_v48 = vpop.f32.mrf.mxu0 }
 0x476   : > { %4717 = vmatmul.mubr.bf16.gmra.mxu1 %v4470_v13  ;;  %8621 = vmatpush3.bf16.msra.mxu0 %v9040_v1  ;;  %v3922_v13 = vadd.f32 %v10644_v39, %v10727_v16  ;;  %v4363_v16 = vmax.f32 %v3933_v21, 0.0  ;;  %v4364_v5 = vmax.f32 %v3938_v51, 0.0  ;;  %v3949_v60 = vadd.f32 %v10744_v48, %v10644_v39 }
 0x477   : > { %v10748_v24 = vpop.f32.mrf.mxu0  ;;  %4726 = vmatprep.mubr.bf16.mxu1 %v13040_v18  ;;  %8622 = vmatprep.subr.bf16.mxu0 %v9041_v59 }
 0x478   : > { %v4360_v63 = vmax.f32 %v3922_v13, 0.0  ;;  %v4477_v4 = vpack.c.bf16 %v4363_v16, %v4362_v42  ;;  %v3941_v46 = vadd.f32 %v10644_v39, %v10748_v24  ;;  %v4367_v31 = vmax.f32 %v3949_v60, 0.0 }
 0x479   : > { %v10754_v3 = vpop.f32.mrf.mxu0 }
 0x47a   : > { %8623 = vmatpush3.bf16.msra.mxu0 %v9041_v59  ;;  %v4365_v22 = vmax.f32 %v3941_v46, 0.0  ;;  %v3962_v6 = vadd.f32 %v10754_v3, %v10644_v39 }
 0x47b   : > { %v10756_v52 = vpop.f32.mrf.mxu0  ;;  %8624 = vmatprep.subr.bf16.mxu0 %v9042_v15 }
 0x47c   : > { %v4478_v36 = vpack.c.bf16 %v4365_v22, %v4364_v5  ;;  %v3954_v48 = vadd.f32 %v10644_v39, %v10756_v52 }
 0x47d   : > { %v10763_v17 = vpop.f32.mrf.mxu0 }
 0x47e   : > { %4727 = vmatmul.mubr.bf16.gmra.mxu1 %v4471_v25  ;;  %8625 = vmatpush3.bf16.msra.mxu0 %v9042_v15  ;;  %v4476_v25 = vpack.c.bf16 %v4361_v7, %v4360_v63  ;;  %v4368_v30 = vmax.f32 %v3954_v48, 0.0  ;;  %v3965_v59 = vadd.f32 %v10763_v17, %v10644_v39 }
 0x47f   : > { %v10767_v0 = vpop.f32.mrf.mxu0  ;;  %4736 = vmatprep.mubr.bf16.mxu1 %v13040_v18 }
 0x480   : > { %v3957_v12 = vadd.f32 %v10644_v39, %v10767_v0  ;;  %v4371_v52 = vmax.f32 %v3965_v59, 0.0 }
 0x481   : > { %v10773_v44 = vpop.f32.mrf.mxu0 }
 0x482   : > { %v4369_v27 = vmax.f32 %v3957_v12, 0.0  ;;  %v3978_v63 = vadd.f32 %v10773_v44, %v10644_v39 }
 0x483   : > { %v10775_v10 = vpop.f32.mrf.mxu0 }
 0x484   : > { %v4480_v2 = vpack.c.bf16 %v4369_v27, %v4368_v30  ;;  %v3970_v17 = vadd.f32 %v10644_v39, %v10775_v10  ;;  %v4374_v21 = vmax.f32 %v3978_v63, 0.0 }
 0x485   : > { %v10782_v40 = vpop.f32.mrf.mxu0 }
 0x486   : > { %4737 = vmatmul.mubr.bf16.gmra.mxu1 %v4472_v37  ;;  %v3981_v13 = vadd.f32 %v10782_v40, %v10644_v39 }
 0x487   : > { %v10786_v14 = vpop.f32.mrf.mxu0  ;;  %4746 = vmatprep.mubr.bf16.mxu1 %v13040_v18 }
 0x488   : > { %v3973_v50 = vadd.f32 %v10644_v39, %v10786_v14  ;;  %v4375_v10 = vmax.f32 %v3981_v13, 0.0 }
 0x489   : > { %v10792_v9 = vpop.f32.mrf.mxu0 }
 0x48a   : > { %v4373_v3 = vmax.f32 %v3973_v50, 0.0  ;;  %v4483_v55 = vpack.c.bf16 %v4375_v10, %v4374_v21  ;;  %v3994_v5 = vadd.f32 %v10792_v9, %v10644_v39 }
 0x48b   : > { %v10794_v47 = vpop.f32.mrf.mxu0 }
 0x48c   : > { %v3986_v40 = vadd.f32 %v10644_v39, %v10794_v47  ;;  %v4378_v60 = vmax.f32 %v3994_v5, 0.0 }
 0x48d   : > { %v10801_v26 = vpop.f32.mrf.mxu0 }
 0x48e   : > { %4747 = vmatmul.mubr.bf16.gmra.mxu1 %v4473_v41  ;;  %v4479_v41 = vpack.c.bf16 %v4367_v31, %v4366_v58  ;;  %v3997_v51 = vadd.f32 %v10801_v26, %v10644_v39 }
 0x48f   : > { %v10805_v34 = vpop.f32.mrf.mxu0  ;;  %4756 = vmatprep.mubr.bf16.mxu1 %v13040_v18 }
 0x490   : > { %v3989_v16 = vadd.f32 %v10644_v39, %v10805_v34  ;;  %v4379_v47 = vmax.f32 %v3997_v51, 0.0 }
 0x491   : > { %v10811_v43 = vpop.f32.mrf.mxu0 }
 0x492   : > { %v4377_v44 = vmax.f32 %v3989_v16, 0.0  ;;  %v4485_v61 = vpack.c.bf16 %v4379_v47, %v4378_v60  ;;  %v4010_v30 = vadd.f32 %v10811_v43, %v10644_v39 }
 0x493   : > { %v10813_v28 = vpop.f32.mrf.mxu0 }
 0x494   : > { %v4002_v26 = vadd.f32 %v10644_v39, %v10813_v28  ;;  %v4382_v59 = vmax.f32 %v4010_v30, 0.0 }
 0x495   : > { %v10820_v8 = vpop.f32.mrf.mxu0 }
 0x496   : > { %4757 = vmatmul.mubr.bf16.gmra.mxu1 %v4474_v38  ;;  %v4370_v38 = vmax.f32 %v3962_v6, 0.0  ;;  %v4013_v48 = vadd.f32 %v10820_v8, %v10644_v39 }
 0x497   : > { %v10824_v35 = vpop.f32.mrf.mxu0  ;;  %4766 = vmatprep.mubr.bf16.mxu1 %v13040_v18 }
 0x498   : > { %v4481_v23 = vpack.c.bf16 %v4371_v52, %v4370_v38  ;;  %v4005_v31 = vadd.f32 %v10644_v39, %v10824_v35  ;;  %v4383_v28 = vmax.f32 %v4013_v48, 0.0 }
 0x499   : > { %v10827_v20 = vpop.f32.mrf.mxu0 }
 0x49a   : > { %v4381_v9 = vmax.f32 %v4005_v31, 0.0  ;;  %v4487_v6 = vpack.c.bf16 %v4383_v28, %v4382_v59 }
 0x49b   : > { %v10833_v29 = vpop.f32.mrf.mxu0 }
 0x49c   : > { %v4018_v8 = vadd.f32 %v10644_v39, %v10833_v29  ;;  %v10953_v29 = vld [vmem:[%s12856_s6] ss:$0 sm:$0xff] }
 0x49d   : > { %v10836_v45 = vpop.f32.mrf.mxu0 }
 0x49e   : > { %4767 = vmatmul.mubr.bf16.gmra.mxu1 %v4475_v53  ;;  %v4372_v53 = vmax.f32 %v3970_v17, 0.0  ;;  %v4029_v17 = vadd.f32 %v10836_v45, %v10644_v39 }
 0x49f   : > { %4776 = vmatprep.mubr.bf16.mxu1 %v13040_v18  ;;  %v10842_v62 = vpop.f32.mrf.mxu0 }
 0x4a0   : > { %v4482_v7 = vpack.c.bf16 %v4373_v3, %v4372_v53  ;;  %v4021_v52 = vadd.f32 %v10644_v39, %v10842_v62  ;;  %v4026_v53 = vadd.f32 %v10827_v20, %v10644_v39 }
 0x4a1   : > { %v10845_v56 = vpop.f32.mrf.mxu0 }
 0x4a2   : > { %v4385_v43 = vmax.f32 %v4021_v52, 0.0  ;;  %v4386_v10 = vmax.f32 %v4026_v53, 0.0 }
 0x4a3   : > { %v10851_v57 = vpop.f32.mrf.mxu0 }
 0x4a5   : > { %v10854_v37 = vpop.f32.mrf.mxu0 }
 0x4a6   : > { %4777 = vmatmul.mubr.bf16.gmra.mxu1 %v4476_v25 }
 0x4a7   : > { %4786 = vmatprep.mubr.bf16.mxu1 %v13040_v18  ;;  %v10860_v24 = vpop.f32.mrf.mxu0 }
 0x4a9   : > { %v10863_v49 = vpop.f32.mrf.mxu0 }
 0x4ab   : > { %v10869_v1 = vpop.f32.mrf.mxu0 }
 0x4ad   : > { %v10872_v11 = vpop.f32.mrf.mxu0 }
 0x4ae   : > { %4787 = vmatmul.mubr.bf16.gmra.mxu1 %v4477_v4  ;;  %v4376_v4 = vmax.f32 %v3986_v40, 0.0  ;;  %v4037_v40 = vadd.f32 %v10644_v39, %v10860_v24 }
 0x4af   : > { %4796 = vmatprep.mubr.bf16.mxu1 %v13040_v18  ;;  %v10878_v0 = vpop.f32.mrf.mxu0 }
 0x4b0   : > { %v4484_v22 = vpack.c.bf16 %v4377_v44, %v4376_v4 }
 0x4b1   : > { %v10881_v15 = vpop.f32.mrf.mxu0 }
 0x4b3   : > { %v10887_v54 = vpop.f32.mrf.mxu0 }
 0x4b5   : > { %v10890_v19 = vpop.f32.mrf.mxu0 }
 0x4b6   : > { %4797 = vmatmul.mubr.bf16.gmra.mxu1 %v4478_v36 }
 0x4b7   : > { %4806 = vmatprep.mubr.bf16.mxu1 %v13040_v18  ;;  %v10896_v14 = vpop.f32.mrf.mxu0 }
 0x4b9   : > { %v10899_v25 = vpop.f32.mrf.mxu0 }
 0x4bb   : > { %v10905_v42 = vpop.f32.mrf.mxu0 }
 0x4bd   : > { %v10908_v46 = vpop.f32.mrf.mxu0 }
 0x4be   : > { %4807 = vmatmul.mubr.bf16.gmra.mxu1 %v4479_v41  ;;  %v4380_v41 = vmax.f32 %v4002_v26, 0.0 }
 0x4bf   : > { %4816 = vmatprep.mubr.bf16.mxu1 %v13040_v18  ;;  %v10914_v34 = vpop.f32.mrf.mxu0 }
 0x4c0   : > { %v4486_v27 = vpack.c.bf16 %v4381_v9, %v4380_v41 }
 0x4c1   : > { %v10917_v36 = vpop.f32.mrf.mxu0 }
 0x4c3   : > { %v10923_v58 = vpop.f32.mrf.mxu0 }
 0x4c5   : > { %v10926_v12 = vpop.f32.mrf.mxu0 }
 0x4c6   : > { %4817 = vmatmul.mubr.bf16.gmra.mxu1 %v4480_v2 }
 0x4c7   : > { %4826 = vmatprep.mubr.bf16.mxu1 %v13040_v18  ;;  %v10932_v35 = vpop.f32.mrf.mxu0 }
 0x4c9   : > { %v10935_v2 = vpop.f32.mrf.mxu0 }
 0x4cb   : > { %v10941_v38 = vpop.f32.mrf.mxu0 }
 0x4cd   : > { %v10944_v50 = vpop.f32.mrf.mxu0 }
 0x4ce   : > { %4827 = vmatmul.mubr.bf16.gmra.mxu1 %v4481_v23  ;;  %v4384_v23 = vmax.f32 %v4018_v8, 0.0 }
 0x4cf   : > { %4836 = vmatprep.mubr.bf16.mxu1 %v13040_v18  ;;  %v10955_v13 = vpop.f32.mrf.mxu0 }
 0x4d0   : > { %v4488_v3 = vpack.c.bf16 %v4385_v43, %v4384_v23 }
 0x4d6   : > { %4837 = vmatmul.mubr.bf16.gmra.mxu1 %v4482_v7  ;;  %v4387_v7 = vmax.f32 %v4029_v17, 0.0 }
 0x4d7   : > { %4846 = vmatprep.mubr.bf16.mxu1 %v13040_v18 }
 0x4d8   : > { %v4489_v16 = vpack.c.bf16 %v4387_v7, %v4386_v10 }
 0x4de   : > { %4847 = vmatmul.mubr.bf16.gmra.mxu1 %v4483_v55  ;;  %v10961_v55 = vpop.f32.mrf.mxu0 }
 0x4df   : > { %4856 = vmatprep.mubr.bf16.mxu1 %v13040_v18 }
 0x4e0   : > { %v10970_v47 = vpop.f32.mrf.mxu0 }
 0x4e2   : > { %v10976_v41 = vpop.f32.mrf.mxu0 }
 0x4e4   : > { %v10985_v8 = vpop.f32.mrf.mxu0 }
 0x4e6   : > { %4857 = vmatmul.mubr.bf16.gmra.mxu1 %v4484_v22  ;;  %v4034_v22 = vadd.f32 %v10644_v39, %v10851_v57  ;;  %v4045_v57 = vadd.f32 %v10854_v37, %v10644_v39 }
 0x4e7   : > { %4866 = vmatprep.mubr.bf16.mxu1 %v13040_v18 }
 0x4e8   : > { %v4388_v24 = vmax.f32 %v4034_v22, 0.0  ;;  %v4391_v23 = vmax.f32 %v4045_v57, 0.0 }
 0x4ee   : > { %4867 = vmatmul.mubr.bf16.gmra.mxu1 %v4485_v61  ;;  %v4389_v61 = vmax.f32 %v4037_v40, 0.0 }
 0x4ef   : > { %4876 = vmatprep.mubr.bf16.mxu1 %v13040_v18 }
 0x4f6   : > { %4877 = vmatmul.mubr.bf16.gmra.mxu1 %v4486_v27  ;;  %v4490_v27 = vpack.c.bf16 %v4389_v61, %v4388_v24 }
 0x4f7   : > { %4886 = vmatprep.mubr.bf16.mxu1 %v13040_v18 }
 0x4fe   : > { %4887 = vmatmul.mubr.bf16.gmra.mxu1 %v4487_v6  ;;  %v4042_v6 = vadd.f32 %v10845_v56, %v10644_v39 }
 0x4ff   : > { %4896 = vmatprep.mubr.bf16.mxu1 %v13040_v18 }
 0x506   : > { %v4658_v62 = vpop.f32.mrf.mxu1  ;;  %4897 = vmatmul.mubr.bf16.gmra.mxu1 %v4488_v3  ;;  %v4390_v3 = vmax.f32 %v4042_v6, 0.0 }
 0x507   : > { %4906 = vmatprep.mubr.bf16.mxu1 %v13040_v18  ;;  %v5304_v45 = vadd.f32 %v10953_v29, %v4658_v62  ;;  %v10991_v62 = vpop.f32.mrf.mxu0 }
 0x508   : > { %v10958_v63 = vpop.f32.mrf.mxu1  ;;  %v4491_v56 = vpack.c.bf16 %v4391_v23, %v4390_v3 }
 0x509   : > { %13042 = vst [vmem:[#allocation115_spill] sm:$0xff] %v10958_v63  ;;  %v5432_v4 = vmax.f32 %v5304_v45, 0.0  ;;  %v4053_v45 = vadd.f32 %v10644_v39, %v10878_v0 }
 0x50a   : > { %v4662_v21 = vpop.f32.mrf.mxu1 }
 0x50b   : > { %v5305_v20 = vadd.f32 %v10953_v29, %v4662_v21  ;;  %v4393_v22 = vmax.f32 %v4053_v45, 0.0 }
 0x50c   : > { %v10966_v44 = vpop.f32.mrf.mxu1 }
 0x50d   : > { %13043 = vst [vmem:[#allocation117_spill] sm:$0xff] %v10966_v44  ;;  %v5433_v51 = vmax.f32 %v5305_v20, 0.0 }
 0x50e   : > { %v4668_v5 = vpop.f32.mrf.mxu1  ;;  %4907 = vmatmul.mubr.bf16.gmra.mxu1 %v4489_v16  ;;  %v4050_v16 = vadd.f32 %v10644_v39, %v10869_v1  ;;  %v4061_v1 = vadd.f32 %v10872_v11, %v10644_v39 }
 0x50f   : > { %v5560_v60 = vpack.c.bf16 %v5433_v51, %v5432_v4  ;;  %4916 = vmatprep.mubr.bf16.mxu1 %v13040_v18  ;;  %v5306_v26 = vadd.f32 %v10953_v29, %v4668_v5  ;;  %v11000_v4 = vpop.f32.mrf.mxu0 }
 0x510   : > { %v10973_v31 = vpop.f32.mrf.mxu1  ;;  %v4392_v0 = vmax.f32 %v4050_v16, 0.0  ;;  %v4066_v16 = vadd.f32 %v10644_v39, %v10887_v54  ;;  %v4077_v54 = vadd.f32 %v10890_v19, %v10644_v39 }
 0x511   : > { %13044 = vst [vmem:[#allocation125_spill] sm:$0xff] %v10973_v31  ;;  %8626 = vmatprep.mubr.bf16.mxu0 %v5560_v60  ;;  %v5434_v28 = vmax.f32 %v5306_v26, 0.0  ;;  %v11006_v26 = vpop.f32.mrf.mxu0 }
 0x512   : > { %v4672_v9 = vpop.f32.mrf.mxu1 }
 0x513   : > { %v5307_v48 = vadd.f32 %v10953_v29, %v4672_v9  ;;  %v4492_v9 = vpack.c.bf16 %v4393_v22, %v4392_v0  ;;  %v11015_v6 = vpop.f32.mrf.mxu0 }
 0x514   : > { %v10981_v30 = vpop.f32.mrf.mxu1 }
 0x515   : > { %13045 = vst [vmem:[#allocation113_spill] sm:$0xff] %v10981_v30  ;;  %v5435_v59 = vmax.f32 %v5307_v48, 0.0 }
 0x516   : > { %v4678_v52 = vpop.f32.mrf.mxu1  ;;  %4917 = vmatmul.mubr.bf16.gmra.mxu1 %v4490_v27 }
 0x517   : > { %v5561_v43 = vpack.c.bf16 %v5435_v59, %v5434_v28  ;;  %4926 = vmatprep.mubr.bf16.mxu1 %v13040_v18  ;;  %v5308_v37 = vadd.f32 %v10953_v29, %v4678_v52  ;;  %v4058_v28 = vadd.f32 %v10863_v49, %v10644_v39 }
 0x518   : > { %v10988_v17 = vpop.f32.mrf.mxu1 }
 0x519   : > { %13046 = vst [vmem:[#allocation121_spill] sm:$0xff] %v10988_v17  ;;  %8627 = vmatmul.mubr.bf16.vlgmr.msra.gmra.mxu0 %v5561_v43  ;;  %v5436_v21 = vmax.f32 %v5308_v37, 0.0  ;;  %v4395_v43 = vmax.f32 %v4061_v1, 0.0  ;;  %v4394_v37 = vmax.f32 %v4058_v28, 0.0 }
 0x51a   : > { %v4682_v53 = vpop.f32.mrf.mxu1 }
 0x51b   : > { %v5309_v7 = vadd.f32 %v10953_v29, %v4682_v53  ;;  %v11021_v53 = vpop.f32.mrf.mxu0  ;;  %v4493_v49 = vpack.c.bf16 %v4395_v43, %v4394_v37 }
 0x51c   : > { %v10996_v10 = vpop.f32.mrf.mxu1 }
 0x51d   : > { %13047 = vst [vmem:[#allocation123_spill] sm:$0xff] %v10996_v10  ;;  %v5437_v20 = vmax.f32 %v5309_v7, 0.0 }
 0x51e   : > { %v4688_v40 = vpop.f32.mrf.mxu1  ;;  %4927 = vmatmul.mubr.bf16.gmra.mxu1 %v4491_v56  ;;  %v4069_v56 = vadd.f32 %v10644_v39, %v10896_v14  ;;  %v4396_v14 = vmax.f32 %v4066_v16, 0.0  ;;  %v4085_v16 = vadd.f32 %v10644_v39, %v10914_v34 }
 0x51f   : > { %v5562_v51 = vpack.c.bf16 %v5437_v20, %v5436_v21  ;;  %4936 = vmatprep.mubr.bf16.mxu1 %v13040_v18  ;;  %v5310_v60 = vadd.f32 %v10953_v29, %v4688_v40 }
 0x520   : > { %v11003_v5 = vpop.f32.mrf.mxu1 }
 0x521   : > { %13048 = vst [vmem:[#allocation119_spill] sm:$0xff] %v11003_v5  ;;  %8630 = vmatprep.mubr.bf16.mxu0 %v5562_v51  ;;  %v5438_v57 = vmax.f32 %v5310_v60, 0.0  ;;  %v11030_v51 = vpop.f32.mrf.mxu0  ;;  %v4397_v60 = vmax.f32 %v4069_v56, 0.0 }
 0x522   : > { %v4692_v61 = vpop.f32.mrf.mxu1 }
 0x523   : > { %v5311_v24 = vadd.f32 %v10953_v29, %v4692_v61  ;;  %v11036_v1 = vpop.f32.mrf.mxu0 }
 0x524   : > { %v11011_v48 = vpop.f32.mrf.mxu1 }
 0x525   : > { %13049 = vst [vmem:[#allocation129_spill] sm:$0xff] %v11011_v48  ;;  %v5439_v27 = vmax.f32 %v5311_v24, 0.0 }
 0x526   : > { %v4698_v59 = vpop.f32.mrf.mxu1  ;;  %4937 = vmatmul.mubr.bf16.gmra.mxu1 %v4492_v9 }
 0x527   : > { %v5563_v52 = vpack.c.bf16 %v5439_v27, %v5438_v57  ;;  %4946 = vmatprep.mubr.bf16.mxu1 %v13040_v18  ;;  %v5312_v11 = vadd.f32 %v10953_v29, %v4698_v59  ;;  %v4494_v57 = vpack.c.bf16 %v4397_v60, %v4396_v14 }
 0x528   : > { %v11018_v23 = vpop.f32.mrf.mxu1 }
 0x529   : > { %13050 = vst [vmem:[#allocation131_spill] sm:$0xff] %v11018_v23  ;;  %8631 = vmatmul.mubr.bf16.gmra.mxu0 %v5563_v52  ;;  %v5440_v21 = vmax.f32 %v5312_v11, 0.0  ;;  %v4074_v52 = vadd.f32 %v10881_v15, %v10644_v39  ;;  %v11045_v11 = vpop.f32.mrf.mxu0 }
 0x52a   : > { %v4702_v3 = vpop.f32.mrf.mxu1 }
 0x52b   : > { %v5313_v7 = vadd.f32 %v10953_v29, %v4702_v3  ;;  %v4399_v3 = vmax.f32 %v4077_v54, 0.0  ;;  %v4401_v54 = vmax.f32 %v4085_v16, 0.0 }
 0x52c   : > { %v11026_v45 = vpop.f32.mrf.mxu1 }
 0x52d   : > { %13051 = vst [vmem:[#allocation139_spill] sm:$0xff] %v11026_v45  ;;  %v5441_v20 = vmax.f32 %v5313_v7, 0.0 }
 0x52e   : > { %v4708_v40 = vpop.f32.mrf.mxu1  ;;  %4947 = vmatmul.mubr.bf16.gmra.mxu1 %v4493_v49  ;;  %v4398_v49 = vmax.f32 %v4074_v52, 0.0 }
 0x52f   : > { %v5564_v22 = vpack.c.bf16 %v5441_v20, %v5440_v21  ;;  %4956 = vmatprep.mubr.bf16.mxu1 %v13040_v18  ;;  %v5314_v61 = vadd.f32 %v10953_v29, %v4708_v40  ;;  %v11051_v21 = vpop.f32.mrf.mxu0 }
 0x530   : > { %v11033_v0 = vpop.f32.mrf.mxu1  ;;  %v4495_v15 = vpack.c.bf16 %v4399_v3, %v4398_v49 }
 0x531   : > { %13052 = vst [vmem:[#allocation127_spill] sm:$0xff] %v11033_v0  ;;  %8634 = vmatprep.mubr.bf16.mxu0 %v5564_v22  ;;  %v5442_v28 = vmax.f32 %v5314_v61, 0.0  ;;  %v4082_v61 = vadd.f32 %v10644_v39, %v10905_v42  ;;  %v11072_v39 = vld [vmem:[%s12854_s4 + $0x2] ss:$0 sm:$0xff] }
 0x532   : > { %v4712_v24 = vpop.f32.mrf.mxu1  ;;  %v4093_v42 = vadd.f32 %v11072_v39, %v10908_v46 }
 0x533   : > { %v5315_v9 = vadd.f32 %v10953_v29, %v4712_v24  ;;  %v11060_v24 = vpop.f32.mrf.mxu0  ;;  %v4400_v34 = vmax.f32 %v4082_v61, 0.0 }
 0x534   : > { %v11041_v27 = vpop.f32.mrf.mxu1 }
 0x535   : > { %13053 = vst [vmem:[#allocation135_spill] sm:$0xff] %v11041_v27  ;;  %v5443_v59 = vmax.f32 %v5315_v9, 0.0  ;;  %v11066_v52 = vpop.f32.mrf.mxu0 }
 0x536   : > { %v4718_v43 = vpop.f32.mrf.mxu1  ;;  %4957 = vmatmul.mubr.bf16.gmra.mxu1 %v4494_v57 }
 0x537   : > { %v5565_v37 = vpack.c.bf16 %v5443_v59, %v5442_v28  ;;  %4966 = vmatprep.mubr.bf16.mxu1 %v13040_v18  ;;  %v5316_v19 = vadd.f32 %v10953_v29, %v4718_v43 }
 0x538   : > { %v11048_v7 = vpop.f32.mrf.mxu1 }
 0x539   : > { %13054 = vst [vmem:[#allocation137_spill] sm:$0xff] %v11048_v7  ;;  %8635 = vmatmul.mubr.bf16.gmra.mxu0 %v5565_v37  ;;  %v5444_v22 = vmax.f32 %v5316_v19, 0.0  ;;  %v4496_v37 = vpack.c.bf16 %v4401_v54, %v4400_v34 }
 0x53a   : > { %v4722_v56 = vpop.f32.mrf.mxu1 }
 0x53b   : > { %v5317_v20 = vadd.f32 %v10953_v29, %v4722_v56  ;;  %v4090_v56 = vadd.f32 %v11072_v39, %v10899_v25 }
 0x53c   : > { %v11056_v40 = vpop.f32.mrf.mxu1 }
 0x53d   : > { %13055 = vst [vmem:[#allocation133_spill] sm:$0xff] %v11056_v40  ;;  %v5445_v60 = vmax.f32 %v5317_v20, 0.0  ;;  %v4402_v61 = vmax.f32 %v4090_v56, 0.0  ;;  %v13099_v40 = vld [vmem:[#allocation4_spill] sm:$0xff] }
 0x53e   : > { %v4728_v14 = vpop.f32.mrf.mxu1  ;;  %4967 = vmatmul.mubr.bf16.gmra.mxu1 %v4495_v15  ;;  %v11080_v15 = vpop.f32.mrf.mxu0 }
 0x53f   : > { %v5566_v9 = vpack.c.bf16 %v5445_v60, %v5444_v22  ;;  %4976 = vmatprep.mubr.bf16.mxu1 %v13040_v18  ;;  %v5318_v28 = vadd.f32 %v10953_v29, %v4728_v14  ;;  %v4403_v22 = vmax.f32 %v4093_v42, 0.0  ;;  %v4098_v42 = vadd.f32 %v11072_v39, %v10923_v58 }
 0x540   : > { %v11063_v57 = vpop.f32.mrf.mxu1  ;;  %v4109_v58 = vadd.f32 %v11072_v39, %v10926_v12 }
 0x541   : > { %13056 = vst [vmem:[#allocation143_spill] sm:$0xff] %v11063_v57  ;;  %8638 = vmatprep.mubr.bf16.mxu0 %v5566_v9  ;;  %v5446_v19 = vmax.f32 %v5318_v28, 0.0  ;;  %v11086_v9 = vpop.f32.mrf.mxu0  ;;  %v4497_v25 = vpack.c.bf16 %v4403_v22, %v4402_v61  ;;  %v4101_v28 = vadd.f32 %v11072_v39, %v10932_v35  ;;  %v4404_v35 = vmax.f32 %v4098_v42, 0.0 }
 0x542   : > { %v4732_v59 = vpop.f32.mrf.mxu1 }
 0x543   : > { %v5319_v43 = vadd.f32 %v10953_v29, %v4732_v59  ;;  %v4405_v56 = vmax.f32 %v4101_v28, 0.0  ;;  %v4106_v28 = vadd.f32 %v11072_v39, %v10917_v36 }
 0x544   : > { %v11076_v3 = vpop.f32.mrf.mxu1 }
 0x545   : > { %13057 = vst [vmem:[#allocation141_spill] sm:$0xff] %v11076_v3  ;;  %v5447_v49 = vmax.f32 %v5319_v43, 0.0 }
 0x546   : > { %v4738_v20 = vpop.f32.mrf.mxu1  ;;  %4977 = vmatmul.mubr.bf16.gmra.mxu1 %v4496_v37 }
 0x547   : > { %v5567_v16 = vpack.c.bf16 %v5447_v49, %v5446_v19  ;;  %4986 = vmatprep.mubr.bf16.mxu1 %v13040_v18  ;;  %v5320_v46 = vadd.f32 %v10953_v29, %v4738_v20  ;;  %v11095_v19 = vpop.f32.mrf.mxu0 }
 0x548   : > { %v11083_v60 = vpop.f32.mrf.mxu1 }
 0x549   : > { %13058 = vst [vmem:[#allocation146_spill] sm:$0xff] %v11083_v60  ;;  %8639 = vmatmul.mubr.bf16.gmra.mxu0 %v5567_v16  ;;  %v5448_v59 = vmax.f32 %v5320_v46, 0.0  ;;  %v11101_v46 = vpop.f32.mrf.mxu0 }
 0x54a   : > { %v4742_v14 = vpop.f32.mrf.mxu1 }
 0x54b   : > { %v5321_v54 = vadd.f32 %v10953_v29, %v4742_v14  ;;  %v4498_v14 = vpack.c.bf16 %v4405_v56, %v4404_v35  ;;  %v4406_v56 = vmax.f32 %v4106_v28, 0.0 }
 0x54c   : > { %v11091_v34 = vpop.f32.mrf.mxu1 }
 0x54d   : > { %13059 = vst [vmem:[#allocation147_spill] sm:$0xff] %v11091_v34  ;;  %v5449_v43 = vmax.f32 %v5321_v54, 0.0 }
 0x54e   : > { %v4748_v37 = vpop.f32.mrf.mxu1  ;;  %4987 = vmatmul.mubr.bf16.gmra.mxu1 %v4497_v25 }
 0x54f   : > { %v5568_v49 = vpack.c.bf16 %v5449_v43, %v5448_v59  ;;  %4996 = vmatprep.mubr.bf16.mxu1 %v13040_v18  ;;  %v5322_v16 = vadd.f32 %v10953_v29, %v4748_v37  ;;  %v11110_v37 = vpop.f32.mrf.mxu0 }
 0x550   : > { %v11098_v20 = vpop.f32.mrf.mxu1 }
 0x551   : > { %13060 = vst [vmem:[#allocation148_spill] sm:$0xff] %v11098_v20  ;;  %8642 = vmatprep.mubr.bf16.mxu0 %v5568_v49  ;;  %v5450_v25 = vmax.f32 %v5322_v16, 0.0  ;;  %v4407_v49 = vmax.f32 %v4109_v58, 0.0  ;;  %v11116_v16 = vpop.f32.mrf.mxu0  ;;  %v4114_v58 = vadd.f32 %v11072_v39, %v10941_v38  ;;  %v4125_v38 = vadd.f32 %v11072_v39, %v10944_v50 }
 0x552   : > { %v4752_v22 = vpop.f32.mrf.mxu1 }
 0x553   : > { %v5323_v61 = vadd.f32 %v10953_v29, %v4752_v22  ;;  %v4499_v36 = vpack.c.bf16 %v4407_v49, %v4406_v56 }
 0x554   : > { %v11106_v54 = vpop.f32.mrf.mxu1 }
 0x555   : > { %13061 = vst [vmem:[#allocation149_spill] sm:$0xff] %v11106_v54  ;;  %v5451_v59 = vmax.f32 %v5323_v61, 0.0  ;;  %v13097_v54 = vld [vmem:[#allocation8_spill] sm:$0xff] }
 0x556   : > { %v4758_v43 = vpop.f32.mrf.mxu1  ;;  %4997 = vmatmul.mubr.bf16.gmra.mxu1 %v4498_v14  ;;  %v4117_v14 = vadd.f32 %v11072_v39, %v10955_v13  ;;  %v4408_v13 = vmax.f32 %v4114_v58, 0.0 }
 0x557   : > { %v5569_v42 = vpack.c.bf16 %v5451_v59, %v5450_v25  ;;  %5006 = vmatprep.mubr.bf16.mxu1 %v13040_v18  ;;  %v5324_v12 = vadd.f32 %v10953_v29, %v4758_v43  ;;  %v11125_v43 = vpop.f32.mrf.mxu0 }
 0x558   : > { %v11113_v22 = vpop.f32.mrf.mxu1 }
 0x559   : > { %13062 = vst [vmem:[#allocation150_spill] sm:$0xff] %v11113_v22  ;;  %8643 = vmatmul.mubr.bf16.gmra.mxu0 %v5569_v42  ;;  %v5452_v25 = vmax.f32 %v5324_v12, 0.0  ;;  %v4409_v42 = vmax.f32 %v4117_v14, 0.0  ;;  %v11131_v12 = vpop.f32.mrf.mxu0  ;;  %v4122_v14 = vadd.f32 %v11072_v39, %v10935_v2 }
 0x55a   : > { %v4762_v35 = vpop.f32.mrf.mxu1 }
 0x55b   : > { %v5325_v61 = vadd.f32 %v10953_v29, %v4762_v35 }
 0x55c   : > { %v11121_v34 = vpop.f32.mrf.mxu1 }
 0x55d   : > { %13063 = vst [vmem:[#allocation151_spill] sm:$0xff] %v11121_v34  ;;  %v5453_v59 = vmax.f32 %v5325_v61, 0.0 }
 0x55e   : > { %v4768_v22 = vpop.f32.mrf.mxu1  ;;  %5007 = vmatmul.mubr.bf16.gmra.mxu1 %v4499_v36  ;;  %v4500_v36 = vpack.c.bf16 %v4409_v42, %v4408_v13  ;;  %v4410_v42 = vmax.f32 %v4122_v14, 0.0 }
 0x55f   : > { %v5570_v28 = vpack.c.bf16 %v5453_v59, %v5452_v25  ;;  %5016 = vmatprep.mubr.bf16.mxu1 %v13040_v18  ;;  %v5326_v49 = vadd.f32 %v10953_v29, %v4768_v22  ;;  %v11140_v22 = vpop.f32.mrf.mxu0 }
 0x560   : > { %v11128_v35 = vpop.f32.mrf.mxu1 }
 0x561   : > { %13064 = vst [vmem:[#allocation152_spill] sm:$0xff] %v11128_v35  ;;  %8646 = vmatprep.mubr.bf16.mxu0 %v5570_v28  ;;  %v5454_v25 = vmax.f32 %v5326_v49, 0.0  ;;  %v4411_v28 = vmax.f32 %v4125_v38, 0.0  ;;  %v11146_v49 = vpop.f32.mrf.mxu0  ;;  %v4130_v38 = vadd.f32 %v11072_v39, %v10970_v47  ;;  %v4141_v47 = vadd.f32 %v11072_v39, %v10976_v41 }
 0x562   : > { %v4772_v56 = vpop.f32.mrf.mxu1 }
 0x563   : > { %v5327_v61 = vadd.f32 %v10953_v29, %v4772_v56  ;;  %v4501_v2 = vpack.c.bf16 %v4411_v28, %v4410_v42 }
 0x564   : > { %v11136_v34 = vpop.f32.mrf.mxu1 }
 0x565   : > { %13065 = vst [vmem:[#allocation153_spill] sm:$0xff] %v11136_v34  ;;  %v5455_v59 = vmax.f32 %v5327_v61, 0.0 }
 0x566   : > { %v4778_v35 = vpop.f32.mrf.mxu1  ;;  %5017 = vmatmul.mubr.bf16.gmra.mxu1 %v4500_v36  ;;  %v4133_v36 = vadd.f32 %v11072_v39, %v10985_v8  ;;  %v4412_v8 = vmax.f32 %v4130_v38, 0.0 }
 0x567   : > { %v5571_v58 = vpack.c.bf16 %v5455_v59, %v5454_v25  ;;  %5026 = vmatprep.mubr.bf16.mxu1 %v13040_v18  ;;  %v5328_v50 = vadd.f32 %v10953_v29, %v4778_v35  ;;  %v11155_v35 = vpop.f32.mrf.mxu0 }
 0x568   : > { %v11143_v56 = vpop.f32.mrf.mxu1 }
 0x569   : > { %13066 = vst [vmem:[#allocation154_spill] sm:$0xff] %v11143_v56  ;;  %8647 = vmatmul.mubr.bf16.gmra.mxu0 %v5571_v58  ;;  %v5456_v25 = vmax.f32 %v5328_v50, 0.0  ;;  %v4413_v58 = vmax.f32 %v4133_v36, 0.0  ;;  %v11161_v50 = vpop.f32.mrf.mxu0  ;;  %v4138_v36 = vadd.f32 %v11072_v39, %v10961_v55 }
 0x56a   : > { %v4782_v13 = vpop.f32.mrf.mxu1 }
 0x56b   : > { %v5329_v61 = vadd.f32 %v10953_v29, %v4782_v13 }
 0x56c   : > { %v11151_v34 = vpop.f32.mrf.mxu1 }
 0x56d   : > { %13067 = vst [vmem:[#allocation155_spill] sm:$0xff] %v11151_v34  ;;  %v5457_v59 = vmax.f32 %v5329_v61, 0.0 }
 0x56e   : > { %v4788_v56 = vpop.f32.mrf.mxu1  ;;  %5027 = vmatmul.mubr.bf16.gmra.mxu1 %v4501_v2  ;;  %v4502_v2 = vpack.c.bf16 %v4413_v58, %v4412_v8  ;;  %v4414_v58 = vmax.f32 %v4138_v36, 0.0 }
 0x56f   : > { %v5572_v14 = vpack.c.bf16 %v5457_v59, %v5456_v25  ;;  %5036 = vmatprep.mubr.bf16.mxu1 %v13040_v18  ;;  %v5330_v28 = vadd.f32 %v10953_v29, %v4788_v56  ;;  %v11170_v56 = vpop.f32.mrf.mxu0 }
 0x570   : > { %v11158_v13 = vpop.f32.mrf.mxu1 }
 0x571   : > { %13068 = vst [vmem:[#allocation156_spill] sm:$0xff] %v11158_v13  ;;  %8650 = vmatprep.mubr.bf16.mxu0 %v5572_v14  ;;  %v5458_v25 = vmax.f32 %v5330_v28, 0.0  ;;  %v4415_v14 = vmax.f32 %v4141_v47, 0.0  ;;  %v11176_v28 = vpop.f32.mrf.mxu0  ;;  %v4146_v47 = vadd.f32 %v11072_v39, %v11000_v4  ;;  %v4157_v4 = vadd.f32 %v11072_v39, %v11006_v26 }
 0x572   : > { %v4792_v42 = vpop.f32.mrf.mxu1 }
 0x573   : > { %v5331_v61 = vadd.f32 %v10953_v29, %v4792_v42  ;;  %v4503_v55 = vpack.c.bf16 %v4415_v14, %v4414_v58 }
 0x574   : > { %v11166_v34 = vpop.f32.mrf.mxu1 }
 0x575   : > { %13069 = vst [vmem:[#allocation157_spill] sm:$0xff] %v11166_v34  ;;  %v5459_v59 = vmax.f32 %v5331_v61, 0.0 }
 0x576   : > { %v4798_v13 = vpop.f32.mrf.mxu1  ;;  %5037 = vmatmul.mubr.bf16.gmra.mxu1 %v4502_v2  ;;  %v4149_v2 = vadd.f32 %v11072_v39, %v11015_v6  ;;  %v4416_v6 = vmax.f32 %v4146_v47, 0.0 }
 0x577   : > { %v5573_v38 = vpack.c.bf16 %v5459_v59, %v5458_v25  ;;  %5046 = vmatprep.mubr.bf16.mxu1 %v13040_v18  ;;  %v5332_v41 = vadd.f32 %v10953_v29, %v4798_v13  ;;  %v11185_v13 = vpop.f32.mrf.mxu0 }
 0x578   : > { %v11173_v42 = vpop.f32.mrf.mxu1 }
 0x579   : > { %13070 = vst [vmem:[#allocation158_spill] sm:$0xff] %v11173_v42  ;;  %8651 = vmatmul.mubr.bf16.gmra.mxu0 %v5573_v38  ;;  %v5460_v25 = vmax.f32 %v5332_v41, 0.0  ;;  %v4417_v38 = vmax.f32 %v4149_v2, 0.0  ;;  %v11191_v41 = vpop.f32.mrf.mxu0  ;;  %v4154_v2 = vadd.f32 %v11072_v39, %v10991_v62 }
 0x57a   : > { %v4802_v8 = vpop.f32.mrf.mxu1 }
 0x57b   : > { %v5333_v61 = vadd.f32 %v10953_v29, %v4802_v8 }
 0x57c   : > { %v11181_v34 = vpop.f32.mrf.mxu1 }
 0x57d   : > { %13071 = vst [vmem:[#allocation159_spill] sm:$0xff] %v11181_v34  ;;  %v5461_v59 = vmax.f32 %v5333_v61, 0.0 }
 0x57e   : > { %v4808_v42 = vpop.f32.mrf.mxu1  ;;  %5047 = vmatmul.mubr.bf16.gmra.mxu1 %v4503_v55  ;;  %v4504_v55 = vpack.c.bf16 %v4417_v38, %v4416_v6  ;;  %v4418_v38 = vmax.f32 %v4154_v2, 0.0 }
 0x57f   : > { %v5574_v36 = vpack.c.bf16 %v5461_v59, %v5460_v25  ;;  %5056 = vmatprep.mubr.bf16.mxu1 %v13040_v18  ;;  %v5334_v14 = vadd.f32 %v10953_v29, %v4808_v42  ;;  %v11200_v42 = vpop.f32.mrf.mxu0 }
 0x580   : > { %v11188_v8 = vpop.f32.mrf.mxu1 }
 0x581   : > { %13072 = vst [vmem:[#allocation160_spill] sm:$0xff] %v11188_v8  ;;  %8654 = vmatprep.mubr.bf16.mxu0 %v5574_v36  ;;  %v5462_v25 = vmax.f32 %v5334_v14, 0.0  ;;  %v4419_v36 = vmax.f32 %v4157_v4, 0.0  ;;  %v11206_v14 = vpop.f32.mrf.mxu0  ;;  %v4162_v4 = vadd.f32 %v11072_v39, %v11030_v51  ;;  %v4173_v51 = vadd.f32 %v11072_v39, %v11036_v1 }
 0x582   : > { %v4812_v58 = vpop.f32.mrf.mxu1 }
 0x583   : > { %v5335_v61 = vadd.f32 %v10953_v29, %v4812_v58  ;;  %v4505_v62 = vpack.c.bf16 %v4419_v36, %v4418_v38  ;;  %v4423_v1 = vmax.f32 %v4173_v51, 0.0  ;;  %v4178_v51 = vadd.f32 %v11072_v39, %v11060_v24 }
 0x584   : > { %v11196_v34 = vpop.f32.mrf.mxu1  ;;  %v4189_v24 = vadd.f32 %v11072_v39, %v11066_v52 }
 0x585   : > { %13073 = vst [vmem:[#allocation161_spill] sm:$0xff] %v11196_v34  ;;  %v5463_v59 = vmax.f32 %v5335_v61, 0.0 }
 0x586   : > { %v4818_v8 = vpop.f32.mrf.mxu1  ;;  %5057 = vmatmul.mubr.bf16.gmra.mxu1 %v4504_v55  ;;  %v4165_v55 = vadd.f32 %v11072_v39, %v11045_v11  ;;  %v4420_v11 = vmax.f32 %v4162_v4, 0.0 }
 0x587   : > { %v5575_v47 = vpack.c.bf16 %v5463_v59, %v5462_v25  ;;  %5066 = vmatprep.mubr.bf16.mxu1 %v13040_v18  ;;  %v5336_v26 = vadd.f32 %v10953_v29, %v4818_v8  ;;  %v11215_v8 = vpop.f32.mrf.mxu0 }
 0x588   : > { %v11203_v58 = vpop.f32.mrf.mxu1 }
 0x589   : > { %13074 = vst [vmem:[#allocation162_spill] sm:$0xff] %v11203_v58  ;;  %8655 = vmatmul.mubr.bf16.gmra.mxu0 %v5575_v47  ;;  %v5464_v25 = vmax.f32 %v5336_v26, 0.0  ;;  %v4421_v47 = vmax.f32 %v4165_v55, 0.0  ;;  %v11221_v26 = vpop.f32.mrf.mxu0  ;;  %v9043_v55 = vld [vmem:[%s12859_s9 + $0x18] sm:$0xff]  }
 0x58a   : > { %v4822_v6 = vpop.f32.mrf.mxu1  ;;  %8754 = vmatprep.subr.bf16.mxu0 %v9043_v55 }
 0x58b   : > { %v5337_v61 = vadd.f32 %v10953_v29, %v4822_v6  ;;  %8755 = vmatpush3.bf16.msra.mxu0 %v9043_v55 }
 0x58c   : > { %v11211_v34 = vpop.f32.mrf.mxu1 }
 0x58d   : > { %13075 = vst [vmem:[#allocation163_spill] sm:$0xff] %v11211_v34  ;;  %v5465_v59 = vmax.f32 %v5337_v61, 0.0 }
 0x58e   : > { %v4828_v58 = vpop.f32.mrf.mxu1  ;;  %5067 = vmatmul.mubr.bf16.gmra.mxu1 %v4505_v62  ;;  %v4506_v62 = vpack.c.bf16 %v4421_v47, %v4420_v11 }
 0x58f   : > { %v5576_v2 = vpack.c.bf16 %v5465_v59, %v5464_v25  ;;  %5076 = vmatprep.mubr.bf16.mxu1 %v13040_v18  ;;  %v5338_v36 = vadd.f32 %v10953_v29, %v4828_v58  ;;  %v4170_v58 = vadd.f32 %v11072_v39, %v11021_v53 }
 0x590   : > { %v11218_v6 = vpop.f32.mrf.mxu1 }
 0x591   : > { %13076 = vst [vmem:[#allocation164_spill] sm:$0xff] %v11218_v6  ;;  %8658 = vmatprep.mubr.bf16.mxu0 %v5576_v2  ;;  %v5466_v25 = vmax.f32 %v5338_v36, 0.0  ;;  %v11233_v2 = vpop.f32.mrf.mxu0  ;;  %v4422_v36 = vmax.f32 %v4170_v58, 0.0  ;;  %v4181_v6 = vadd.f32 %v11072_v39, %v11080_v15  ;;  %v4424_v15 = vmax.f32 %v4178_v51, 0.0 }
 0x592   : > { %v4832_v38 = vpop.f32.mrf.mxu1 }
 0x593   : > { %v5339_v61 = vadd.f32 %v10953_v29, %v4832_v38 }
 0x594   : > { %v11226_v34 = vpop.f32.mrf.mxu1 }
 0x595   : > { %13077 = vst [vmem:[#allocation165_spill] sm:$0xff] %v11226_v34  ;;  %v5467_v59 = vmax.f32 %v5339_v61, 0.0  ;;  %v11239_v34 = vpop.f32.mrf.mxu0 }
 0x596   : > { %v4838_v4 = vpop.f32.mrf.mxu1  ;;  %5077 = vmatmul.mubr.bf16.gmra.mxu1 %v4506_v62  ;;  %v4507_v62 = vpack.c.bf16 %v4423_v1, %v4422_v36 }
 0x597   : > { %v5577_v38 = vpack.c.bf16 %v5467_v59, %v5466_v25  ;;  %5086 = vmatprep.mubr.bf16.mxu1 %v13040_v18  ;;  %v5340_v11 = vadd.f32 %v10953_v29, %v4838_v4  ;;  %v11248_v4 = vpop.f32.mrf.mxu0 }
 0x598   : > { %v11236_v47 = vpop.f32.mrf.mxu1 }
 0x599   : > { %13078 = vst [vmem:[#allocation166_spill] sm:$0xff] %v11236_v47  ;;  %8659 = vmatmul.mubr.bf16.gmra.mxu0 %v5577_v38  ;;  %v5468_v59 = vmax.f32 %v5340_v11, 0.0  ;;  %v4425_v38 = vmax.f32 %v4181_v6, 0.0  ;;  %v11254_v11 = vpop.f32.mrf.mxu0  ;;  %v4186_v6 = vadd.f32 %v11072_v39, %v11051_v21 }
 0x59a   : > { %v4842_v61 = vpop.f32.mrf.mxu1 }
 0x59b   : > { %v5341_v53 = vadd.f32 %v10953_v29, %v4842_v61 }
 0x59c   : > { %v11244_v25 = vpop.f32.mrf.mxu1 }
 0x59d   : > { %13079 = vst [vmem:[#allocation167_spill] sm:$0xff] %v11244_v25  ;;  %v5469_v55 = vmax.f32 %v5341_v53, 0.0 }
 0x59e   : > { %v4848_v47 = vpop.f32.mrf.mxu1  ;;  %5087 = vmatmul.mubr.bf16.gmra.mxu1 %v4507_v62  ;;  %v4508_v62 = vpack.c.bf16 %v4425_v38, %v4424_v15  ;;  %v4426_v38 = vmax.f32 %v4186_v6, 0.0 }
 0x59f   : > { %v5578_v58 = vpack.c.bf16 %v5469_v55, %v5468_v59  ;;  %5096 = vmatprep.mubr.bf16.mxu1 %v13040_v18  ;;  %v5342_v1 = vadd.f32 %v10953_v29, %v4848_v47  ;;  %v11263_v47 = vpop.f32.mrf.mxu0 }
 0x5a0   : > { %v11251_v61 = vpop.f32.mrf.mxu1 }
 0x5a1   : > { %13080 = vst [vmem:[#allocation168_spill] sm:$0xff] %v11251_v61  ;;  %8662 = vmatprep.mubr.bf16.mxu0 %v5578_v58  ;;  %v5470_v59 = vmax.f32 %v5342_v1, 0.0  ;;  %v4427_v58 = vmax.f32 %v4189_v24, 0.0  ;;  %v11269_v1 = vpop.f32.mrf.mxu0  ;;  %v4194_v24 = vadd.f32 %v11072_v39, %v11095_v19  ;;  %v4205_v19 = vadd.f32 %v11072_v39, %v11101_v46 }
 0x5a2   : > { %v4852_v36 = vpop.f32.mrf.mxu1 }
 0x5a3   : > { %v5343_v53 = vadd.f32 %v10953_v29, %v4852_v36  ;;  %v4509_v21 = vpack.c.bf16 %v4427_v58, %v4426_v38 }
 0x5a4   : > { %v11259_v25 = vpop.f32.mrf.mxu1 }
 0x5a5   : > { %13081 = vst [vmem:[#allocation169_spill] sm:$0xff] %v11259_v25  ;;  %v5471_v55 = vmax.f32 %v5343_v53, 0.0 }
 0x5a6   : > { %v4858_v61 = vpop.f32.mrf.mxu1  ;;  %5097 = vmatmul.mubr.bf16.gmra.mxu1 %v4508_v62  ;;  %v4197_v62 = vadd.f32 %v11072_v39, %v11110_v37  ;;  %v4428_v37 = vmax.f32 %v4194_v24, 0.0 }
 0x5a7   : > { %v5579_v51 = vpack.c.bf16 %v5471_v55, %v5470_v59  ;;  %5106 = vmatprep.mubr.bf16.mxu1 %v13040_v18  ;;  %v5344_v52 = vadd.f32 %v10953_v29, %v4858_v61  ;;  %v11278_v61 = vpop.f32.mrf.mxu0 }
 0x5a8   : > { %v11266_v36 = vpop.f32.mrf.mxu1 }
 0x5a9   : > { %13082 = vst [vmem:[#allocation170_spill] sm:$0xff] %v11266_v36  ;;  %8663 = vmatmul.mubr.bf16.gmra.mxu0 %v5579_v51  ;;  %v5472_v59 = vmax.f32 %v5344_v52, 0.0  ;;  %v4429_v51 = vmax.f32 %v4197_v62, 0.0  ;;  %v11284_v52 = vpop.f32.mrf.mxu0  ;;  %v4202_v62 = vadd.f32 %v11072_v39, %v11086_v9 }
 0x5aa   : > { %v4862_v15 = vpop.f32.mrf.mxu1 }
 0x5ab   : > { %v5345_v53 = vadd.f32 %v10953_v29, %v4862_v15 }
 0x5ac   : > { %v11274_v25 = vpop.f32.mrf.mxu1 }
 0x5ad   : > { %13083 = vst [vmem:[#allocation171_spill] sm:$0xff] %v11274_v25  ;;  %v5473_v55 = vmax.f32 %v5345_v53, 0.0 }
 0x5ae   : > { %v4868_v36 = vpop.f32.mrf.mxu1  ;;  %5107 = vmatmul.mubr.bf16.gmra.mxu1 %v4509_v21  ;;  %v4510_v21 = vpack.c.bf16 %v4429_v51, %v4428_v37  ;;  %v4430_v51 = vmax.f32 %v4202_v62, 0.0 }
 0x5af   : > { %v5580_v6 = vpack.c.bf16 %v5473_v55, %v5472_v59  ;;  %5116 = vmatprep.mubr.bf16.mxu1 %v13040_v18  ;;  %v5346_v58 = vadd.f32 %v10953_v29, %v4868_v36  ;;  %v11293_v36 = vpop.f32.mrf.mxu0 }
 0x5b0   : > { %v11281_v15 = vpop.f32.mrf.mxu1 }
 0x5b1   : > { %13084 = vst [vmem:[#allocation172_spill] sm:$0xff] %v11281_v15  ;;  %8666 = vmatprep.mubr.bf16.mxu0 %v5580_v6  ;;  %v5474_v59 = vmax.f32 %v5346_v58, 0.0  ;;  %v4431_v6 = vmax.f32 %v4205_v19, 0.0  ;;  %v11299_v58 = vpop.f32.mrf.mxu0  ;;  %v4210_v19 = vadd.f32 %v11072_v39, %v11125_v43  ;;  %v4221_v43 = vadd.f32 %v11072_v39, %v11131_v12 }
 0x5b2   : > { %v4872_v38 = vpop.f32.mrf.mxu1 }
 0x5b3   : > { %v5347_v53 = vadd.f32 %v10953_v29, %v4872_v38  ;;  %v4511_v9 = vpack.c.bf16 %v4431_v6, %v4430_v51 }
 0x5b4   : > { %v11289_v25 = vpop.f32.mrf.mxu1 }
 0x5b5   : > { %13085 = vst [vmem:[#allocation173_spill] sm:$0xff] %v11289_v25  ;;  %v5475_v55 = vmax.f32 %v5347_v53, 0.0 }
 0x5b6   : > { %v4878_v15 = vpop.f32.mrf.mxu1  ;;  %5117 = vmatmul.mubr.bf16.gmra.mxu1 %v4510_v21  ;;  %v4213_v21 = vadd.f32 %v11072_v39, %v11140_v22  ;;  %v4432_v22 = vmax.f32 %v4210_v19, 0.0 }
 0x5b7   : > { %v5581_v24 = vpack.c.bf16 %v5475_v55, %v5474_v59  ;;  %5126 = vmatprep.mubr.bf16.mxu1 %v13040_v18  ;;  %v5348_v46 = vadd.f32 %v10953_v29, %v4878_v15  ;;  %v11308_v15 = vpop.f32.mrf.mxu0 }
 0x5b8   : > { %v11296_v38 = vpop.f32.mrf.mxu1 }
 0x5b9   : > { %13086 = vst [vmem:[#allocation174_spill] sm:$0xff] %v11296_v38  ;;  %8667 = vmatmul.mubr.bf16.gmra.mxu0 %v5581_v24  ;;  %v5476_v59 = vmax.f32 %v5348_v46, 0.0  ;;  %v4433_v24 = vmax.f32 %v4213_v21, 0.0  ;;  %v11314_v46 = vpop.f32.mrf.mxu0  ;;  %v4218_v21 = vadd.f32 %v11072_v39, %v11116_v16 }
 0x5ba   : > { %v4882_v37 = vpop.f32.mrf.mxu1 }
 0x5bb   : > { %v5349_v53 = vadd.f32 %v10953_v29, %v4882_v37 }
 0x5bc   : > { %v11304_v25 = vpop.f32.mrf.mxu1 }
 0x5bd   : > { %13087 = vst [vmem:[#allocation175_spill] sm:$0xff] %v11304_v25  ;;  %v5477_v55 = vmax.f32 %v5349_v53, 0.0 }
 0x5be   : > { %v4888_v38 = vpop.f32.mrf.mxu1  ;;  %5127 = vmatmul.mubr.bf16.gmra.mxu1 %v4511_v9  ;;  %v4512_v9 = vpack.c.bf16 %v4433_v24, %v4432_v22  ;;  %v4434_v24 = vmax.f32 %v4218_v21, 0.0 }
 0x5bf   : > { %v5582_v62 = vpack.c.bf16 %v5477_v55, %v5476_v59  ;;  %5136 = vmatprep.mubr.bf16.mxu1 %v13040_v18  ;;  %v5350_v6 = vadd.f32 %v10953_v29, %v4888_v38  ;;  %v11323_v38 = vpop.f32.mrf.mxu0 }
 0x5c0   : > { %v11311_v37 = vpop.f32.mrf.mxu1 }
 0x5c1   : > { %13088 = vst [vmem:[#allocation176_spill] sm:$0xff] %v11311_v37  ;;  %8670 = vmatprep.mubr.bf16.mxu0 %v5582_v62  ;;  %v5478_v59 = vmax.f32 %v5350_v6, 0.0  ;;  %v4435_v62 = vmax.f32 %v4221_v43, 0.0  ;;  %v11329_v6 = vpop.f32.mrf.mxu0  ;;  %v4226_v43 = vadd.f32 %v11072_v39, %v11155_v35  ;;  %v4237_v35 = vadd.f32 %v11072_v39, %v11161_v50  ;;  %v11362_v50 = vld [vmem:[%s12858_s8] ss:$0 sm:$0xff] }
 0x5c2   : > { %v4892_v51 = vpop.f32.mrf.mxu1  ;;  %v1909_v3 = vadd.f32 %v11362_v50, %v13099_v40 }
 0x5c3   : > { %v5351_v53 = vadd.f32 %v10953_v29, %v4892_v51  ;;  %v4513_v16 = vpack.c.bf16 %v4435_v62, %v4434_v24 }
 0x5c4   : > { %v11319_v25 = vpop.f32.mrf.mxu1 }
 0x5c5   : > { %13089 = vst [vmem:[#allocation177_spill] sm:$0xff] %v11319_v25  ;;  %v5479_v55 = vmax.f32 %v5351_v53, 0.0 }
 0x5c6   : > { %v4898_v37 = vpop.f32.mrf.mxu1  ;;  %5137 = vmatmul.mubr.bf16.gmra.mxu1 %v4512_v9  ;;  %v4229_v9 = vadd.f32 %v11072_v39, %v11170_v56  ;;  %v4436_v56 = vmax.f32 %v4226_v43, 0.0 }
 0x5c7   : > { %v5583_v19 = vpack.c.bf16 %v5479_v55, %v5478_v59  ;;  %5146 = vmatprep.mubr.bf16.mxu1 %v13040_v18  ;;  %v5352_v12 = vadd.f32 %v10953_v29, %v4898_v37  ;;  %v11338_v37 = vpop.f32.mrf.mxu0 }
 0x5c8   : > { %v11326_v51 = vpop.f32.mrf.mxu1 }
 0x5c9   : > { %13090 = vst [vmem:[#allocation178_spill] sm:$0xff] %v11326_v51  ;;  %8671 = vmatmul.mubr.bf16.gmra.mxu0 %v5583_v19  ;;  %v5480_v59 = vmax.f32 %v5352_v12, 0.0  ;;  %v4437_v19 = vmax.f32 %v4229_v9, 0.0  ;;  %v11344_v12 = vpop.f32.mrf.mxu0  ;;  %v9044_v9 = vld [vmem:[%s12859_s9 + $0x10] sm:$0xff]  }
 0x5ca   : > { %v4902_v22 = vpop.f32.mrf.mxu1  ;;  %8756 = vmatprep.subr.bf16.mxu0 %v9044_v9 }
 0x5cb   : > { %v5353_v53 = vadd.f32 %v10953_v29, %v4902_v22  ;;  %8757 = vmatpush3.bf16.msra.mxu0 %v9044_v9 }
 0x5cc   : > { %v11334_v25 = vpop.f32.mrf.mxu1 }
 0x5cd   : > { %13091 = vst [vmem:[#allocation179_spill] sm:$0xff] %v11334_v25  ;;  %v5481_v55 = vmax.f32 %v5353_v53, 0.0 }
 0x5ce   : > { %v4908_v51 = vpop.f32.mrf.mxu1  ;;  %5147 = vmatmul.mubr.bf16.gmra.mxu1 %v4513_v16  ;;  %v4514_v16 = vpack.c.bf16 %v4437_v19, %v4436_v56  ;;  %v4439_v19 = vmax.f32 %v4237_v35, 0.0 }
 0x5cf   : > { %v5584_v21 = vpack.c.bf16 %v5481_v55, %v5480_v59  ;;  %5156 = vmatprep.mubr.bf16.mxu1 %v13040_v18  ;;  %v5354_v62 = vadd.f32 %v10953_v29, %v4908_v51  ;;  %v4234_v51 = vadd.f32 %v11072_v39, %v11146_v49 }
 0x5d0   : > { %v11341_v22 = vpop.f32.mrf.mxu1 }
 0x5d1   : > { %13092 = vst [vmem:[#allocation180_spill] sm:$0xff] %v11341_v22  ;;  %8674 = vmatprep.mubr.bf16.mxu0 %v5584_v21  ;;  %v5482_v59 = vmax.f32 %v5354_v62, 0.0  ;;  %v11356_v21 = vpop.f32.mrf.mxu0  ;;  %v11374_v22 = vld [vmem:[%s12856_s6] ss:$0 sm:$0xff] }
 0x5d2   : > { %v4912_v24 = vpop.f32.mrf.mxu1 }
 0x5d3   : > { %v5355_v53 = vadd.f32 %v10953_v29, %v4912_v24 }
 0x5d4   : > { %v11349_v25 = vpop.f32.mrf.mxu1 }
 0x5d5   : > { %13093 = vst [vmem:[#allocation181_spill] sm:$0xff] %v11349_v25  ;;  %v5483_v55 = vmax.f32 %v5355_v53, 0.0  ;;  %v13095_v53 = vld [vmem:[#allocation6_spill] sm:$0xff]  ;;  %v4438_v25 = vmax.f32 %v4234_v51, 0.0 }
 0x5d6   : > { %v4918_v43 = vpop.f32.mrf.mxu1  ;;  %5157 = vmatmul.mubr.bf16.gmra.mxu1 %v4514_v16  ;;  %v1910_v16 = vadd.f32 %v11362_v50, %v13095_v53 }
 0x5d7   : > { %v5585_v24 = vpack.c.bf16 %v5483_v55, %v5482_v59  ;;  %5166 = vmatprep.mubr.bf16.mxu1 %v13040_v18  ;;  %v5356_v56 = vadd.f32 %v10953_v29, %v4918_v43  ;;  %v13096_v55 = vld [vmem:[#allocation2_spill] sm:$0xff]  ;;  %v1911_v29 = vadd.f32 %v11362_v50, %v13097_v54  ;;  %v4515_v43 = vpack.c.bf16 %v4439_v19, %v4438_v25 }
 0x5d8   : > { %v11364_v62 = vpop.f32.mrf.mxu1  ;;  %v1908_v9 = vadd.f32 %v11362_v50, %v13096_v55 }
 0x5d9   : > { %13094 = vst [vmem:[#allocation182_spill] sm:$0xff] %v11364_v62  ;;  %v8628_v49 = vpop.f32.mrf.mxu0  ;;  %8675 = vmatmul.mubr.bf16.gmra.mxu0 %v5585_v24  ;;  %v4245_v24 = vadd.f32 %v11072_v39, %v11200_v42  ;;  %v5484_v60 = vmax.f32 %v5356_v56, 0.0 }
 0x5da   : > { %v4922_v59 = vpop.f32.mrf.mxu1  ;;  %v5731_v51 = vadd.f32 %v8628_v49, %v1910_v16 }
 0x5db   : > { %v5357_v35 = vadd.f32 %v11374_v22, %v4922_v59  ;;  %v5722_v62 = vpop.f32.mrf.mxu0  ;;  %v4242_v59 = vadd.f32 %v11072_v39, %v11185_v13  ;;  %v4441_v42 = vmax.f32 %v4245_v24, 0.0 }
 0x5dc   : > { %v11381_v53 = vpop.f32.mrf.mxu1  ;;  %v5723_v7 = vadd.f32 %v5722_v62, %v1908_v9  ;;  %v6235_v19 = vmax.f32 %v5731_v51, 0.0  ;;  %v4253_v9 = vadd.f32 %v11072_v39, %v11191_v41 }
 0x5dd   : > { %13098 = vst [vmem:[#allocation6_spill] sm:$0xff] %v11381_v53  ;;  %v5485_v55 = vmax.f32 %v5357_v35, 0.0  ;;  %v8629_v20 = vpop.f32.mrf.mxu0  ;;  %v4440_v40 = vmax.f32 %v4242_v59, 0.0 }
 0x5de   : > { %v5734_v57 = vadd.f32 %v8629_v20, %v1911_v29  ;;  %v4928_v45 = vpop.f32.mrf.mxu1  ;;  %5167 = vmatmul.mubr.bf16.gmra.mxu1 %v4515_v43  ;;  %v6233_v53 = vmax.f32 %v5723_v7, 0.0 }
 0x5df   : > { %v5586_v54 = vpack.c.bf16 %v5485_v55, %v5484_v60  ;;  %v5725_v25 = vpop.f32.mrf.mxu0  ;;  %5176 = vmatprep.mubr.bf16.mxu1 %v13040_v18  ;;  %v5358_v35 = vadd.f32 %v11374_v22, %v4928_v45  ;;  %v4516_v29 = vpack.c.bf16 %v4441_v42, %v4440_v40  ;;  %v4250_v45 = vadd.f32 %v11072_v39, %v11176_v28  ;;  %v13105_v40 = vld [vmem:[#allocation16_spill] sm:$0xff] }
 0x5e0   : > { %v6236_v49 = vmax.f32 %v5734_v57, 0.0  ;;  %v5726_v56 = vadd.f32 %v5725_v25, %v1909_v3  ;;  %v11388_v16 = vpop.f32.mrf.mxu1  ;;  %v4443_v55 = vmax.f32 %v4253_v9, 0.0 }
 0x5e1   : > { %13100 = vst [vmem:[#allocation2_spill] sm:$0xff] %v11388_v16  ;;  %8678 = vmatprep.mubr.bf16.mxu0 %v5586_v54  ;;  %v5486_v3 = vmax.f32 %v5358_v35, 0.0  ;;  %v4442_v42 = vmax.f32 %v4250_v45, 0.0 }
 0x5e2   : > { %v11391_v13 = vpack.c.bf16 %v6236_v49, %v6235_v19  ;;  %v6234_v20 = vmax.f32 %v5726_v56, 0.0  ;;  %v4932_v62 = vpop.f32.mrf.mxu1  ;;  %v13104_v49 = vld [vmem:[#allocation10_spill] sm:$0xff] }
 0x5e3   : > { %v5359_v60 = vadd.f32 %v11374_v22, %v4932_v62  ;;  %v1912_v28 = vadd.f32 %v11362_v50, %v13104_v49  ;;  %v4517_v62 = vpack.c.bf16 %v4443_v55, %v4442_v42 }
 0x5e4   : > { %v11396_v43 = vpack.c.bf16 %v6234_v20, %v6233_v53  ;;  %v11398_v57 = vpop.f32.mrf.mxu1  ;;  %v13103_v53 = vld [vmem:[#allocation14_spill] sm:$0xff]  ;;  %v1915_v20 = vadd.f32 %v11362_v50, %v13105_v40 }
 0x5e5   : > { %13101 = vst [vmem:[#allocation8_spill] sm:$0xff] %v11398_v57  ;;  %v5487_v24 = vmax.f32 %v5359_v60, 0.0  ;;  %v1914_v25 = vadd.f32 %v11362_v50, %v13103_v53  ;;  %v4261_v60 = vadd.f32 %v11072_v39, %v11233_v2  ;;  %v4258_v53 = vadd.f32 %v11072_v39, %v11215_v8 }
 0x5e6   : > { %v4938_v7 = vpop.f32.mrf.mxu1  ;;  %5177 = vmatmul.mubr.bf16.gmra.mxu1 %v4516_v29 }
 0x5e7   : > { %v5587_v51 = vpack.c.bf16 %v5487_v24, %v5486_v3  ;;  %5186 = vmatprep.mubr.bf16.mxu1 %v13040_v18  ;;  %v5360_v41 = vadd.f32 %v11374_v22, %v4938_v7  ;;  %v13107_v7 = vld [vmem:[#allocation12_spill] sm:$0xff]  ;;  %v4445_v2 = vmax.f32 %v4261_v60, 0.0 }
 0x5e8   : > { %v11403_v59 = vpop.f32.mrf.mxu1 }
 0x5e9   : > { %13102 = vst [vmem:[#allocation4_spill] sm:$0xff] %v11403_v59  ;;  %v8632_v54 = vpop.f32.mrf.mxu0  ;;  %8679 = vmatmul.mubr.bf16.gmra.mxu0 %v5587_v51  ;;  %v5488_v3 = vmax.f32 %v5360_v41, 0.0  ;;  %v1913_v51 = vadd.f32 %v11362_v50, %v13107_v7  ;;  %v4444_v7 = vmax.f32 %v4258_v53, 0.0 }
 0x5ea   : > { %v4942_v19 = vpop.f32.mrf.mxu1  ;;  %v5747_v9 = vadd.f32 %v8632_v54, %v1914_v25 }
 0x5eb   : > { %v5361_v56 = vadd.f32 %v11374_v22, %v4942_v19  ;;  %v5738_v35 = vpop.f32.mrf.mxu0  ;;  %v4518_v60 = vpack.c.bf16 %v4445_v2, %v4444_v7  ;;  %v13113_v7 = vld [vmem:[#allocation24_spill] sm:$0xff] }
 0x5ec   : > { %v11415_v29 = vpop.f32.mrf.mxu1  ;;  %v5739_v19 = vadd.f32 %v5738_v35, %v1912_v28  ;;  %v6239_v54 = vmax.f32 %v5747_v9, 0.0 }
 0x5ed   : > { %13106 = vst [vmem:[#allocation14_spill] sm:$0xff] %v11415_v29  ;;  %v5489_v24 = vmax.f32 %v5361_v56, 0.0  ;;  %v8633_v45 = vpop.f32.mrf.mxu0 }
 0x5ee   : > { %v5750_v49 = vadd.f32 %v8633_v45, %v1915_v20  ;;  %v4948_v59 = vpop.f32.mrf.mxu1  ;;  %5187 = vmatmul.mubr.bf16.gmra.mxu1 %v4517_v62  ;;  %v6237_v29 = vmax.f32 %v5739_v19, 0.0  ;;  %v4269_v62 = vadd.f32 %v11072_v39, %v11221_v26 }
 0x5ef   : > { %v5588_v55 = vpack.c.bf16 %v5489_v24, %v5488_v3  ;;  %v5741_v42 = vpop.f32.mrf.mxu0  ;;  %5196 = vmatprep.mubr.bf16.mxu1 %v13040_v18  ;;  %v5362_v40 = vadd.f32 %v11374_v22, %v4948_v59  ;;  %v4266_v59 = vadd.f32 %v11072_v39, %v11206_v14 }
 0x5f0   : > { %v6240_v25 = vmax.f32 %v5750_v49, 0.0  ;;  %v5742_v41 = vadd.f32 %v5741_v42, %v1913_v51  ;;  %v11422_v56 = vpop.f32.mrf.mxu1  ;;  %v4447_v19 = vmax.f32 %v4269_v62, 0.0 }
 0x5f1   : > { %13108 = vst [vmem:[#allocation10_spill] sm:$0xff] %v11422_v56  ;;  %8682 = vmatprep.mubr.bf16.mxu0 %v5588_v55  ;;  %v5490_v24 = vmax.f32 %v5362_v40, 0.0  ;;  %v4446_v2 = vmax.f32 %v4266_v59, 0.0 }
 0x5f2   : > { %v11425_v8 = vpack.c.bf16 %v6240_v25, %v6239_v54  ;;  %v6238_v28 = vmax.f32 %v5742_v41, 0.0  ;;  %v4952_v35 = vpop.f32.mrf.mxu1  ;;  %v13112_v25 = vld [vmem:[#allocation18_spill] sm:$0xff] }
 0x5f3   : > { %v5363_v20 = vadd.f32 %v11374_v22, %v4952_v35  ;;  %v1916_v14 = vadd.f32 %v11362_v50, %v13112_v25  ;;  %v4519_v35 = vpack.c.bf16 %v4447_v19, %v4446_v2 }
 0x5f4   : > { %v11430_v9 = vpack.c.bf16 %v6238_v28, %v6237_v29  ;;  %v11432_v3 = vpop.f32.mrf.mxu1  ;;  %v13111_v29 = vld [vmem:[#allocation22_spill] sm:$0xff]  ;;  %v1919_v28 = vadd.f32 %v11362_v50, %v13113_v7 }
 0x5f5   : > { %13109 = vst [vmem:[#allocation16_spill] sm:$0xff] %v11432_v3  ;;  %v5491_v45 = vmax.f32 %v5363_v20, 0.0  ;;  %v1918_v42 = vadd.f32 %v11362_v50, %v13111_v29  ;;  %v4277_v20 = vadd.f32 %v11072_v39, %v11263_v47  ;;  %v4274_v29 = vadd.f32 %v11072_v39, %v11248_v4 }
 0x5f6   : > { %v4958_v51 = vpop.f32.mrf.mxu1  ;;  %5197 = vmatmul.mubr.bf16.gmra.mxu1 %v4518_v60 }
 0x5f7   : > { %v5589_v53 = vpack.c.bf16 %v5491_v45, %v5490_v24  ;;  %5206 = vmatprep.mubr.bf16.mxu1 %v13040_v18  ;;  %v5364_v26 = vadd.f32 %v11374_v22, %v4958_v51  ;;  %v13115_v51 = vld [vmem:[#allocation20_spill] sm:$0xff]  ;;  %v4449_v47 = vmax.f32 %v4277_v20, 0.0 }
 0x5f8   : > { %v11437_v49 = vpop.f32.mrf.mxu1 }
 0x5f9   : > { %13110 = vst [vmem:[#allocation12_spill] sm:$0xff] %v11437_v49  ;;  %v8636_v55 = vpop.f32.mrf.mxu0  ;;  %8683 = vmatmul.mubr.bf16.gmra.mxu0 %v5589_v53  ;;  %v5492_v24 = vmax.f32 %v5364_v26, 0.0  ;;  %v1917_v53 = vadd.f32 %v11362_v50, %v13115_v51  ;;  %v4448_v51 = vmax.f32 %v4274_v29, 0.0 }
 0x5fa   : > { %v4962_v54 = vpop.f32.mrf.mxu1  ;;  %v5763_v62 = vadd.f32 %v8636_v55, %v1918_v42 }
 0x5fb   : > { %v5365_v41 = vadd.f32 %v11374_v22, %v4962_v54  ;;  %v5754_v40 = vpop.f32.mrf.mxu0  ;;  %v4520_v20 = vpack.c.bf16 %v4449_v47, %v4448_v51 }
 0x5fc   : > { %v11449_v60 = vpop.f32.mrf.mxu1  ;;  %v5755_v54 = vadd.f32 %v5754_v40, %v1916_v14  ;;  %v6243_v55 = vmax.f32 %v5763_v62, 0.0 }
 0x5fd   : > { %13114 = vst [vmem:[#allocation22_spill] sm:$0xff] %v11449_v60  ;;  %v5493_v45 = vmax.f32 %v5365_v41, 0.0  ;;  %v8637_v59 = vpop.f32.mrf.mxu0 }
 0x5fe   : > { %v5766_v25 = vadd.f32 %v8637_v59, %v1919_v28  ;;  %v4968_v49 = vpop.f32.mrf.mxu1  ;;  %5207 = vmatmul.mubr.bf16.gmra.mxu1 %v4519_v35  ;;  %v6241_v60 = vmax.f32 %v5755_v54, 0.0  ;;  %v4285_v35 = vadd.f32 %v11072_v39, %v11254_v11 }
 0x5ff   : > { %v5590_v19 = vpack.c.bf16 %v5493_v45, %v5492_v24  ;;  %v5757_v2 = vpop.f32.mrf.mxu0  ;;  %5216 = vmatprep.mubr.bf16.mxu1 %v13040_v18  ;;  %v5366_v7 = vadd.f32 %v11374_v22, %v4968_v49  ;;  %v4282_v49 = vadd.f32 %v11072_v39, %v11239_v34 }
 0x600   : > { %v6244_v42 = vmax.f32 %v5766_v25, 0.0  ;;  %v5758_v26 = vadd.f32 %v5757_v2, %v1917_v53  ;;  %v11456_v41 = vpop.f32.mrf.mxu1  ;;  %v4451_v54 = vmax.f32 %v4285_v35, 0.0 }
 0x601   : > { %13116 = vst [vmem:[#allocation18_spill] sm:$0xff] %v11456_v41  ;;  %8686 = vmatprep.mubr.bf16.mxu0 %v5590_v19  ;;  %v5494_v45 = vmax.f32 %v5366_v7, 0.0  ;;  %v4450_v47 = vmax.f32 %v4282_v49, 0.0  ;;  %v13121_v7 = vld [vmem:[#allocation32_spill] sm:$0xff] }
 0x602   : > { %v11459_v4 = vpack.c.bf16 %v6244_v42, %v6243_v55  ;;  %v6242_v14 = vmax.f32 %v5758_v26, 0.0  ;;  %v4972_v40 = vpop.f32.mrf.mxu1  ;;  %v13120_v42 = vld [vmem:[#allocation26_spill] sm:$0xff]  ;;  %v1923_v51 = vadd.f32 %v11362_v50, %v13121_v7 }
 0x603   : > { %v5367_v28 = vadd.f32 %v11374_v22, %v4972_v40  ;;  %v1920_v39 = vadd.f32 %v11362_v50, %v13120_v42  ;;  %v11484_v40 = vld [vmem:[%s12854_s4 + $0x2] ss:$0 sm:$0xff] }
 0x604   : > { %v11464_v62 = vpack.c.bf16 %v6242_v14, %v6241_v60  ;;  %v11466_v24 = vpop.f32.mrf.mxu1  ;;  %v13119_v60 = vld [vmem:[#allocation30_spill] sm:$0xff]  ;;  %v4521_v14 = vpack.c.bf16 %v4451_v54, %v4450_v47  ;;  %v4290_v54 = vadd.f32 %v11484_v40, %v11278_v61 }
 0x605   : > { %13117 = vst [vmem:[#allocation24_spill] sm:$0xff] %v11466_v24  ;;  %v5495_v59 = vmax.f32 %v5367_v28, 0.0  ;;  %v1922_v2 = vadd.f32 %v11362_v50, %v13119_v60  ;;  %v4293_v28 = vadd.f32 %v11484_v40, %v11293_v36 }
 0x606   : > { %v4978_v53 = vpop.f32.mrf.mxu1  ;;  %5217 = vmatmul.mubr.bf16.gmra.mxu1 %v4520_v20 }
 0x607   : > { %v5591_v29 = vpack.c.bf16 %v5495_v59, %v5494_v45  ;;  %5226 = vmatprep.mubr.bf16.mxu1 %v13040_v18  ;;  %v5368_v11 = vadd.f32 %v11374_v22, %v4978_v53  ;;  %v13123_v53 = vld [vmem:[#allocation28_spill] sm:$0xff]  ;;  %v4453_v36 = vmax.f32 %v4293_v28, 0.0 }
 0x608   : > { %v11471_v25 = vpop.f32.mrf.mxu1 }
 0x609   : > { %13118 = vst [vmem:[#allocation20_spill] sm:$0xff] %v11471_v25  ;;  %v8640_v19 = vpop.f32.mrf.mxu0  ;;  %8687 = vmatmul.mubr.bf16.gmra.mxu0 %v5591_v29  ;;  %v5496_v45 = vmax.f32 %v5368_v11, 0.0  ;;  %v1921_v29 = vadd.f32 %v11362_v50, %v13123_v53  ;;  %v4452_v53 = vmax.f32 %v4290_v54, 0.0  ;;  %v4298_v54 = vadd.f32 %v11484_v40, %v11269_v1  ;;  %v13128_v1 = vld [vmem:[#allocation34_spill] sm:$0xff] }
 0x60a   : > { %v4982_v55 = vpop.f32.mrf.mxu1  ;;  %v5779_v35 = vadd.f32 %v8640_v19, %v1922_v2 }
 0x60b   : > { %v5369_v34 = vadd.f32 %v11374_v22, %v4982_v55  ;;  %v5770_v26 = vpop.f32.mrf.mxu0  ;;  %v4522_v28 = vpack.c.bf16 %v4453_v36, %v4452_v53  ;;  %v4454_v36 = vmax.f32 %v4298_v54, 0.0 }
 0x60c   : > { %v11488_v20 = vpop.f32.mrf.mxu1  ;;  %v5771_v60 = vadd.f32 %v5770_v26, %v1920_v39  ;;  %v6247_v19 = vmax.f32 %v5779_v35, 0.0 }
 0x60d   : > { %13122 = vst [vmem:[#allocation30_spill] sm:$0xff] %v11488_v20  ;;  %v5497_v59 = vmax.f32 %v5369_v34, 0.0  ;;  %v8641_v49 = vpop.f32.mrf.mxu0 }
 0x60e   : > { %v5782_v47 = vadd.f32 %v8641_v49, %v1923_v51  ;;  %v4988_v55 = vpop.f32.mrf.mxu1  ;;  %5227 = vmatmul.mubr.bf16.gmra.mxu1 %v4521_v14  ;;  %v6245_v25 = vmax.f32 %v5771_v60, 0.0  ;;  %v4301_v14 = vadd.f32 %v11484_v40, %v11284_v52 }
 0x60f   : > { %v5592_v42 = vpack.c.bf16 %v5497_v59, %v5496_v45  ;;  %v5773_v7 = vpop.f32.mrf.mxu0  ;;  %5236 = vmatprep.mubr.bf16.mxu1 %v13040_v18  ;;  %v5370_v20 = vadd.f32 %v11374_v22, %v4988_v55  ;;  %v9045_v59 = vld [vmem:[%s12859_s9 + $0x8] sm:$0xff]  }
 0x610   : > { %v6248_v2 = vmax.f32 %v5782_v47, 0.0  ;;  %v5774_v11 = vadd.f32 %v5773_v7, %v1921_v29  ;;  %v11495_v34 = vpop.f32.mrf.mxu1  ;;  %8758 = vmatprep.subr.bf16.mxu0 %v9045_v59  ;;  %v4455_v52 = vmax.f32 %v4301_v14, 0.0  ;;  %v13127_v7 = vld [vmem:[#allocation38_spill] sm:$0xff]  ;;  %v4309_v14 = vadd.f32 %v11484_v40, %v11323_v38 }
 0x611   : > { %13124 = vst [vmem:[#allocation26_spill] sm:$0xff] %v11495_v34  ;;  %8690 = vmatprep.mubr.bf16.mxu0 %v5592_v42  ;;  %v5498_v49 = vmax.f32 %v5370_v20, 0.0  ;;  %8759 = vmatpush3.bf16.msra.mxu0 %v9045_v59  ;;  %v1926_v20 = vadd.f32 %v11362_v50, %v13127_v7  ;;  %v4306_v7 = vadd.f32 %v11484_v40, %v11308_v15 }
 0x612   : > { %v11498_v61 = vpack.c.bf16 %v6248_v2, %v6247_v19  ;;  %v6246_v39 = vmax.f32 %v5774_v11, 0.0  ;;  %v4992_v26 = vpop.f32.mrf.mxu1  ;;  %v1924_v2 = vadd.f32 %v11362_v50, %v13128_v1  ;;  %v4457_v38 = vmax.f32 %v4309_v14, 0.0 }
 0x613   : > { %v5371_v51 = vadd.f32 %v11374_v22, %v4992_v26 }
 0x614   : > { %v11503_v35 = vpack.c.bf16 %v6246_v39, %v6245_v25  ;;  %v11505_v45 = vpop.f32.mrf.mxu1  ;;  %v13129_v39 = vld [vmem:[#allocation40_spill] sm:$0xff] }
 0x615   : > { %13125 = vst [vmem:[#allocation32_spill] sm:$0xff] %v11505_v45  ;;  %v5499_v29 = vmax.f32 %v5371_v51, 0.0  ;;  %v1927_v26 = vadd.f32 %v11362_v50, %v13129_v39  ;;  %v4523_v51 = vpack.c.bf16 %v4455_v52, %v4454_v36 }
 0x616   : > { %v4998_v60 = vpop.f32.mrf.mxu1  ;;  %5237 = vmatmul.mubr.bf16.gmra.mxu1 %v4522_v28 }
 0x617   : > { %v5593_v47 = vpack.c.bf16 %v5499_v29, %v5498_v49  ;;  %5246 = vmatprep.mubr.bf16.mxu1 %v13040_v18  ;;  %v5372_v55 = vadd.f32 %v11374_v22, %v4998_v60  ;;  %v13131_v60 = vld [vmem:[#allocation36_spill] sm:$0xff] }
 0x618   : > { %v11513_v25 = vpop.f32.mrf.mxu1 }
 0x619   : > { %13126 = vst [vmem:[#allocation28_spill] sm:$0xff] %v11513_v25  ;;  %v8644_v42 = vpop.f32.mrf.mxu0  ;;  %8691 = vmatmul.mubr.bf16.gmra.mxu0 %v5593_v47  ;;  %v5500_v49 = vmax.f32 %v5372_v55, 0.0  ;;  %v1925_v47 = vadd.f32 %v11362_v50, %v13131_v60  ;;  %v4456_v60 = vmax.f32 %v4306_v7, 0.0 }
 0x61a   : > { %v5002_v19 = vpop.f32.mrf.mxu1  ;;  %v5795_v28 = vadd.f32 %v8644_v42, %v1926_v20 }
 0x61b   : > { %v5373_v11 = vadd.f32 %v11374_v22, %v5002_v19  ;;  %v5786_v53 = vpop.f32.mrf.mxu0  ;;  %v4524_v14 = vpack.c.bf16 %v4457_v38, %v4456_v60  ;;  %v13137_v60 = vld [vmem:[#allocation48_spill] sm:$0xff] }
 0x61c   : > { %v11525_v59 = vpop.f32.mrf.mxu1  ;;  %v5787_v19 = vadd.f32 %v5786_v53, %v1924_v2  ;;  %v6251_v42 = vmax.f32 %v5795_v28, 0.0 }
 0x61d   : > { %13130 = vst [vmem:[#allocation38_spill] sm:$0xff] %v11525_v59  ;;  %v5501_v29 = vmax.f32 %v5373_v11, 0.0  ;;  %v8645_v54 = vpop.f32.mrf.mxu0 }
 0x61e   : > { %v5798_v1 = vadd.f32 %v8645_v54, %v1927_v26  ;;  %v5008_v25 = vpop.f32.mrf.mxu1  ;;  %5247 = vmatmul.mubr.bf16.gmra.mxu1 %v4523_v51  ;;  %v6249_v59 = vmax.f32 %v5787_v19, 0.0  ;;  %v4317_v51 = vadd.f32 %v11484_v40, %v11314_v46 }
 0x61f   : > { %v5594_v52 = vpack.c.bf16 %v5501_v29, %v5500_v49  ;;  %v5789_v36 = vpop.f32.mrf.mxu0  ;;  %5256 = vmatprep.mubr.bf16.mxu1 %v13040_v18  ;;  %v5374_v39 = vadd.f32 %v11374_v22, %v5008_v25  ;;  %v4314_v25 = vadd.f32 %v11484_v40, %v11299_v58 }
 0x620   : > { %v6252_v20 = vmax.f32 %v5798_v1, 0.0  ;;  %v5790_v55 = vadd.f32 %v5789_v36, %v1925_v47  ;;  %v11532_v11 = vpop.f32.mrf.mxu1  ;;  %v4459_v19 = vmax.f32 %v4317_v51, 0.0 }
 0x621   : > { %13132 = vst [vmem:[#allocation34_spill] sm:$0xff] %v11532_v11  ;;  %8694 = vmatprep.mubr.bf16.mxu0 %v5594_v52  ;;  %v5502_v29 = vmax.f32 %v5374_v39, 0.0  ;;  %v4458_v38 = vmax.f32 %v4314_v25, 0.0 }
 0x622   : > { %v11535_v15 = vpack.c.bf16 %v6252_v20, %v6251_v42  ;;  %v6250_v2 = vmax.f32 %v5790_v55, 0.0  ;;  %v5012_v53 = vpop.f32.mrf.mxu1  ;;  %v13136_v20 = vld [vmem:[#allocation42_spill] sm:$0xff] }
 0x623   : > { %v5375_v26 = vadd.f32 %v11374_v22, %v5012_v53  ;;  %v1928_v58 = vadd.f32 %v11362_v50, %v13136_v20  ;;  %v4525_v53 = vpack.c.bf16 %v4459_v19, %v4458_v38 }
 0x624   : > { %v11540_v28 = vpack.c.bf16 %v6250_v2, %v6249_v59  ;;  %v11542_v49 = vpop.f32.mrf.mxu1  ;;  %v13135_v59 = vld [vmem:[#allocation46_spill] sm:$0xff]  ;;  %v1931_v2 = vadd.f32 %v11362_v50, %v13137_v60 }
 0x625   : > { %13133 = vst [vmem:[#allocation40_spill] sm:$0xff] %v11542_v49  ;;  %v5503_v54 = vmax.f32 %v5375_v26, 0.0  ;;  %v1930_v36 = vadd.f32 %v11362_v50, %v13135_v59  ;;  %v4325_v26 = vadd.f32 %v11484_v40, %v11356_v21  ;;  %v4322_v59 = vadd.f32 %v11484_v40, %v11338_v37 }
 0x626   : > { %v5018_v47 = vpop.f32.mrf.mxu1  ;;  %5257 = vmatmul.mubr.bf16.gmra.mxu1 %v4524_v14 }
 0x627   : > { %v5595_v7 = vpack.c.bf16 %v5503_v54, %v5502_v29  ;;  %5266 = vmatprep.mubr.bf16.mxu1 %v13040_v18  ;;  %v5376_v46 = vadd.f32 %v11374_v22, %v5018_v47  ;;  %v13139_v47 = vld [vmem:[#allocation44_spill] sm:$0xff]  ;;  %v4461_v21 = vmax.f32 %v4325_v26, 0.0 }
 0x628   : > { %v11547_v1 = vpop.f32.mrf.mxu1 }
 0x629   : > { %13134 = vst [vmem:[#allocation36_spill] sm:$0xff] %v11547_v1  ;;  %v8648_v52 = vpop.f32.mrf.mxu0  ;;  %8695 = vmatmul.mubr.bf16.gmra.mxu0 %v5595_v7  ;;  %v5504_v29 = vmax.f32 %v5376_v46, 0.0  ;;  %v1929_v7 = vadd.f32 %v11362_v50, %v13139_v47  ;;  %v4460_v47 = vmax.f32 %v4322_v59, 0.0 }
 0x62a   : > { %v5022_v42 = vpop.f32.mrf.mxu1  ;;  %v5811_v51 = vadd.f32 %v8648_v52, %v1930_v36 }
 0x62b   : > { %v5377_v55 = vadd.f32 %v11374_v22, %v5022_v42  ;;  %v5802_v39 = vpop.f32.mrf.mxu0  ;;  %v4526_v26 = vpack.c.bf16 %v4461_v21, %v4460_v47 }
 0x62c   : > { %v11559_v14 = vpop.f32.mrf.mxu1  ;;  %v5803_v42 = vadd.f32 %v5802_v39, %v1928_v58  ;;  %v6255_v52 = vmax.f32 %v5811_v51, 0.0 }
 0x62d   : > { %13138 = vst [vmem:[#allocation46_spill] sm:$0xff] %v11559_v14  ;;  %v5505_v54 = vmax.f32 %v5377_v55, 0.0  ;;  %v8649_v25 = vpop.f32.mrf.mxu0 }
 0x62e   : > { %v5814_v20 = vadd.f32 %v8649_v25, %v1931_v2  ;;  %v5028_v1 = vpop.f32.mrf.mxu1  ;;  %5267 = vmatmul.mubr.bf16.gmra.mxu1 %v4525_v53  ;;  %v6253_v14 = vmax.f32 %v5803_v42, 0.0  ;;  %v4333_v53 = vadd.f32 %v11484_v40, %v11344_v12 }
 0x62f   : > { %v5596_v19 = vpack.c.bf16 %v5505_v54, %v5504_v29  ;;  %v5805_v38 = vpop.f32.mrf.mxu0  ;;  %5276 = vmatprep.mubr.bf16.mxu1 %v13040_v18  ;;  %v5378_v60 = vadd.f32 %v11374_v22, %v5028_v1  ;;  %v4330_v1 = vadd.f32 %v11484_v40, %v11329_v6  ;;  %v13144_v40 = vld [vmem:[#allocation50_spill] sm:$0xff] }
 0x630   : > { %v6256_v36 = vmax.f32 %v5814_v20, 0.0  ;;  %v5806_v46 = vadd.f32 %v5805_v38, %v1929_v7  ;;  %v11566_v55 = vpop.f32.mrf.mxu1  ;;  %v4463_v42 = vmax.f32 %v4333_v53, 0.0 }
 0x631   : > { %13140 = vst [vmem:[#allocation42_spill] sm:$0xff] %v11566_v55  ;;  %8698 = vmatprep.mubr.bf16.mxu0 %v5596_v19  ;;  %v5506_v54 = vmax.f32 %v5378_v60, 0.0  ;;  %v4462_v21 = vmax.f32 %v4330_v1, 0.0  ;;  %v13145_v60 = vld [vmem:[#allocation54_spill] sm:$0xff] }
 0x632   : > { %v11569_v37 = vpack.c.bf16 %v6256_v36, %v6255_v52  ;;  %v6254_v58 = vmax.f32 %v5806_v46, 0.0  ;;  %v5032_v39 = vpop.f32.mrf.mxu1  ;;  %v1932_v46 = vadd.f32 %v11362_v50, %v13144_v40 }
 0x633   : > { %v5379_v2 = vadd.f32 %v11374_v22, %v5032_v39  ;;  %v4527_v47 = vpack.c.bf16 %v4463_v42, %v4462_v21 }
 0x634   : > { %v11574_v51 = vpack.c.bf16 %v6254_v58, %v6253_v14  ;;  %v11576_v29 = vpop.f32.mrf.mxu1  ;;  %v13143_v14 = vld [vmem:[#allocation53_spill] sm:$0xff] }
 0x635   : > { %13141 = vst [vmem:[#allocation48_spill] sm:$0xff] %v11576_v29  ;;  %v5507_v25 = vmax.f32 %v5379_v2, 0.0  ;;  %v1934_v38 = vadd.f32 %v11362_v50, %v13143_v14 }
 0x636   : > { %v5038_v7 = vpop.f32.mrf.mxu1  ;;  %5277 = vmatmul.mubr.bf16.gmra.mxu1 %v4526_v26 }
 0x637   : > { %v5597_v59 = vpack.c.bf16 %v5507_v25, %v5506_v54  ;;  %5286 = vmatprep.mubr.bf16.mxu1 %v13040_v18  ;;  %v5380_v12 = vadd.f32 %v11374_v22, %v5038_v7  ;;  %v1935_v18 = vadd.f32 %v11362_v50, %v13145_v60  ;;  %v13147_v54 = vld [vmem:[#allocation52_spill] sm:$0xff] }
 0x638   : > { %v11581_v20 = vpop.f32.mrf.mxu1  ;;  %v1933_v25 = vadd.f32 %v11362_v50, %v13147_v54 }
 0x639   : > { %13142 = vst [vmem:[#allocation44_spill] sm:$0xff] %v11581_v20  ;;  %v8652_v19 = vpop.f32.mrf.mxu0  ;;  %8699 = vmatmul.mubr.bf16.gmra.mxu0 %v5597_v59  ;;  %v5508_v2 = vmax.f32 %v5380_v12, 0.0 }
 0x63a   : > { %v5042_v52 = vpop.f32.mrf.mxu1  ;;  %v5827_v58 = vadd.f32 %v8652_v19, %v1934_v38 }
 0x63b   : > { %v5381_v36 = vadd.f32 %v11374_v22, %v5042_v52  ;;  %v5818_v6 = vpop.f32.mrf.mxu0 }
 0x63c   : > { %v11591_v39 = vpop.f32.mrf.mxu1  ;;  %v5819_v1 = vadd.f32 %v5818_v6, %v1932_v46  ;;  %v6259_v40 = vmax.f32 %v5827_v58, 0.0 }
 0x63d   : > { %13146 = vst [vmem:[#allocation53_spill] sm:$0xff] %v11591_v39  ;;  %v5509_v53 = vmax.f32 %v5381_v36, 0.0  ;;  %v8653_v26 = vpop.f32.mrf.mxu0 }
 0x63e   : > { %v5830_v7 = vadd.f32 %v8653_v26, %v1935_v18  ;;  %v5048_v59 = vpop.f32.mrf.mxu1  ;;  %5287 = vmatmul.mubr.bf16.gmra.mxu1 %v4527_v47  ;;  %v6257_v12 = vmax.f32 %v5819_v1, 0.0 }
 0x63f   : > { %v5598_v14 = vpack.c.bf16 %v5509_v53, %v5508_v2  ;;  %v5821_v52 = vpop.f32.mrf.mxu0  ;;  %v5382_v42 = vadd.f32 %v11374_v22, %v5048_v59  ;;  %v13152_v59 = vld [vmem:[#allocation55_spill] sm:$0xff] }
 0x640   : > { %v6260_v20 = vmax.f32 %v5830_v7, 0.0  ;;  %v5822_v29 = vadd.f32 %v5821_v52, %v1933_v25  ;;  %v11595_v60 = vpop.f32.mrf.mxu1  ;;  %v13153_v52 = vld [vmem:[#allocation58_spill] sm:$0xff] }
 0x641   : > { %13148 = vst [vmem:[#allocation50_spill] sm:$0xff] %v11595_v60  ;;  %8702 = vmatprep.mubr.bf16.mxu0 %v5598_v14  ;;  %v5510_v18 = vmax.f32 %v5382_v42, 0.0  ;;  %v1936_v14 = vadd.f32 %v11362_v50, %v13152_v59 }
 0x642   : > { %v11598_v19 = vpack.c.bf16 %v6260_v20, %v6259_v40  ;;  %v6258_v38 = vmax.f32 %v5822_v29, 0.0  ;;  %v5052_v21 = vpop.f32.mrf.mxu1  ;;  %v13151_v20 = vld [vmem:[#allocation57_spill] sm:$0xff]  ;;  %v1939_v40 = vadd.f32 %v11362_v50, %v13153_v52 }
 0x643   : > { %v5383_v36 = vadd.f32 %v11374_v22, %v5052_v21  ;;  %v1938_v29 = vadd.f32 %v11362_v50, %v13151_v20 }
 0x644   : > { %v11601_v6 = vpack.c.bf16 %v6258_v38, %v6257_v12  ;;  %v11603_v46 = vpop.f32.mrf.mxu1 }
 0x645   : > { %13149 = vst [vmem:[#allocation54_spill] sm:$0xff] %v11603_v46  ;;  %v5511_v47 = vmax.f32 %v5383_v36, 0.0 }
 0x646   : > { %v5058_v58 = vpop.f32.mrf.mxu1 }
 0x647   : > { %v5599_v2 = vpack.c.bf16 %v5511_v47, %v5510_v18  ;;  %v5384_v26 = vadd.f32 %v11374_v22, %v5058_v58  ;;  %v13155_v18 = vld [vmem:[#allocation56_spill] sm:$0xff] }
 0x648   : > { %v11605_v53 = vpop.f32.mrf.mxu1  ;;  %v1937_v47 = vadd.f32 %v11362_v50, %v13155_v18 }
 0x649   : > { %13150 = vst [vmem:[#allocation52_spill] sm:$0xff] %v11605_v53  ;;  %v8656_v54 = vpop.f32.mrf.mxu0  ;;  %8703 = vmatmul.mubr.bf16.gmra.mxu0 %v5599_v2  ;;  %v5512_v38 = vmax.f32 %v5384_v26, 0.0 }
 0x64a   : > { %v5062_v25 = vpop.f32.mrf.mxu1  ;;  %v5843_v42 = vadd.f32 %v8656_v54, %v1938_v29 }
 0x64b   : > { %v5385_v1 = vadd.f32 %v11374_v22, %v5062_v25  ;;  %v5834_v7 = vpop.f32.mrf.mxu0 }
 0x64c   : > { %v11615_v12 = vpop.f32.mrf.mxu1  ;;  %v5835_v58 = vadd.f32 %v5834_v7, %v1936_v14  ;;  %v6263_v39 = vmax.f32 %v5843_v42, 0.0 }
 0x64d   : > { %13154 = vst [vmem:[#allocation57_spill] sm:$0xff] %v11615_v12  ;;  %v5513_v21 = vmax.f32 %v5385_v1, 0.0  ;;  %v8657_v36 = vpop.f32.mrf.mxu0 }
 0x64e   : > { %v5846_v2 = vadd.f32 %v8657_v36, %v1939_v40  ;;  %v5068_v20 = vpop.f32.mrf.mxu1  ;;  %v6261_v29 = vmax.f32 %v5835_v58, 0.0 }
 0x64f   : > { %v5600_v25 = vpack.c.bf16 %v5513_v21, %v5512_v38  ;;  %v5837_v53 = vpop.f32.mrf.mxu0  ;;  %v5386_v54 = vadd.f32 %v11374_v22, %v5068_v20 }
 0x650   : > { %v6264_v46 = vmax.f32 %v5846_v2, 0.0  ;;  %v5838_v59 = vadd.f32 %v5837_v53, %v1937_v47  ;;  %v11619_v60 = vpop.f32.mrf.mxu1  ;;  %v9046_v53 = vld [vmem:[%s12859_s9] sm:$0xff]   ;;  %v13159_v47 = vld [vmem:[#allocation61_spill] sm:$0xff] }
 0x651   : > { %13156 = vst [vmem:[#allocation55_spill] sm:$0xff] %v11619_v60  ;;  %8706 = vmatprep.mubr.bf16.mxu0 %v5600_v25  ;;  %v5514_v40 = vmax.f32 %v5386_v54, 0.0  ;;  %8760 = vmatprep.subr.bf16.mxu0 %v9046_v53  ;;  %v1942_v58 = vadd.f32 %v11362_v50, %v13159_v47 }
 0x652   : > { %v11622_v26 = vpack.c.bf16 %v6264_v46, %v6263_v39  ;;  %v6262_v1 = vmax.f32 %v5838_v59, 0.0  ;;  %v5072_v52 = vpop.f32.mrf.mxu1  ;;  %8761 = vmatpush3.bf16.msra.mxu0 %v9046_v53  ;;  %v13160_v59 = vld [vmem:[#allocation59_spill] sm:$0xff] }
 0x653   : > { %v5387_v18 = vadd.f32 %v11374_v22, %v5072_v52  ;;  %v1940_v54 = vadd.f32 %v11362_v50, %v13160_v59 }
 0x654   : > { %v11625_v7 = vpack.c.bf16 %v6262_v1, %v6261_v29  ;;  %v11627_v14 = vpop.f32.mrf.mxu1  ;;  %v13161_v29 = vld [vmem:[#allocation62_spill] sm:$0xff] }
 0x655   : > { %13157 = vst [vmem:[#allocation58_spill] sm:$0xff] %v11627_v14  ;;  %v5515_v42 = vmax.f32 %v5387_v18, 0.0  ;;  %v1943_v1 = vadd.f32 %v11362_v50, %v13161_v29 }
 0x656   : > { %v5078_v38 = vpop.f32.mrf.mxu1 }
 0x657   : > { %v5601_v21 = vpack.c.bf16 %v5515_v42, %v5514_v40  ;;  %v5388_v46 = vadd.f32 %v11374_v22, %v5078_v38  ;;  %v13163_v38 = vld [vmem:[#allocation60_spill] sm:$0xff] }
 0x658   : > { %v11632_v39 = vpop.f32.mrf.mxu1 }
 0x659   : > { %13158 = vst [vmem:[#allocation56_spill] sm:$0xff] %v11632_v39  ;;  %v8660_v36 = vpop.f32.mrf.mxu0  ;;  %8707 = vmatmul.mubr.bf16.gmra.mxu0 %v5601_v21  ;;  %v5516_v53 = vmax.f32 %v5388_v46, 0.0  ;;  %v1941_v21 = vadd.f32 %v11362_v50, %v13163_v38 }
 0x65a   : > { %v5082_v2 = vpop.f32.mrf.mxu1  ;;  %v5859_v52 = vadd.f32 %v8660_v36, %v1942_v58 }
 0x65b   : > { %v5389_v20 = vadd.f32 %v11374_v22, %v5082_v2  ;;  %v5850_v25 = vpop.f32.mrf.mxu0 }
 0x65c   : > { %v11642_v18 = vpop.f32.mrf.mxu1  ;;  %v5851_v47 = vadd.f32 %v5850_v25, %v1940_v54  ;;  %v6267_v60 = vmax.f32 %v5859_v52, 0.0 }
 0x65d   : > { %13162 = vst [vmem:[#allocation61_spill] sm:$0xff] %v11642_v18  ;;  %v5517_v40 = vmax.f32 %v5389_v20, 0.0  ;;  %v8661_v42 = vpop.f32.mrf.mxu0 }
 0x65e   : > { %v5862_v39 = vadd.f32 %v8661_v42, %v1943_v1  ;;  %v5088_v12 = vpop.f32.mrf.mxu1  ;;  %v6265_v58 = vmax.f32 %v5851_v47, 0.0 }
 0x65f   : > { %v5602_v2 = vpack.c.bf16 %v5517_v40, %v5516_v53  ;;  %v5853_v14 = vpop.f32.mrf.mxu0  ;;  %v5390_v36 = vadd.f32 %v11374_v22, %v5088_v12 }
 0x660   : > { %v6268_v55 = vmax.f32 %v5862_v39, 0.0  ;;  %v5854_v59 = vadd.f32 %v5853_v14, %v1941_v21  ;;  %v11646_v49 = vpop.f32.mrf.mxu1 }
 0x661   : > { %13164 = vst [vmem:[#allocation59_spill] sm:$0xff] %v11646_v49  ;;  %8710 = vmatprep.mubr.bf16.mxu0 %v5602_v2  ;;  %v5518_v1 = vmax.f32 %v5390_v36, 0.0  ;;  %v13168_v2 = vld [vmem:[#allocation63_spill] sm:$0xff]  ;;  %v13169_v36 = vld [vmem:[#allocation66_spill] sm:$0xff] }
 0x662   : > { %v11649_v46 = vpack.c.bf16 %v6268_v55, %v6267_v60  ;;  %v6266_v20 = vmax.f32 %v5854_v59, 0.0  ;;  %v5092_v29 = vpop.f32.mrf.mxu1  ;;  %v13167_v55 = vld [vmem:[#allocation65_spill] sm:$0xff]  ;;  %v1944_v59 = vadd.f32 %v11362_v50, %v13168_v2 }
 0x663   : > { %v5391_v38 = vadd.f32 %v11374_v22, %v5092_v29  ;;  %v1946_v60 = vadd.f32 %v11362_v50, %v13167_v55 }
 0x664   : > { %v11652_v25 = vpack.c.bf16 %v6266_v20, %v6265_v58  ;;  %v11654_v54 = vpop.f32.mrf.mxu1  ;;  %v1947_v58 = vadd.f32 %v11362_v50, %v13169_v36 }
 0x665   : > { %13165 = vst [vmem:[#allocation62_spill] sm:$0xff] %v11654_v54  ;;  %v5519_v52 = vmax.f32 %v5391_v38, 0.0 }
 0x666   : > { %v5098_v39 = vpop.f32.mrf.mxu1 }
 0x667   : > { %v5603_v14 = vpack.c.bf16 %v5519_v52, %v5518_v1  ;;  %v5392_v12 = vadd.f32 %v11374_v22, %v5098_v39  ;;  %v13171_v39 = vld [vmem:[#allocation64_spill] sm:$0xff] }
 0x668   : > { %v11656_v53 = vpop.f32.mrf.mxu1 }
 0x669   : > { %13166 = vst [vmem:[#allocation60_spill] sm:$0xff] %v11656_v53  ;;  %v8664_v40 = vpop.f32.mrf.mxu0  ;;  %8711 = vmatmul.mubr.bf16.gmra.mxu0 %v5603_v14  ;;  %v5520_v38 = vmax.f32 %v5392_v12, 0.0  ;;  %v1945_v14 = vadd.f32 %v11362_v50, %v13171_v39 }
 0x66a   : > { %v5102_v42 = vpop.f32.mrf.mxu1  ;;  %v5875_v20 = vadd.f32 %v8664_v40, %v1946_v60 }
 0x66b   : > { %v5393_v21 = vadd.f32 %v11374_v22, %v5102_v42  ;;  %v5866_v47 = vpop.f32.mrf.mxu0 }
 0x66c   : > { %v11666_v29 = vpop.f32.mrf.mxu1  ;;  %v5867_v55 = vadd.f32 %v5866_v47, %v1944_v59  ;;  %v6271_v49 = vmax.f32 %v5875_v20, 0.0 }
 0x66d   : > { %13170 = vst [vmem:[#allocation65_spill] sm:$0xff] %v11666_v29  ;;  %v5521_v1 = vmax.f32 %v5393_v21, 0.0  ;;  %v8665_v52 = vpop.f32.mrf.mxu0 }
 0x66e   : > { %v5878_v53 = vadd.f32 %v8665_v52, %v1947_v58  ;;  %v5108_v18 = vpop.f32.mrf.mxu1  ;;  %v6269_v60 = vmax.f32 %v5867_v55, 0.0 }
 0x66f   : > { %v5604_v42 = vpack.c.bf16 %v5521_v1, %v5520_v38  ;;  %v5869_v54 = vpop.f32.mrf.mxu0  ;;  %v5394_v40 = vadd.f32 %v11374_v22, %v5108_v18 }
 0x670   : > { %v6272_v11 = vmax.f32 %v5878_v53, 0.0  ;;  %v5870_v2 = vadd.f32 %v5869_v54, %v1945_v14  ;;  %v11670_v45 = vpop.f32.mrf.mxu1 }
 0x671   : > { %13172 = vst [vmem:[#allocation63_spill] sm:$0xff] %v11670_v45  ;;  %8714 = vmatprep.mubr.bf16.mxu0 %v5604_v42  ;;  %v5522_v58 = vmax.f32 %v5394_v40, 0.0 }
 0x672   : > { %v11673_v12 = vpack.c.bf16 %v6272_v11, %v6271_v49  ;;  %v6270_v21 = vmax.f32 %v5870_v2, 0.0  ;;  %v5112_v36 = vpop.f32.mrf.mxu1 }
 0x673   : > { %v5395_v50 = vadd.f32 %v11374_v22, %v5112_v36 }
 0x674   : > { %v11676_v47 = vpack.c.bf16 %v6270_v21, %v6269_v60  ;;  %v11678_v59 = vpop.f32.mrf.mxu1 }
 0x675   : > { %13173 = vst [vmem:[#allocation66_spill] sm:$0xff] %v11678_v59  ;;  %v5523_v20 = vmax.f32 %v5395_v50, 0.0 }
 0x676   : > { %v5118_v53 = vpop.f32.mrf.mxu1 }
 0x677   : > { %v5605_v54 = vpack.c.bf16 %v5523_v20, %v5522_v58  ;;  %v5396_v18 = vadd.f32 %v11374_v22, %v5118_v53 }
 0x678   : > { %v11680_v38 = vpop.f32.mrf.mxu1 }
 0x679   : > { %13174 = vst [vmem:[#allocation64_spill] sm:$0xff] %v11680_v38  ;;  %8715 = vmatmul.mubr.bf16.gmra.mxu0 %v5605_v54  ;;  %v5524_v52 = vmax.f32 %v5396_v18, 0.0 }
 0x67a   : > { %v5122_v1 = vpop.f32.mrf.mxu1 }
 0x67b   : > { %v5397_v11 = vadd.f32 %v11374_v22, %v5122_v1 }
 0x67c   : > { %v11684_v49 = vpop.f32.mrf.mxu1 }
 0x67d   : > { %13175 = vst [vmem:[#allocation183_spill] sm:$0xff] %v11684_v49  ;;  %v5525_v39 = vmax.f32 %v5397_v11, 0.0 }
 0x67e   : > { %v5128_v14 = vpop.f32.mrf.mxu1 }
 0x67f   : > { %v5606_v55 = vpack.c.bf16 %v5525_v39, %v5524_v52  ;;  %v5398_v2 = vadd.f32 %v11374_v22, %v5128_v14 }
 0x680   : > { %v11686_v42 = vpop.f32.mrf.mxu1 }
 0x681   : > { %13176 = vst [vmem:[#allocation184_spill] sm:$0xff] %v11686_v42  ;;  %8718 = vmatprep.mubr.bf16.mxu0 %v5606_v55  ;;  %v5526_v36 = vmax.f32 %v5398_v2, 0.0 }
 0x682   : > { %v5132_v40 = vpop.f32.mrf.mxu1 }
 0x683   : > { %v5399_v60 = vadd.f32 %v11374_v22, %v5132_v40 }
 0x684   : > { %v11690_v21 = vpop.f32.mrf.mxu1 }
 0x685   : > { %13177 = vst [vmem:[#allocation185_spill] sm:$0xff] %v11690_v21  ;;  %v5527_v50 = vmax.f32 %v5399_v60, 0.0 }
 0x686   : > { %v5138_v58 = vpop.f32.mrf.mxu1 }
 0x687   : > { %v5607_v20 = vpack.c.bf16 %v5527_v50, %v5526_v36  ;;  %v5400_v54 = vadd.f32 %v11374_v22, %v5138_v58 }
 0x688   : > { %v11692_v53 = vpop.f32.mrf.mxu1 }
 0x689   : > { %13178 = vst [vmem:[#allocation186_spill] sm:$0xff] %v11692_v53  ;;  %8719 = vmatmul.mubr.bf16.gmra.mxu0 %v5607_v20  ;;  %v5528_v52 = vmax.f32 %v5400_v54, 0.0 }
 0x68a   : > { %v5142_v18 = vpop.f32.mrf.mxu1 }
 0x68b   : > { %v5401_v1 = vadd.f32 %v11374_v22, %v5142_v18 }
 0x68c   : > { %v11696_v11 = vpop.f32.mrf.mxu1 }
 0x68d   : > { %13179 = vst [vmem:[#allocation187_spill] sm:$0xff] %v11696_v11  ;;  %v5529_v39 = vmax.f32 %v5401_v1, 0.0 }
 0x68e   : > { %v5148_v14 = vpop.f32.mrf.mxu1 }
 0x68f   : > { %v5608_v55 = vpack.c.bf16 %v5529_v39, %v5528_v52  ;;  %v5402_v2 = vadd.f32 %v11374_v22, %v5148_v14 }
 0x690   : > { %v11698_v40 = vpop.f32.mrf.mxu1 }
 0x691   : > { %13180 = vst [vmem:[#allocation188_spill] sm:$0xff] %v11698_v40  ;;  %8722 = vmatprep.mubr.bf16.mxu0 %v5608_v55  ;;  %v5530_v58 = vmax.f32 %v5402_v2, 0.0  ;;  %v11715_v2 = vld [vmem:[%s12856_s6] ss:$0 sm:$0xff] }
 0x692   : > { %v5152_v60 = vpop.f32.mrf.mxu1 }
 0x693   : > { %v5403_v36 = vadd.f32 %v11374_v22, %v5152_v60 }
 0x694   : > { %v11702_v50 = vpop.f32.mrf.mxu1 }
 0x695   : > { %13181 = vst [vmem:[#allocation189_spill] sm:$0xff] %v11702_v50  ;;  %v5531_v20 = vmax.f32 %v5403_v36, 0.0 }
 0x696   : > { %v5158_v53 = vpop.f32.mrf.mxu1 }
 0x697   : > { %v5609_v18 = vpack.c.bf16 %v5531_v20, %v5530_v58  ;;  %v5404_v54 = vadd.f32 %v11374_v22, %v5158_v53  ;;  %v11718_v58 = vpop.f32.mrf.mxu0 }
 0x698   : > { %v11704_v49 = vpop.f32.mrf.mxu1 }
 0x699   : > { %13182 = vst [vmem:[#allocation190_spill] sm:$0xff] %v11704_v49  ;;  %8723 = vmatmul.mubr.bf16.gmra.mxu0 %v5609_v18  ;;  %v5532_v14 = vmax.f32 %v5404_v54, 0.0 }
 0x69a   : > { %v5162_v1 = vpop.f32.mrf.mxu1 }
 0x69b   : > { %v5405_v52 = vadd.f32 %v11374_v22, %v5162_v1 }
 0x69c   : > { %v11708_v39 = vpop.f32.mrf.mxu1 }
 0x69d   : > { %13183 = vst [vmem:[#allocation191_spill] sm:$0xff] %v11708_v39  ;;  %v5533_v55 = vmax.f32 %v5405_v52, 0.0  ;;  %v11723_v52 = vpop.f32.mrf.mxu0 }
 0x69e   : > { %v5168_v11 = vpop.f32.mrf.mxu1 }
 0x69f   : > { %v5610_v60 = vpack.c.bf16 %v5533_v55, %v5532_v14  ;;  %v5406_v36 = vadd.f32 %v11715_v2, %v5168_v11 }
 0x6a0   : > { %v11710_v40 = vpop.f32.mrf.mxu1 }
 0x6a1   : > { %13184 = vst [vmem:[#allocation192_spill] sm:$0xff] %v11710_v40  ;;  %8726 = vmatprep.mubr.bf16.mxu0 %v5610_v60  ;;  %v5534_v18 = vmax.f32 %v5406_v36, 0.0  ;;  %v11728_v60 = vpop.f32.mrf.mxu0 }
 0x6a2   : > { %v5172_v53 = vpop.f32.mrf.mxu1 }
 0x6a3   : > { %v5407_v22 = vadd.f32 %v11715_v2, %v5172_v53 }
 0x6a4   : > { %v11721_v20 = vpop.f32.mrf.mxu1 }
 0x6a5   : > { %13185 = vst [vmem:[#allocation193_spill] sm:$0xff] %v11721_v20  ;;  %v5535_v54 = vmax.f32 %v5407_v22, 0.0  ;;  %v11733_v22 = vpop.f32.mrf.mxu0 }
 0x6a6   : > { %v5178_v1 = vpop.f32.mrf.mxu1 }
 0x6a7   : > { %v5611_v14 = vpack.c.bf16 %v5535_v54, %v5534_v18  ;;  %v5408_v39 = vadd.f32 %v11715_v2, %v5178_v1  ;;  %v11737_v18 = vpop.f32.mrf.mxu0 }
 0x6a8   : > { %v11725_v55 = vpop.f32.mrf.mxu1 }
 0x6a9   : > { %13186 = vst [vmem:[#allocation194_spill] sm:$0xff] %v11725_v55  ;;  %8727 = vmatmul.mubr.bf16.gmra.mxu0 %v5611_v14  ;;  %v5536_v53 = vmax.f32 %v5408_v39, 0.0 }
 0x6aa   : > { %v5182_v11 = vpop.f32.mrf.mxu1 }
 0x6ab   : > { %v5409_v49 = vadd.f32 %v11715_v2, %v5182_v11  ;;  %v11743_v11 = vpop.f32.mrf.mxu0 }
 0x6ac   : > { %v11731_v40 = vpop.f32.mrf.mxu1 }
 0x6ad   : > { %13187 = vst [vmem:[#allocation195_spill] sm:$0xff] %v11731_v40  ;;  %v5537_v20 = vmax.f32 %v5409_v49, 0.0 }
 0x6ae   : > { %v5188_v36 = vpop.f32.mrf.mxu1 }
 0x6af   : > { %v5612_v50 = vpack.c.bf16 %v5537_v20, %v5536_v53  ;;  %v5410_v54 = vadd.f32 %v11715_v2, %v5188_v36  ;;  %v11747_v20 = vpop.f32.mrf.mxu0 }
 0x6b0   : > { %v11735_v21 = vpop.f32.mrf.mxu1 }
 0x6b1   : > { %13188 = vst [vmem:[#allocation196_spill] sm:$0xff] %v11735_v21  ;;  %8730 = vmatprep.mubr.bf16.mxu0 %v5612_v50  ;;  %v5538_v39 = vmax.f32 %v5410_v54, 0.0 }
 0x6b2   : > { %v5192_v1 = vpop.f32.mrf.mxu1 }
 0x6b3   : > { %v5411_v14 = vadd.f32 %v11715_v2, %v5192_v1  ;;  %v11753_v1 = vpop.f32.mrf.mxu0 }
 0x6b4   : > { %v11741_v55 = vpop.f32.mrf.mxu1 }
 0x6b5   : > { %13189 = vst [vmem:[#allocation197_spill] sm:$0xff] %v11741_v55  ;;  %v5539_v49 = vmax.f32 %v5411_v14, 0.0  ;;  %v11755_v14 = vpop.f32.mrf.mxu0 }
 0x6b6   : > { %v5198_v40 = vpop.f32.mrf.mxu1 }
 0x6b7   : > { %v5613_v38 = vpack.c.bf16 %v5539_v49, %v5538_v39  ;;  %v5412_v53 = vadd.f32 %v11715_v2, %v5198_v40 }
 0x6b8   : > { %v11745_v42 = vpop.f32.mrf.mxu1 }
 0x6b9   : > { %13190 = vst [vmem:[#allocation198_spill] sm:$0xff] %v11745_v42  ;;  %8731 = vmatmul.mubr.bf16.gmra.mxu0 %v5613_v38  ;;  %v5540_v55 = vmax.f32 %v5412_v53, 0.0  ;;  %v11760_v38 = vpop.f32.mrf.mxu0 }
 0x6ba   : > { %v5202_v36 = vpop.f32.mrf.mxu1 }
 0x6bb   : > { %v5413_v50 = vadd.f32 %v11715_v2, %v5202_v36 }
 0x6bc   : > { %v11751_v21 = vpop.f32.mrf.mxu1 }
 0x6bd   : > { %13191 = vst [vmem:[#allocation199_spill] sm:$0xff] %v11751_v21  ;;  %v5541_v29 = vmax.f32 %v5413_v50, 0.0  ;;  %v11765_v50 = vpop.f32.mrf.mxu0 }
 0x6be   : > { %v5208_v54 = vpop.f32.mrf.mxu1 }
 0x6bf   : > { %v5614_v39 = vpack.c.bf16 %v5541_v29, %v5540_v55  ;;  %v5414_v42 = vadd.f32 %v11715_v2, %v5208_v54  ;;  %v11770_v54 = vpop.f32.mrf.mxu0 }
 0x6c0   : > { %v11757_v49 = vpop.f32.mrf.mxu1 }
 0x6c1   : > { %13192 = vst [vmem:[#allocation200_spill] sm:$0xff] %v11757_v49  ;;  %8734 = vmatprep.mubr.bf16.mxu0 %v5614_v39  ;;  %v5542_v21 = vmax.f32 %v5414_v42, 0.0 }
 0x6c2   : > { %v5212_v40 = vpop.f32.mrf.mxu1 }
 0x6c3   : > { %v5415_v36 = vadd.f32 %v11715_v2, %v5212_v40  ;;  %v11775_v40 = vpop.f32.mrf.mxu0 }
 0x6c4   : > { %v11763_v59 = vpop.f32.mrf.mxu1 }
 0x6c5   : > { %13193 = vst [vmem:[#allocation201_spill] sm:$0xff] %v11763_v59  ;;  %v5543_v45 = vmax.f32 %v5415_v36, 0.0 }
 0x6c6   : > { %v5218_v53 = vpop.f32.mrf.mxu1 }
 0x6c7   : > { %v5615_v34 = vpack.c.bf16 %v5543_v45, %v5542_v21  ;;  %v5416_v29 = vadd.f32 %v11715_v2, %v5218_v53  ;;  %v11779_v45 = vpop.f32.mrf.mxu0 }
 0x6c8   : > { %v11767_v24 = vpop.f32.mrf.mxu1 }
 0x6c9   : > { %13194 = vst [vmem:[#allocation202_spill] sm:$0xff] %v11767_v24  ;;  %8735 = vmatmul.mubr.bf16.gmra.mxu0 %v5615_v34  ;;  %v5544_v42 = vmax.f32 %v5416_v29, 0.0 }
 0x6ca   : > { %v5222_v55 = vpop.f32.mrf.mxu1 }
 0x6cb   : > { %v5417_v39 = vadd.f32 %v11715_v2, %v5222_v55  ;;  %v11785_v55 = vpop.f32.mrf.mxu0 }
 0x6cc   : > { %v11773_v49 = vpop.f32.mrf.mxu1 }
 0x6cd   : > { %13195 = vst [vmem:[#allocation203_spill] sm:$0xff] %v11773_v49  ;;  %v5545_v36 = vmax.f32 %v5417_v39, 0.0 }
 0x6ce   : > { %v5228_v59 = vpop.f32.mrf.mxu1 }
 0x6cf   : > { %v5616_v41 = vpack.c.bf16 %v5545_v36, %v5544_v42  ;;  %v5418_v21 = vadd.f32 %v11715_v2, %v5228_v59  ;;  %v11789_v42 = vpop.f32.mrf.mxu0 }
 0x6d0   : > { %v11777_v3 = vpop.f32.mrf.mxu1 }
 0x6d1   : > { %13196 = vst [vmem:[#allocation204_spill] sm:$0xff] %v11777_v3  ;;  %8738 = vmatprep.mubr.bf16.mxu0 %v5616_v41  ;;  %v5546_v49 = vmax.f32 %v5418_v21, 0.0  ;;  %v11792_v41 = vpop.f32.mrf.mxu0 }
 0x6d2   : > { %v5232_v34 = vpop.f32.mrf.mxu1 }
 0x6d3   : > { %v5419_v53 = vadd.f32 %v11715_v2, %v5232_v34 }
 0x6d4   : > { %v11783_v24 = vpop.f32.mrf.mxu1 }
 0x6d5   : > { %13197 = vst [vmem:[#allocation205_spill] sm:$0xff] %v11783_v24  ;;  %v5547_v56 = vmax.f32 %v5419_v53, 0.0  ;;  %v11797_v53 = vpop.f32.mrf.mxu0 }
 0x6d6   : > { %v5238_v29 = vpop.f32.mrf.mxu1 }
 0x6d7   : > { %v5617_v39 = vpack.c.bf16 %v5547_v56, %v5546_v49  ;;  %v5420_v36 = vadd.f32 %v11715_v2, %v5238_v29 }
 0x6d8   : > { %v11787_v57 = vpop.f32.mrf.mxu1 }
 0x6d9   : > { %13198 = vst [vmem:[#allocation206_spill] sm:$0xff] %v11787_v57  ;;  %8739 = vmatmul.mubr.bf16.gmra.mxu0 %v5617_v39  ;;  %v5548_v24 = vmax.f32 %v5420_v36, 0.0  ;;  %v11802_v39 = vpop.f32.mrf.mxu0 }
 0x6da   : > { %v5242_v59 = vpop.f32.mrf.mxu1 }
 0x6db   : > { %v5421_v34 = vadd.f32 %v11715_v2, %v5242_v59 }
 0x6dc   : > { %v11795_v3 = vpop.f32.mrf.mxu1 }
 0x6dd   : > { %13199 = vst [vmem:[#allocation207_spill] sm:$0xff] %v11795_v3  ;;  %v5549_v16 = vmax.f32 %v5421_v34, 0.0  ;;  %v11807_v34 = vpop.f32.mrf.mxu0 }
 0x6de   : > { %v5248_v21 = vpop.f32.mrf.mxu1 }
 0x6df   : > { %v5618_v56 = vpack.c.bf16 %v5549_v16, %v5548_v24  ;;  %v5422_v57 = vadd.f32 %v11715_v2, %v5248_v21  ;;  %v11811_v16 = vpop.f32.mrf.mxu0 }
 0x6e0   : > { %v11799_v49 = vpop.f32.mrf.mxu1 }
 0x6e1   : > { %13200 = vst [vmem:[#allocation208_spill] sm:$0xff] %v11799_v49  ;;  %8742 = vmatprep.mubr.bf16.mxu0 %v5618_v56  ;;  %v5550_v59 = vmax.f32 %v5422_v57, 0.0 }
 0x6e2   : > { %v5252_v29 = vpop.f32.mrf.mxu1 }
 0x6e3   : > { %v5423_v27 = vadd.f32 %v11715_v2, %v5252_v29  ;;  %v11817_v29 = vpop.f32.mrf.mxu0 }
 0x6e4   : > { %v11805_v23 = vpop.f32.mrf.mxu1 }
 0x6e5   : > { %13201 = vst [vmem:[#allocation209_spill] sm:$0xff] %v11805_v23  ;;  %v5551_v3 = vmax.f32 %v5423_v27, 0.0 }
 0x6e6   : > { %v5258_v36 = vpop.f32.mrf.mxu1 }
 0x6e7   : > { %v5619_v0 = vpack.c.bf16 %v5551_v3, %v5550_v59  ;;  %v5424_v24 = vadd.f32 %v11715_v2, %v5258_v36  ;;  %v11821_v3 = vpop.f32.mrf.mxu0 }
 0x6e8   : > { %v11809_v10 = vpop.f32.mrf.mxu1 }
 0x6e9   : > { %13202 = vst [vmem:[#allocation210_spill] sm:$0xff] %v11809_v10  ;;  %8743 = vmatmul.mubr.bf16.gmra.mxu0 %v5619_v0  ;;  %v5552_v57 = vmax.f32 %v5424_v24, 0.0 }
 0x6ea   : > { %v5262_v21 = vpop.f32.mrf.mxu1 }
 0x6eb   : > { %v5425_v56 = vadd.f32 %v11715_v2, %v5262_v21  ;;  %v11827_v21 = vpop.f32.mrf.mxu0 }
 0x6ec   : > { %v11815_v49 = vpop.f32.mrf.mxu1 }
 0x6ed   : > { %13203 = vst [vmem:[#allocation211_spill] sm:$0xff] %v11815_v49  ;;  %v5553_v27 = vmax.f32 %v5425_v56, 0.0  ;;  %v11829_v56 = vpop.f32.mrf.mxu0 }
 0x6ee   : > { %v5268_v23 = vpop.f32.mrf.mxu1 }
 0x6ef   : > { %v5620_v48 = vpack.c.bf16 %v5553_v27, %v5552_v57  ;;  %v5426_v59 = vadd.f32 %v11715_v2, %v5268_v23 }
 0x6f0   : > { %v11819_v17 = vpop.f32.mrf.mxu1 }
 0x6f1   : > { %13204 = vst [vmem:[#allocation212_spill] sm:$0xff] %v11819_v17  ;;  %8746 = vmatprep.mubr.bf16.mxu0 %v5620_v48  ;;  %v5554_v49 = vmax.f32 %v5426_v59, 0.0  ;;  %v11834_v48 = vpop.f32.mrf.mxu0 }
 0x6f2   : > { %v5272_v36 = vpop.f32.mrf.mxu1 }
 0x6f3   : > { %v5427_v0 = vadd.f32 %v11715_v2, %v5272_v36 }
 0x6f4   : > { %v11825_v10 = vpop.f32.mrf.mxu1 }
 0x6f5   : > { %13205 = vst [vmem:[#allocation213_spill] sm:$0xff] %v11825_v10  ;;  %v5555_v5 = vmax.f32 %v5427_v0, 0.0  ;;  %v11839_v0 = vpop.f32.mrf.mxu0 }
 0x6f6   : > { %v5278_v24 = vpop.f32.mrf.mxu1 }
 0x6f7   : > { %v5621_v57 = vpack.c.bf16 %v5555_v5, %v5554_v49  ;;  %v5428_v17 = vadd.f32 %v11715_v2, %v5278_v24  ;;  %v11844_v24 = vpop.f32.mrf.mxu0 }
 0x6f8   : > { %v11831_v27 = vpop.f32.mrf.mxu1 }
 0x6f9   : > { %13206 = vst [vmem:[#allocation214_spill] sm:$0xff] %v11831_v27  ;;  %8747 = vmatmul.mubr.bf16.gmra.mxu0 %v5621_v57  ;;  %v5556_v10 = vmax.f32 %v5428_v17, 0.0  ;;  %v11847_v27 = vpop.f32.mrf.mxu0 }
 0x6fa   : > { %v5282_v23 = vpop.f32.mrf.mxu1 }
 0x6fb   : > { %v5429_v36 = vadd.f32 %v11715_v2, %v5282_v23 }
 0x6fc   : > { %v11837_v44 = vpop.f32.mrf.mxu1 }
 0x6fd   : > { %13207 = vst [vmem:[#allocation215_spill] sm:$0xff] %v11837_v44  ;;  %v5557_v30 = vmax.f32 %v5429_v36, 0.0  ;;  %v11849_v36 = vpop.f32.mrf.mxu0 }
 0x6fe   : > { %v5288_v59 = vpop.f32.mrf.mxu1 }
 0x6ff   : > { %v5622_v63 = vpack.c.bf16 %v5557_v30, %v5556_v10  ;;  %v5430_v5 = vadd.f32 %v11715_v2, %v5288_v59  ;;  %v11853_v30 = vpop.f32.mrf.mxu0 }
 0x700   : > { %v11841_v31 = vpop.f32.mrf.mxu1 }
 0x701   : > { %13208 = vst [vmem:[#allocation216_spill] sm:$0xff] %v11841_v31  ;;  %8750 = vmatprep.mubr.bf16.mxu0 %v5622_v63  ;;  %v5558_v23 = vmax.f32 %v5430_v5, 0.0  ;;  %v11855_v63 = vpop.f32.mrf.mxu0 }
 0x702   : > { %v5292_v49 = vpop.f32.mrf.mxu1 }
 0x703   : > { %v5431_v57 = vadd.f32 %v11715_v2, %v5292_v49  ;;  %v11861_v10 = vpop.f32.mrf.mxu0 }
 0x705   : > { %v5559_v44 = vmax.f32 %v5431_v57, 0.0  ;;  %v13212_v57 = vld [vmem:[#allocation67_spill] sm:$0xff] }
 0x707   : > { %v5623_v17 = vpack.c.bf16 %v5559_v44, %v5558_v23  ;;  %v11863_v44 = vpop.f32.mrf.mxu0 }
 0x709   : > { %8751 = vmatmul.mubr.bf16.gmra.mxu0 %v5623_v17 }
 0x70a   : > { %8762 = vmatprep.mubr.msk.bf16.mxu0 %vm6457_vm2, %v11396_v43  ;;  %v11869_v43 = vpop.f32.mrf.mxu0 }
 0x70c   : > { %v11871_v2 = vpop.f32.mrf.mxu0 }
 0x70e   : > { %v11873_v59 = vpop.f32.mrf.mxu0 }
 0x711   : > { %8763 = vmatmul.mubr.msk.bf16.vlgmr.msra.gmra.mxu0 %vm6457_vm2, %v11391_v13  ;;  %v11879_v13 = vpop.f32.mrf.mxu0 }
 0x712   : > { %8766 = vmatprep.mubr.msk.bf16.mxu0 %vm6457_vm2, %v11430_v9 }
 0x713   : > { %v11881_v9 = vpop.f32.mrf.mxu0 }
 0x719   : > { %8767 = vmatmul.mubr.msk.bf16.gmra.mxu0 %vm6457_vm2, %v11425_v8  ;;  %v11887_v8 = vpop.f32.mrf.mxu0 }
 0x71a   : > { %8770 = vmatprep.mubr.msk.bf16.mxu0 %vm6457_vm2, %v11464_v62 }
 0x71b   : > { %v11889_v62 = vpop.f32.mrf.mxu0 }
 0x721   : > { %8771 = vmatmul.mubr.msk.bf16.gmra.mxu0 %vm6457_vm2, %v11459_v4  ;;  %v11895_v4 = vpop.f32.mrf.mxu0 }
 0x722   : > { %8774 = vmatprep.mubr.msk.bf16.mxu0 %vm6457_vm2, %v11503_v35 }
 0x723   : > { %v11897_v35 = vpop.f32.mrf.mxu0 }
 0x729   : > { %8775 = vmatmul.mubr.msk.bf16.gmra.mxu0 %vm6457_vm2, %v11498_v61  ;;  %v11903_v61 = vpop.f32.mrf.mxu0 }
 0x72a   : > { %8778 = vmatprep.mubr.msk.bf16.mxu0 %vm6457_vm2, %v11540_v28 }
 0x72b   : > { %v11905_v28 = vpop.f32.mrf.mxu0 }
 0x72d   : > { %v11907_v5 = vpop.f32.mrf.mxu0 }
 0x731   : > { %8779 = vmatmul.mubr.msk.bf16.gmra.mxu0 %vm6457_vm2, %v11535_v15  ;;  %v11913_v15 = vpop.f32.mrf.mxu0 }
 0x732   : > { %8782 = vmatprep.mubr.msk.bf16.mxu0 %vm6457_vm2, %v11574_v51 }
 0x733   : > { %v11915_v51 = vpop.f32.mrf.mxu0 }
 0x739   : > { %8783 = vmatmul.mubr.msk.bf16.gmra.mxu0 %vm6457_vm2, %v11569_v37  ;;  %v11921_v37 = vpop.f32.mrf.mxu0 }
 0x73a   : > { %8786 = vmatprep.mubr.msk.bf16.mxu0 %vm6457_vm2, %v11601_v6  ;;  %13209 = vst [vmem:[#allocation217_spill] sm:$0xff] %v11921_v37  ;;  %v11926_v6 = vld [vmem:[%s12858_s8] ss:$0 sm:$0xff]  ;;  %v13215_v37 = vld [vmem:[#allocation72_spill] sm:$0xff] }
 0x73b   : > { %v11930_v49 = vpop.f32.mrf.mxu0  ;;  %v1948_v23 = vadd.f32 %v11926_v6, %v13212_v57  ;;  %v1953_v32 = vadd.f32 %v11926_v6, %v13215_v37 }
 0x73d   : > { %v11940_v17 = vpop.f32.mrf.mxu0 }
 0x73e   : > { %13213 = vst [vmem:[#allocation67_spill] sm:$0xff] %v11940_v17 }
 0x741   : > { %8787 = vmatmul.mubr.msk.bf16.gmra.mxu0 %vm6457_vm2, %v11598_v19  ;;  %v13210_v19 = vld [vmem:[#allocation68_spill] sm:$0xff] }
 0x742   : > { %8790 = vmatprep.mubr.msk.bf16.mxu0 %vm6457_vm2, %v11625_v7  ;;  %v1949_v7 = vadd.f32 %v11926_v6, %v13210_v19  ;;  %13211 = vst [vmem:[#allocation68_spill] sm:$0xff] %v11930_v49  ;;  %v1951_v19 = vadd.f32 %v11926_v6, %v13214_v33  ;;  %v13216_v49 = vld [vmem:[#allocation69_spill] sm:$0xff] }
 0x749   : > { %8791 = vmatmul.mubr.msk.bf16.gmra.mxu0 %vm6457_vm2, %v11622_v26  ;;  %v5886_v26 = vadd.f32 %v11733_v22, %v1949_v7  ;;  %v1950_v22 = vadd.f32 %v11926_v6, %v13216_v49  ;;  %v11949_v7 = vpop.f32.mrf.mxu0 }
 0x74a   : > { %8794 = vmatprep.mubr.msk.bf16.mxu0 %vm6457_vm2, %v11652_v25  ;;  %v5883_v25 = vadd.f32 %v11723_v52, %v1948_v23  ;;  %v13217_v52 = vld [vmem:[#allocation71_spill] sm:$0xff] }
 0x74b   : > { %v6274_v31 = vmax.f32 %v5886_v26, 0.0  ;;  %v5902_v26 = vadd.f32 %v11753_v1, %v1953_v32  ;;  %v5891_v17 = vadd.f32 %v11718_v58, %v1950_v22  ;;  %v11955_v33 = vpop.f32.mrf.mxu0  ;;  %v13219_v32 = vld [vmem:[#allocation76_spill] sm:$0xff] }
 0x74c   : > { %v6273_v57 = vmax.f32 %v5883_v25, 0.0  ;;  %v13218_v25 = vld [vmem:[#allocation74_spill] sm:$0xff]  ;;  %v1957_v58 = vadd.f32 %v11926_v6, %v13219_v32 }
 0x74d   : > { %v6278_v49 = vmax.f32 %v5902_v26, 0.0 }
 0x74e   : > { %v6381_v23 = vpack.c.bf16 %v6274_v31, %v6273_v57  ;;  %v11963_v31 = vpop.f32.mrf.mxu0  ;;  %v13220_v57 = vld [vmem:[#allocation73_spill] sm:$0xff]  ;;  %v5918_v26 = vadd.f32 %v11770_v54, %v1957_v58 }
 0x74f   : > { %v1954_v22 = vadd.f32 %v11926_v6, %v13220_v57  ;;  %v13224_v58 = vld [vmem:[#allocation77_spill] sm:$0xff] }
 0x751   : > { %8795 = vmatmul.mubr.msk.bf16.gmra.mxu0 %vm6457_vm2, %v11649_v46  ;;  %v5894_v46 = vadd.f32 %v11728_v60, %v1951_v19  ;;  %v1955_v19 = vadd.f32 %v11926_v6, %v13218_v25  ;;  %v11974_v25 = vpop.f32.mrf.mxu0 }
 0x752   : > { %8798 = vmatprep.mubr.msk.bf16.mxu0 %vm6457_vm2, %v11676_v47  ;;  %v1952_v47 = vadd.f32 %v11926_v6, %v13217_v52  ;;  %v6275_v52 = vmax.f32 %v5891_v17, 0.0  ;;  %v5907_v17 = vadd.f32 %v11737_v18, %v1954_v22 }
 0x753   : > { %v6276_v60 = vmax.f32 %v5894_v46, 0.0  ;;  %v11981_v57 = vpop.f32.mrf.mxu0 }
 0x754   : > { %v5899_v37 = vadd.f32 %v11743_v11, %v1952_v47  ;;  %v5910_v11 = vadd.f32 %v11747_v20, %v1955_v19  ;;  %v13221_v47 = vld [vmem:[#allocation75_spill] sm:$0xff]  ;;  %v6279_v19 = vmax.f32 %v5907_v17, 0.0 }
 0x755   : > { %v1956_v46 = vadd.f32 %v11926_v6, %v13221_v47 }
 0x756   : > { %v6277_v1 = vmax.f32 %v5899_v37, 0.0  ;;  %v6280_v32 = vmax.f32 %v5910_v11, 0.0  ;;  %v13225_v11 = vld [vmem:[#allocation80_spill] sm:$0xff] }
 0x757   : > { %v5915_v37 = vadd.f32 %v11760_v38, %v1956_v46  ;;  %v1960_v47 = vadd.f32 %v11926_v6, %v13225_v11 }
 0x758   : > { %v6384_v22 = vpack.c.bf16 %v6280_v32, %v6279_v19 }
 0x759   : > { %8799 = vmatmul.mubr.msk.bf16.gmra.mxu0 %vm6457_vm2, %v11673_v12  ;;  %v6382_v12 = vpack.c.bf16 %v6276_v60, %v6275_v52  ;;  %v6282_v60 = vmax.f32 %v5918_v26, 0.0  ;;  %v13222_v52 = vld [vmem:[#allocation79_spill] sm:$0xff]  ;;  %v6281_v18 = vmax.f32 %v5915_v37, 0.0  ;;  %v5931_v17 = vadd.f32 %v11779_v45, %v1960_v47 }
 0x75a   : > { %8802 = vmatprep.mubr.msk.bf16.mxu0 %vm6457_vm2, %v6381_v23  ;;  %v6383_v23 = vpack.c.bf16 %v6278_v49, %v6277_v1  ;;  %v1959_v20 = vadd.f32 %v11926_v6, %v13222_v52  ;;  %v13223_v49 = vld [vmem:[#allocation82_spill] sm:$0xff]  ;;  %v1958_v1 = vadd.f32 %v11926_v6, %v13224_v58  ;;  %v13226_v52 = vld [vmem:[#allocation85_spill] sm:$0xff] }
 0x75b   : > { %v1961_v54 = vadd.f32 %v11926_v6, %v13223_v49  ;;  %v6385_v46 = vpack.c.bf16 %v6282_v60, %v6281_v18  ;;  %v13227_v49 = vld [vmem:[#allocation88_spill] sm:$0xff] }
 0x75c   : > { %v5926_v38 = vadd.f32 %v11765_v50, %v1959_v20  ;;  %v5923_v26 = vadd.f32 %v11755_v14, %v1958_v1  ;;  %v1963_v20 = vadd.f32 %v11926_v6, %v13226_v52  ;;  %v1965_v60 = vadd.f32 %v11926_v6, %v13227_v49  ;;  %v13229_v1 = vld [vmem:[#allocation86_spill] sm:$0xff] }
 0x75e   : > { %v6284_v37 = vmax.f32 %v5926_v38, 0.0  ;;  %v6283_v19 = vmax.f32 %v5923_v26, 0.0  ;;  %v5942_v45 = vadd.f32 %v11785_v55, %v1963_v20  ;;  %v5950_v11 = vadd.f32 %v11807_v34, %v1965_v60 }
 0x760   : > { %v6386_v18 = vpack.c.bf16 %v6284_v37, %v6283_v19  ;;  %v6290_v55 = vmax.f32 %v5950_v11, 0.0  ;;  %v13232_v19 = vld [vmem:[#allocation89_spill] sm:$0xff] }
 0x761   : > { %8803 = vmatmul.mubr.msk.bf16.gmra.mxu0 %vm6457_vm2, %v6382_v12  ;;  %v11988_v12 = vpop.f32.mrf.mxu0  ;;  %v1966_v49 = vadd.f32 %v11926_v6, %v13232_v19 }
 0x762   : > { %8806 = vmatprep.mubr.msk.bf16.mxu0 %vm6457_vm2, %v6383_v23  ;;  %v5934_v23 = vadd.f32 %v11789_v42, %v1961_v54  ;;  %v6285_v42 = vmax.f32 %v5931_v17, 0.0  ;;  %v13228_v54 = vld [vmem:[#allocation83_spill] sm:$0xff] }
 0x763   : > { %v11997_v32 = vpop.f32.mrf.mxu0  ;;  %v1962_v14 = vadd.f32 %v11926_v6, %v13228_v54  ;;  %v13230_v17 = vld [vmem:[#allocation91_spill] sm:$0xff] }
 0x764   : > { %v6286_v50 = vmax.f32 %v5934_v23, 0.0  ;;  %v6288_v23 = vmax.f32 %v5942_v45, 0.0  ;;  %v1967_v37 = vadd.f32 %v11926_v6, %v13230_v17  ;;  %v5955_v45 = vadd.f32 %v11792_v41, %v1966_v49  ;;  %v13236_v17 = vld [vmem:[#allocation95_spill] sm:$0xff] }
 0x765   : > { %v12006_v58 = vpop.f32.mrf.mxu0  ;;  %v5939_v47 = vadd.f32 %v11775_v40, %v1962_v14 }
 0x766   : > { %v6387_v38 = vpack.c.bf16 %v6286_v50, %v6285_v42  ;;  %v13231_v50 = vld [vmem:[#allocation94_spill] sm:$0xff]  ;;  %v5958_v60 = vadd.f32 %v11802_v39, %v1967_v37  ;;  %v13233_v42 = vld [vmem:[#allocation92_spill] sm:$0xff]  ;;  %v1970_v37 = vadd.f32 %v11926_v6, %v13236_v17 }
 0x767   : > { %v12015_v26 = vpop.f32.mrf.mxu0  ;;  %v6287_v52 = vmax.f32 %v5939_v47, 0.0  ;;  %v1969_v34 = vadd.f32 %v11926_v6, %v13231_v50  ;;  %v1968_v54 = vadd.f32 %v11926_v6, %v13233_v42  ;;  %v13234_v47 = vld [vmem:[#allocation97_spill] sm:$0xff]  ;;  %v13237_v50 = vld [vmem:[#allocation98_spill] sm:$0xff] }
 0x768   : > { %v1971_v39 = vadd.f32 %v11926_v6, %v13234_v47  ;;  %v5971_v49 = vadd.f32 %v11811_v16, %v1970_v37 }
 0x769   : > { %8807 = vmatmul.mubr.msk.bf16.gmra.mxu0 %vm6457_vm2, %v6384_v22  ;;  %v1964_v22 = vadd.f32 %v11926_v6, %v13229_v1  ;;  %v12019_v20 = vpop.f32.mrf.mxu0 }
 0x76a   : > { %8810 = vmatprep.mubr.msk.bf16.mxu0 %vm6457_vm2, %v6385_v46 }
 0x76b   : > { %v5947_v46 = vadd.f32 %v11797_v53, %v1964_v22  ;;  %v6388_v53 = vpack.c.bf16 %v6288_v23, %v6287_v52  ;;  %v12030_v1 = vpop.f32.mrf.mxu0  ;;  %v5963_v22 = vadd.f32 %v11817_v29, %v1968_v54  ;;  %v5974_v29 = vadd.f32 %v11821_v3, %v1971_v39 }
 0x76d   : > { %v6289_v40 = vmax.f32 %v5947_v46, 0.0  ;;  %v6291_v46 = vmax.f32 %v5955_v45, 0.0  ;;  %v12037_v23 = vpop.f32.mrf.mxu0  ;;  %v6293_v41 = vmax.f32 %v5963_v22, 0.0  ;;  %v6296_v42 = vmax.f32 %v5974_v29, 0.0  ;;  %v13239_v22 = vld [vmem:[#allocation103_spill] sm:$0xff] }
 0x76e   : > { %v6295_v45 = vmax.f32 %v5971_v49, 0.0 }
 0x76f   : > { %v6389_v14 = vpack.c.bf16 %v6290_v55, %v6289_v40  ;;  %v13235_v55 = vld [vmem:[#allocation99_spill] sm:$0xff] }
 0x770   : > { %v6392_v47 = vpack.c.bf16 %v6296_v42, %v6295_v45 }
 0x771   : > { %8811 = vmatmul.mubr.msk.bf16.gmra.mxu0 %vm6457_vm2, %v6386_v18  ;;  %v5966_v18 = vadd.f32 %v11827_v21, %v1969_v34  ;;  %v1973_v21 = vadd.f32 %v11926_v6, %v13235_v55  ;;  %v1972_v34 = vadd.f32 %v11926_v6, %v13237_v50  ;;  %v13242_v50 = vld [vmem:[#allocation105_spill] sm:$0xff] }
 0x772   : > { %8814 = vmatprep.mubr.msk.bf16.mxu0 %vm6457_vm2, %v6387_v38  ;;  %v6292_v38 = vmax.f32 %v5958_v60, 0.0 }
 0x773   : > { %v6294_v11 = vmax.f32 %v5966_v18, 0.0  ;;  %v5982_v19 = vadd.f32 %v11844_v24, %v1973_v21  ;;  %v5979_v60 = vadd.f32 %v11834_v48, %v1972_v34  ;;  %v1977_v24 = vadd.f32 %v11926_v6, %v13239_v22 }
 0x774   : > { %v6390_v52 = vpack.c.bf16 %v6292_v38, %v6291_v46  ;;  %v13240_v38 = vld [vmem:[#allocation100_spill] sm:$0xff]  ;;  %v13241_v46 = vld [vmem:[#allocation102_spill] sm:$0xff]  ;;  %v1979_v34 = vadd.f32 %v11926_v6, %v13242_v50 }
 0x775   : > { %v6391_v40 = vpack.c.bf16 %v6294_v11, %v6293_v41  ;;  %v6298_v3 = vmax.f32 %v5982_v19, 0.0  ;;  %v6297_v16 = vmax.f32 %v5979_v60, 0.0  ;;  %v1974_v11 = vadd.f32 %v11926_v6, %v13240_v38  ;;  %v13243_v19 = vld [vmem:[#allocation107_spill] sm:$0xff]  ;;  %v13244_v60 = vld [vmem:[#allocation104_spill] sm:$0xff] }
 0x776   : > { %v1976_v55 = vadd.f32 %v11926_v6, %v13241_v46  ;;  %v5998_v41 = vadd.f32 %v11855_v63, %v1977_v24  ;;  %v1981_v49 = vadd.f32 %v11926_v6, %v13243_v19 }
 0x777   : > { %v6393_v21 = vpack.c.bf16 %v6298_v3, %v6297_v16  ;;  %v5987_v17 = vadd.f32 %v11829_v56, %v1974_v11  ;;  %v1978_v56 = vadd.f32 %v11926_v6, %v13244_v60 }
 0x778   : > { %v5995_v37 = vadd.f32 %v11849_v36, %v1976_v55  ;;  %v6006_v36 = vadd.f32 %v11853_v30, %v1979_v34  ;;  %v6014_v22 = vadd.f32 %v11871_v2, %v1981_v49 }
 0x779   : > { %8815 = vmatmul.mubr.msk.bf16.gmra.mxu0 %vm6457_vm2, %v6388_v53  ;;  %v12048_v53 = vpop.f32.mrf.mxu0  ;;  %v6003_v24 = vadd.f32 %v11847_v27, %v1978_v56  ;;  %v13250_v56 = vld [vmem:[#allocation116_spill] sm:$0xff] }
 0x77a   : > { %8818 = vmatprep.mubr.msk.bf16.mxu0 %vm6457_vm2, %v6389_v14  ;;  %v13238_v14 = vld [vmem:[#allocation101_spill] sm:$0xff]  ;;  %v6301_v63 = vmax.f32 %v5995_v37, 0.0  ;;  %v6304_v11 = vmax.f32 %v6006_v36, 0.0  ;;  %v6306_v30 = vmax.f32 %v6014_v22, 0.0 }
 0x77b   : > { %v12053_v54 = vpop.f32.mrf.mxu0  ;;  %v1975_v18 = vadd.f32 %v11926_v6, %v13238_v14  ;;  %v13245_v14 = vld [vmem:[#allocation106_spill] sm:$0xff]  ;;  %v6303_v46 = vmax.f32 %v6003_v24, 0.0 }
 0x77d   : > { %v5990_v48 = vadd.f32 %v11839_v0, %v1975_v18  ;;  %v12062_v39 = vpop.f32.mrf.mxu0  ;;  %v6302_v0 = vmax.f32 %v5998_v41, 0.0  ;;  %v1980_v18 = vadd.f32 %v11926_v6, %v13245_v14  ;;  %v13248_v41 = vld [vmem:[#allocation109_spill] sm:$0xff]  ;;  %v6396_v37 = vpack.c.bf16 %v6304_v11, %v6303_v46  ;;  %v13251_v14 = vld [vmem:[#allocation120_spill] sm:$0xff] }
 0x77f   : > { %v12071_v29 = vpop.f32.mrf.mxu0  ;;  %v6395_v45 = vpack.c.bf16 %v6302_v0, %v6301_v63  ;;  %v6011_v38 = vadd.f32 %v11863_v44, %v1980_v18  ;;  %v13252_v18 = vld [vmem:[#allocation114_spill] sm:$0xff] }
 0x781   : > { %8819 = vmatmul.mubr.msk.bf16.gmra.mxu0 %vm6457_vm2, %v6390_v52  ;;  %v6300_v52 = vmax.f32 %v5990_v48, 0.0  ;;  %v12080_v3 = vpop.f32.mrf.mxu0  ;;  %v6305_v27 = vmax.f32 %v6011_v38, 0.0  ;;  %v13253_v38 = vld [vmem:[#allocation118_spill] sm:$0xff] }
 0x782   : > { %8822 = vmatprep.mubr.msk.bf16.mxu0 %vm6457_vm2, %v6391_v40  ;;  %v6299_v40 = vmax.f32 %v5987_v17, 0.0  ;;  %v1982_v17 = vadd.f32 %v11926_v6, %v13248_v41  ;;  %v1988_v11 = vadd.f32 %v11926_v6, %v13253_v38 }
 0x783   : > { %v6397_v50 = vpack.c.bf16 %v6306_v30, %v6305_v27  ;;  %v13254_v27 = vld [vmem:[#allocation124_spill] sm:$0xff] }
 0x784   : > { %v6394_v42 = vpack.c.bf16 %v6300_v52, %v6299_v40  ;;  %v13249_v52 = vld [vmem:[#allocation111_spill] sm:$0xff]  ;;  %v6019_v40 = vadd.f32 %v11861_v10, %v1982_v17  ;;  %v6043_v46 = vadd.f32 %v11895_v4, %v1988_v11  ;;  %v1991_v41 = vadd.f32 %v11926_v6, %v13254_v27  ;;  %v13261_v11 = vld [vmem:[#allocation134_spill] sm:$0xff] }
 0x785   : > { %v1984_v0 = vadd.f32 %v11926_v6, %v13249_v52  ;;  %v13256_v52 = vld [vmem:[#allocation122_spill] sm:$0xff] }
 0x786   : > { %v6054_v4 = vadd.f32 %v11897_v35, %v1991_v41 }
 0x787   : > { %v6027_v49 = vadd.f32 %v11879_v13, %v1984_v0 }
 0x789   : > { %8823 = vmatmul.mubr.msk.bf16.gmra.mxu0 %vm6457_vm2, %v6392_v47  ;;  %v12086_v16 = vpop.f32.mrf.mxu0  ;;  %v13246_v47 = vld [vmem:[#allocation110_spill] sm:$0xff]  ;;  %v6309_v10 = vmax.f32 %v6027_v49, 0.0 }
 0x78a   : > { %8826 = vmatprep.mubr.msk.bf16.mxu0 %vm6457_vm2, %v6393_v21  ;;  %v1983_v48 = vadd.f32 %v11926_v6, %v13246_v47  ;;  %v13247_v21 = vld [vmem:[#allocation112_spill] sm:$0xff] }
 0x78b   : > { %v12093_v55 = vpop.f32.mrf.mxu0  ;;  %v1985_v2 = vadd.f32 %v11926_v6, %v13247_v21 }
 0x78c   : > { %v6022_v44 = vadd.f32 %v11869_v43, %v1983_v48  ;;  %v1987_v43 = vadd.f32 %v11926_v6, %v13250_v56 }
 0x78d   : > { %v6030_v34 = vadd.f32 %v11887_v8, %v1985_v2  ;;  %v12104_v19 = vpop.f32.mrf.mxu0  ;;  %v1989_v8 = vadd.f32 %v11926_v6, %v13251_v14  ;;  %v13258_v14 = vld [vmem:[#allocation132_spill] sm:$0xff] }
 0x78e   : > { %v6308_v63 = vmax.f32 %v6022_v44, 0.0  ;;  %v6038_v13 = vadd.f32 %v11881_v9, %v1987_v43  ;;  %v6316_v43 = vmax.f32 %v6054_v4, 0.0 }
 0x78f   : > { %v6310_v60 = vmax.f32 %v6030_v34, 0.0  ;;  %v12111_v36 = vpop.f32.mrf.mxu0  ;;  %v6046_v47 = vadd.f32 %v11903_v61, %v1989_v8  ;;  %v6313_v61 = vmax.f32 %v6043_v46, 0.0  ;;  %v13257_v34 = vld [vmem:[#allocation126_spill] sm:$0xff]  ;;  %v1995_v8 = vadd.f32 %v11926_v6, %v13258_v14 }
 0x790   : > { %v6312_v21 = vmax.f32 %v6038_v13, 0.0 }
 0x791   : > { %8827 = vmatmul.mubr.msk.bf16.gmra.mxu0 %vm6457_vm2, %v6394_v42  ;;  %v6307_v42 = vmax.f32 %v6019_v40, 0.0  ;;  %v6399_v30 = vpack.c.bf16 %v6310_v60, %v6309_v10  ;;  %v6314_v9 = vmax.f32 %v6046_v47, 0.0  ;;  %v1992_v40 = vadd.f32 %v11926_v6, %v13257_v34  ;;  %v13266_v34 = vld [vmem:[#allocation67_spill] sm:$0xff] }
 0x792   : > { %8830 = vmatprep.mubr.msk.bf16.mxu0 %vm6457_vm2, %v6395_v45  ;;  %v1986_v45 = vadd.f32 %v11926_v6, %v13252_v18  ;;  %v6070_v38 = vadd.f32 %v11913_v15, %v1995_v8 }
 0x793   : > { %v6398_v22 = vpack.c.bf16 %v6308_v63, %v6307_v42  ;;  %v6401_v49 = vpack.c.bf16 %v6314_v9, %v6313_v61  ;;  %v6059_v56 = vadd.f32 %v11907_v5, %v1992_v40  ;;  %v13262_v9 = vld [vmem:[#allocation68_spill] sm:$0xff] }
 0x794   : > { %v6035_v48 = vadd.f32 %v11873_v59, %v1986_v45  ;;  %v1990_v59 = vadd.f32 %v11926_v6, %v13256_v52  ;;  %v13259_v45 = vld [vmem:[#allocation136_spill] sm:$0xff]  ;;  %v6320_v41 = vmax.f32 %v6070_v38, 0.0 }
 0x795   : > { %v13264_v52 = vld [vmem:[#allocation144_spill] sm:$0xff] }
 0x796   : > { %v6311_v17 = vmax.f32 %v6035_v48, 0.0  ;;  %v6051_v60 = vadd.f32 %v11889_v62, %v1990_v59  ;;  %v6317_v62 = vmax.f32 %v6059_v56, 0.0  ;;  %v13265_v59 = vld [vmem:[#allocation138_spill] sm:$0xff] }
 0x798   : > { %v6400_v0 = vpack.c.bf16 %v6312_v21, %v6311_v17  ;;  %v6315_v10 = vmax.f32 %v6051_v60, 0.0 }
 0x799   : > { %8831 = vmatmul.mubr.msk.bf16.gmra.mxu0 %vm6457_vm2, %v6396_v37  ;;  %v12118_v24 = vpop.f32.mrf.mxu0  ;;  %v13255_v37 = vld [vmem:[#allocation128_spill] sm:$0xff] }
 0x79a   : > { %8834 = vmatprep.mubr.msk.bf16.mxu0 %vm6457_vm2, %v6397_v50  ;;  %v1993_v44 = vadd.f32 %v11926_v6, %v13255_v37  ;;  %v6402_v5 = vpack.c.bf16 %v6316_v43, %v6315_v10  ;;  %v13263_v37 = vld [vmem:[#allocation140_spill] sm:$0xff]  ;;  %v13268_v43 = vld [vmem:[#allocation217_spill] sm:$0xff] }
 0x79b   : > { %v12127_v2 = vpop.f32.mrf.mxu0  ;;  %v1999_v15 = vadd.f32 %v11926_v6, %v13263_v37 }
 0x79c   : > { %v6062_v63 = vadd.f32 %v11915_v51, %v1993_v44  ;;  %v1997_v51 = vadd.f32 %v11926_v6, %v13259_v45 }
 0x79d   : > { %v12136_v50 = vpop.f32.mrf.mxu0  ;;  %v6086_v40 = vadd.f32 %v13266_v34, %v1999_v15 }
 0x79e   : > { %v6318_v35 = vmax.f32 %v6062_v63, 0.0  ;;  %v6078_v48 = vadd.f32 %v11949_v7, %v1997_v51  ;;  %v2001_v7 = vadd.f32 %v11926_v6, %v13264_v52  ;;  %v13273_v52 = vld [vmem:[#allocation9_spill] sm:$0xff] }
 0x79f   : > { %v12145_v42 = vpop.f32.mrf.mxu0  ;;  %v6324_v10 = vmax.f32 %v6086_v40, 0.0 }
 0x7a0   : > { %v6403_v47 = vpack.c.bf16 %v6318_v35, %v6317_v62  ;;  %v6322_v17 = vmax.f32 %v6078_v48, 0.0  ;;  %v6094_v56 = vadd.f32 %v11981_v57, %v2001_v7  ;;  %v13269_v62 = vld [vmem:[#allocation108_spill] sm:$0xff]  ;;  %v2007_v7 = vadd.f32 %v11926_v6, %v13273_v52 }
 0x7a1   : > { %8835 = vmatmul.mubr.msk.bf16.gmra.mxu0 %vm6457_vm2, %v6398_v22  ;;  %v13260_v22 = vld [vmem:[#allocation130_spill] sm:$0xff] }
 0x7a2   : > { %8838 = vmatprep.mubr.msk.bf16.mxu0 %vm6457_vm2, %v6399_v30  ;;  %v1994_v13 = vadd.f32 %v11926_v6, %v13260_v22  ;;  %v1996_v30 = vadd.f32 %v11926_v6, %v13261_v11  ;;  %v6326_v51 = vmax.f32 %v6094_v56, 0.0  ;;  %v2003_v22 = vadd.f32 %v11926_v6, %v13269_v62  ;;  %v13271_v11 = vld [vmem:[#allocation145_spill] sm:$0xff] }
 0x7a3   : > { %v13277_v62 = vld [vmem:[#allocation17_spill] sm:$0xff] }
 0x7a4   : > { %v6067_v46 = vadd.f32 %v11905_v28, %v1994_v13  ;;  %v6075_v27 = vadd.f32 %v13262_v9, %v1996_v30  ;;  %v2002_v30 = vadd.f32 %v11926_v6, %v13271_v11 }
 0x7a6   : > { %v6319_v44 = vmax.f32 %v6067_v46, 0.0  ;;  %v6321_v28 = vmax.f32 %v6075_v27, 0.0  ;;  %v13272_v46 = vld [vmem:[#allocation3_spill] sm:$0xff] }
 0x7a7   : > { %v2004_v9 = vadd.f32 %v11926_v6, %v13272_v46 }
 0x7a8   : > { %v6404_v4 = vpack.c.bf16 %v6320_v41, %v6319_v44  ;;  %v6405_v60 = vpack.c.bf16 %v6322_v17, %v6321_v28  ;;  %v6099_v17 = vadd.f32 %v11955_v33, %v2002_v30 }
 0x7a9   : > { %8839 = vmatmul.mubr.msk.bf16.gmra.mxu0 %vm6457_vm2, %v6400_v0  ;;  %v12149_v18 = vpop.f32.mrf.mxu0  ;;  %v1998_v0 = vadd.f32 %v11926_v6, %v13265_v59  ;;  %v6107_v37 = vadd.f32 %v11997_v32, %v2004_v9  ;;  %v13274_v59 = vld [vmem:[#allocation13_spill] sm:$0xff]  ;;  %v6118_v32 = vadd.f32 %v12006_v58, %v2007_v7 }
 0x7aa   : > { %8842 = vmatprep.mubr.msk.bf16.mxu0 %vm6457_vm2, %v6401_v49  ;;  %v13267_v49 = vld [vmem:[#allocation142_spill] sm:$0xff]  ;;  %v6327_v28 = vmax.f32 %v6099_v17, 0.0 }
 0x7ab   : > { %v12160_v21 = vpop.f32.mrf.mxu0  ;;  %v2000_v63 = vadd.f32 %v11926_v6, %v13267_v49  ;;  %v6083_v35 = vadd.f32 %v13268_v43, %v1998_v0  ;;  %v2009_v0 = vadd.f32 %v11926_v6, %v13274_v59  ;;  %v13276_v49 = vld [vmem:[#allocation11_spill] sm:$0xff]  ;;  %v6332_v58 = vmax.f32 %v6118_v32, 0.0 }
 0x7ad   : > { %v12167_v61 = vpop.f32.mrf.mxu0  ;;  %v6091_v8 = vadd.f32 %v11963_v31, %v2000_v63  ;;  %v6323_v13 = vmax.f32 %v6083_v35, 0.0  ;;  %v6102_v31 = vadd.f32 %v11974_v25, %v2003_v22  ;;  %v2008_v63 = vadd.f32 %v11926_v6, %v13276_v49 }
 0x7ae   : > { %v6126_v56 = vadd.f32 %v12048_v53, %v2009_v0  ;;  %v2011_v22 = vadd.f32 %v11926_v6, %v13277_v62  ;;  %v13283_v0 = vld [vmem:[#allocation25_spill] sm:$0xff] }
 0x7af   : > { %v12178_v14 = vpop.f32.mrf.mxu0  ;;  %v6325_v38 = vmax.f32 %v6091_v8, 0.0  ;;  %v6328_v15 = vmax.f32 %v6102_v31, 0.0  ;;  %v6123_v8 = vadd.f32 %v12030_v1, %v2008_v63  ;;  %v13280_v31 = vld [vmem:[#allocation19_spill] sm:$0xff]  ;;  %v13285_v63 = vld [vmem:[#allocation113_spill] sm:$0xff] }
 0x7b0   : > { %v6134_v30 = vadd.f32 %v12037_v23, %v2011_v22  ;;  %v2012_v46 = vadd.f32 %v11926_v6, %v13280_v31  ;;  %v13289_v31 = vld [vmem:[#allocation119_spill] sm:$0xff] }
 0x7b1   : > { %8843 = vmatmul.mubr.msk.bf16.gmra.mxu0 %vm6457_vm2, %v6402_v5  ;;  %v13270_v5 = vld [vmem:[#allocation5_spill] sm:$0xff]  ;;  %v6407_v27 = vpack.c.bf16 %v6326_v51, %v6325_v38  ;;  %v6408_v34 = vpack.c.bf16 %v6328_v15, %v6327_v28  ;;  %v6334_v51 = vmax.f32 %v6126_v56, 0.0  ;;  %v13279_v38 = vld [vmem:[#allocation15_spill] sm:$0xff] }
 0x7b2   : > { %8846 = vmatprep.mubr.msk.bf16.mxu0 %vm6457_vm2, %v6403_v47  ;;  %v2005_v57 = vadd.f32 %v11926_v6, %v13270_v5  ;;  %v6406_v47 = vpack.c.bf16 %v6324_v10, %v6323_v13  ;;  %v2010_v1 = vadd.f32 %v11926_v6, %v13279_v38  ;;  %v6139_v23 = vadd.f32 %v12062_v39, %v2012_v46  ;;  %v13281_v15 = vld [vmem:[#allocation125_spill] sm:$0xff]  ;;  %v13282_v28 = vld [vmem:[#allocation115_spill] sm:$0xff] }
 0x7b3   : > { %v6336_v52 = vmax.f32 %v6134_v30, 0.0  ;;  %v2015_v39 = vadd.f32 %v11926_v6, %v13283_v0  ;;  %v13286_v56 = vld [vmem:[#allocation23_spill] sm:$0xff] }
 0x7b4   : > { %v6110_v41 = vadd.f32 %v12015_v26, %v2005_v57  ;;  %v6329_v26 = vmax.f32 %v6107_v37, 0.0  ;;  %v6333_v57 = vmax.f32 %v6123_v8, 0.0  ;;  %v12242_v37 = vld [vmem:[%s12860_s10] ss:$0 sm:$0xff]  ;;  %v6337_v32 = vmax.f32 %v6139_v23, 0.0  ;;  %v13287_v8 = vld [vmem:[#allocation27_spill] sm:$0xff] }
 0x7b5   : > { %v6150_v62 = vadd.f32 %v12071_v29, %v2015_v39  ;;  %v13291_v23 = vld [vmem:[#allocation33_spill] sm:$0xff]  ;;  %v13294_v0 = vld [vmem:[#allocation31_spill] sm:$0xff] }
 0x7b6   : > { %v6330_v25 = vmax.f32 %v6110_v41, 0.0  ;;  %v6411_v9 = vpack.c.bf16 %v6334_v51, %v6333_v57  ;;  %v6131_v41 = vadd.f32 %v12019_v20, %v2010_v1  ;;  %v13288_v57 = vld [vmem:[#allocation117_spill] sm:$0xff]  ;;  %v2018_v39 = vadd.f32 %v11926_v6, %v13294_v0 }
 0x7b7   : > { %v6340_v46 = vmax.f32 %v6150_v62, 0.0  ;;  %v13297_v62 = vld [vmem:[#allocation127_spill] sm:$0xff] }
 0x7b9   : > { %8847 = vmatmul.mubr.msk.bf16.gmra.mxu0 %vm6457_vm2, %v6404_v4  ;;  %v12183_v45 = vpop.f32.mrf.mxu0  ;;  %v13275_v4 = vld [vmem:[#allocation7_spill] sm:$0xff] }
 0x7ba   : > { %8850 = vmatprep.mubr.msk.bf16.mxu0 %vm6457_vm2, %v6405_v60  ;;  %v2006_v33 = vadd.f32 %v11926_v6, %v13275_v4  ;;  %v6409_v60 = vpack.c.bf16 %v6330_v25, %v6329_v26  ;;  %v6335_v26 = vmax.f32 %v6131_v41, 0.0  ;;  %v13290_v41 = vld [vmem:[#allocation121_spill] sm:$0xff] }
 0x7bb   : > { %v12192_v48 = vpop.f32.mrf.mxu0 }
 0x7bc   : > { %v6115_v43 = vadd.f32 %v11988_v12, %v2006_v33  ;;  %v13278_v12 = vld [vmem:[#allocation21_spill] sm:$0xff]  ;;  %v6412_v51 = vpack.c.bf16 %v6336_v52, %v6335_v26  ;;  %v13295_v26 = vld [vmem:[#allocation35_spill] sm:$0xff] }
 0x7bd   : > { %v12201_v44 = vpop.f32.mrf.mxu0  ;;  %v2013_v5 = vadd.f32 %v11926_v6, %v13278_v12  ;;  %v13284_v33 = vld [vmem:[#allocation29_spill] sm:$0xff] }
 0x7be   : > { %v6331_v13 = vmax.f32 %v6115_v43, 0.0  ;;  %v2014_v43 = vadd.f32 %v11926_v6, %v13286_v56  ;;  %v13292_v52 = vld [vmem:[#allocation37_spill] sm:$0xff]  ;;  %v13296_v56 = vld [vmem:[#allocation123_spill] sm:$0xff] }
 0x7bf   : > { %v12210_v40 = vpop.f32.mrf.mxu0 }
 0x7c0   : > { %v6410_v11 = vpack.c.bf16 %v6332_v58, %v6331_v13  ;;  %v2016_v58 = vadd.f32 %v11926_v6, %v13287_v8  ;;  %v6147_v1 = vadd.f32 %v12053_v54, %v2014_v43  ;;  %v6163_v8 = vadd.f32 %v12086_v16, %v2018_v39  ;;  %v13305_v39 = vld [vmem:[#allocation143_spill] sm:$0xff] }
 0x7c1   : > { %8851 = vmatmul.mubr.msk.bf16.gmra.mxu0 %vm6457_vm2, %v6406_v47 }
 0x7c2   : > { %8854 = vmatprep.mubr.msk.bf16.mxu0 %vm6457_vm2, %v6407_v27  ;;  %v6142_v27 = vadd.f32 %v12080_v3, %v2013_v5  ;;  %v6155_v30 = vadd.f32 %v12093_v55, %v2016_v58  ;;  %v2019_v55 = vadd.f32 %v11926_v6, %v13291_v23 }
 0x7c4   : > { %v6338_v3 = vmax.f32 %v6142_v27, 0.0 }
 0x7c6   : > { %v6413_v13 = vpack.c.bf16 %v6338_v3, %v6337_v32  ;;  %v6341_v3 = vmax.f32 %v6155_v30, 0.0  ;;  %v13300_v30 = vld [vmem:[#allocation45_spill] sm:$0xff] }
 0x7c9   : > { %v12216_v35 = vpop.f32.mrf.mxu0  ;;  %8855 = vmatmul.mubr.msk.bf16.gmra.mxu0 %vm6457_vm2, %v6408_v34  ;;  %v2017_v34 = vadd.f32 %v11926_v6, %v13284_v33 }
 0x7ca   : > { %8858 = vmatprep.mubr.msk.bf16.mxu0 %vm6457_vm2, %v6409_v60 }
 0x7cb   : > { %v12221_v10 = vpop.f32.mrf.mxu0  ;;  %v6158_v12 = vadd.f32 %v12111_v36, %v2017_v34  ;;  %v6166_v34 = vadd.f32 %v12104_v19, %v2019_v55 }
 0x7cd   : > { %v12225_v53 = vpop.f32.mrf.mxu0  ;;  %v6342_v27 = vmax.f32 %v6158_v12, 0.0 }
 0x7cf   : > { %v12232_v47 = vpop.f32.mrf.mxu0 }
 0x7d1   : > { %v8764_v17 = vpop.f32.mrf.mxu0  ;;  %8859 = vmatmul.mubr.msk.bf16.gmra.mxu0 %vm6457_vm2, %v6410_v11 }
 0x7d2   : > { %v6693_v25 = vadd.f32 %v8764_v17, %v13281_v15  ;;  %8862 = vmatprep.mubr.msk.bf16.mxu0 %vm6457_vm2, %v6411_v9  ;;  %v6339_v15 = vmax.f32 %v6147_v1, 0.0  ;;  %v6343_v1 = vmax.f32 %v6163_v8, 0.0 }
 0x7d3   : > { %v6684_v20 = vpop.f32.mrf.mxu0 }
 0x7d4   : > { %v7204_v7 = vadd.f32 %v12242_v37, %v6693_v25  ;;  %v6685_v59 = vadd.f32 %v6684_v20, %v13282_v28  ;;  %v2021_v20 = vadd.f32 %v11926_v6, %v13292_v52  ;;  %v13293_v28 = vld [vmem:[#allocation129_spill] sm:$0xff]  ;;  %v6414_v33 = vpack.c.bf16 %v6340_v46, %v6339_v15  ;;  %v13301_v46 = vld [vmem:[#allocation135_spill] sm:$0xff] }
 0x7d5   : > { %v8765_v4 = vpop.f32.mrf.mxu0 }
 0x7d6   : > { %7333 = vst.msk [vmem:[%s12251_s23 + $0x10] sm:$0xff] %vm7330_vm3, %v7204_v7  ;;  %v7202_v49 = vadd.f32 %v12242_v37, %v6685_v59  ;;  %v6696_v60 = vadd.f32 %v8765_v4, %v13285_v63  ;;  %v2020_v4 = vadd.f32 %v11926_v6, %v13295_v26  ;;  %v6174_v63 = vadd.f32 %v12145_v42, %v2021_v20 }
 0x7d7   : > { %v6687_v22 = vpop.f32.mrf.mxu0 }
 0x7d8   : > { %7331 = vst.msk [vmem:[%s12251_s23] sm:$0xff] %vm7330_vm3, %v7202_v49  ;;  %v7205_v5 = vadd.f32 %v12242_v37, %v6696_v60  ;;  %v6688_v38 = vadd.f32 %v6687_v22, %v13288_v57  ;;  %v6415_v49 = vpack.c.bf16 %v6342_v27, %v6341_v3  ;;  %v6344_v22 = vmax.f32 %v6166_v34, 0.0  ;;  %v13302_v27 = vld [vmem:[#allocation39_spill] sm:$0xff]  ;;  %v13306_v34 = vld [vmem:[#allocation137_spill] sm:$0xff] }
 0x7d9   : > { %v8768_v11 = vpop.f32.mrf.mxu0  ;;  %8863 = vmatmul.mubr.msk.bf16.gmra.mxu0 %vm6457_vm2, %v6412_v51  ;;  %v6171_v51 = vadd.f32 %v12127_v2, %v2020_v4  ;;  %v6346_v12 = vmax.f32 %v6174_v63, 0.0  ;;  %v13304_v3 = vld [vmem:[#allocation139_spill] sm:$0xff] }
 0x7da   : > { %7334 = vst.msk [vmem:[%s12251_s23 + $0x18] sm:$0xff] %vm7330_vm3, %v7205_v5  ;;  %v7203_v29 = vadd.f32 %v12242_v37, %v6688_v38  ;;  %v6709_v36 = vadd.f32 %v8768_v11, %v13289_v31  ;;  %8866 = vmatprep.mubr.msk.bf16.mxu0 %vm6457_vm2, %v6413_v13  ;;  %v13298_v5 = vld [vmem:[#allocation131_spill] sm:$0xff]  ;;  %v13299_v38 = vld [vmem:[#allocation41_spill] sm:$0xff]  ;;  %v6416_v23 = vpack.c.bf16 %v6344_v22, %v6343_v1 }
 0x7db   : > { %v6700_v9 = vpop.f32.mrf.mxu0  ;;  %v2023_v2 = vadd.f32 %v11926_v6, %v13299_v38  ;;  %v6345_v31 = vmax.f32 %v6171_v51, 0.0  ;;  %v13309_v51 = vld [vmem:[#allocation141_spill] sm:$0xff]  ;;  %v13311_v22 = vld [vmem:[#allocation51_spill] sm:$0xff] }
 0x7dc   : > { %7332 = vst.msk [vmem:[%s12251_s23 + $0x8] sm:$0xff] %vm7330_vm3, %v7203_v29  ;;  %v7208_v54 = vadd.f32 %v12242_v37, %v6709_v36  ;;  %v6701_v17 = vadd.f32 %v6700_v9, %v13290_v41  ;;  %v2025_v29 = vadd.f32 %v11926_v6, %v13300_v30  ;;  %v13303_v41 = vld [vmem:[#allocation43_spill] sm:$0xff]  ;;  %v13312_v1 = vld [vmem:[#allocation133_spill] sm:$0xff] }
 0x7dd   : > { %v8769_v25 = vpop.f32.mrf.mxu0  ;;  %v6182_v55 = vadd.f32 %v12136_v50, %v2023_v2 }
 0x7de   : > { %7337 = vst.msk [vmem:[%s12251_s23 + $0x30] sm:$0xff] %vm7330_vm3, %v7208_v54  ;;  %v7206_v7 = vadd.f32 %v12242_v37, %v6701_v17  ;;  %v6712_v59 = vadd.f32 %v8769_v25, %v13293_v28  ;;  %v2022_v54 = vadd.f32 %v11926_v6, %v13302_v27  ;;  %v2024_v17 = vadd.f32 %v11926_v6, %v13303_v41 }
 0x7df   : > { %v6703_v32 = vpop.f32.mrf.mxu0  ;;  %v6417_v25 = vpack.c.bf16 %v6346_v12, %v6345_v31  ;;  %v6190_v52 = vadd.f32 %v12178_v14, %v2025_v29  ;;  %v6348_v26 = vmax.f32 %v6182_v55, 0.0 }
 0x7e0   : > { %7335 = vst.msk [vmem:[%s12251_s23 + $0x20] sm:$0xff] %vm7330_vm3, %v7206_v7  ;;  %v7209_v60 = vadd.f32 %v12242_v37, %v6712_v59  ;;  %v6704_v43 = vadd.f32 %v6703_v32, %v13296_v56  ;;  %v6179_v28 = vadd.f32 %v12118_v24, %v2022_v54  ;;  %v6187_v0 = vadd.f32 %v12160_v21, %v2024_v17  ;;  %v13308_v56 = vld [vmem:[#allocation78_spill] sm:$0xff]  ;;  %v13315_v17 = vld [vmem:[#allocation84_spill] sm:$0xff] }
 0x7e1   : > { %v8772_v58 = vpop.f32.mrf.mxu0  ;;  %8867 = vmatmul.mubr.msk.bf16.gmra.mxu0 %vm6457_vm2, %v6414_v33  ;;  %v6350_v33 = vmax.f32 %v6190_v52, 0.0  ;;  %v13314_v54 = vld [vmem:[#allocation146_spill] sm:$0xff] }
 0x7e2   : > { %7338 = vst.msk [vmem:[%s12251_s23 + $0x38] sm:$0xff] %vm7330_vm3, %v7209_v60  ;;  %v7207_v19 = vadd.f32 %v12242_v37, %v6704_v43  ;;  %v6725_v42 = vadd.f32 %v8772_v58, %v13297_v62  ;;  %8870 = vmatprep.mubr.msk.bf16.mxu0 %vm6457_vm2, %v6415_v49  ;;  %v13307_v49 = vld [vmem:[#allocation49_spill] sm:$0xff]  ;;  %v6347_v63 = vmax.f32 %v6179_v28, 0.0  ;;  %v2029_v43 = vadd.f32 %v11926_v6, %v13308_v56  ;;  %v13310_v62 = vld [vmem:[#allocation47_spill] sm:$0xff] }
 0x7e3   : > { %v6716_v13 = vpop.f32.mrf.mxu0  ;;  %v2027_v21 = vadd.f32 %v11926_v6, %v13307_v49  ;;  %v6349_v8 = vmax.f32 %v6187_v0, 0.0  ;;  %v13318_v28 = vld [vmem:[#allocation81_spill] sm:$0xff]  ;;  %v13319_v0 = vld [vmem:[#allocation87_spill] sm:$0xff] }
 0x7e4   : > { %7336 = vst.msk [vmem:[%s12251_s23 + $0x28] sm:$0xff] %vm7330_vm3, %v7207_v19  ;;  %v7212_v16 = vadd.f32 %v12242_v37, %v6725_v42  ;;  %v6717_v57 = vadd.f32 %v6716_v13, %v13298_v5  ;;  %v2026_v42 = vadd.f32 %v11926_v6, %v13310_v62  ;;  %v2028_v13 = vadd.f32 %v11926_v6, %v13311_v22 }
 0x7e5   : > { %v8773_v11 = vpop.f32.mrf.mxu0  ;;  %v6418_v12 = vpack.c.bf16 %v6348_v26, %v6347_v63  ;;  %v6206_v38 = vadd.f32 %v12210_v40, %v2029_v43 }
 0x7e6   : > { %7341 = vst.msk [vmem:[%s12251_s23 + $0x50] sm:$0xff] %vm7330_vm3, %v7212_v16  ;;  %v7210_v36 = vadd.f32 %v12242_v37, %v6717_v57  ;;  %v6728_v9 = vadd.f32 %v8773_v11, %v13301_v46  ;;  %v6198_v16 = vadd.f32 %v12167_v61, %v2027_v21  ;;  %v6419_v57 = vpack.c.bf16 %v6350_v33, %v6349_v8 }
 0x7e7   : > { %v6719_v15 = vpop.f32.mrf.mxu0  ;;  %v6195_v30 = vadd.f32 %v12149_v18, %v2026_v42  ;;  %v6203_v31 = vadd.f32 %v12192_v48, %v2028_v13  ;;  %v6354_v27 = vmax.f32 %v6206_v38, 0.0  ;;  %v2031_v48 = vadd.f32 %v11926_v6, %v13315_v17 }
 0x7e8   : > { %7339 = vst.msk [vmem:[%s12251_s23 + $0x40] sm:$0xff] %vm7330_vm3, %v7210_v36  ;;  %v7213_v20 = vadd.f32 %v12242_v37, %v6728_v9  ;;  %v6720_v7 = vadd.f32 %v6719_v15, %v13304_v3  ;;  %v13313_v36 = vld [vmem:[#allocation148_spill] sm:$0xff]  ;;  %v6352_v46 = vmax.f32 %v6198_v16, 0.0  ;;  %v13316_v15 = vld [vmem:[#allocation90_spill] sm:$0xff]  ;;  %v13317_v3 = vld [vmem:[#allocation149_spill] sm:$0xff] }
 0x7e9   : > { %v8776_v59 = vpop.f32.mrf.mxu0  ;;  %8871 = vmatmul.mubr.msk.bf16.gmra.mxu0 %vm6457_vm2, %v6416_v23  ;;  %v6351_v23 = vmax.f32 %v6195_v30, 0.0  ;;  %v6353_v52 = vmax.f32 %v6203_v31, 0.0 }
 0x7ea   : > { %7342 = vst.msk [vmem:[%s12251_s23 + $0x58] sm:$0xff] %vm7330_vm3, %v7213_v20  ;;  %v7211_v50 = vadd.f32 %v12242_v37, %v6720_v7  ;;  %v6741_v14 = vadd.f32 %v8776_v59, %v13305_v39  ;;  %8874 = vmatprep.mubr.msk.bf16.mxu0 %vm6457_vm2, %v6417_v25  ;;  %v2033_v25 = vadd.f32 %v11926_v6, %v13316_v15 }
 0x7eb   : > { %v6732_v4 = vpop.f32.mrf.mxu0  ;;  %v2030_v59 = vadd.f32 %v11926_v6, %v13318_v28  ;;  %v6420_v39 = vpack.c.bf16 %v6352_v46, %v6351_v23  ;;  %v13331_v28 = vld [vmem:[#allocation160_spill] sm:$0xff] }
 0x7ec   : > { %7340 = vst.msk [vmem:[%s12251_s23 + $0x48] sm:$0xff] %vm7330_vm3, %v7211_v50  ;;  %v7216_v24 = vadd.f32 %v12242_v37, %v6741_v14  ;;  %v6733_v32 = vadd.f32 %v6732_v4, %v13306_v34  ;;  %v2032_v50 = vadd.f32 %v11926_v6, %v13319_v0  ;;  %v6214_v14 = vadd.f32 %v12201_v44, %v2031_v48  ;;  %v13320_v34 = vld [vmem:[#allocation147_spill] sm:$0xff]  ;;  %v13329_v48 = vld [vmem:[#allocation157_spill] sm:$0xff] }
 0x7ed   : > { %v8777_v60 = vpop.f32.mrf.mxu0  ;;  %v6421_v4 = vpack.c.bf16 %v6354_v27, %v6353_v52  ;;  %v6222_v33 = vadd.f32 %v12232_v47, %v2033_v25  ;;  %v6211_v49 = vadd.f32 %v12183_v45, %v2030_v59  ;;  %v13330_v52 = vld [vmem:[#allocation155_spill] sm:$0xff] }
 0x7ee   : > { %7345 = vst.msk [vmem:[%s12251_s23 + $0x70] sm:$0xff] %vm7330_vm3, %v7216_v24  ;;  %v7214_v58 = vadd.f32 %v12242_v37, %v6733_v32  ;;  %v6744_v19 = vadd.f32 %v8777_v60, %v13309_v51  ;;  %v6219_v63 = vadd.f32 %v12221_v10, %v2032_v50  ;;  %v13321_v60 = vld [vmem:[#allocation152_spill] sm:$0xff]  ;;  %v6356_v56 = vmax.f32 %v6214_v14, 0.0 }
 0x7ef   : > { %v6735_v5 = vpop.f32.mrf.mxu0  ;;  %v6358_v8 = vmax.f32 %v6222_v33, 0.0  ;;  %v6355_v62 = vmax.f32 %v6211_v49, 0.0  ;;  %v13333_v33 = vld [vmem:[#allocation161_spill] sm:$0xff]  ;;  %v13334_v49 = vld [vmem:[#allocation159_spill] sm:$0xff] }
 0x7f0   : > { %7343 = vst.msk [vmem:[%s12251_s23 + $0x60] sm:$0xff] %vm7330_vm3, %v7214_v58  ;;  %v7217_v2 = vadd.f32 %v12242_v37, %v6744_v19  ;;  %v6736_v11 = vadd.f32 %v6735_v5, %v13312_v1  ;;  %v13322_v58 = vld [vmem:[#allocation150_spill] sm:$0xff]  ;;  %v13323_v19 = vld [vmem:[#allocation96_spill] sm:$0xff]  ;;  %v6357_v22 = vmax.f32 %v6219_v63, 0.0  ;;  %v13325_v5 = vld [vmem:[#allocation93_spill] sm:$0xff] }
 0x7f1   : > { %v8780_v29 = vpop.f32.mrf.mxu0  ;;  %8875 = vmatmul.mubr.msk.bf16.gmra.mxu0 %vm6457_vm2, %v6418_v12  ;;  %v2035_v10 = vadd.f32 %v11926_v6, %v13323_v19  ;;  %v13324_v12 = vld [vmem:[#allocation153_spill] sm:$0xff]  ;;  %v6422_v38 = vpack.c.bf16 %v6356_v56, %v6355_v62 }
 0x7f2   : > { %7346 = vst.msk [vmem:[%s12251_s23 + $0x78] sm:$0xff] %vm7330_vm3, %v7217_v2  ;;  %v7215_v61 = vadd.f32 %v12242_v37, %v6736_v11  ;;  %v6757_v40 = vadd.f32 %v8780_v29, %v13313_v36  ;;  %8878 = vmatprep.mubr.msk.bf16.mxu0 %vm6457_vm2, %v6419_v57  ;;  %v2034_v57 = vadd.f32 %v11926_v6, %v13325_v5  ;;  %v13326_v29 = vld [vmem:[#allocation151_spill] sm:$0xff]  ;;  %v13337_v19 = vld [vmem:[#allocation165_spill] sm:$0xff]  ;;  %v13339_v5 = vld [vmem:[#allocation168_spill] sm:$0xff] }
 0x7f3   : > { %v6748_v9 = vpop.f32.mrf.mxu0  ;;  %v6230_v2 = vadd.f32 %v12225_v53, %v2035_v10  ;;  %v6423_v11 = vpack.c.bf16 %v6358_v8, %v6357_v22  ;;  %v13327_v53 = vld [vmem:[#allocation156_spill] sm:$0xff]  ;;  %v13336_v8 = vld [vmem:[#allocation162_spill] sm:$0xff]  ;;  %v13338_v22 = vld [vmem:[#allocation163_spill] sm:$0xff] }
 0x7f4   : > { %7344 = vst.msk [vmem:[%s12251_s23 + $0x68] sm:$0xff] %vm7330_vm3, %v7215_v61  ;;  %v7220_v18 = vadd.f32 %v12242_v37, %v6757_v40  ;;  %v6749_v41 = vadd.f32 %v6748_v9, %v13314_v54  ;;  %v6227_v61 = vadd.f32 %v12216_v35, %v2034_v57  ;;  %v13328_v35 = vld [vmem:[#allocation154_spill] sm:$0xff] }
 0x7f5   : > { %v8781_v55 = vpop.f32.mrf.mxu0  ;;  %v6360_v46 = vmax.f32 %v6230_v2, 0.0 }
 0x7f6   : > { %7349 = vst.msk [vmem:[%s12251_s23 + $0x90] sm:$0xff] %vm7330_vm3, %v7220_v18  ;;  %v7218_v20 = vadd.f32 %v12242_v37, %v6749_v41  ;;  %v6760_v7 = vadd.f32 %v8781_v55, %v13317_v3  ;;  %v6359_v54 = vmax.f32 %v6227_v61, 0.0 }
 0x7f7   : > { %v6751_v26 = vpop.f32.mrf.mxu0 }
 0x7f8   : > { %7347 = vst.msk [vmem:[%s12251_s23 + $0x80] sm:$0xff] %vm7330_vm3, %v7218_v20  ;;  %v7221_v24 = vadd.f32 %v12242_v37, %v6760_v7  ;;  %v6752_v32 = vadd.f32 %v6751_v26, %v13320_v34  ;;  %v6424_v55 = vpack.c.bf16 %v6360_v46, %v6359_v54 }
 0x7f9   : > { %v8784_v21 = vpop.f32.mrf.mxu0  ;;  %8879 = vmatmul.mubr.msk.bf16.gmra.mxu0 %vm6457_vm2, %v6420_v39  ;;  %v13332_v39 = vld [vmem:[#allocation158_spill] sm:$0xff] }
 0x7fa   : > { %7350 = vst.msk [vmem:[%s12251_s23 + $0x98] sm:$0xff] %vm7330_vm3, %v7221_v24  ;;  %v7219_v44 = vadd.f32 %v12242_v37, %v6752_v32  ;;  %v6773_v47 = vadd.f32 %v8784_v21, %v13321_v60  ;;  %8882 = vmatprep.mubr.msk.bf16.mxu0 %vm6457_vm2, %v6421_v4  ;;  %v13335_v60 = vld [vmem:[#allocation164_spill] sm:$0xff] }
 0x7fb   : > { %v6764_v43 = vpop.f32.mrf.mxu0 }
 0x7fc   : > { %7348 = vst.msk [vmem:[%s12251_s23 + $0x88] sm:$0xff] %vm7330_vm3, %v7219_v44  ;;  %v7224_v45 = vadd.f32 %v12242_v37, %v6773_v47  ;;  %v6765_v51 = vadd.f32 %v6764_v43, %v13322_v58 }
 0x7fd   : > { %v8785_v42 = vpop.f32.mrf.mxu0 }
 0x7fe   : > { %7353 = vst.msk [vmem:[%s12251_s23 + $0xb0] sm:$0xff] %vm7330_vm3, %v7224_v45  ;;  %v7222_v13 = vadd.f32 %v12242_v37, %v6765_v51  ;;  %v6776_v16 = vadd.f32 %v8785_v42, %v13324_v12 }
 0x7ff   : > { %v6767_v1 = vpop.f32.mrf.mxu0 }
 0x800   : > { %7351 = vst.msk [vmem:[%s12251_s23 + $0xa0] sm:$0xff] %vm7330_vm3, %v7222_v13  ;;  %v7225_v30 = vadd.f32 %v12242_v37, %v6776_v16  ;;  %v6768_v31 = vadd.f32 %v6767_v1, %v13326_v29  ;;  %v13340_v1 = vld [vmem:[#allocation166_spill] sm:$0xff] }
 0x801   : > { %v8788_v36 = vpop.f32.mrf.mxu0  ;;  %8883 = vmatmul.mubr.msk.bf16.gmra.mxu0 %vm6457_vm2, %v6422_v38 }
 0x802   : > { %7354 = vst.msk [vmem:[%s12251_s23 + $0xb8] sm:$0xff] %vm7330_vm3, %v7225_v30  ;;  %v7223_v6 = vadd.f32 %v12242_v37, %v6768_v31  ;;  %v6789_v40 = vadd.f32 %v8788_v36, %v13327_v53  ;;  %8886 = vmatprep.mubr.msk.bf16.mxu0 %vm6457_vm2, %v6423_v11  ;;  %v13341_v31 = vld [vmem:[#allocation169_spill] sm:$0xff]  ;;  %v13342_v53 = vld [vmem:[#allocation167_spill] sm:$0xff] }
 0x803   : > { %v6780_v9 = vpop.f32.mrf.mxu0 }
 0x804   : > { %7352 = vst.msk [vmem:[%s12251_s23 + $0xa8] sm:$0xff] %vm7330_vm3, %v7223_v6  ;;  %v7228_v27 = vadd.f32 %v12242_v37, %v6789_v40  ;;  %v6781_v18 = vadd.f32 %v6780_v9, %v13328_v35 }
 0x805   : > { %v8789_v41 = vpop.f32.mrf.mxu0 }
 0x806   : > { %7357 = vst.msk [vmem:[%s12251_s23 + $0xd0] sm:$0xff] %vm7330_vm3, %v7228_v27  ;;  %v7226_v17 = vadd.f32 %v12242_v37, %v6781_v18  ;;  %v6792_v23 = vadd.f32 %v8789_v41, %v13329_v48  ;;  %v13343_v27 = vld [vmem:[#allocation172_spill] sm:$0xff]  ;;  %v13344_v41 = vld [vmem:[#allocation170_spill] sm:$0xff] }
 0x807   : > { %v6783_v15 = vpop.f32.mrf.mxu0 }
 0x808   : > { %7355 = vst.msk [vmem:[%s12251_s23 + $0xc0] sm:$0xff] %vm7330_vm3, %v7226_v17  ;;  %v7229_v25 = vadd.f32 %v12242_v37, %v6792_v23  ;;  %v6784_v20 = vadd.f32 %v6783_v15, %v13330_v52 }
 0x809   : > { %v8792_v3 = vpop.f32.mrf.mxu0  ;;  %8887 = vmatmul.mubr.msk.bf16.gmra.mxu0 %vm6457_vm2, %v6424_v55  ;;  %v13345_v55 = vld [vmem:[#allocation173_spill] sm:$0xff] }
 0x80a   : > { %7358 = vst.msk [vmem:[%s12251_s23 + $0xd8] sm:$0xff] %vm7330_vm3, %v7229_v25  ;;  %v7227_v7 = vadd.f32 %v12242_v37, %v6784_v20  ;;  %v6805_v59 = vadd.f32 %v8792_v3, %v13331_v28  ;;  %v13346_v20 = vld [vmem:[#allocation171_spill] sm:$0xff] }
 0x80b   : > { %v6796_v0 = vpop.f32.mrf.mxu0 }
 0x80c   : > { %7356 = vst.msk [vmem:[%s12251_s23 + $0xc8] sm:$0xff] %vm7330_vm3, %v7227_v7  ;;  %v7232_v50 = vadd.f32 %v12242_v37, %v6805_v59  ;;  %v6797_v14 = vadd.f32 %v6796_v0, %v13332_v39  ;;  %v13347_v59 = vld [vmem:[#allocation176_spill] sm:$0xff] }
 0x80d   : > { %v8793_v26 = vpop.f32.mrf.mxu0 }
 0x80e   : > { %7361 = vst.msk [vmem:[%s12251_s23 + $0xf0] sm:$0xff] %vm7330_vm3, %v7232_v50  ;;  %v7230_v4 = vadd.f32 %v12242_v37, %v6797_v14  ;;  %v6808_v24 = vadd.f32 %v8793_v26, %v13333_v33  ;;  %v13348_v14 = vld [vmem:[#allocation174_spill] sm:$0xff] }
 0x80f   : > { %v6799_v34 = vpop.f32.mrf.mxu0 }
 0x810   : > { %7359 = vst.msk [vmem:[%s12251_s23 + $0xe0] sm:$0xff] %vm7330_vm3, %v7230_v4  ;;  %v7233_v32 = vadd.f32 %v12242_v37, %v6808_v24  ;;  %v6800_v21 = vadd.f32 %v6799_v34, %v13334_v49  ;;  %v13349_v24 = vld [vmem:[#allocation177_spill] sm:$0xff] }
 0x811   : > { %v8796_v63 = vpop.f32.mrf.mxu0 }
 0x812   : > { %7362 = vst.msk [vmem:[%s12251_s23 + $0xf8] sm:$0xff] %vm7330_vm3, %v7233_v32  ;;  %v7231_v44 = vadd.f32 %v12242_v37, %v6800_v21  ;;  %v6821_v47 = vadd.f32 %v8796_v63, %v13335_v60  ;;  %v13350_v21 = vld [vmem:[#allocation175_spill] sm:$0xff] }
 0x813   : > { %v6812_v56 = vpop.f32.mrf.mxu0 }
 0x814   : > { %7360 = vst.msk [vmem:[%s12251_s23 + $0xe8] sm:$0xff] %vm7330_vm3, %v7231_v44  ;;  %v7236_v43 = vadd.f32 %v12242_v37, %v6821_v47  ;;  %v6813_v45 = vadd.f32 %v6812_v56, %v13336_v8  ;;  %v13351_v47 = vld [vmem:[#allocation180_spill] sm:$0xff] }
 0x815   : > { %v8797_v58 = vpop.f32.mrf.mxu0 }
 0x816   : > { %7365 = vst.msk [vmem:[%s12251_s23 + $0x110] sm:$0xff] %vm7330_vm3, %v7236_v43  ;;  %v7234_v51 = vadd.f32 %v12242_v37, %v6813_v45  ;;  %v6824_v10 = vadd.f32 %v8797_v58, %v13337_v19  ;;  %v13352_v45 = vld [vmem:[#allocation178_spill] sm:$0xff] }
 0x817   : > { %v6815_v62 = vpop.f32.mrf.mxu0 }
 0x818   : > { %7363 = vst.msk [vmem:[%s12251_s23 + $0x100] sm:$0xff] %vm7330_vm3, %v7234_v51  ;;  %v7237_v42 = vadd.f32 %v12242_v37, %v6824_v10  ;;  %v6816_v13 = vadd.f32 %v6815_v62, %v13338_v22  ;;  %v13353_v10 = vld [vmem:[#allocation181_spill] sm:$0xff] }
 0x819   : > { %v8800_v12 = vpop.f32.mrf.mxu0 }
 0x81a   : > { %7366 = vst.msk [vmem:[%s12251_s23 + $0x118] sm:$0xff] %vm7330_vm3, %v7237_v42  ;;  %v7235_v16 = vadd.f32 %v12242_v37, %v6816_v13  ;;  %v6837_v57 = vadd.f32 %v8800_v12, %v13339_v5  ;;  %v13354_v13 = vld [vmem:[#allocation179_spill] sm:$0xff] }
 0x81b   : > { %v6828_v38 = vpop.f32.mrf.mxu0 }
 0x81c   : > { %7364 = vst.msk [vmem:[%s12251_s23 + $0x108] sm:$0xff] %vm7330_vm3, %v7235_v16  ;;  %v7240_v2 = vadd.f32 %v12242_v37, %v6837_v57  ;;  %v6829_v11 = vadd.f32 %v6828_v38, %v13340_v1  ;;  %v13355_v57 = vld [vmem:[#allocation2_spill] sm:$0xff] }
 0x81d   : > { %v8801_v30 = vpop.f32.mrf.mxu0 }
 0x81e   : > { %7369 = vst.msk [vmem:[%s12251_s23 + $0x130] sm:$0xff] %vm7330_vm3, %v7240_v2  ;;  %v7238_v29 = vadd.f32 %v12242_v37, %v6829_v11  ;;  %v6840_v61 = vadd.f32 %v8801_v30, %v13341_v31  ;;  %v13356_v11 = vld [vmem:[#allocation182_spill] sm:$0xff] }
 0x81f   : > { %v6831_v36 = vpop.f32.mrf.mxu0 }
 0x820   : > { %7367 = vst.msk [vmem:[%s12251_s23 + $0x120] sm:$0xff] %vm7330_vm3, %v7238_v29  ;;  %v7241_v6 = vadd.f32 %v12242_v37, %v6840_v61  ;;  %v6832_v40 = vadd.f32 %v6831_v36, %v13342_v53  ;;  %v13357_v61 = vld [vmem:[#allocation8_spill] sm:$0xff] }
 0x821   : > { %v8804_v46 = vpop.f32.mrf.mxu0 }
 0x822   : > { %7370 = vst.msk [vmem:[%s12251_s23 + $0x138] sm:$0xff] %vm7330_vm3, %v7241_v6  ;;  %v7239_v9 = vadd.f32 %v12242_v37, %v6832_v40  ;;  %v6853_v35 = vadd.f32 %v8804_v46, %v13343_v27  ;;  %v13358_v40 = vld [vmem:[#allocation6_spill] sm:$0xff] }
 0x823   : > { %v6844_v18 = vpop.f32.mrf.mxu0 }
 0x824   : > { %7368 = vst.msk [vmem:[%s12251_s23 + $0x128] sm:$0xff] %vm7330_vm3, %v7239_v9  ;;  %v7244_v54 = vadd.f32 %v12242_v37, %v6853_v35  ;;  %v6845_v17 = vadd.f32 %v6844_v18, %v13344_v41  ;;  %v13359_v35 = vld [vmem:[#allocation10_spill] sm:$0xff] }
 0x825   : > { %v8805_v48 = vpop.f32.mrf.mxu0 }
 0x826   : > { %7373 = vst.msk [vmem:[%s12251_s23 + $0x150] sm:$0xff] %vm7330_vm3, %v7244_v54  ;;  %v7242_v23 = vadd.f32 %v12242_v37, %v6845_v17  ;;  %v6856_v15 = vadd.f32 %v8805_v48, %v13345_v55  ;;  %v13360_v17 = vld [vmem:[#allocation4_spill] sm:$0xff] }
 0x827   : > { %v6847_v25 = vpop.f32.mrf.mxu0 }
 0x828   : > { %7371 = vst.msk [vmem:[%s12251_s23 + $0x140] sm:$0xff] %vm7330_vm3, %v7242_v23  ;;  %v7245_v52 = vadd.f32 %v12242_v37, %v6856_v15  ;;  %v6848_v3 = vadd.f32 %v6847_v25, %v13346_v20  ;;  %v13361_v15 = vld [vmem:[#allocation16_spill] sm:$0xff] }
 0x829   : > { %v8808_v7 = vpop.f32.mrf.mxu0 }
 0x82a   : > { %7374 = vst.msk [vmem:[%s12251_s23 + $0x158] sm:$0xff] %vm7330_vm3, %v7245_v52  ;;  %v7243_v28 = vadd.f32 %v12242_v37, %v6848_v3  ;;  %v6869_v0 = vadd.f32 %v8808_v7, %v13347_v59  ;;  %v13362_v3 = vld [vmem:[#allocation14_spill] sm:$0xff] }
 0x82b   : > { %v6860_v50 = vpop.f32.mrf.mxu0 }
 0x82c   : > { %7372 = vst.msk [vmem:[%s12251_s23 + $0x148] sm:$0xff] %vm7330_vm3, %v7243_v28  ;;  %v7248_v39 = vadd.f32 %v12242_v37, %v6869_v0  ;;  %v6861_v26 = vadd.f32 %v6860_v50, %v13348_v14  ;;  %v13363_v0 = vld [vmem:[#allocation18_spill] sm:$0xff] }
 0x82d   : > { %v8809_v4 = vpop.f32.mrf.mxu0 }
 0x82e   : > { %7377 = vst.msk [vmem:[%s12251_s23 + $0x170] sm:$0xff] %vm7330_vm3, %v7248_v39  ;;  %v7246_v33 = vadd.f32 %v12242_v37, %v6861_v26  ;;  %v6872_v34 = vadd.f32 %v8809_v4, %v13349_v24  ;;  %v13364_v26 = vld [vmem:[#allocation12_spill] sm:$0xff] }
 0x82f   : > { %v6863_v32 = vpop.f32.mrf.mxu0 }
 0x830   : > { %7375 = vst.msk [vmem:[%s12251_s23 + $0x160] sm:$0xff] %vm7330_vm3, %v7246_v33  ;;  %v7249_v49 = vadd.f32 %v12242_v37, %v6872_v34  ;;  %v6864_v63 = vadd.f32 %v6863_v32, %v13350_v21  ;;  %v13365_v34 = vld [vmem:[#allocation24_spill] sm:$0xff] }
 0x831   : > { %v8812_v44 = vpop.f32.mrf.mxu0 }
 0x832   : > { %7378 = vst.msk [vmem:[%s12251_s23 + $0x178] sm:$0xff] %vm7330_vm3, %v7249_v49  ;;  %v7247_v60 = vadd.f32 %v12242_v37, %v6864_v63  ;;  %v6885_v56 = vadd.f32 %v8812_v44, %v13351_v47  ;;  %v13366_v63 = vld [vmem:[#allocation22_spill] sm:$0xff] }
 0x833   : > { %v6876_v43 = vpop.f32.mrf.mxu0 }
 0x834   : > { %7376 = vst.msk [vmem:[%s12251_s23 + $0x168] sm:$0xff] %vm7330_vm3, %v7247_v60  ;;  %v7252_v8 = vadd.f32 %v12242_v37, %v6885_v56  ;;  %v6877_v58 = vadd.f32 %v6876_v43, %v13352_v45  ;;  %v13367_v56 = vld [vmem:[#allocation26_spill] sm:$0xff] }
 0x835   : > { %v8813_v51 = vpop.f32.mrf.mxu0 }
 0x836   : > { %7381 = vst.msk [vmem:[%s12251_s23 + $0x190] sm:$0xff] %vm7330_vm3, %v7252_v8  ;;  %v7250_v19 = vadd.f32 %v12242_v37, %v6877_v58  ;;  %v6888_v62 = vadd.f32 %v8813_v51, %v13353_v10  ;;  %v13368_v58 = vld [vmem:[#allocation20_spill] sm:$0xff] }
 0x837   : > { %v6879_v42 = vpop.f32.mrf.mxu0 }
 0x838   : > { %7379 = vst.msk [vmem:[%s12251_s23 + $0x180] sm:$0xff] %vm7330_vm3, %v7250_v19  ;;  %v7253_v22 = vadd.f32 %v12242_v37, %v6888_v62  ;;  %v6880_v12 = vadd.f32 %v6879_v42, %v13354_v13  ;;  %v13369_v62 = vld [vmem:[#allocation32_spill] sm:$0xff] }
 0x839   : > { %v8816_v16 = vpop.f32.mrf.mxu0 }
 0x83a   : > { %7382 = vst.msk [vmem:[%s12251_s23 + $0x198] sm:$0xff] %vm7330_vm3, %v7253_v22  ;;  %v7251_v5 = vadd.f32 %v12242_v37, %v6880_v12  ;;  %v6901_v38 = vadd.f32 %v8816_v16, %v13355_v57  ;;  %v13370_v12 = vld [vmem:[#allocation30_spill] sm:$0xff] }
 0x83b   : > { %v6892_v2 = vpop.f32.mrf.mxu0 }
 0x83c   : > { %7380 = vst.msk [vmem:[%s12251_s23 + $0x188] sm:$0xff] %vm7330_vm3, %v7251_v5  ;;  %v7256_v1 = vadd.f32 %v12242_v37, %v6901_v38  ;;  %v6893_v30 = vadd.f32 %v6892_v2, %v13356_v11  ;;  %v13371_v38 = vld [vmem:[#allocation34_spill] sm:$0xff] }
 0x83d   : > { %v8817_v29 = vpop.f32.mrf.mxu0 }
 0x83e   : > { %7385 = vst.msk [vmem:[%s12251_s23 + $0x1b0] sm:$0xff] %vm7330_vm3, %v7256_v1  ;;  %v7254_v31 = vadd.f32 %v12242_v37, %v6893_v30  ;;  %v6904_v36 = vadd.f32 %v8817_v29, %v13357_v61  ;;  %v13372_v30 = vld [vmem:[#allocation28_spill] sm:$0xff] }
 0x83f   : > { %v6895_v6 = vpop.f32.mrf.mxu0 }
 0x840   : > { %7383 = vst.msk [vmem:[%s12251_s23 + $0x1a0] sm:$0xff] %vm7330_vm3, %v7254_v31  ;;  %v7257_v53 = vadd.f32 %v12242_v37, %v6904_v36  ;;  %v6896_v46 = vadd.f32 %v6895_v6, %v13358_v40  ;;  %v13373_v36 = vld [vmem:[#allocation40_spill] sm:$0xff] }
 0x841   : > { %v8820_v9 = vpop.f32.mrf.mxu0 }
 0x842   : > { %7386 = vst.msk [vmem:[%s12251_s23 + $0x1b8] sm:$0xff] %vm7330_vm3, %v7257_v53  ;;  %v7255_v27 = vadd.f32 %v12242_v37, %v6896_v46  ;;  %v6917_v18 = vadd.f32 %v8820_v9, %v13359_v35  ;;  %v13374_v46 = vld [vmem:[#allocation38_spill] sm:$0xff] }
 0x843   : > { %v6908_v54 = vpop.f32.mrf.mxu0 }
 0x844   : > { %7384 = vst.msk [vmem:[%s12251_s23 + $0x1a8] sm:$0xff] %vm7330_vm3, %v7255_v27  ;;  %v7260_v41 = vadd.f32 %v12242_v37, %v6917_v18  ;;  %v6909_v48 = vadd.f32 %v6908_v54, %v13360_v17  ;;  %v13375_v18 = vld [vmem:[#allocation42_spill] sm:$0xff] }
 0x845   : > { %v8821_v23 = vpop.f32.mrf.mxu0 }
 0x846   : > { %7389 = vst.msk [vmem:[%s12251_s23 + $0x1d0] sm:$0xff] %vm7330_vm3, %v7260_v41  ;;  %v7258_v55 = vadd.f32 %v12242_v37, %v6909_v48  ;;  %v6920_v25 = vadd.f32 %v8821_v23, %v13361_v15  ;;  %v13376_v48 = vld [vmem:[#allocation36_spill] sm:$0xff] }
 0x847   : > { %v6911_v52 = vpop.f32.mrf.mxu0 }
 0x848   : > { %7387 = vst.msk [vmem:[%s12251_s23 + $0x1c0] sm:$0xff] %vm7330_vm3, %v7258_v55  ;;  %v7261_v20 = vadd.f32 %v12242_v37, %v6920_v25  ;;  %v6912_v7 = vadd.f32 %v6911_v52, %v13362_v3  ;;  %v13377_v25 = vld [vmem:[#allocation48_spill] sm:$0xff] }
 0x849   : > { %v8824_v28 = vpop.f32.mrf.mxu0 }
 0x84a   : > { %7390 = vst.msk [vmem:[%s12251_s23 + $0x1d8] sm:$0xff] %vm7330_vm3, %v7261_v20  ;;  %v7259_v59 = vadd.f32 %v12242_v37, %v6912_v7  ;;  %v6933_v50 = vadd.f32 %v8824_v28, %v13363_v0  ;;  %v13378_v7 = vld [vmem:[#allocation46_spill] sm:$0xff] }
 0x84b   : > { %v6924_v39 = vpop.f32.mrf.mxu0 }
 0x84c   : > { %7388 = vst.msk [vmem:[%s12251_s23 + $0x1c8] sm:$0xff] %vm7330_vm3, %v7259_v59  ;;  %v7264_v14 = vadd.f32 %v12242_v37, %v6933_v50  ;;  %v6925_v4 = vadd.f32 %v6924_v39, %v13364_v26  ;;  %v13379_v50 = vld [vmem:[#allocation50_spill] sm:$0xff] }
 0x84d   : > { %v8825_v33 = vpop.f32.mrf.mxu0 }
 0x84e   : > { %7393 = vst.msk [vmem:[%s12251_s23 + $0x1f0] sm:$0xff] %vm7330_vm3, %v7264_v14  ;;  %v7262_v24 = vadd.f32 %v12242_v37, %v6925_v4  ;;  %v6936_v32 = vadd.f32 %v8825_v33, %v13365_v34  ;;  %v13380_v4 = vld [vmem:[#allocation44_spill] sm:$0xff] }
 0x84f   : > { %v6927_v49 = vpop.f32.mrf.mxu0 }
 0x850   : > { %7391 = vst.msk [vmem:[%s12251_s23 + $0x1e0] sm:$0xff] %vm7330_vm3, %v7262_v24  ;;  %v7265_v21 = vadd.f32 %v12242_v37, %v6936_v32  ;;  %v6928_v44 = vadd.f32 %v6927_v49, %v13366_v63  ;;  %v13381_v32 = vld [vmem:[#allocation54_spill] sm:$0xff] }
 0x851   : > { %v8828_v60 = vpop.f32.mrf.mxu0 }
 0x852   : > { %7394 = vst.msk [vmem:[%s12251_s23 + $0x1f8] sm:$0xff] %vm7330_vm3, %v7265_v21  ;;  %v7263_v47 = vadd.f32 %v12242_v37, %v6928_v44  ;;  %v6949_v43 = vadd.f32 %v8828_v60, %v13367_v56  ;;  %v13382_v44 = vld [vmem:[#allocation53_spill] sm:$0xff] }
 0x853   : > { %v6940_v8 = vpop.f32.mrf.mxu0 }
 0x854   : > { %7392 = vst.msk [vmem:[%s12251_s23 + $0x1e8] sm:$0xff] %vm7330_vm3, %v7263_v47  ;;  %v7268_v45 = vadd.f32 %v12242_v37, %v6949_v43  ;;  %v6941_v51 = vadd.f32 %v6940_v8, %v13368_v58  ;;  %v13383_v43 = vld [vmem:[#allocation55_spill] sm:$0xff] }
 0x855   : > { %v8829_v19 = vpop.f32.mrf.mxu0 }
 0x856   : > { %7397 = vst.msk [vmem:[%s12251_s23 + $0x210] sm:$0xff] %vm7330_vm3, %v7268_v45  ;;  %v7266_v10 = vadd.f32 %v12242_v37, %v6941_v51  ;;  %v6952_v42 = vadd.f32 %v8829_v19, %v13369_v62  ;;  %v13384_v51 = vld [vmem:[#allocation52_spill] sm:$0xff] }
 0x857   : > { %v6943_v22 = vpop.f32.mrf.mxu0 }
 0x858   : > { %7395 = vst.msk [vmem:[%s12251_s23 + $0x200] sm:$0xff] %vm7330_vm3, %v7266_v10  ;;  %v7269_v13 = vadd.f32 %v12242_v37, %v6952_v42  ;;  %v6944_v16 = vadd.f32 %v6943_v22, %v13370_v12  ;;  %v13385_v42 = vld [vmem:[#allocation58_spill] sm:$0xff] }
 0x859   : > { %v8832_v5 = vpop.f32.mrf.mxu0 }
 0x85a   : > { %7398 = vst.msk [vmem:[%s12251_s23 + $0x218] sm:$0xff] %vm7330_vm3, %v7269_v13  ;;  %v7267_v57 = vadd.f32 %v12242_v37, %v6944_v16  ;;  %v6965_v2 = vadd.f32 %v8832_v5, %v13371_v38  ;;  %v13386_v16 = vld [vmem:[#allocation57_spill] sm:$0xff] }
 0x85b   : > { %v6956_v1 = vpop.f32.mrf.mxu0 }
 0x85c   : > { %7396 = vst.msk [vmem:[%s12251_s23 + $0x208] sm:$0xff] %vm7330_vm3, %v7267_v57  ;;  %v7272_v11 = vadd.f32 %v12242_v37, %v6965_v2  ;;  %v6957_v29 = vadd.f32 %v6956_v1, %v13372_v30  ;;  %v13387_v2 = vld [vmem:[#allocation59_spill] sm:$0xff] }
 0x85d   : > { %v8833_v31 = vpop.f32.mrf.mxu0 }
 0x85e   : > { %7401 = vst.msk [vmem:[%s12251_s23 + $0x230] sm:$0xff] %vm7330_vm3, %v7272_v11  ;;  %v7270_v61 = vadd.f32 %v12242_v37, %v6957_v29  ;;  %v6968_v6 = vadd.f32 %v8833_v31, %v13373_v36  ;;  %v13388_v29 = vld [vmem:[#allocation56_spill] sm:$0xff] }
 0x85f   : > { %v6959_v53 = vpop.f32.mrf.mxu0 }
 0x860   : > { %7399 = vst.msk [vmem:[%s12251_s23 + $0x220] sm:$0xff] %vm7330_vm3, %v7270_v61  ;;  %v7273_v40 = vadd.f32 %v12242_v37, %v6968_v6  ;;  %v6960_v9 = vadd.f32 %v6959_v53, %v13374_v46  ;;  %v13389_v6 = vld [vmem:[#allocation62_spill] sm:$0xff] }
 0x861   : > { %v8836_v27 = vpop.f32.mrf.mxu0 }
 0x862   : > { %7402 = vst.msk [vmem:[%s12251_s23 + $0x238] sm:$0xff] %vm7330_vm3, %v7273_v40  ;;  %v7271_v35 = vadd.f32 %v12242_v37, %v6960_v9  ;;  %v6981_v54 = vadd.f32 %v8836_v27, %v13375_v18  ;;  %v13390_v9 = vld [vmem:[#allocation61_spill] sm:$0xff] }
 0x863   : > { %v6972_v41 = vpop.f32.mrf.mxu0 }
 0x864   : > { %7400 = vst.msk [vmem:[%s12251_s23 + $0x228] sm:$0xff] %vm7330_vm3, %v7271_v35  ;;  %v7276_v17 = vadd.f32 %v12242_v37, %v6981_v54  ;;  %v6973_v23 = vadd.f32 %v6972_v41, %v13376_v48  ;;  %v13391_v54 = vld [vmem:[#allocation63_spill] sm:$0xff] }
 0x865   : > { %v8837_v55 = vpop.f32.mrf.mxu0 }
 0x866   : > { %7405 = vst.msk [vmem:[%s12251_s23 + $0x250] sm:$0xff] %vm7330_vm3, %v7276_v17  ;;  %v7274_v15 = vadd.f32 %v12242_v37, %v6973_v23  ;;  %v6984_v52 = vadd.f32 %v8837_v55, %v13377_v25  ;;  %v13392_v23 = vld [vmem:[#allocation60_spill] sm:$0xff] }
 0x867   : > { %v6975_v20 = vpop.f32.mrf.mxu0 }
 0x868   : > { %7403 = vst.msk [vmem:[%s12251_s23 + $0x240] sm:$0xff] %vm7330_vm3, %v7274_v15  ;;  %v7277_v3 = vadd.f32 %v12242_v37, %v6984_v52  ;;  %v6976_v28 = vadd.f32 %v6975_v20, %v13378_v7  ;;  %v13393_v52 = vld [vmem:[#allocation66_spill] sm:$0xff] }
 0x869   : > { %v8840_v59 = vpop.f32.mrf.mxu0 }
 0x86a   : > { %7406 = vst.msk [vmem:[%s12251_s23 + $0x258] sm:$0xff] %vm7330_vm3, %v7277_v3  ;;  %v7275_v0 = vadd.f32 %v12242_v37, %v6976_v28  ;;  %v6997_v39 = vadd.f32 %v8840_v59, %v13379_v50  ;;  %v13394_v28 = vld [vmem:[#allocation65_spill] sm:$0xff] }
 0x86b   : > { %v6988_v14 = vpop.f32.mrf.mxu0 }
 0x86c   : > { %7404 = vst.msk [vmem:[%s12251_s23 + $0x248] sm:$0xff] %vm7330_vm3, %v7275_v0  ;;  %v7280_v26 = vadd.f32 %v12242_v37, %v6997_v39  ;;  %v6989_v33 = vadd.f32 %v6988_v14, %v13380_v4  ;;  %v13395_v39 = vld [vmem:[#allocation184_spill] sm:$0xff] }
 0x86d   : > { %v8841_v24 = vpop.f32.mrf.mxu0 }
 0x86e   : > { %7409 = vst.msk [vmem:[%s12251_s23 + $0x270] sm:$0xff] %vm7330_vm3, %v7280_v26  ;;  %v7278_v34 = vadd.f32 %v12242_v37, %v6989_v33  ;;  %v7000_v49 = vadd.f32 %v8841_v24, %v13381_v32  ;;  %v13396_v33 = vld [vmem:[#allocation64_spill] sm:$0xff] }
 0x86f   : > { %v6991_v21 = vpop.f32.mrf.mxu0 }
 0x870   : > { %7407 = vst.msk [vmem:[%s12251_s23 + $0x260] sm:$0xff] %vm7330_vm3, %v7278_v34  ;;  %v7281_v63 = vadd.f32 %v12242_v37, %v7000_v49  ;;  %v6992_v60 = vadd.f32 %v6991_v21, %v13382_v44  ;;  %v13397_v49 = vld [vmem:[#allocation185_spill] sm:$0xff] }
 0x871   : > { %v8844_v47 = vpop.f32.mrf.mxu0 }
 0x872   : > { %7410 = vst.msk [vmem:[%s12251_s23 + $0x278] sm:$0xff] %vm7330_vm3, %v7281_v63  ;;  %v7279_v56 = vadd.f32 %v12242_v37, %v6992_v60  ;;  %v7013_v8 = vadd.f32 %v8844_v47, %v13383_v43  ;;  %v13398_v60 = vld [vmem:[#allocation183_spill] sm:$0xff] }
 0x873   : > { %v7004_v45 = vpop.f32.mrf.mxu0 }
 0x874   : > { %7408 = vst.msk [vmem:[%s12251_s23 + $0x268] sm:$0xff] %vm7330_vm3, %v7279_v56  ;;  %v7284_v58 = vadd.f32 %v12242_v37, %v7013_v8  ;;  %v7005_v19 = vadd.f32 %v7004_v45, %v13384_v51  ;;  %v13399_v8 = vld [vmem:[#allocation188_spill] sm:$0xff] }
 0x875   : > { %v8845_v10 = vpop.f32.mrf.mxu0 }
 0x876   : > { %7413 = vst.msk [vmem:[%s12251_s23 + $0x290] sm:$0xff] %vm7330_vm3, %v7284_v58  ;;  %v7282_v62 = vadd.f32 %v12242_v37, %v7005_v19  ;;  %v7016_v22 = vadd.f32 %v8845_v10, %v13385_v42  ;;  %v13400_v19 = vld [vmem:[#allocation186_spill] sm:$0xff] }
 0x877   : > { %v7007_v13 = vpop.f32.mrf.mxu0 }
 0x878   : > { %7411 = vst.msk [vmem:[%s12251_s23 + $0x280] sm:$0xff] %vm7330_vm3, %v7282_v62  ;;  %v7285_v12 = vadd.f32 %v12242_v37, %v7016_v22  ;;  %v7008_v5 = vadd.f32 %v7007_v13, %v13386_v16  ;;  %v13401_v22 = vld [vmem:[#allocation189_spill] sm:$0xff] }
 0x879   : > { %v8848_v57 = vpop.f32.mrf.mxu0 }
 0x87a   : > { %7414 = vst.msk [vmem:[%s12251_s23 + $0x298] sm:$0xff] %vm7330_vm3, %v7285_v12  ;;  %v7283_v38 = vadd.f32 %v12242_v37, %v7008_v5  ;;  %v7029_v1 = vadd.f32 %v8848_v57, %v13387_v2  ;;  %v13402_v5 = vld [vmem:[#allocation187_spill] sm:$0xff] }
 0x87b   : > { %v7020_v11 = vpop.f32.mrf.mxu0 }
 0x87c   : > { %7412 = vst.msk [vmem:[%s12251_s23 + $0x288] sm:$0xff] %vm7330_vm3, %v7283_v38  ;;  %v7288_v30 = vadd.f32 %v12242_v37, %v7029_v1  ;;  %v7021_v31 = vadd.f32 %v7020_v11, %v13388_v29  ;;  %v13403_v1 = vld [vmem:[#allocation192_spill] sm:$0xff] }
 0x87d   : > { %v8849_v61 = vpop.f32.mrf.mxu0 }
 0x87e   : > { %7417 = vst.msk [vmem:[%s12251_s23 + $0x2b0] sm:$0xff] %vm7330_vm3, %v7288_v30  ;;  %v7286_v36 = vadd.f32 %v12242_v37, %v7021_v31  ;;  %v7032_v53 = vadd.f32 %v8849_v61, %v13389_v6  ;;  %v13404_v31 = vld [vmem:[#allocation190_spill] sm:$0xff] }
 0x87f   : > { %v7023_v40 = vpop.f32.mrf.mxu0 }
 0x880   : > { %7415 = vst.msk [vmem:[%s12251_s23 + $0x2a0] sm:$0xff] %vm7330_vm3, %v7286_v36  ;;  %v7289_v46 = vadd.f32 %v12242_v37, %v7032_v53  ;;  %v7024_v27 = vadd.f32 %v7023_v40, %v13390_v9  ;;  %v13405_v53 = vld [vmem:[#allocation193_spill] sm:$0xff]  ;;  %v12743_v9 = vld [vmem:[%s12860_s10] ss:$0 sm:$0xff] }
 0x881   : > { %v8852_v35 = vpop.f32.mrf.mxu0 }
 0x882   : > { %7418 = vst.msk [vmem:[%s12251_s23 + $0x2b8] sm:$0xff] %vm7330_vm3, %v7289_v46  ;;  %v7287_v18 = vadd.f32 %v12242_v37, %v7024_v27  ;;  %v7045_v41 = vadd.f32 %v8852_v35, %v13391_v54  ;;  %v13406_v35 = vld [vmem:[#allocation191_spill] sm:$0xff] }
 0x883   : > { %v7036_v17 = vpop.f32.mrf.mxu0 }
 0x884   : > { %7416 = vst.msk [vmem:[%s12251_s23 + $0x2a8] sm:$0xff] %vm7330_vm3, %v7287_v18  ;;  %v7292_v48 = vadd.f32 %v12242_v37, %v7045_v41  ;;  %v7037_v55 = vadd.f32 %v7036_v17, %v13392_v23  ;;  %v13407_v41 = vld [vmem:[#allocation196_spill] sm:$0xff] }
 0x885   : > { %v8853_v15 = vpop.f32.mrf.mxu0 }
 0x886   : > { %7421 = vst.msk [vmem:[%s12251_s23 + $0x2d0] sm:$0xff] %vm7330_vm3, %v7292_v48  ;;  %v7290_v25 = vadd.f32 %v12242_v37, %v7037_v55  ;;  %v7048_v20 = vadd.f32 %v8853_v15, %v13393_v52  ;;  %v13408_v55 = vld [vmem:[#allocation194_spill] sm:$0xff] }
 0x887   : > { %v7039_v3 = vpop.f32.mrf.mxu0 }
 0x888   : > { %7419 = vst.msk [vmem:[%s12251_s23 + $0x2c0] sm:$0xff] %vm7330_vm3, %v7290_v25  ;;  %v7293_v7 = vadd.f32 %v12242_v37, %v7048_v20  ;;  %v7040_v59 = vadd.f32 %v7039_v3, %v13394_v28  ;;  %v13409_v20 = vld [vmem:[#allocation197_spill] sm:$0xff] }
 0x889   : > { %v8856_v0 = vpop.f32.mrf.mxu0 }
 0x88a   : > { %7422 = vst.msk [vmem:[%s12251_s23 + $0x2d8] sm:$0xff] %vm7330_vm3, %v7293_v7  ;;  %v7291_v50 = vadd.f32 %v12242_v37, %v7040_v59  ;;  %v7061_v14 = vadd.f32 %v8856_v0, %v13395_v39  ;;  %v13410_v59 = vld [vmem:[#allocation195_spill] sm:$0xff] }
 0x88b   : > { %v7052_v26 = vpop.f32.mrf.mxu0 }
 0x88c   : > { %7420 = vst.msk [vmem:[%s12251_s23 + $0x2c8] sm:$0xff] %vm7330_vm3, %v7291_v50  ;;  %v7296_v4 = vadd.f32 %v12242_v37, %v7061_v14  ;;  %v7053_v24 = vadd.f32 %v7052_v26, %v13396_v33  ;;  %v13411_v14 = vld [vmem:[#allocation200_spill] sm:$0xff] }
 0x88d   : > { %v8857_v34 = vpop.f32.mrf.mxu0 }
 0x88e   : > { %7425 = vst.msk [vmem:[%s12251_s23 + $0x2f0] sm:$0xff] %vm7330_vm3, %v7296_v4  ;;  %v7294_v32 = vadd.f32 %v12242_v37, %v7053_v24  ;;  %v7064_v21 = vadd.f32 %v8857_v34, %v13397_v49  ;;  %v13412_v24 = vld [vmem:[#allocation198_spill] sm:$0xff] }
 0x88f   : > { %v7055_v63 = vpop.f32.mrf.mxu0 }
 0x890   : > { %7423 = vst.msk [vmem:[%s12251_s23 + $0x2e0] sm:$0xff] %vm7330_vm3, %v7294_v32  ;;  %v7297_v44 = vadd.f32 %v12242_v37, %v7064_v21  ;;  %v7056_v47 = vadd.f32 %v7055_v63, %v13398_v60  ;;  %v13413_v21 = vld [vmem:[#allocation201_spill] sm:$0xff] }
 0x891   : > { %v8860_v56 = vpop.f32.mrf.mxu0 }
 0x892   : > { %7426 = vst.msk [vmem:[%s12251_s23 + $0x2f8] sm:$0xff] %vm7330_vm3, %v7297_v44  ;;  %v7295_v43 = vadd.f32 %v12242_v37, %v7056_v47  ;;  %v7077_v45 = vadd.f32 %v8860_v56, %v13399_v8  ;;  %v13414_v47 = vld [vmem:[#allocation199_spill] sm:$0xff] }
 0x893   : > { %v7068_v58 = vpop.f32.mrf.mxu0 }
 0x894   : > { %7424 = vst.msk [vmem:[%s12251_s23 + $0x2e8] sm:$0xff] %vm7330_vm3, %v7295_v43  ;;  %v7300_v51 = vadd.f32 %v12242_v37, %v7077_v45  ;;  %v7069_v10 = vadd.f32 %v7068_v58, %v13400_v19  ;;  %v13415_v45 = vld [vmem:[#allocation204_spill] sm:$0xff] }
 0x895   : > { %v8861_v62 = vpop.f32.mrf.mxu0 }
 0x896   : > { %7429 = vst.msk [vmem:[%s12251_s23 + $0x310] sm:$0xff] %vm7330_vm3, %v7300_v51  ;;  %v7298_v42 = vadd.f32 %v12242_v37, %v7069_v10  ;;  %v7080_v13 = vadd.f32 %v8861_v62, %v13401_v22  ;;  %v13416_v10 = vld [vmem:[#allocation202_spill] sm:$0xff] }
 0x897   : > { %v7071_v12 = vpop.f32.mrf.mxu0 }
 0x898   : > { %7427 = vst.msk [vmem:[%s12251_s23 + $0x300] sm:$0xff] %vm7330_vm3, %v7298_v42  ;;  %v7301_v16 = vadd.f32 %v12242_v37, %v7080_v13  ;;  %v7072_v57 = vadd.f32 %v7071_v12, %v13402_v5  ;;  %v13417_v13 = vld [vmem:[#allocation205_spill] sm:$0xff] }
 0x899   : > { %v8864_v38 = vpop.f32.mrf.mxu0 }
 0x89a   : > { %7430 = vst.msk [vmem:[%s12251_s23 + $0x318] sm:$0xff] %vm7330_vm3, %v7301_v16  ;;  %v7299_v2 = vadd.f32 %v12242_v37, %v7072_v57  ;;  %v7093_v11 = vadd.f32 %v8864_v38, %v13403_v1  ;;  %v13418_v57 = vld [vmem:[#allocation203_spill] sm:$0xff] }
 0x89b   : > { %v7084_v30 = vpop.f32.mrf.mxu0 }
 0x89c   : > { %7428 = vst.msk [vmem:[%s12251_s23 + $0x308] sm:$0xff] %vm7330_vm3, %v7299_v2  ;;  %v7304_v29 = vadd.f32 %v12242_v37, %v7093_v11  ;;  %v7085_v61 = vadd.f32 %v7084_v30, %v13404_v31  ;;  %v13419_v11 = vld [vmem:[#allocation208_spill] sm:$0xff] }
 0x89d   : > { %v8865_v36 = vpop.f32.mrf.mxu0 }
 0x89e   : > { %7433 = vst.msk [vmem:[%s12251_s23 + $0x330] sm:$0xff] %vm7330_vm3, %v7304_v29  ;;  %v7302_v6 = vadd.f32 %v12242_v37, %v7085_v61  ;;  %v7096_v40 = vadd.f32 %v8865_v36, %v13405_v53  ;;  %v13420_v61 = vld [vmem:[#allocation206_spill] sm:$0xff] }
 0x89f   : > { %v7087_v46 = vpop.f32.mrf.mxu0 }
 0x8a0   : > { %7431 = vst.msk [vmem:[%s12251_s23 + $0x320] sm:$0xff] %vm7330_vm3, %v7302_v6  ;;  %v7305_v27 = vadd.f32 %v12743_v9, %v7096_v40  ;;  %v7088_v18 = vadd.f32 %v7087_v46, %v13406_v35  ;;  %v13421_v40 = vld [vmem:[#allocation209_spill] sm:$0xff] }
 0x8a1   : > { %v8868_v54 = vpop.f32.mrf.mxu0 }
 0x8a2   : > { %7434 = vst.msk [vmem:[%s12251_s23 + $0x338] sm:$0xff] %vm7330_vm3, %v7305_v27  ;;  %v7303_v37 = vadd.f32 %v12743_v9, %v7088_v18  ;;  %v7109_v17 = vadd.f32 %v8868_v54, %v13407_v41  ;;  %v13422_v18 = vld [vmem:[#allocation207_spill] sm:$0xff] }
 0x8a3   : > { %v7100_v48 = vpop.f32.mrf.mxu0 }
 0x8a4   : > { %7432 = vst.msk [vmem:[%s12251_s23 + $0x328] sm:$0xff] %vm7330_vm3, %v7303_v37  ;;  %v7308_v23 = vadd.f32 %v12743_v9, %v7109_v17  ;;  %v7101_v15 = vadd.f32 %v7100_v48, %v13408_v55  ;;  %v13423_v17 = vld [vmem:[#allocation212_spill] sm:$0xff] }
 0x8a5   : > { %v8869_v25 = vpop.f32.mrf.mxu0 }
 0x8a6   : > { %7437 = vst.msk [vmem:[%s12251_s23 + $0x350] sm:$0xff] %vm7330_vm3, %v7308_v23  ;;  %v7306_v52 = vadd.f32 %v12743_v9, %v7101_v15  ;;  %v7112_v3 = vadd.f32 %v8869_v25, %v13409_v20  ;;  %v13424_v15 = vld [vmem:[#allocation210_spill] sm:$0xff] }
 0x8a7   : > { %v7103_v7 = vpop.f32.mrf.mxu0 }
 0x8a8   : > { %7435 = vst.msk [vmem:[%s12251_s23 + $0x340] sm:$0xff] %vm7330_vm3, %v7306_v52  ;;  %v7309_v28 = vadd.f32 %v12743_v9, %v7112_v3  ;;  %v7104_v0 = vadd.f32 %v7103_v7, %v13410_v59  ;;  %v13425_v3 = vld [vmem:[#allocation213_spill] sm:$0xff] }
 0x8a9   : > { %v8872_v50 = vpop.f32.mrf.mxu0 }
 0x8aa   : > { %7438 = vst.msk [vmem:[%s12251_s23 + $0x358] sm:$0xff] %vm7330_vm3, %v7309_v28  ;;  %v7307_v39 = vadd.f32 %v12743_v9, %v7104_v0  ;;  %v7125_v26 = vadd.f32 %v8872_v50, %v13411_v14  ;;  %v13426_v0 = vld [vmem:[#allocation211_spill] sm:$0xff] }
 0x8ab   : > { %v7116_v4 = vpop.f32.mrf.mxu0 }
 0x8ac   : > { %7436 = vst.msk [vmem:[%s12251_s23 + $0x348] sm:$0xff] %vm7330_vm3, %v7307_v39  ;;  %v7312_v33 = vadd.f32 %v12743_v9, %v7125_v26  ;;  %v7117_v34 = vadd.f32 %v7116_v4, %v13412_v24  ;;  %v13427_v26 = vld [vmem:[#allocation216_spill] sm:$0xff] }
 0x8ad   : > { %v8873_v32 = vpop.f32.mrf.mxu0 }
 0x8ae   : > { %7441 = vst.msk [vmem:[%s12251_s23 + $0x370] sm:$0xff] %vm7330_vm3, %v7312_v33  ;;  %v7310_v49 = vadd.f32 %v12743_v9, %v7117_v34  ;;  %v7128_v63 = vadd.f32 %v8873_v32, %v13413_v21  ;;  %v13428_v34 = vld [vmem:[#allocation214_spill] sm:$0xff] }
 0x8af   : > { %v7119_v44 = vpop.f32.mrf.mxu0 }
 0x8b0   : > { %7439 = vst.msk [vmem:[%s12251_s23 + $0x360] sm:$0xff] %vm7330_vm3, %v7310_v49  ;;  %v7313_v60 = vadd.f32 %v12743_v9, %v7128_v63  ;;  %v7120_v56 = vadd.f32 %v7119_v44, %v13414_v47  ;;  %v5294_v49 = vpop.f32.mrf.mxu1 }
 0x8b1   : > { %v8876_v43 = vpop.f32.mrf.mxu0 }
 0x8b2   : > { %7442 = vst.msk [vmem:[%s12251_s23 + $0x378] sm:$0xff] %vm7330_vm3, %v7313_v60  ;;  %v7311_v8 = vadd.f32 %v12743_v9, %v7120_v56  ;;  %v7141_v58 = vadd.f32 %v8876_v43, %v13415_v45  ;;  %v13429_v56 = vld [vmem:[#allocation215_spill] sm:$0xff] }
 0x8b3   : > { %v7132_v51 = vpop.f32.mrf.mxu0 }
 0x8b4   : > { %7440 = vst.msk [vmem:[%s12251_s23 + $0x368] sm:$0xff] %vm7330_vm3, %v7311_v8  ;;  %v7316_v19 = vadd.f32 %v12743_v9, %v7141_v58  ;;  %v7133_v62 = vadd.f32 %v7132_v51, %v13416_v10 }
 0x8b5   : > { %v8877_v42 = vpop.f32.mrf.mxu0 }
 0x8b6   : > { %7445 = vst.msk [vmem:[%s12251_s23 + $0x390] sm:$0xff] %vm7330_vm3, %v7316_v19  ;;  %v7314_v22 = vadd.f32 %v12743_v9, %v7133_v62  ;;  %v7144_v12 = vadd.f32 %v8877_v42, %v13417_v13 }
 0x8b7   : > { %v7135_v16 = vpop.f32.mrf.mxu0 }
 0x8b8   : > { %7443 = vst.msk [vmem:[%s12251_s23 + $0x380] sm:$0xff] %vm7330_vm3, %v7314_v22  ;;  %v7317_v5 = vadd.f32 %v12743_v9, %v7144_v12  ;;  %v7136_v38 = vadd.f32 %v7135_v16, %v13418_v57 }
 0x8b9   : > { %v8880_v2 = vpop.f32.mrf.mxu0 }
 0x8ba   : > { %7446 = vst.msk [vmem:[%s12251_s23 + $0x398] sm:$0xff] %vm7330_vm3, %v7317_v5  ;;  %v7315_v1 = vadd.f32 %v12743_v9, %v7136_v38  ;;  %v7157_v30 = vadd.f32 %v8880_v2, %v13419_v11 }
 0x8bb   : > { %v7148_v29 = vpop.f32.mrf.mxu0 }
 0x8bc   : > { %7444 = vst.msk [vmem:[%s12251_s23 + $0x388] sm:$0xff] %vm7330_vm3, %v7315_v1  ;;  %v7320_v31 = vadd.f32 %v12743_v9, %v7157_v30  ;;  %v7149_v36 = vadd.f32 %v7148_v29, %v13420_v61 }
 0x8bd   : > { %v8881_v6 = vpop.f32.mrf.mxu0 }
 0x8be   : > { %7449 = vst.msk [vmem:[%s12251_s23 + $0x3b0] sm:$0xff] %vm7330_vm3, %v7320_v31  ;;  %v7318_v53 = vadd.f32 %v12743_v9, %v7149_v36  ;;  %v7160_v46 = vadd.f32 %v8881_v6, %v13421_v40 }
 0x8bf   : > { %v7151_v27 = vpop.f32.mrf.mxu0 }
 0x8c0   : > { %7447 = vst.msk [vmem:[%s12251_s23 + $0x3a0] sm:$0xff] %vm7330_vm3, %v7318_v53  ;;  %v7321_v35 = vadd.f32 %v12743_v9, %v7160_v46  ;;  %v7152_v54 = vadd.f32 %v7151_v27, %v13422_v18 }
 0x8c1   : > { %v8884_v37 = vpop.f32.mrf.mxu0 }
 0x8c2   : > { %7450 = vst.msk [vmem:[%s12251_s23 + $0x3b8] sm:$0xff] %vm7330_vm3, %v7321_v35  ;;  %v7319_v41 = vadd.f32 %v12743_v9, %v7152_v54  ;;  %v7173_v48 = vadd.f32 %v8884_v37, %v13423_v17 }
 0x8c3   : > { %v7164_v23 = vpop.f32.mrf.mxu0 }
 0x8c4   : > { %7448 = vst.msk [vmem:[%s12251_s23 + $0x3a8] sm:$0xff] %vm7330_vm3, %v7319_v41  ;;  %v7324_v55 = vadd.f32 %v12743_v9, %v7173_v48  ;;  %v7165_v25 = vadd.f32 %v7164_v23, %v13424_v15 }
 0x8c5   : > { %v8885_v52 = vpop.f32.mrf.mxu0 }
 0x8c6   : > { %7453 = vst.msk [vmem:[%s12251_s23 + $0x3d0] sm:$0xff] %vm7330_vm3, %v7324_v55  ;;  %v7322_v20 = vadd.f32 %v12743_v9, %v7165_v25  ;;  %v7176_v7 = vadd.f32 %v8885_v52, %v13425_v3 }
 0x8c7   : > { %v7167_v28 = vpop.f32.mrf.mxu0 }
 0x8c8   : > { %7451 = vst.msk [vmem:[%s12251_s23 + $0x3c0] sm:$0xff] %vm7330_vm3, %v7322_v20  ;;  %v7325_v59 = vadd.f32 %v12743_v9, %v7176_v7  ;;  %v7168_v50 = vadd.f32 %v7167_v28, %v13426_v0 }
 0x8c9   : > { %v8888_v39 = vpop.f32.mrf.mxu0 }
 0x8ca   : > { %7454 = vst.msk [vmem:[%s12251_s23 + $0x3d8] sm:$0xff] %vm7330_vm3, %v7325_v59  ;;  %v7323_v14 = vadd.f32 %v12743_v9, %v7168_v50  ;;  %v7189_v4 = vadd.f32 %v8888_v39, %v13427_v26 }
 0x8cb   : > { %v7180_v33 = vpop.f32.mrf.mxu0 }
 0x8cc   : > { %7452 = vst.msk [vmem:[%s12251_s23 + $0x3c8] sm:$0xff] %vm7330_vm3, %v7323_v14  ;;  %v7328_v24 = vadd.f32 %v12743_v9, %v7189_v4  ;;  %v7181_v32 = vadd.f32 %v7180_v33, %v13428_v34 }
 0x8cd   : > { %v8889_v21 = vpop.f32.mrf.mxu0 }
 0x8ce   : > { %7457 = vst.msk [vmem:[%s12251_s23 + $0x3f0] sm:$0xff] %vm7330_vm3, %v7328_v24  ;;  %v7326_v63 = vadd.f32 %v12743_v9, %v7181_v32  ;;  %v7192_v44 = vadd.f32 %v8889_v21, %v5294_v49 }
 0x8cf   : > { %v7183_v60 = vpop.f32.mrf.mxu0 }
 0x8d0   : > { %7455 = vst.msk [vmem:[%s12251_s23 + $0x3e0] sm:$0xff] %vm7330_vm3, %v7326_v63  ;;  %v7329_v47 = vadd.f32 %v12743_v9, %v7192_v44  ;;  %v7184_v43 = vadd.f32 %v7183_v60, %v13429_v56 }
 0x8d2   : > { %7458 = vst.msk [vmem:[%s12251_s23 + $0x3f8] sm:$0xff] %vm7330_vm3, %v7329_v47  ;;  %v7327_v8 = vadd.f32 %v12743_v9, %v7184_v43 }
 0x8d4   : > { %7456 = vst.msk [vmem:[%s12251_s23 + $0x3e8] sm:$0xff] %vm7330_vm3, %v7327_v8 }
 0x8d5 PF: > { %s21_s17 = sadd.s32 1, %s9062_s17  }
 0x8d6   : > { %p18_p4 = scmp.ge.s32.totalorder %s21_s17, 4  }
 0x8d8   :  { %20 = sbr.rel (!%p18_p4) target bundleno = 1 (0x1), region = 98 }

</bundles_post_ra>
